<compile_context>
chip_gen: v6e
topology: v6e:2x2x1
jax: 0.10.0
libtpu: 0.0.40
codegen_flags: <defaults>
</compile_context>

<pallas_src>
import math

import jax
import jax.numpy as jnp
from jax.experimental import pallas as pl
from jax.experimental.pallas import tpu as pltpu

_VMEM_LIMIT = 32 * 1024 * 1024  # safely below v7x's 64 MiB physical VMEM


def _num_tensorcores():
    """Best-effort TensorCore count (2 on v7x megacore); defaults to 1."""
    try:
        return max(1, int(getattr(jax.devices()[0], "num_cores", 1)))
    except Exception:
        return 1


# ----------------------------------------------------------------------------
# Fused transposed GEMM (+ bias | BatchNorm, + activation) kernels
#   out^T (C_out, M) = W^T (C_out, K) @ cols^T (K, M)
# ----------------------------------------------------------------------------
def _apply_act(x, act):
    if act == "relu":
        return jnp.maximum(x, 0.0)
    if act == "sigmoid":
        return jax.nn.sigmoid(x)
    return x


def _make_gemm_kernel(act, bn, eps=1e-5):
    if bn:
        # Training-mode BatchNorm2d over the lane (spatial) axis, single pass:
        # var = E[x^2] - E[x]^2 (biased), rsqrt on the EUP.  Conv bias omitted --
        # exactly cancelled by the mean subtraction.  Stats are only correct
        # because BN layers always run as ONE full block (see pallas_gemm_t).
        def kernel(w_ref, x_ref, gamma_ref, beta_ref, o_ref):
            acc = jnp.dot(w_ref[...], x_ref[...],
                          preferred_element_type=jnp.float32)      # (C_out, M)
            m = acc.shape[1]
            inv_m = 1.0 / m
            s1 = jnp.sum(acc, axis=1, keepdims=True) * inv_m        # (C_out, 1)
            s2 = jnp.sum(acc * acc, axis=1, keepdims=True) * inv_m  # (C_out, 1)
            var = jnp.maximum(s2 - s1 * s1, 0.0)
            scale = jax.lax.rsqrt(var + eps) * gamma_ref[...]       # (C_out, 1)
            acc = (acc - s1) * scale + beta_ref[...]
            o_ref[...] = _apply_act(acc, act).astype(o_ref.dtype)
    else:
        def kernel(w_ref, x_ref, bias_ref, o_ref):
            acc = jnp.dot(w_ref[...], x_ref[...],
                          preferred_element_type=jnp.float32)
            acc = acc + bias_ref[...]                               # (C_out, 1) bcast
            o_ref[...] = _apply_act(acc, act).astype(o_ref.dtype)

    return kernel


def pallas_gemm_t(w, cols_t, *, act, bn=False, bias=None, gamma=None, beta=None,
                  out_dtype=jnp.bfloat16, lane_split=1):
    """out^T = act(BN(w @ cols_t)) or act(w @ cols_t + bias), fused in one kernel.

    w:      (C_out, K) bf16 (prepared once)
    cols_t: (K, M)     bf16 transposed im2col patches (M = N*oh*ow, lane-major)
    bias/gamma/beta: (C_out, 1) f32 column vectors (prepared once)
    """
    c_out, k = w.shape
    _, m = cols_t.shape

    # BN requires a single block (batch stats over ALL rows); do NOT tile BN layers.
    if (not bn) and lane_split > 1 and m % (lane_split * 128) == 0:
        tm = m // lane_split            # one lane tile per TensorCore (v7x megacore)
        grid = (lane_split,)
        semantics = ("parallel",)
    else:
        tm = m                          # single full block (best on v5e/v6e)
        grid = (1,)
        semantics = ("arbitrary",)

    extra = (gamma, beta) if bn else (bias,)
    in_specs = ([pl.BlockSpec((c_out, k), lambda i: (0, 0)),
                 pl.BlockSpec((k, tm), lambda i: (0, i))]
                + [pl.BlockSpec((c_out, 1), lambda i: (0, 0)) for _ in extra])

    return pl.pallas_call(
        _make_gemm_kernel(act, bn),
        out_shape=jax.ShapeDtypeStruct((c_out, m), out_dtype),
        grid=grid,
        in_specs=in_specs,
        out_specs=pl.BlockSpec((c_out, tm), lambda i: (0, i)),
        compiler_params=pltpu.CompilerParams(
            dimension_semantics=semantics,
            vmem_limit_bytes=_VMEM_LIMIT),
    )(w, cols_t, *extra)


# ----------------------------------------------------------------------------
# Fused 4-layer MLP (encoder_lin + decoder_lin) -- batch rows are tiny, so all
# four Linear layers run as sequential dots inside ONE pallas_call.
# ----------------------------------------------------------------------------
def _mlp_kernel(a_ref, w1_ref, b1_ref, w2_ref, b2_ref, w3_ref, b3_ref,
                w4_ref, b4_ref, o_ref):
    h = jnp.dot(a_ref[...], w1_ref[...], preferred_element_type=jnp.float32)
    h = jnp.maximum(h + b1_ref[...], 0.0)                              # Linear+ReLU
    z = jnp.dot(h.astype(jnp.bfloat16), w2_ref[...],
                preferred_element_type=jnp.float32) + b2_ref[...]      # bottleneck
    h = jnp.dot(z.astype(jnp.bfloat16), w3_ref[...],
                preferred_element_type=jnp.float32)
    h = jnp.maximum(h + b3_ref[...], 0.0)                              # Linear+ReLU
    h = jnp.dot(h.astype(jnp.bfloat16), w4_ref[...],
                preferred_element_type=jnp.float32)
    o_ref[...] = jnp.maximum(h + b4_ref[...], 0.0).astype(o_ref.dtype)  # Linear+ReLU


def fused_mlp(x, w1, b1, w2, b2, w3, b3, w4, b4, *, out_dtype=jnp.bfloat16):
    m = x.shape[0]
    n = w4.shape[1]
    args = (x, w1, b1, w2, b2, w3, b3, w4, b4)
    return pl.pallas_call(
        _mlp_kernel,
        out_shape=jax.ShapeDtypeStruct((m, n), out_dtype),
        grid=(1,),
        in_specs=[pl.BlockSpec(a.shape, lambda i: (0, 0)) for a in args],
        out_specs=pl.BlockSpec((m, n), lambda i: (0, 0)),
        compiler_params=pltpu.CompilerParams(
            dimension_semantics=("arbitrary",),
            vmem_limit_bytes=_VMEM_LIMIT),
    )(*args)


# ----------------------------------------------------------------------------
# JAX glue: transposed im2col, zero-dilation.  Activations are (C, N, H, W).
# ----------------------------------------------------------------------------
def _im2col_t(x, kh, kw, stride, padding):
    """x: (C, N, H, W) -> (kh*kw*C, N*oh*ow) transposed patch matrix.

    Row ordering is (i, j, c) to match the prepared weight column ordering; the
    flattened spatial dim (lane-major in the kernel) is (n, y, x) row-major.
    """
    if padding > 0:
        x = jnp.pad(x, ((0, 0), (0, 0), (padding, padding), (padding, padding)))
    c, n, h, w = x.shape
    oh = (h - kh) // stride + 1
    ow = (w - kw) // stride + 1
    taps = []
    for i in range(kh):
        for j in range(kw):
            taps.append(x[:, :, i:i + stride * oh:stride, j:j + stride * ow:stride])
    cols = jnp.stack(taps, axis=0)                      # (kh*kw, C, N, oh, ow)
    cols = cols.reshape(kh * kw * c, n * oh * ow)
    return cols, oh, ow


def _dilate(x, s):
    if s == 1:
        return x
    c, n, h, w = x.shape
    out = jnp.zeros((c, n, (h - 1) * s + 1, (w - 1) * s + 1), x.dtype)
    return out.at[:, :, ::s, ::s].set(x)


def conv2d(x, wt, bias, kh, kw, *, stride, padding, act, bn=False,
           gamma=None, beta=None, out_dtype=jnp.bfloat16, lane_split=1):
    """x: (C_in, N, H, W) -> (C_out, N, oh, ow)."""
    cols_t, oh, ow = _im2col_t(x, kh, kw, stride, padding)
    y = pallas_gemm_t(wt, cols_t, act=act, bn=bn, bias=bias, gamma=gamma, beta=beta,
                      out_dtype=out_dtype, lane_split=lane_split)
    return y.reshape(wt.shape[0], x.shape[1], oh, ow)


def conv_transpose2d(x, wt, bias, kh, kw, *, stride, padding, output_padding,
                     act, bn=False, gamma=None, beta=None,
                     out_dtype=jnp.bfloat16, lane_split=1):
    """x: (C_in, N, H, W) -> (C_out, N, oh, ow) via dilation + flipped-kernel conv."""
    xd = _dilate(x, stride)
    lo = kh - 1 - padding
    hi = lo + output_padding
    xp = jnp.pad(xd, ((0, 0), (0, 0), (lo, hi), (lo, hi)))
    return conv2d(xp, wt, bias, kh, kw, stride=1, padding=0, act=act, bn=bn,
                  gamma=gamma, beta=beta, out_dtype=out_dtype, lane_split=lane_split)


# ----------------------------------------------------------------------------
# Parameters (deterministic, PyTorch-like uniform(-1/sqrt(fan_in), 1/sqrt(fan_in)))
# ----------------------------------------------------------------------------
def init_params(key, in_ch, enc_dim):
    keys = iter(jax.random.split(key, 32))

    def u(shape, fan_in):
        bound = 1.0 / math.sqrt(fan_in)
        return jax.random.uniform(next(keys), shape, jnp.float32, -bound, bound)

    p = {
        # encoder
        "ec1_w": u((8, in_ch, 3, 3), in_ch * 9), "ec1_b": u((8,), in_ch * 9),
        "ec2_w": u((16, 8, 3, 3), 8 * 9), "ec2_b": u((16,), 8 * 9),
        "ebn1_g": jnp.ones((16,), jnp.float32), "ebn1_b": jnp.zeros((16,), jnp.float32),
        "ec3_w": u((32, 16, 3, 3), 16 * 9), "ec3_b": u((32,), 16 * 9),
        "el1_w": u((128, 7 * 7 * 32), 7 * 7 * 32), "el1_b": u((128,), 7 * 7 * 32),
        "el2_w": u((enc_dim, 128), 128), "el2_b": u((enc_dim,), 128),
        # decoder
        "dl1_w": u((128, enc_dim), enc_dim), "dl1_b": u((128,), enc_dim),
        "dl2_w": u((3 * 3 * 32, 128), 128), "dl2_b": u((3 * 3 * 32,), 128),
        "dc1_w": u((32, 16, 3, 3), 16 * 9), "dc1_b": u((16,), 16 * 9),
        "dbn1_g": jnp.ones((16,), jnp.float32), "dbn1_b": jnp.zeros((16,), jnp.float32),
        "dc2_w": u((16, 8, 4, 4), 8 * 16), "dc2_b": u((8,), 8 * 16),
        "dbn2_g": jnp.ones((8,), jnp.float32), "dbn2_b": jnp.zeros((8,), jnp.float32),
        "dc3_w": u((8, 8, 4, 4), 8 * 16), "dc3_b": u((8,), 8 * 16),
        "dc4_w": u((8, in_ch, 5, 5), in_ch * 25), "dc4_b": u((in_ch,), in_ch * 25),
    }
    return p


def prepare_params(p):
    """One-time weight layout prep for the TRANSPOSED GEMM formulation.

    Weights become (C_out, kh*kw*C_in) bf16 (columns ordered (i, j, c_in));
    bias/gamma/beta become (C, 1) f32 column vectors (broadcast along lanes).
    Conv biases of BatchNorm layers are dropped (cancelled by mean subtraction).
    """
    bf = jnp.bfloat16

    def conv_wt(w):                    # (oc, ic, kh, kw) -> (oc, kh*kw*ic)
        oc, ic, kh, kw = w.shape
        return jnp.transpose(w, (0, 2, 3, 1)).reshape(oc, kh * kw * ic).astype(bf)

    def conv_t_wt(w):                  # (ic, oc, kh, kw) -> flipped (oc, kh*kw*ic)
        ic, oc, kh, kw = w.shape
        return jnp.transpose(w[:, :, ::-1, ::-1],
                             (1, 2, 3, 0)).reshape(oc, kh * kw * ic).astype(bf)

    def col(v):
        return v.reshape(-1, 1).astype(jnp.float32)

    def row(v):
        return v.reshape(1, -1).astype(jnp.float32)

    return {
        # encoder conv stack
        "ec1_w": conv_wt(p["ec1_w"]), "ec1_b": col(p["ec1_b"]),
        "ec2_w": conv_wt(p["ec2_w"]),
        "ebn1_g": col(p["ebn1_g"]), "ebn1_b": col(p["ebn1_b"]),
        "ec3_w": conv_wt(p["ec3_w"]), "ec3_b": col(p["ec3_b"]),
        # fused MLP (PyTorch Linear weight (out, in) -> (in, out))
        "mlp_w1": p["el1_w"].T.astype(bf), "mlp_b1": row(p["el1_b"]),
        "mlp_w2": p["el2_w"].T.astype(bf), "mlp_b2": row(p["el2_b"]),
        "mlp_w3": p["dl1_w"].T.astype(bf), "mlp_b3": row(p["dl1_b"]),
        "mlp_w4": p["dl2_w"].T.astype(bf), "mlp_b4": row(p["dl2_b"]),
        # decoder transposed-conv stack
        "dc1_w": conv_t_wt(p["dc1_w"]),
        "dbn1_g": col(p["dbn1_g"]), "dbn1_b": col(p["dbn1_b"]),
        "dc2_w": conv_t_wt(p["dc2_w"]),
        "dbn2_g": col(p["dbn2_g"]), "dbn2_b": col(p["dbn2_b"]),
        "dc3_w": conv_t_wt(p["dc3_w"]), "dc3_b": col(p["dc3_b"]),
        "dc4_w": conv_t_wt(p["dc4_w"]), "dc4_b": col(p["dc4_b"]),
    }


# ----------------------------------------------------------------------------
# Full forward pass (matches CNNAutoencoder.forward)
# ----------------------------------------------------------------------------
def cnn_autoencoder_forward(x_nchw, prep, *, dc4_split=1):
    n = x_nchw.shape[0]
    # NCHW -> (C, N, H, W) bf16: channels on sublanes of the GEMM, spatial on lanes.
    x = jnp.transpose(x_nchw, (1, 0, 2, 3)).astype(jnp.bfloat16)

    # ---- Encoder conv stack ----
    x = conv2d(x, prep["ec1_w"], prep["ec1_b"], 3, 3, stride=2, padding=1, act="relu")
    x = conv2d(x, prep["ec2_w"], None, 3, 3, stride=2, padding=1, act="relu",
               bn=True, gamma=prep["ebn1_g"], beta=prep["ebn1_b"])
    x = conv2d(x, prep["ec3_w"], prep["ec3_b"], 3, 3, stride=2, padding=0, act="relu")

    # ---- Flatten (PyTorch NCHW order) + fused encoder_lin / decoder_lin MLP ----
    x = jnp.transpose(x, (1, 0, 2, 3)).reshape(n, -1)          # (N, 32*7*7)
    x = fused_mlp(x,
                  prep["mlp_w1"], prep["mlp_b1"], prep["mlp_w2"], prep["mlp_b2"],
                  prep["mlp_w3"], prep["mlp_b3"], prep["mlp_w4"], prep["mlp_b4"])
    x = x.reshape(n, 32, 3, 3).transpose(1, 0, 2, 3)           # -> (32, N, 3, 3)

    # ---- Decoder transposed-conv stack ----
    x = conv_transpose2d(x, prep["dc1_w"], None, 3, 3, stride=2, padding=0,
                         output_padding=0, act="relu",
                         bn=True, gamma=prep["dbn1_g"], beta=prep["dbn1_b"])
    x = conv_transpose2d(x, prep["dc2_w"], None, 4, 4, stride=2, padding=1,
                         output_padding=1, act="relu",
                         bn=True, gamma=prep["dbn2_g"], beta=prep["dbn2_b"])
    x = conv_transpose2d(x, prep["dc3_w"], prep["dc3_b"], 4, 4, stride=2, padding=1,
                         output_padding=1, act="relu")
    x = conv_transpose2d(x, prep["dc4_w"], prep["dc4_b"], 5, 5, stride=2, padding=1,
                         output_padding=1, act="sigmoid", out_dtype=jnp.float32,
                         lane_split=dc4_split)

    return jnp.transpose(x, (1, 0, 2, 3))                      # (C, N, H, W) -> NCHW


if __name__ == "__main__":
    # Encoder expects 7x7x32 after the conv stack -> spatial input 60x60.
    in_shape = (3, 60, 60)
    encoded_space_dim = 16
    batch = 2

    key = jax.random.PRNGKey(0)
    pkey, xkey = jax.random.split(key)
    raw_params = init_params(pkey, in_shape[0], encoded_space_dim)
    prep = prepare_params(raw_params)          # one-time layout prep (hoisted)
    x = jax.random.uniform(xkey, (batch,) + in_shape, jnp.float32)

    # dc4 (M = 8192) gets one lane tile per detected TensorCore (2 on v7x, else 1).
    n_tc = _num_tensorcores()
    fwd = jax.jit(lambda inp: cnn_autoencoder_forward(inp, prep, dc4_split=n_tc))
    y = jax.block_until_ready(fwd(x))

    # ConvTranspose stack maps 3x3 -> 7 -> 15 -> 31 -> 64 (same as PyTorch).
    assert y.shape == (batch, in_shape[0], 64, 64), y.shape
    assert bool(jnp.all(jnp.isfinite(y)))
    assert bool(jnp.all((y >= 0.0) & (y <= 1.0)))  # sigmoid output
    print("KERNEL_OK")
</pallas_src>

<mosaic_0001>
module attributes {stable_mosaic.version = 11 : i64} {
  func.func @kernel(%arg0: i32, %arg1: memref<8x27xbf16, #tpu.memory_space<vmem>>, %arg2: memref<27x1800xbf16, #tpu.memory_space<vmem>>, %arg3: memref<8x1xf32, #tpu.memory_space<vmem>>, %arg4: memref<8x1800xbf16, #tpu.memory_space<vmem>>) attributes {dimension_semantics = [#tpu.dimension_semantics<arbitrary>], iteration_bounds = array<i64: 1>, scalar_prefetch = 0 : i64, scratch_operands = 0 : i64, tpu.core_type = #tpu.core_type<tc>, window_params = [{pipeline_mode = #tpu.pipeline_mode<synchronous>, transform_indices = @transform_0, window_bounds = array<i64: 8, 27>}, {transform_indices = @transform_1, window_bounds = array<i64: 27, 1800>}, {pipeline_mode = #tpu.pipeline_mode<synchronous>, transform_indices = @transform_2, window_bounds = array<i64: 8, 1>}, {transform_indices = @transform_3, window_bounds = array<i64: 8, 1800>}]} {
    %c0 = arith.constant 0 : index
    %c0_0 = arith.constant 0 : index
    %0 = vector.load %arg1[%c0, %c0_0] : memref<8x27xbf16, #tpu.memory_space<vmem>>, vector<8x27xbf16>
    %c0_1 = arith.constant 0 : index
    %c0_2 = arith.constant 0 : index
    %1 = vector.load %arg2[%c0_1, %c0_2] : memref<27x1800xbf16, #tpu.memory_space<vmem>>, vector<27x1800xbf16>
    %cst = arith.constant dense<0.000000e+00> : vector<8x1800xf32>
    %2 = tpu.matmul %0, %1, %cst {dimension_numbers = #tpu.dot_dimension_numbers<[1], [0], [0], [1], [0, 0, 1, 1], [], []>} : vector<8x27xbf16>, vector<27x1800xbf16>, vector<8x1800xf32> -> vector<8x1800xf32>
    %c0_3 = arith.constant 0 : index
    %c0_4 = arith.constant 0 : index
    %3 = vector.load %arg3[%c0_3, %c0_4] : memref<8x1xf32, #tpu.memory_space<vmem>>, vector<8x1xf32>
    %4 = vector.broadcast %3 : vector<8x1xf32> to vector<8x1800xf32>
    %5 = arith.addf %2, %4 : vector<8x1800xf32>
    %cst_5 = arith.constant 0.000000e+00 : f32
    %6 = vector.broadcast %cst_5 : f32 to vector<8x1800xf32>
    %7 = arith.maximumf %5, %6 : vector<8x1800xf32>
    %8 = arith.truncf %7 : vector<8x1800xf32> to vector<8x1800xbf16>
    %c0_6 = arith.constant 0 : index
    %c0_7 = arith.constant 0 : index
    %9 = vector.load %arg4[%c0_6, %c0_7] : memref<8x1800xbf16, #tpu.memory_space<vmem>>, vector<8x1800xbf16>
    tpu.vector_store %arg4[%c0_6, %c0_7], %8 {strides = array<i32>} : memref<8x1800xbf16, #tpu.memory_space<vmem>>, vector<8x1800xbf16>,
    return
  }
  func.func @transform_0(%arg0: i32) -> (i32, i32) {
    %c0_i32 = arith.constant 0 : i32
    %c0_i32_0 = arith.constant 0 : i32
    %c0_i32_1 = arith.constant 0 : i32
    return %c0_i32, %c0_i32_0 : i32, i32
  }
  func.func @transform_1(%arg0: i32) -> (i32, i32) {
    %c0_i32 = arith.constant 0 : i32
    %c0_i32_0 = arith.constant 0 : i32
    return %c0_i32, %arg0 : i32, i32
  }
  func.func @transform_2(%arg0: i32) -> (i32, i32) {
    %c0_i32 = arith.constant 0 : i32
    %c0_i32_0 = arith.constant 0 : i32
    %c0_i32_1 = arith.constant 0 : i32
    return %c0_i32, %c0_i32_0 : i32, i32
  }
  func.func @transform_3(%arg0: i32) -> (i32, i32) {
    %c0_i32 = arith.constant 0 : i32
    %c0_i32_0 = arith.constant 0 : i32
    return %c0_i32, %arg0 : i32, i32
  }
}

module attributes {stable_mosaic.version = 11 : i64} {
  func.func @kernel(%arg0: i32, %arg1: memref<16x72xbf16, #tpu.memory_space<vmem>>, %arg2: memref<72x450xbf16, #tpu.memory_space<vmem>>, %arg3: memref<16x1xf32, #tpu.memory_space<vmem>>, %arg4: memref<16x1xf32, #tpu.memory_space<vmem>>, %arg5: memref<16x450xbf16, #tpu.memory_space<vmem>>) attributes {dimension_semantics = [#tpu.dimension_semantics<arbitrary>], iteration_bounds = array<i64: 1>, scalar_prefetch = 0 : i64, scratch_operands = 0 : i64, tpu.core_type = #tpu.core_type<tc>, window_params = [{pipeline_mode = #tpu.pipeline_mode<synchronous>, transform_indices = @transform_0, window_bounds = array<i64: 16, 72>}, {transform_indices = @transform_1, window_bounds = array<i64: 72, 450>}, {pipeline_mode = #tpu.pipeline_mode<synchronous>, transform_indices = @transform_2, window_bounds = array<i64: 16, 1>}, {pipeline_mode = #tpu.pipeline_mode<synchronous>, transform_indices = @transform_3, window_bounds = array<i64: 16, 1>}, {transform_indices = @transform_4, window_bounds = array<i64: 16, 450>}]} {
    %c0 = arith.constant 0 : index
    %c0_0 = arith.constant 0 : index
    %0 = vector.load %arg1[%c0, %c0_0] : memref<16x72xbf16, #tpu.memory_space<vmem>>, vector<16x72xbf16>
    %c0_1 = arith.constant 0 : index
    %c0_2 = arith.constant 0 : index
    %1 = vector.load %arg2[%c0_1, %c0_2] : memref<72x450xbf16, #tpu.memory_space<vmem>>, vector<72x450xbf16>
    %cst = arith.constant dense<0.000000e+00> : vector<16x450xf32>
    %2 = tpu.matmul %0, %1, %cst {dimension_numbers = #tpu.dot_dimension_numbers<[1], [0], [0], [1], [0, 0, 1, 1], [], []>} : vector<16x72xbf16>, vector<72x450xbf16>, vector<16x450xf32> -> vector<16x450xf32>
    %cst_3 = arith.constant dense<0.000000e+00> : vector<16xf32>
    %3 = vector.multi_reduction <add>, %2, %cst_3 [1] : vector<16x450xf32> to vector<16xf32>
    %4 = vector.shape_cast %3 : vector<16xf32> to vector<16x1xf32>
    %cst_4 = arith.constant 0.00222222228 : f32
    %5 = vector.broadcast %cst_4 : f32 to vector<16x1xf32>
    %6 = arith.mulf %4, %5 : vector<16x1xf32>
    %7 = arith.mulf %2, %2 : vector<16x450xf32>
    %cst_5 = arith.constant dense<0.000000e+00> : vector<16xf32>
    %8 = vector.multi_reduction <add>, %7, %cst_5 [1] : vector<16x450xf32> to vector<16xf32>
    %9 = vector.shape_cast %8 : vector<16xf32> to vector<16x1xf32>
    %cst_6 = arith.constant 0.00222222228 : f32
    %10 = vector.broadcast %cst_6 : f32 to vector<16x1xf32>
    %11 = arith.mulf %9, %10 : vector<16x1xf32>
    %12 = arith.mulf %6, %6 : vector<16x1xf32>
    %13 = arith.subf %11, %12 : vector<16x1xf32>
    %cst_7 = arith.constant 0.000000e+00 : f32
    %14 = vector.broadcast %cst_7 : f32 to vector<16x1xf32>
    %15 = arith.maximumf %13, %14 : vector<16x1xf32>
    %cst_8 = arith.constant 9.99999974E-6 : f32
    %16 = vector.broadcast %cst_8 : f32 to vector<16x1xf32>
    %17 = arith.addf %15, %16 : vector<16x1xf32>
    %18 = math.rsqrt %17 : vector<16x1xf32>
    %c0_9 = arith.constant 0 : index
    %c0_10 = arith.constant 0 : index
    %19 = vector.load %arg3[%c0_9, %c0_10] : memref<16x1xf32, #tpu.memory_space<vmem>>, vector<16x1xf32>
    %20 = arith.mulf %18, %19 : vector<16x1xf32>
    %21 = vector.broadcast %6 : vector<16x1xf32> to vector<16x450xf32>
    %22 = arith.subf %2, %21 : vector<16x450xf32>
    %23 = vector.broadcast %20 : vector<16x1xf32> to vector<16x450xf32>
    %24 = arith.mulf %22, %23 : vector<16x450xf32>
    %c0_11 = arith.constant 0 : index
    %c0_12 = arith.constant 0 : index
    %25 = vector.load %arg4[%c0_11, %c0_12] : memref<16x1xf32, #tpu.memory_space<vmem>>, vector<16x1xf32>
    %26 = vector.broadcast %25 : vector<16x1xf32> to vector<16x450xf32>
    %27 = arith.addf %24, %26 : vector<16x450xf32>
    %cst_13 = arith.constant 0.000000e+00 : f32
    %28 = vector.broadcast %cst_13 : f32 to vector<16x450xf32>
    %29 = arith.maximumf %27, %28 : vector<16x450xf32>
    %30 = arith.truncf %29 : vector<16x450xf32> to vector<16x450xbf16>
    %c0_14 = arith.constant 0 : index
    %c0_15 = arith.constant 0 : index
    %31 = vector.load %arg5[%c0_14, %c0_15] : memref<16x450xbf16, #tpu.memory_space<vmem>>, vector<16x450xbf16>
    tpu.vector_store %arg5[%c0_14, %c0_15], %30 {strides = array<i32>} : memref<16x450xbf16, #tpu.memory_space<vmem>>, vector<16x450xbf16>,
    return
  }
  func.func @transform_0(%arg0: i32) -> (i32, i32) {
    %c0_i32 = arith.constant 0 : i32
    %c0_i32_0 = arith.constant 0 : i32
    %c0_i32_1 = arith.constant 0 : i32
    return %c0_i32, %c0_i32_0 : i32, i32
  }
  func.func @transform_1(%arg0: i32) -> (i32, i32) {
    %c0_i32 = arith.constant 0 : i32
    %c0_i32_0 = arith.constant 0 : i32
    return %c0_i32, %arg0 : i32, i32
  }
  func.func @transform_2(%arg0: i32) -> (i32, i32) {
    %c0_i32 = arith.constant 0 : i32
    %c0_i32_0 = arith.constant 0 : i32
    %c0_i32_1 = arith.constant 0 : i32
    return %c0_i32, %c0_i32_0 : i32, i32
  }
  func.func @transform_3(%arg0: i32) -> (i32, i32) {
    %c0_i32 = arith.constant 0 : i32
    %c0_i32_0 = arith.constant 0 : i32
    %c0_i32_1 = arith.constant 0 : i32
    return %c0_i32, %c0_i32_0 : i32, i32
  }
  func.func @transform_4(%arg0: i32) -> (i32, i32) {
    %c0_i32 = arith.constant 0 : i32
    %c0_i32_0 = arith.constant 0 : i32
    return %c0_i32, %arg0 : i32, i32
  }
}

module attributes {stable_mosaic.version = 11 : i64} {
  func.func @kernel(%arg0: i32, %arg1: memref<32x144xbf16, #tpu.memory_space<vmem>>, %arg2: memref<144x98xbf16, #tpu.memory_space<vmem>>, %arg3: memref<32x1xf32, #tpu.memory_space<vmem>>, %arg4: memref<32x98xbf16, #tpu.memory_space<vmem>>) attributes {dimension_semantics = [#tpu.dimension_semantics<arbitrary>], iteration_bounds = array<i64: 1>, scalar_prefetch = 0 : i64, scratch_operands = 0 : i64, tpu.core_type = #tpu.core_type<tc>, window_params = [{pipeline_mode = #tpu.pipeline_mode<synchronous>, transform_indices = @transform_0, window_bounds = array<i64: 32, 144>}, {transform_indices = @transform_1, window_bounds = array<i64: 144, 98>}, {pipeline_mode = #tpu.pipeline_mode<synchronous>, transform_indices = @transform_2, window_bounds = array<i64: 32, 1>}, {transform_indices = @transform_3, window_bounds = array<i64: 32, 98>}]} {
    %c0 = arith.constant 0 : index
    %c0_0 = arith.constant 0 : index
    %0 = vector.load %arg1[%c0, %c0_0] : memref<32x144xbf16, #tpu.memory_space<vmem>>, vector<32x144xbf16>
    %c0_1 = arith.constant 0 : index
    %c0_2 = arith.constant 0 : index
    %1 = vector.load %arg2[%c0_1, %c0_2] : memref<144x98xbf16, #tpu.memory_space<vmem>>, vector<144x98xbf16>
    %cst = arith.constant dense<0.000000e+00> : vector<32x98xf32>
    %2 = tpu.matmul %0, %1, %cst {dimension_numbers = #tpu.dot_dimension_numbers<[1], [0], [0], [1], [0, 0, 1, 1], [], []>} : vector<32x144xbf16>, vector<144x98xbf16>, vector<32x98xf32> -> vector<32x98xf32>
    %c0_3 = arith.constant 0 : index
    %c0_4 = arith.constant 0 : index
    %3 = vector.load %arg3[%c0_3, %c0_4] : memref<32x1xf32, #tpu.memory_space<vmem>>, vector<32x1xf32>
    %4 = vector.broadcast %3 : vector<32x1xf32> to vector<32x98xf32>
    %5 = arith.addf %2, %4 : vector<32x98xf32>
    %cst_5 = arith.constant 0.000000e+00 : f32
    %6 = vector.broadcast %cst_5 : f32 to vector<32x98xf32>
    %7 = arith.maximumf %5, %6 : vector<32x98xf32>
    %8 = arith.truncf %7 : vector<32x98xf32> to vector<32x98xbf16>
    %c0_6 = arith.constant 0 : index
    %c0_7 = arith.constant 0 : index
    %9 = vector.load %arg4[%c0_6, %c0_7] : memref<32x98xbf16, #tpu.memory_space<vmem>>, vector<32x98xbf16>
    tpu.vector_store %arg4[%c0_6, %c0_7], %8 {strides = array<i32>} : memref<32x98xbf16, #tpu.memory_space<vmem>>, vector<32x98xbf16>,
    return
  }
  func.func @transform_0(%arg0: i32) -> (i32, i32) {
    %c0_i32 = arith.constant 0 : i32
    %c0_i32_0 = arith.constant 0 : i32
    %c0_i32_1 = arith.constant 0 : i32
    return %c0_i32, %c0_i32_0 : i32, i32
  }
  func.func @transform_1(%arg0: i32) -> (i32, i32) {
    %c0_i32 = arith.constant 0 : i32
    %c0_i32_0 = arith.constant 0 : i32
    return %c0_i32, %arg0 : i32, i32
  }
  func.func @transform_2(%arg0: i32) -> (i32, i32) {
    %c0_i32 = arith.constant 0 : i32
    %c0_i32_0 = arith.constant 0 : i32
    %c0_i32_1 = arith.constant 0 : i32
    return %c0_i32, %c0_i32_0 : i32, i32
  }
  func.func @transform_3(%arg0: i32) -> (i32, i32) {
    %c0_i32 = arith.constant 0 : i32
    %c0_i32_0 = arith.constant 0 : i32
    return %c0_i32, %arg0 : i32, i32
  }
}

module attributes {stable_mosaic.version = 11 : i64} {
  func.func @_mlp_kernel(%arg0: i32, %arg1: memref<2x1568xbf16, #tpu.memory_space<vmem>>, %arg2: memref<1568x128xbf16, #tpu.memory_space<vmem>>, %arg3: memref<1x128xf32, #tpu.memory_space<vmem>>, %arg4: memref<128x16xbf16, #tpu.memory_space<vmem>>, %arg5: memref<1x16xf32, #tpu.memory_space<vmem>>, %arg6: memref<16x128xbf16, #tpu.memory_space<vmem>>, %arg7: memref<1x128xf32, #tpu.memory_space<vmem>>, %arg8: memref<128x288xbf16, #tpu.memory_space<vmem>>, %arg9: memref<1x288xf32, #tpu.memory_space<vmem>>, %arg10: memref<2x288xbf16, #tpu.memory_space<vmem>>) attributes {dimension_semantics = [#tpu.dimension_semantics<arbitrary>], iteration_bounds = array<i64: 1>, scalar_prefetch = 0 : i64, scratch_operands = 0 : i64, tpu.core_type = #tpu.core_type<tc>, window_params = [{pipeline_mode = #tpu.pipeline_mode<synchronous>, transform_indices = @transform_0, window_bounds = array<i64: 2, 1568>}, {pipeline_mode = #tpu.pipeline_mode<synchronous>, transform_indices = @transform_1, window_bounds = array<i64: 1568, 128>}, {pipeline_mode = #tpu.pipeline_mode<synchronous>, transform_indices = @transform_2, window_bounds = array<i64: 1, 128>}, {pipeline_mode = #tpu.pipeline_mode<synchronous>, transform_indices = @transform_3, window_bounds = array<i64: 128, 16>}, {pipeline_mode = #tpu.pipeline_mode<synchronous>, transform_indices = @transform_4, window_bounds = array<i64: 1, 16>}, {pipeline_mode = #tpu.pipeline_mode<synchronous>, transform_indices = @transform_5, window_bounds = array<i64: 16, 128>}, {pipeline_mode = #tpu.pipeline_mode<synchronous>, transform_indices = @transform_6, window_bounds = array<i64: 1, 128>}, {pipeline_mode = #tpu.pipeline_mode<synchronous>, transform_indices = @transform_7, window_bounds = array<i64: 128, 288>}, {pipeline_mode = #tpu.pipeline_mode<synchronous>, transform_indices = @transform_8, window_bounds = array<i64: 1, 288>}, {pipeline_mode = #tpu.pipeline_mode<synchronous>, transform_indices = @transform_9, window_bounds = array<i64: 2, 288>}]} {
    %c0 = arith.constant 0 : index
    %c0_0 = arith.constant 0 : index
    %0 = vector.load %arg1[%c0, %c0_0] : memref<2x1568xbf16, #tpu.memory_space<vmem>>, vector<2x1568xbf16>
    %c0_1 = arith.constant 0 : index
    %c0_2 = arith.constant 0 : index
    %1 = vector.load %arg2[%c0_1, %c0_2] : memref<1568x128xbf16, #tpu.memory_space<vmem>>, vector<1568x128xbf16>
    %cst = arith.constant dense<0.000000e+00> : vector<2x128xf32>
    %2 = tpu.matmul %0, %1, %cst {dimension_numbers = #tpu.dot_dimension_numbers<[1], [0], [0], [1], [0, 0, 1, 1], [], []>} : vector<2x1568xbf16>, vector<1568x128xbf16>, vector<2x128xf32> -> vector<2x128xf32>
    %c0_3 = arith.constant 0 : index
    %c0_4 = arith.constant 0 : index
    %3 = vector.load %arg3[%c0_3, %c0_4] : memref<1x128xf32, #tpu.memory_space<vmem>>, vector<1x128xf32>
    %4 = vector.broadcast %3 : vector<1x128xf32> to vector<2x128xf32>
    %5 = arith.addf %2, %4 : vector<2x128xf32>
    %cst_5 = arith.constant 0.000000e+00 : f32
    %6 = vector.broadcast %cst_5 : f32 to vector<2x128xf32>
    %7 = arith.maximumf %5, %6 : vector<2x128xf32>
    %8 = arith.truncf %7 : vector<2x128xf32> to vector<2x128xbf16>
    %c0_6 = arith.constant 0 : index
    %c0_7 = arith.constant 0 : index
    %9 = vector.load %arg4[%c0_6, %c0_7] : memref<128x16xbf16, #tpu.memory_space<vmem>>, vector<128x16xbf16>
    %cst_8 = arith.constant dense<0.000000e+00> : vector<2x16xf32>
    %10 = tpu.matmul %8, %9, %cst_8 {dimension_numbers = #tpu.dot_dimension_numbers<[1], [0], [0], [1], [0, 0, 1, 1], [], []>} : vector<2x128xbf16>, vector<128x16xbf16>, vector<2x16xf32> -> vector<2x16xf32>
    %c0_9 = arith.constant 0 : index
    %c0_10 = arith.constant 0 : index
    %11 = vector.load %arg5[%c0_9, %c0_10] : memref<1x16xf32, #tpu.memory_space<vmem>>, vector<1x16xf32>
    %12 = vector.broadcast %11 : vector<1x16xf32> to vector<2x16xf32>
    %13 = arith.addf %10, %12 : vector<2x16xf32>
    %14 = arith.truncf %13 : vector<2x16xf32> to vector<2x16xbf16>
    %c0_11 = arith.constant 0 : index
    %c0_12 = arith.constant 0 : index
    %15 = vector.load %arg6[%c0_11, %c0_12] : memref<16x128xbf16, #tpu.memory_space<vmem>>, vector<16x128xbf16>
    %cst_13 = arith.constant dense<0.000000e+00> : vector<2x128xf32>
    %16 = tpu.matmul %14, %15, %cst_13 {dimension_numbers = #tpu.dot_dimension_numbers<[1], [0], [0], [1], [0, 0, 1, 1], [], []>} : vector<2x16xbf16>, vector<16x128xbf16>, vector<2x128xf32> -> vector<2x128xf32>
    %c0_14 = arith.constant 0 : index
    %c0_15 = arith.constant 0 : index
    %17 = vector.load %arg7[%c0_14, %c0_15] : memref<1x128xf32, #tpu.memory_space<vmem>>, vector<1x128xf32>
    %18 = vector.broadcast %17 : vector<1x128xf32> to vector<2x128xf32>
    %19 = arith.addf %16, %18 : vector<2x128xf32>
    %cst_16 = arith.constant 0.000000e+00 : f32
    %20 = vector.broadcast %cst_16 : f32 to vector<2x128xf32>
    %21 = arith.maximumf %19, %20 : vector<2x128xf32>
    %22 = arith.truncf %21 : vector<2x128xf32> to vector<2x128xbf16>
    %c0_17 = arith.constant 0 : index
    %c0_18 = arith.constant 0 : index
    %23 = vector.load %arg8[%c0_17, %c0_18] : memref<128x288xbf16, #tpu.memory_space<vmem>>, vector<128x288xbf16>
    %cst_19 = arith.constant dense<0.000000e+00> : vector<2x288xf32>
    %24 = tpu.matmul %22, %23, %cst_19 {dimension_numbers = #tpu.dot_dimension_numbers<[1], [0], [0], [1], [0, 0, 1, 1], [], []>} : vector<2x128xbf16>, vector<128x288xbf16>, vector<2x288xf32> -> vector<2x288xf32>
    %c0_20 = arith.constant 0 : index
    %c0_21 = arith.constant 0 : index
    %25 = vector.load %arg9[%c0_20, %c0_21] : memref<1x288xf32, #tpu.memory_space<vmem>>, vector<1x288xf32>
    %26 = vector.broadcast %25 : vector<1x288xf32> to vector<2x288xf32>
    %27 = arith.addf %24, %26 : vector<2x288xf32>
    %cst_22 = arith.constant 0.000000e+00 : f32
    %28 = vector.broadcast %cst_22 : f32 to vector<2x288xf32>
    %29 = arith.maximumf %27, %28 : vector<2x288xf32>
    %30 = arith.truncf %29 : vector<2x288xf32> to vector<2x288xbf16>
    %c0_23 = arith.constant 0 : index
    %c0_24 = arith.constant 0 : index
    %31 = vector.load %arg10[%c0_23, %c0_24] : memref<2x288xbf16, #tpu.memory_space<vmem>>, vector<2x288xbf16>
    tpu.vector_store %arg10[%c0_23, %c0_24], %30 {strides = array<i32>} : memref<2x288xbf16, #tpu.memory_space<vmem>>, vector<2x288xbf16>,
    return
  }
  func.func @transform_0(%arg0: i32) -> (i32, i32) {
    %c0_i32 = arith.constant 0 : i32
    %c0_i32_0 = arith.constant 0 : i32
    %c0_i32_1 = arith.constant 0 : i32
    return %c0_i32, %c0_i32_0 : i32, i32
  }
  func.func @transform_1(%arg0: i32) -> (i32, i32) {
    %c0_i32 = arith.constant 0 : i32
    %c0_i32_0 = arith.constant 0 : i32
    %c0_i32_1 = arith.constant 0 : i32
    return %c0_i32, %c0_i32_0 : i32, i32
  }
  func.func @transform_2(%arg0: i32) -> (i32, i32) {
    %c0_i32 = arith.constant 0 : i32
    %c0_i32_0 = arith.constant 0 : i32
    %c0_i32_1 = arith.constant 0 : i32
    return %c0_i32, %c0_i32_0 : i32, i32
  }
  func.func @transform_3(%arg0: i32) -> (i32, i32) {
    %c0_i32 = arith.constant 0 : i32
    %c0_i32_0 = arith.constant 0 : i32
    %c0_i32_1 = arith.constant 0 : i32
    return %c0_i32, %c0_i32_0 : i32, i32
  }
  func.func @transform_4(%arg0: i32) -> (i32, i32) {
    %c0_i32 = arith.constant 0 : i32
    %c0_i32_0 = arith.constant 0 : i32
    %c0_i32_1 = arith.constant 0 : i32
    return %c0_i32, %c0_i32_0 : i32, i32
  }
  func.func @transform_5(%arg0: i32) -> (i32, i32) {
    %c0_i32 = arith.constant 0 : i32
    %c0_i32_0 = arith.constant 0 : i32
    %c0_i32_1 = arith.constant 0 : i32
    return %c0_i32, %c0_i32_0 : i32, i32
  }
  func.func @transform_6(%arg0: i32) -> (i32, i32) {
    %c0_i32 = arith.constant 0 : i32
    %c0_i32_0 = arith.constant 0 : i32
    %c0_i32_1 = arith.constant 0 : i32
    return %c0_i32, %c0_i32_0 : i32, i32
  }
  func.func @transform_7(%arg0: i32) -> (i32, i32) {
    %c0_i32 = arith.constant 0 : i32
    %c0_i32_0 = arith.constant 0 : i32
    %c0_i32_1 = arith.constant 0 : i32
    return %c0_i32, %c0_i32_0 : i32, i32
  }
  func.func @transform_8(%arg0: i32) -> (i32, i32) {
    %c0_i32 = arith.constant 0 : i32
    %c0_i32_0 = arith.constant 0 : i32
    %c0_i32_1 = arith.constant 0 : i32
    return %c0_i32, %c0_i32_0 : i32, i32
  }
  func.func @transform_9(%arg0: i32) -> (i32, i32) {
    %c0_i32 = arith.constant 0 : i32
    %c0_i32_0 = arith.constant 0 : i32
    %c0_i32_1 = arith.constant 0 : i32
    return %c0_i32, %c0_i32_0 : i32, i32
  }
}

module attributes {stable_mosaic.version = 11 : i64} {
  func.func @kernel(%arg0: i32, %arg1: memref<16x288xbf16, #tpu.memory_space<vmem>>, %arg2: memref<288x98xbf16, #tpu.memory_space<vmem>>, %arg3: memref<16x1xf32, #tpu.memory_space<vmem>>, %arg4: memref<16x1xf32, #tpu.memory_space<vmem>>, %arg5: memref<16x98xbf16, #tpu.memory_space<vmem>>) attributes {dimension_semantics = [#tpu.dimension_semantics<arbitrary>], iteration_bounds = array<i64: 1>, scalar_prefetch = 0 : i64, scratch_operands = 0 : i64, tpu.core_type = #tpu.core_type<tc>, window_params = [{pipeline_mode = #tpu.pipeline_mode<synchronous>, transform_indices = @transform_0, window_bounds = array<i64: 16, 288>}, {transform_indices = @transform_1, window_bounds = array<i64: 288, 98>}, {pipeline_mode = #tpu.pipeline_mode<synchronous>, transform_indices = @transform_2, window_bounds = array<i64: 16, 1>}, {pipeline_mode = #tpu.pipeline_mode<synchronous>, transform_indices = @transform_3, window_bounds = array<i64: 16, 1>}, {transform_indices = @transform_4, window_bounds = array<i64: 16, 98>}]} {
    %c0 = arith.constant 0 : index
    %c0_0 = arith.constant 0 : index
    %0 = vector.load %arg1[%c0, %c0_0] : memref<16x288xbf16, #tpu.memory_space<vmem>>, vector<16x288xbf16>
    %c0_1 = arith.constant 0 : index
    %c0_2 = arith.constant 0 : index
    %1 = vector.load %arg2[%c0_1, %c0_2] : memref<288x98xbf16, #tpu.memory_space<vmem>>, vector<288x98xbf16>
    %cst = arith.constant dense<0.000000e+00> : vector<16x98xf32>
    %2 = tpu.matmul %0, %1, %cst {dimension_numbers = #tpu.dot_dimension_numbers<[1], [0], [0], [1], [0, 0, 1, 1], [], []>} : vector<16x288xbf16>, vector<288x98xbf16>, vector<16x98xf32> -> vector<16x98xf32>
    %cst_3 = arith.constant dense<0.000000e+00> : vector<16xf32>
    %3 = vector.multi_reduction <add>, %2, %cst_3 [1] : vector<16x98xf32> to vector<16xf32>
    %4 = vector.shape_cast %3 : vector<16xf32> to vector<16x1xf32>
    %cst_4 = arith.constant 0.0102040814 : f32
    %5 = vector.broadcast %cst_4 : f32 to vector<16x1xf32>
    %6 = arith.mulf %4, %5 : vector<16x1xf32>
    %7 = arith.mulf %2, %2 : vector<16x98xf32>
    %cst_5 = arith.constant dense<0.000000e+00> : vector<16xf32>
    %8 = vector.multi_reduction <add>, %7, %cst_5 [1] : vector<16x98xf32> to vector<16xf32>
    %9 = vector.shape_cast %8 : vector<16xf32> to vector<16x1xf32>
    %cst_6 = arith.constant 0.0102040814 : f32
    %10 = vector.broadcast %cst_6 : f32 to vector<16x1xf32>
    %11 = arith.mulf %9, %10 : vector<16x1xf32>
    %12 = arith.mulf %6, %6 : vector<16x1xf32>
    %13 = arith.subf %11, %12 : vector<16x1xf32>
    %cst_7 = arith.constant 0.000000e+00 : f32
    %14 = vector.broadcast %cst_7 : f32 to vector<16x1xf32>
    %15 = arith.maximumf %13, %14 : vector<16x1xf32>
    %cst_8 = arith.constant 9.99999974E-6 : f32
    %16 = vector.broadcast %cst_8 : f32 to vector<16x1xf32>
    %17 = arith.addf %15, %16 : vector<16x1xf32>
    %18 = math.rsqrt %17 : vector<16x1xf32>
    %c0_9 = arith.constant 0 : index
    %c0_10 = arith.constant 0 : index
    %19 = vector.load %arg3[%c0_9, %c0_10] : memref<16x1xf32, #tpu.memory_space<vmem>>, vector<16x1xf32>
    %20 = arith.mulf %18, %19 : vector<16x1xf32>
    %21 = vector.broadcast %6 : vector<16x1xf32> to vector<16x98xf32>
    %22 = arith.subf %2, %21 : vector<16x98xf32>
    %23 = vector.broadcast %20 : vector<16x1xf32> to vector<16x98xf32>
    %24 = arith.mulf %22, %23 : vector<16x98xf32>
    %c0_11 = arith.constant 0 : index
    %c0_12 = arith.constant 0 : index
    %25 = vector.load %arg4[%c0_11, %c0_12] : memref<16x1xf32, #tpu.memory_space<vmem>>, vector<16x1xf32>
    %26 = vector.broadcast %25 : vector<16x1xf32> to vector<16x98xf32>
    %27 = arith.addf %24, %26 : vector<16x98xf32>
    %cst_13 = arith.constant 0.000000e+00 : f32
    %28 = vector.broadcast %cst_13 : f32 to vector<16x98xf32>
    %29 = arith.maximumf %27, %28 : vector<16x98xf32>
    %30 = arith.truncf %29 : vector<16x98xf32> to vector<16x98xbf16>
    %c0_14 = arith.constant 0 : index
    %c0_15 = arith.constant 0 : index
    %31 = vector.load %arg5[%c0_14, %c0_15] : memref<16x98xbf16, #tpu.memory_space<vmem>>, vector<16x98xbf16>
    tpu.vector_store %arg5[%c0_14, %c0_15], %30 {strides = array<i32>} : memref<16x98xbf16, #tpu.memory_space<vmem>>, vector<16x98xbf16>,
    return
  }
  func.func @transform_0(%arg0: i32) -> (i32, i32) {
    %c0_i32 = arith.constant 0 : i32
    %c0_i32_0 = arith.constant 0 : i32
    %c0_i32_1 = arith.constant 0 : i32
    return %c0_i32, %c0_i32_0 : i32, i32
  }
  func.func @transform_1(%arg0: i32) -> (i32, i32) {
    %c0_i32 = arith.constant 0 : i32
    %c0_i32_0 = arith.constant 0 : i32
    return %c0_i32, %arg0 : i32, i32
  }
  func.func @transform_2(%arg0: i32) -> (i32, i32) {
    %c0_i32 = arith.constant 0 : i32
    %c0_i32_0 = arith.constant 0 : i32
    %c0_i32_1 = arith.constant 0 : i32
    return %c0_i32, %c0_i32_0 : i32, i32
  }
  func.func @transform_3(%arg0: i32) -> (i32, i32) {
    %c0_i32 = arith.constant 0 : i32
    %c0_i32_0 = arith.constant 0 : i32
    %c0_i32_1 = arith.constant 0 : i32
    return %c0_i32, %c0_i32_0 : i32, i32
  }
  func.func @transform_4(%arg0: i32) -> (i32, i32) {
    %c0_i32 = arith.constant 0 : i32
    %c0_i32_0 = arith.constant 0 : i32
    return %c0_i32, %arg0 : i32, i32
  }
}

module attributes {stable_mosaic.version = 11 : i64} {
  func.func @kernel(%arg0: i32, %arg1: memref<8x256xbf16, #tpu.memory_space<vmem>>, %arg2: memref<256x450xbf16, #tpu.memory_space<vmem>>, %arg3: memref<8x1xf32, #tpu.memory_space<vmem>>, %arg4: memref<8x1xf32, #tpu.memory_space<vmem>>, %arg5: memref<8x450xbf16, #tpu.memory_space<vmem>>) attributes {dimension_semantics = [#tpu.dimension_semantics<arbitrary>], iteration_bounds = array<i64: 1>, scalar_prefetch = 0 : i64, scratch_operands = 0 : i64, tpu.core_type = #tpu.core_type<tc>, window_params = [{pipeline_mode = #tpu.pipeline_mode<synchronous>, transform_indices = @transform_0, window_bounds = array<i64: 8, 256>}, {transform_indices = @transform_1, window_bounds = array<i64: 256, 450>}, {pipeline_mode = #tpu.pipeline_mode<synchronous>, transform_indices = @transform_2, window_bounds = array<i64: 8, 1>}, {pipeline_mode = #tpu.pipeline_mode<synchronous>, transform_indices = @transform_3, window_bounds = array<i64: 8, 1>}, {transform_indices = @transform_4, window_bounds = array<i64: 8, 450>}]} {
    %c0 = arith.constant 0 : index
    %c0_0 = arith.constant 0 : index
    %0 = vector.load %arg1[%c0, %c0_0] : memref<8x256xbf16, #tpu.memory_space<vmem>>, vector<8x256xbf16>
    %c0_1 = arith.constant 0 : index
    %c0_2 = arith.constant 0 : index
    %1 = vector.load %arg2[%c0_1, %c0_2] : memref<256x450xbf16, #tpu.memory_space<vmem>>, vector<256x450xbf16>
    %cst = arith.constant dense<0.000000e+00> : vector<8x450xf32>
    %2 = tpu.matmul %0, %1, %cst {dimension_numbers = #tpu.dot_dimension_numbers<[1], [0], [0], [1], [0, 0, 1, 1], [], []>} : vector<8x256xbf16>, vector<256x450xbf16>, vector<8x450xf32> -> vector<8x450xf32>
    %cst_3 = arith.constant dense<0.000000e+00> : vector<8xf32>
    %3 = vector.multi_reduction <add>, %2, %cst_3 [1] : vector<8x450xf32> to vector<8xf32>
    %4 = vector.shape_cast %3 : vector<8xf32> to vector<8x1xf32>
    %cst_4 = arith.constant 0.00222222228 : f32
    %5 = vector.broadcast %cst_4 : f32 to vector<8x1xf32>
    %6 = arith.mulf %4, %5 : vector<8x1xf32>
    %7 = arith.mulf %2, %2 : vector<8x450xf32>
    %cst_5 = arith.constant dense<0.000000e+00> : vector<8xf32>
    %8 = vector.multi_reduction <add>, %7, %cst_5 [1] : vector<8x450xf32> to vector<8xf32>
    %9 = vector.shape_cast %8 : vector<8xf32> to vector<8x1xf32>
    %cst_6 = arith.constant 0.00222222228 : f32
    %10 = vector.broadcast %cst_6 : f32 to vector<8x1xf32>
    %11 = arith.mulf %9, %10 : vector<8x1xf32>
    %12 = arith.mulf %6, %6 : vector<8x1xf32>
    %13 = arith.subf %11, %12 : vector<8x1xf32>
    %cst_7 = arith.constant 0.000000e+00 : f32
    %14 = vector.broadcast %cst_7 : f32 to vector<8x1xf32>
    %15 = arith.maximumf %13, %14 : vector<8x1xf32>
    %cst_8 = arith.constant 9.99999974E-6 : f32
    %16 = vector.broadcast %cst_8 : f32 to vector<8x1xf32>
    %17 = arith.addf %15, %16 : vector<8x1xf32>
    %18 = math.rsqrt %17 : vector<8x1xf32>
    %c0_9 = arith.constant 0 : index
    %c0_10 = arith.constant 0 : index
    %19 = vector.load %arg3[%c0_9, %c0_10] : memref<8x1xf32, #tpu.memory_space<vmem>>, vector<8x1xf32>
    %20 = arith.mulf %18, %19 : vector<8x1xf32>
    %21 = vector.broadcast %6 : vector<8x1xf32> to vector<8x450xf32>
    %22 = arith.subf %2, %21 : vector<8x450xf32>
    %23 = vector.broadcast %20 : vector<8x1xf32> to vector<8x450xf32>
    %24 = arith.mulf %22, %23 : vector<8x450xf32>
    %c0_11 = arith.constant 0 : index
    %c0_12 = arith.constant 0 : index
    %25 = vector.load %arg4[%c0_11, %c0_12] : memref<8x1xf32, #tpu.memory_space<vmem>>, vector<8x1xf32>
    %26 = vector.broadcast %25 : vector<8x1xf32> to vector<8x450xf32>
    %27 = arith.addf %24, %26 : vector<8x450xf32>
    %cst_13 = arith.constant 0.000000e+00 : f32
    %28 = vector.broadcast %cst_13 : f32 to vector<8x450xf32>
    %29 = arith.maximumf %27, %28 : vector<8x450xf32>
    %30 = arith.truncf %29 : vector<8x450xf32> to vector<8x450xbf16>
    %c0_14 = arith.constant 0 : index
    %c0_15 = arith.constant 0 : index
    %31 = vector.load %arg5[%c0_14, %c0_15] : memref<8x450xbf16, #tpu.memory_space<vmem>>, vector<8x450xbf16>
    tpu.vector_store %arg5[%c0_14, %c0_15], %30 {strides = array<i32>} : memref<8x450xbf16, #tpu.memory_space<vmem>>, vector<8x450xbf16>,
    return
  }
  func.func @transform_0(%arg0: i32) -> (i32, i32) {
    %c0_i32 = arith.constant 0 : i32
    %c0_i32_0 = arith.constant 0 : i32
    %c0_i32_1 = arith.constant 0 : i32
    return %c0_i32, %c0_i32_0 : i32, i32
  }
  func.func @transform_1(%arg0: i32) -> (i32, i32) {
    %c0_i32 = arith.constant 0 : i32
    %c0_i32_0 = arith.constant 0 : i32
    return %c0_i32, %arg0 : i32, i32
  }
  func.func @transform_2(%arg0: i32) -> (i32, i32) {
    %c0_i32 = arith.constant 0 : i32
    %c0_i32_0 = arith.constant 0 : i32
    %c0_i32_1 = arith.constant 0 : i32
    return %c0_i32, %c0_i32_0 : i32, i32
  }
  func.func @transform_3(%arg0: i32) -> (i32, i32) {
    %c0_i32 = arith.constant 0 : i32
    %c0_i32_0 = arith.constant 0 : i32
    %c0_i32_1 = arith.constant 0 : i32
    return %c0_i32, %c0_i32_0 : i32, i32
  }
  func.func @transform_4(%arg0: i32) -> (i32, i32) {
    %c0_i32 = arith.constant 0 : i32
    %c0_i32_0 = arith.constant 0 : i32
    return %c0_i32, %arg0 : i32, i32
  }
}

module attributes {stable_mosaic.version = 11 : i64} {
  func.func @kernel(%arg0: i32, %arg1: memref<8x128xbf16, #tpu.memory_space<vmem>>, %arg2: memref<128x1922xbf16, #tpu.memory_space<vmem>>, %arg3: memref<8x1xf32, #tpu.memory_space<vmem>>, %arg4: memref<8x1922xbf16, #tpu.memory_space<vmem>>) attributes {dimension_semantics = [#tpu.dimension_semantics<arbitrary>], iteration_bounds = array<i64: 1>, scalar_prefetch = 0 : i64, scratch_operands = 0 : i64, tpu.core_type = #tpu.core_type<tc>, window_params = [{pipeline_mode = #tpu.pipeline_mode<synchronous>, transform_indices = @transform_0, window_bounds = array<i64: 8, 128>}, {transform_indices = @transform_1, window_bounds = array<i64: 128, 1922>}, {pipeline_mode = #tpu.pipeline_mode<synchronous>, transform_indices = @transform_2, window_bounds = array<i64: 8, 1>}, {transform_indices = @transform_3, window_bounds = array<i64: 8, 1922>}]} {
    %c0 = arith.constant 0 : index
    %c0_0 = arith.constant 0 : index
    %0 = vector.load %arg1[%c0, %c0_0] : memref<8x128xbf16, #tpu.memory_space<vmem>>, vector<8x128xbf16>
    %c0_1 = arith.constant 0 : index
    %c0_2 = arith.constant 0 : index
    %1 = vector.load %arg2[%c0_1, %c0_2] : memref<128x1922xbf16, #tpu.memory_space<vmem>>, vector<128x1922xbf16>
    %cst = arith.constant dense<0.000000e+00> : vector<8x1922xf32>
    %2 = tpu.matmul %0, %1, %cst {dimension_numbers = #tpu.dot_dimension_numbers<[1], [0], [0], [1], [0, 0, 1, 1], [], []>} : vector<8x128xbf16>, vector<128x1922xbf16>, vector<8x1922xf32> -> vector<8x1922xf32>
    %c0_3 = arith.constant 0 : index
    %c0_4 = arith.constant 0 : index
    %3 = vector.load %arg3[%c0_3, %c0_4] : memref<8x1xf32, #tpu.memory_space<vmem>>, vector<8x1xf32>
    %4 = vector.broadcast %3 : vector<8x1xf32> to vector<8x1922xf32>
    %5 = arith.addf %2, %4 : vector<8x1922xf32>
    %cst_5 = arith.constant 0.000000e+00 : f32
    %6 = vector.broadcast %cst_5 : f32 to vector<8x1922xf32>
    %7 = arith.maximumf %5, %6 : vector<8x1922xf32>
    %8 = arith.truncf %7 : vector<8x1922xf32> to vector<8x1922xbf16>
    %c0_6 = arith.constant 0 : index
    %c0_7 = arith.constant 0 : index
    %9 = vector.load %arg4[%c0_6, %c0_7] : memref<8x1922xbf16, #tpu.memory_space<vmem>>, vector<8x1922xbf16>
    tpu.vector_store %arg4[%c0_6, %c0_7], %8 {strides = array<i32>} : memref<8x1922xbf16, #tpu.memory_space<vmem>>, vector<8x1922xbf16>,
    return
  }
  func.func @transform_0(%arg0: i32) -> (i32, i32) {
    %c0_i32 = arith.constant 0 : i32
    %c0_i32_0 = arith.constant 0 : i32
    %c0_i32_1 = arith.constant 0 : i32
    return %c0_i32, %c0_i32_0 : i32, i32
  }
  func.func @transform_1(%arg0: i32) -> (i32, i32) {
    %c0_i32 = arith.constant 0 : i32
    %c0_i32_0 = arith.constant 0 : i32
    return %c0_i32, %arg0 : i32, i32
  }
  func.func @transform_2(%arg0: i32) -> (i32, i32) {
    %c0_i32 = arith.constant 0 : i32
    %c0_i32_0 = arith.constant 0 : i32
    %c0_i32_1 = arith.constant 0 : i32
    return %c0_i32, %c0_i32_0 : i32, i32
  }
  func.func @transform_3(%arg0: i32) -> (i32, i32) {
    %c0_i32 = arith.constant 0 : i32
    %c0_i32_0 = arith.constant 0 : i32
    return %c0_i32, %arg0 : i32, i32
  }
}

module attributes {stable_mosaic.version = 11 : i64} {
  func.func @kernel(%arg0: i32, %arg1: memref<3x200xbf16, #tpu.memory_space<vmem>>, %arg2: memref<200x8192xbf16, #tpu.memory_space<vmem>>, %arg3: memref<3x1xf32, #tpu.memory_space<vmem>>, %arg4: memref<3x8192xf32, #tpu.memory_space<vmem>>) attributes {dimension_semantics = [#tpu.dimension_semantics<arbitrary>], iteration_bounds = array<i64: 1>, scalar_prefetch = 0 : i64, scratch_operands = 0 : i64, tpu.core_type = #tpu.core_type<tc>, window_params = [{pipeline_mode = #tpu.pipeline_mode<synchronous>, transform_indices = @transform_0, window_bounds = array<i64: 3, 200>}, {transform_indices = @transform_1, window_bounds = array<i64: 200, 8192>}, {pipeline_mode = #tpu.pipeline_mode<synchronous>, transform_indices = @transform_2, window_bounds = array<i64: 3, 1>}, {transform_indices = @transform_3, window_bounds = array<i64: 3, 8192>}]} {
    %c0 = arith.constant 0 : index
    %c0_0 = arith.constant 0 : index
    %0 = vector.load %arg1[%c0, %c0_0] : memref<3x200xbf16, #tpu.memory_space<vmem>>, vector<3x200xbf16>
    %c0_1 = arith.constant 0 : index
    %c0_2 = arith.constant 0 : index
    %1 = vector.load %arg2[%c0_1, %c0_2] : memref<200x8192xbf16, #tpu.memory_space<vmem>>, vector<200x8192xbf16>
    %cst = arith.constant dense<0.000000e+00> : vector<3x8192xf32>
    %2 = tpu.matmul %0, %1, %cst {dimension_numbers = #tpu.dot_dimension_numbers<[1], [0], [0], [1], [0, 0, 1, 1], [], []>} : vector<3x200xbf16>, vector<200x8192xbf16>, vector<3x8192xf32> -> vector<3x8192xf32>
    %c0_3 = arith.constant 0 : index
    %c0_4 = arith.constant 0 : index
    %3 = vector.load %arg3[%c0_3, %c0_4] : memref<3x1xf32, #tpu.memory_space<vmem>>, vector<3x1xf32>
    %4 = vector.broadcast %3 : vector<3x1xf32> to vector<3x8192xf32>
    %5 = arith.addf %2, %4 : vector<3x8192xf32>
    %6 = arith.negf %5 : vector<3x8192xf32>
    %7 = math.exp %6 : vector<3x8192xf32>
    %cst_5 = arith.constant 1.000000e+00 : f32
    %8 = vector.broadcast %cst_5 : f32 to vector<3x8192xf32>
    %9 = arith.addf %8, %7 : vector<3x8192xf32>
    %10 = arith.divf %8, %9 : vector<3x8192xf32>
    %c0_6 = arith.constant 0 : index
    %c0_7 = arith.constant 0 : index
    %11 = vector.load %arg4[%c0_6, %c0_7] : memref<3x8192xf32, #tpu.memory_space<vmem>>, vector<3x8192xf32>
    tpu.vector_store %arg4[%c0_6, %c0_7], %10 {strides = array<i32>} : memref<3x8192xf32, #tpu.memory_space<vmem>>, vector<3x8192xf32>,
    return
  }
  func.func @transform_0(%arg0: i32) -> (i32, i32) {
    %c0_i32 = arith.constant 0 : i32
    %c0_i32_0 = arith.constant 0 : i32
    %c0_i32_1 = arith.constant 0 : i32
    return %c0_i32, %c0_i32_0 : i32, i32
  }
  func.func @transform_1(%arg0: i32) -> (i32, i32) {
    %c0_i32 = arith.constant 0 : i32
    %c0_i32_0 = arith.constant 0 : i32
    return %c0_i32, %arg0 : i32, i32
  }
  func.func @transform_2(%arg0: i32) -> (i32, i32) {
    %c0_i32 = arith.constant 0 : i32
    %c0_i32_0 = arith.constant 0 : i32
    %c0_i32_1 = arith.constant 0 : i32
    return %c0_i32, %c0_i32_0 : i32, i32
  }
  func.func @transform_3(%arg0: i32) -> (i32, i32) {
    %c0_i32 = arith.constant 0 : i32
    %c0_i32_0 = arith.constant 0 : i32
    return %c0_i32, %arg0 : i32, i32
  }
}

</mosaic_0001>

<bundles_post_ra>
// kernel: _lambda_.8
= control target key start
LH: loop header
LB: loop body
LE: loop exit
PB: predicated region body
PF: predicated region fallthrough
CT: control target
= control target key end

     0   :  { %vm195_vm0 = vcmask 1044480   ;;  %vm196_vm1 = vcmask 1045504   ;;  %v774_v1 = vmov 0   ;;  %v775_v2 = vmov 65535   ;;  %s978_s1 = inlined_call_operand.vmem [shape: bf16[27,1800], index: 1, kind: input, shape index: {}]   ;;  %s979_s0 = inlined_call_operand.vmem [shape: bf16[8,27], index: 0, kind: input, shape index: {}]   ;;  %s980_s2 = inlined_call_operand.vmem [shape: f32[8,1], index: 2, kind: input, shape index: {}]   ;;  %s981_s3 = inlined_call_operand.vmem [shape: bf16[8,1800], index: 3, kind: output, shape index: {}]  }
   0x1   :  { %v730_v0 = vld [vmem:[%s978_s1 + $0x7c] ss:$60 sps:$4 sm:$0x3f]   ;;  %276 = vmatprep.mubr.bf16.mxu0 %v774_v1  ;;  %317 = vmatprep.mubr.bf16.mxu1 %v774_v1  ;;  %v197_v3 = vsel %vm195_vm0, 4294967295, %v775_v2  ;;  %v736_v10 = vld [vmem:[%s978_s1 + $0x4] ss:$60 sps:$4 sm:$0xff]  }
   0x2   :  { %729 = vset.pattern.permute.xlu0 %v774_v1  ;;  %v804_v4 = vsel %vm196_vm1, %v197_v3, 0  ;;  %v732_v5 = vld [vmem:[%s978_s1 + $0x84] ss:$60 sps:$4 sm:$0x3f]   ;;  %v738_v11 = vld [vmem:[%s978_s1 + $0xc] ss:$60 sps:$4 sm:$0xff]  }
   0x3   :  { %v203_v6 = vand.u32 %v730_v0, %v804_v4  ;;  %v734_v7 = vld [vmem:[%s978_s1 + $0x78] ss:$60 sps:$4 sm:$0x3f]   ;;  %v735_v8 = vld [vmem:[%s978_s1 + $0x80] ss:$60 sps:$4 sm:$0x3f]   ;;  %v209_v9 = vand.u32 %v732_v5, %v804_v4 }
   0x4   :  { %v200_v12 = vand.u32 %v734_v7, %v804_v4  ;;  %v206_v13 = vand.u32 %v735_v8, %v804_v4  ;;  %v740_v14 = vld [vmem:[%s978_s1] ss:$60 sps:$4 sm:$0xff]   ;;  %v741_v15 = vld [vmem:[%s978_s1 + $0x8] ss:$60 sps:$4 sm:$0xff]   ;;  %vm191_vm2 = vcmask 220160   ;;  %v776_v48 = vmov 0.0  }
   0x5   :  { %256 = vmatprep.subr.bf16.mxu0 %v203_v6  ;;  %297 = vmatprep.subr.bf16.mxu1 %v209_v9  ;;  %v742_v16 = vld [vmem:[%s978_s1 + $0x88] ss:$60 sps:$4 sm:$0x3f]   ;;  %v745_v18 = vld [vmem:[%s978_s1 + $0x90] ss:$60 sps:$4 sm:$0x3f]  }
   0x6   :  { %257 = vmatpush1.bf16.msra.mxu0 %v200_v12  ;;  %298 = vmatpush1.bf16.msra.mxu1 %v206_v13  ;;  %v744_v17 = vld [vmem:[%s978_s1 + $0x8c] ss:$60 sps:$4 sm:$0x3f]   ;;  %v747_v19 = vld [vmem:[%s978_s1 + $0x94] ss:$60 sps:$4 sm:$0x3f]   ;;  %v212_v23 = vand.u32 %v742_v16, %v804_v4  ;;  %v218_v24 = vand.u32 %v745_v18, %v804_v4 }
   0x7   :  { %258 = vmatprep.subr.bf16.mxu0 %v736_v10  ;;  %299 = vmatprep.subr.bf16.mxu1 %v738_v11  ;;  %v215_v20 = vand.u32 %v744_v17, %v804_v4  ;;  %v221_v21 = vand.u32 %v747_v19, %v804_v4  ;;  %v848_v22 = vld [vmem:[%s979_s0] sm:$0xf]  ;;  %v750_v25 = vld [vmem:[%s978_s1 + $0x14] ss:$60 sps:$4 sm:$0xff]   ;;  %v753_v26 = vld [vmem:[%s978_s1 + $0x1c] ss:$60 sps:$4 sm:$0xff]  }
   0x8   :  { %v748_v27 = vld [vmem:[%s978_s1 + $0x10] ss:$60 sps:$4 sm:$0xff]   ;;  %v756_v28 = vld [vmem:[%s978_s1 + $0x9c] ss:$60 sps:$4 sm:$0x3f]   ;;  %v48_v44 = vld [vmem:[%s980_s2] sm:$0xff] }
   0x9   :  { %v754_v29 = vld [vmem:[%s978_s1 + $0x98] ss:$60 sps:$4 sm:$0x3f]   ;;  %v759_v30 = vld [vmem:[%s978_s1 + $0xa4] ss:$60 sps:$4 sm:$0x3f]   ;;  %v227_v33 = vand.u32 %v756_v28, %v804_v4  ;;  %51 = vperm.xlu0 %729, %v48_v44  }
   0xa   :  { %259 = vmatpush1.bf16.msra.mxu0 %v740_v14  ;;  %300 = vmatpush1.bf16.msra.mxu1 %v741_v15  ;;  %v751_v31 = vld [vmem:[%s978_s1 + $0x18] ss:$60 sps:$4 sm:$0xff]   ;;  %v757_v32 = vld [vmem:[%s978_s1 + $0xa0] ss:$60 sps:$4 sm:$0x3f]   ;;  %v233_v34 = vand.u32 %v759_v30, %v804_v4  ;;  %v224_v36 = vand.u32 %v754_v29, %v804_v4  ;;  %vm777_vm3 = vmmov 0  }
   0xb   :  { %338 = vmatprep.subr.bf16.mxu0 %v215_v20  ;;  %379 = vmatprep.subr.bf16.mxu1 %v221_v21  ;;  %v762_v35 = vld [vmem:[%s978_s1 + $0x24] ss:$60 sps:$4 sm:$0xff]   ;;  %v230_v37 = vand.u32 %v757_v32, %v804_v4  ;;  %v765_v38 = vld [vmem:[%s978_s1 + $0x2c] ss:$60 sps:$4 sm:$0xff]   ;;  %v772_v49 = vld [vmem:[%s978_s1 + $0x34] ss:$60 sps:$4 sm:$0xff]  }
   0xc   :  { %v768_v39 = vld [vmem:[%s978_s1 + $0xac] ss:$60 sps:$4 sm:$0x3f]   ;;  %v760_v40 = vld [vmem:[%s978_s1 + $0x20] ss:$60 sps:$4 sm:$0xff]   ;;  %vm654_vm4 = vcmask 60416  }
   0xd   :  { %690 = vmatmul.mubr.msk.bf16.vlgmr.msra.gmra.mxu0 %vm191_vm2, %v848_v22  ;;  %691 = vmatmul.mubr.msk.bf16.vlgmr.msra.gmra.mxu1 %vm191_vm2, %v848_v22  ;;  %v766_v41 = vld [vmem:[%s978_s1 + $0xa8] ss:$60 sps:$4 sm:$0x3f]   ;;  %v769_v43 = vld [vmem:[%s978_s1 + $0xb0] ss:$60 sps:$4 sm:$0x3f]   ;;  %v239_v45 = vand.u32 %v768_v39, %v804_v4 }
   0xe   :  { %339 = vmatpush1.bf16.msra.mxu0 %v212_v23  ;;  %380 = vmatpush1.bf16.msra.mxu1 %v218_v24  ;;  %v763_v42 = vld [vmem:[%s978_s1 + $0x28] ss:$60 sps:$4 sm:$0xff]   ;;  %v236_v46 = vand.u32 %v766_v41, %v804_v4  ;;  %v242_v47 = vand.u32 %v769_v43, %v804_v4  ;;  %v770_v50 = vld [vmem:[%s978_s1 + $0x30] ss:$60 sps:$4 sm:$0xff]   ;;  %v773_v51 = vld [vmem:[%s978_s1 + $0x38] ss:$60 sps:$4 sm:$0xff]  }
   0xf   :  { %340 = vmatprep.subr.bf16.mxu0 %v750_v25  ;;  %381 = vmatprep.subr.bf16.mxu1 %v753_v26 }
  0x10   :  { %358 = vmatprep.mubr.bf16.mxu0 %v774_v1  ;;  %399 = vmatprep.mubr.bf16.mxu1 %v774_v1 }
  0x12   :  { %341 = vmatpush1.bf16.msra.mxu0 %v748_v27  ;;  %382 = vmatpush1.bf16.msra.mxu1 %v751_v31 }
  0x13   :  { %420 = vmatprep.subr.bf16.mxu0 %v227_v33  ;;  %461 = vmatprep.subr.bf16.mxu1 %v233_v34 }
  0x15   :  { %692 = vmatmul.mubr.msk.bf16.vlgmr.msra.gmra.mxu0 %vm191_vm2, %v848_v22  ;;  %693 = vmatmul.mubr.msk.bf16.vlgmr.msra.gmra.mxu1 %vm191_vm2, %v848_v22 }
  0x16   :  { %421 = vmatpush1.bf16.msra.mxu0 %v224_v36  ;;  %462 = vmatpush1.bf16.msra.mxu1 %v230_v37 }
  0x17   :  { %422 = vmatprep.subr.bf16.mxu0 %v762_v35  ;;  %463 = vmatprep.subr.bf16.mxu1 %v765_v38 }
  0x18   :  { %440 = vmatprep.mubr.bf16.mxu0 %v774_v1  ;;  %481 = vmatprep.mubr.bf16.mxu1 %v774_v1 }
  0x1a   :  { %423 = vmatpush1.bf16.msra.mxu0 %v760_v40  ;;  %464 = vmatpush1.bf16.msra.mxu1 %v763_v42 }
  0x1b   :  { %502 = vmatprep.subr.bf16.mxu0 %v239_v45  ;;  %717 = vmatprep.subr.bf16.mxu1 %v776_v48 }
  0x1d   :  { %694 = vmatmul.mubr.msk.bf16.vlgmr.msra.gmra.mxu0 %vm191_vm2, %v848_v22  ;;  %695 = vmatmul.mubr.msk.bf16.vlgmr.msra.gmra.mxu1 %vm191_vm2, %v848_v22 }
  0x1e   :  { %503 = vmatpush1.bf16.msra.mxu0 %v236_v46  ;;  %718 = vmatpush3.bf16.msra.mxu1 %v242_v47 }
  0x1f   :  { %504 = vmatprep.subr.bf16.mxu0 %v772_v49  ;;  %719 = vmatprep.subr.bf16.mxu1 %v776_v48 }
  0x20   :  { %522 = vmatprep.mubr.bf16.mxu0 %v774_v1  ;;  %721 = vmatprep.mubr.msk.bf16.mxu1 %vm777_vm3, %v776_v48 }
  0x22   :  { %505 = vmatpush1.bf16.msra.mxu0 %v770_v50  ;;  %720 = vmatpush3.bf16.msra.mxu1 %v773_v51 }
  0x25   :  { %696 = vmatmul.mubr.msk.bf16.vlgmr.msra.gmra.mxu0 %vm191_vm2, %v848_v22  ;;  %722 = vmatmul.mubr.msk.bf16.vlgmr.msra.gmra.mxu1 %vm191_vm2, %v848_v22 }
  0x84   :  { %v937_v52 = vpop.permute.xlu0 %51 }
  0xcd   :  { %v278_v53 = vpop.f32.mrf.mxu0  ;;  %v319_v54 = vpop.f32.mrf.mxu1 }
  0xce   :  { %v279_v55 = vadd.f32 %v278_v53, %v937_v52  ;;  %v320_v56 = vadd.f32 %v319_v54, %v937_v52 }
  0xcf   :  { %v280_v57 = vpop.f32.mrf.mxu0  ;;  %v321_v58 = vpop.f32.mrf.mxu1 }
  0xd0   :  { %v281_v59 = vadd.f32 %v280_v57, %v937_v52  ;;  %v322_v60 = vadd.f32 %v321_v58, %v937_v52  ;;  %v573_v61 = vmax.f32 %v320_v56, 0.0  ;;  %v571_v0 = vmax.f32 %v279_v55, 0.0 }
  0xd1   :  { %v282_v62 = vpop.f32.mrf.mxu0  ;;  %v323_v63 = vpop.f32.mrf.mxu1 }
  0xd2   :  { %v572_v1 = vmax.f32 %v281_v59, 0.0  ;;  %v574_v2 = vmax.f32 %v322_v60, 0.0 }
  0xd3   :  { %v283_v3 = vpop.f32.mrf.mxu0  ;;  %v324_v4 = vpop.f32.mrf.mxu1 }
  0xd4   :  { %v706_v5 = vpack.c.bf16 %v572_v1, %v571_v0  ;;  %v707_v6 = vpack.c.bf16 %v574_v2, %v573_v61 }
  0xd5   :  { %v360_v7 = vpop.f32.mrf.mxu0  ;;  %v401_v8 = vpop.f32.mrf.mxu1 }
  0xd6   :  { %647 = vst [vmem:[%s981_s3] sm:$0xff] %v706_v5  ;;  %648 = vst [vmem:[%s981_s3 + $0x8] sm:$0xff] %v707_v6  ;;  %v361_v9 = vadd.f32 %v360_v7, %v937_v52  ;;  %v402_v10 = vadd.f32 %v401_v8, %v937_v52 }
  0xd7   :  { %v362_v11 = vpop.f32.mrf.mxu0  ;;  %v403_v12 = vpop.f32.mrf.mxu1 }
  0xd8   :  { %v577_v13 = vmax.f32 %v402_v10, 0.0  ;;  %v363_v14 = vadd.f32 %v362_v11, %v937_v52  ;;  %v404_v15 = vadd.f32 %v403_v12, %v937_v52  ;;  %v575_v18 = vmax.f32 %v361_v9, 0.0 }
  0xd9   :  { %v364_v16 = vpop.f32.mrf.mxu0  ;;  %v405_v17 = vpop.f32.mrf.mxu1 }
  0xda   :  { %v576_v19 = vmax.f32 %v363_v14, 0.0  ;;  %v578_v20 = vmax.f32 %v404_v15, 0.0 }
  0xdb   :  { %v365_v21 = vpop.f32.mrf.mxu0  ;;  %v406_v22 = vpop.f32.mrf.mxu1 }
  0xdc   :  { %v708_v23 = vpack.c.bf16 %v576_v19, %v575_v18  ;;  %v709_v24 = vpack.c.bf16 %v578_v20, %v577_v13 }
  0xdd   :  { %v442_v25 = vpop.f32.mrf.mxu0  ;;  %v483_v26 = vpop.f32.mrf.mxu1 }
  0xde   :  { %649 = vst [vmem:[%s981_s3 + $0x10] sm:$0xff] %v708_v23  ;;  %650 = vst [vmem:[%s981_s3 + $0x18] sm:$0xff] %v709_v24  ;;  %v443_v27 = vadd.f32 %v442_v25, %v937_v52  ;;  %v484_v28 = vadd.f32 %v483_v26, %v937_v52 }
  0xdf   :  { %v444_v29 = vpop.f32.mrf.mxu0  ;;  %v485_v30 = vpop.f32.mrf.mxu1 }
  0xe0   :  { %v581_v31 = vmax.f32 %v484_v28, 0.0  ;;  %v445_v32 = vadd.f32 %v444_v29, %v937_v52  ;;  %v486_v33 = vadd.f32 %v485_v30, %v937_v52  ;;  %v579_v36 = vmax.f32 %v443_v27, 0.0 }
  0xe1   :  { %v446_v34 = vpop.f32.mrf.mxu0  ;;  %v487_v35 = vpop.f32.mrf.mxu1 }
  0xe2   :  { %v580_v37 = vmax.f32 %v445_v32, 0.0  ;;  %v582_v38 = vmax.f32 %v486_v33, 0.0 }
  0xe3   :  { %v447_v39 = vpop.f32.mrf.mxu0  ;;  %v488_v40 = vpop.f32.mrf.mxu1 }
  0xe4   :  { %v710_v41 = vpack.c.bf16 %v580_v37, %v579_v36  ;;  %v711_v42 = vpack.c.bf16 %v582_v38, %v581_v31 }
  0xe5   :  { %v524_v43 = vpop.f32.mrf.mxu0  ;;  %v565_v44 = vpop.f32.mrf.mxu1 }
  0xe6   :  { %651 = vst [vmem:[%s981_s3 + $0x20] sm:$0xff] %v710_v41  ;;  %652 = vst [vmem:[%s981_s3 + $0x28] sm:$0xff] %v711_v42  ;;  %v525_v45 = vadd.f32 %v524_v43, %v937_v52  ;;  %v566_v46 = vadd.f32 %v565_v44, %v937_v52 }
  0xe7   :  { %v526_v47 = vpop.f32.mrf.mxu0  ;;  %v723_v48 = vpop.f32.mrf.mxu1 }
  0xe8   :  { %v585_v49 = vmax.f32 %v566_v46, 0.0  ;;  %v527_v50 = vadd.f32 %v526_v47, %v937_v52  ;;  %v583_v54 = vmax.f32 %v525_v45, 0.0 }
  0xe9   :  { %v528_v51 = vpop.f32.mrf.mxu0  ;;  %v568_v53 = vpop.f32.mrf.mxu1 }
  0xea   :  { %v713_v55 = vpack.c.bf16 %v585_v49, %v585_v49  ;;  %v584_v56 = vmax.f32 %v527_v50, 0.0 }
  0xeb   :  { %v529_v57 = vpop.f32.mrf.mxu0  ;;  %v724_v58 = vpop.f32.mrf.mxu1 }
  0xec   :  { %655 = vst.msk [vmem:[%s981_s3 + $0x38] sm:$0xf] %vm654_vm4, %v713_v55  ;;  %v712_v59 = vpack.c.bf16 %v584_v56, %v583_v54 }
  0xee   :  { %653 = vst [vmem:[%s981_s3 + $0x30] sm:$0xff] %v712_v59 }

// kernel: _lambda_.9
= control target key start
LH: loop header
LB: loop body
LE: loop exit
PB: predicated region body
PF: predicated region fallthrough
CT: control target
= control target key end

     0   :  { %vm137_vm0 = vcmask 1043456   ;;  %v444_v2 = vmov 0   ;;  %vm133_vm1 = vcmask 588800   ;;  %vm238_vm2 = vcmask 539648   ;;  %s616_s1 = inlined_call_operand.vmem [shape: bf16[72,450], index: 1, kind: input, shape index: {}]   ;;  %s617_s0 = inlined_call_operand.vmem [shape: bf16[16,72], index: 0, kind: input, shape index: {}]   ;;  %s618_s3 = inlined_call_operand.vmem [shape: f32[16,1], index: 3, kind: input, shape index: {}]   ;;  %s619_s2 = inlined_call_operand.vmem [shape: f32[16,1], index: 2, kind: input, shape index: {}]   ;;  %s620_s4 = inlined_call_operand.vmem [shape: bf16[16,450], index: 4, kind: output, shape index: {}]  }
   0x1   :  { %v36_v0 = vld [vmem:[%s616_s1 + $0x80] sm:$0xff]  ;;  %v37_v1 = vld [vmem:[%s616_s1 + $0x88] sm:$0xff]  ;;  %182 = vmatprep.mubr.bf16.mxu0 %v444_v2  ;;  %225 = vmatprep.mubr.bf16.mxu1 %v444_v2  ;;  %vm366_vm3 = vcmask 539652  }
   0x2   :  { %v393_v3 = vcombine.high %v36_v0, %v36_v0  ;;  %v395_v4 = vcombine.high %v37_v1, %v37_v1  ;;  %v392_v5 = vcombine.low %v36_v0, %v36_v0  ;;  %v394_v6 = vcombine.low %v37_v1, %v37_v1  ;;  %v415_v7 = vld [vmem:[%s616_s1 + $0x64] ss:$16 sps:$4 sm:$0xff]   ;;  %410 = vset.pattern.permute.xlu1 %v444_v2  ;;  %v417_v8 = vld [vmem:[%s616_s1 + $0x6c] ss:$16 sps:$4 sm:$0xff]   ;;  %v419_v11 = vld [vmem:[%s616_s1 + $0x60] ss:$16 sps:$4 sm:$0xff]  }
   0x3   :  { %409 = vset.pattern.permute.xlu0 %v444_v2  ;;  %v420_v12 = vld [vmem:[%s616_s1 + $0x68] ss:$16 sps:$4 sm:$0xff]   ;;  %v421_v13 = vld [vmem:[%s616_s1 + $0x44] ss:$16 sps:$4 sm:$0xff]   ;;  %v423_v14 = vld [vmem:[%s616_s1 + $0x4c] ss:$16 sps:$4 sm:$0xff]  }
   0x4   :  { %396 = vmatprep.subr.msk.bf16.mxu0 %vm137_vm0, %v393_v3  ;;  %398 = vmatprep.subr.msk.bf16.mxu1 %vm137_vm0, %v395_v4  ;;  %v139_v9 = vsel %vm137_vm0, %v392_v5, 0  ;;  %v145_v10 = vsel %vm137_vm0, %v394_v6, 0  ;;  %v425_v15 = vld [vmem:[%s616_s1 + $0x40] ss:$16 sps:$4 sm:$0xff]   ;;  %v426_v16 = vld [vmem:[%s616_s1 + $0x48] ss:$16 sps:$4 sm:$0xff]   ;;  %vm596_vm4 = vmor %vm366_vm3, %vm137_vm0 }
   0x5   :  { %157 = vmatpush1.bf16.msra.mxu0 %v139_v9  ;;  %200 = vmatpush1.bf16.msra.mxu1 %v145_v10  ;;  %v427_v17 = vld [vmem:[%s616_s1 + $0x24] ss:$16 sps:$4 sm:$0xff]   ;;  %v429_v18 = vld [vmem:[%s616_s1 + $0x2c] ss:$16 sps:$4 sm:$0xff]   ;;  %v431_v19 = vld [vmem:[%s616_s1 + $0x20] ss:$16 sps:$4 sm:$0xff]  }
   0x6   :  { %158 = vmatprep.subr.bf16.mxu0 %v415_v7  ;;  %201 = vmatprep.subr.bf16.mxu1 %v417_v8  ;;  %v432_v20 = vld [vmem:[%s616_s1 + $0x28] ss:$16 sps:$4 sm:$0xff]   ;;  %v433_v21 = vld [vmem:[%s616_s1 + $0x4] ss:$16 sps:$4 sm:$0xff]   ;;  %v435_v22 = vld [vmem:[%s616_s1 + $0xc] ss:$16 sps:$4 sm:$0xff]  }
   0x7   :  { %v437_v23 = vld [vmem:[%s616_s1] ss:$16 sps:$4 sm:$0xff]   ;;  %v438_v24 = vld [vmem:[%s616_s1 + $0x8] ss:$16 sps:$4 sm:$0xff]  }
   0x8   :  { %v439_v25 = vld [vmem:[%s617_s0] sm:$0xff]  }
   0x9   :  { %159 = vmatpush1.bf16.msra.mxu0 %v419_v11  ;;  %202 = vmatpush1.bf16.msra.mxu1 %v420_v12  ;;  %v313_v58 = vld [vmem:[%s618_s3] sm:$0xff] }
   0xa   :  { %160 = vmatprep.subr.bf16.mxu0 %v421_v13  ;;  %203 = vmatprep.subr.bf16.mxu1 %v423_v14  ;;  %v283_v11 = vld [vmem:[%s619_s2] sm:$0xff]  ;;  %v284_v14 = vld [vmem:[%s619_s2 + $0x8] sm:$0xff] }
   0xd   :  { %161 = vmatpush1.bf16.msra.mxu0 %v425_v15  ;;  %204 = vmatpush1.bf16.msra.mxu1 %v426_v16 }
   0xe   :  { %162 = vmatprep.subr.bf16.mxu0 %v427_v17  ;;  %205 = vmatprep.subr.bf16.mxu1 %v429_v18  ;;  %v314_v17 = vld [vmem:[%s618_s3 + $0x8] sm:$0xff] }
  0x11   :  { %163 = vmatpush1.bf16.msra.mxu0 %v431_v19  ;;  %206 = vmatpush1.bf16.msra.mxu1 %v432_v20 }
  0x12   :  { %164 = vmatprep.subr.bf16.mxu0 %v433_v21  ;;  %207 = vmatprep.subr.bf16.mxu1 %v435_v22 }
  0x15   :  { %165 = vmatpush1.bf16.msra.mxu0 %v437_v23  ;;  %208 = vmatpush1.bf16.msra.mxu1 %v438_v24 }
  0x18   :  { %397 = vmatmul.mubr.msk.bf16.vlgmr.msra.gmra.mxu0 %vm133_vm1, %v439_v25  ;;  %399 = vmatmul.mubr.msk.bf16.vlgmr.msra.gmra.mxu1 %vm133_vm1, %v439_v25 }
  0xd8   :  { %v531_v26 = vpop.f32.mrf.mxu0  ;;  %v533_v27 = vpop.f32.mrf.mxu1 }
  0xd9   :  { %v251_v30 = vmul.f32 %v531_v26, %v531_v26  ;;  %v253_v33 = vmul.f32 %v533_v27, %v533_v27 }
  0xda   :  { %v535_v28 = vpop.f32.mrf.mxu0  ;;  %v537_v29 = vpop.f32.mrf.mxu1 }
  0xdb   :  { %v236_v31 = vadd.f32 %v535_v28, %v531_v26  ;;  %v252_v32 = vmul.f32 %v535_v28, %v535_v28  ;;  %v254_v37 = vmul.f32 %v537_v29, %v537_v29  ;;  %v239_v44 = vsel %vm238_vm2, %v537_v29, 0.0 }
  0xdc   :  { %v547_v34 = vpop.f32.mrf.mxu0  ;;  %v549_v35 = vpop.f32.mrf.mxu1 }
  0xdd   :  { %v237_v36 = vadd.f32 %v236_v31, %v533_v27  ;;  %v259_v38 = vadd.f32 %v252_v32, %v251_v30  ;;  %v255_v41 = vmul.f32 %v547_v34, %v547_v34  ;;  %v257_v48 = vmul.f32 %v549_v35, %v549_v35 }
  0xde   :  { %v554_v39 = vpop.f32.mrf.mxu0  ;;  %v556_v40 = vpop.f32.mrf.mxu1  ;;  %v261_v50 = vsel %vm238_vm2, %v254_v37, 0.0 }
  0xdf   :  { %v243_v42 = vadd.f32 %v554_v39, %v547_v34  ;;  %v256_v43 = vmul.f32 %v554_v39, %v554_v39  ;;  %v258_v45 = vmul.f32 %v556_v40, %v556_v40  ;;  %v240_v46 = vadd.f32 %v239_v44, %v237_v36 }
  0xe0   :  { %v260_v47 = vadd.f32 %v259_v38, %v253_v33  ;;  %v245_v52 = vsel %vm238_vm2, %v556_v40, 0.0 }
  0xe1   :  { %v265_v49 = vadd.f32 %v256_v43, %v255_v41  ;;  %v244_v51 = vadd.f32 %v243_v42, %v549_v35  ;;  %241 = vadd.xlane.f32.xlu0 %v240_v46  ;;  %v267_v56 = vsel %vm238_vm2, %v258_v45, 0.0 }
  0xe2   :  { %v262_v53 = vadd.f32 %v261_v50, %v260_v47 }
  0xe3   :  { %v246_v54 = vadd.f32 %v245_v52, %v244_v51  ;;  %v266_v55 = vadd.f32 %v265_v49, %v257_v48 }
  0xe4   :  { %263 = vadd.xlane.f32.xlu1 %v262_v53 }
  0xe5   :  { %v268_v57 = vadd.f32 %v267_v56, %v266_v55  ;;  %247 = vadd.xlane.f32.xlu0 %v246_v54 }
  0xe8   :  { %269 = vadd.xlane.f32.xlu1 %v268_v57 }
  0xf9   :  { %317 = vperm.xlu1 %410, %v313_v58  }
 0x16a   :  { %v242_v59 = vpop.xlane.xlu0 %241 }
 0x16b   :  { %v249_v60 = vmul.f32 0.0022222223, %v242_v59 }
 0x16d   :  { %v264_v61 = vpop.xlane.xlu1 %263  ;;  %v273_v63 = vmul.f32 %v249_v60, %v249_v60  ;;  %v287_v19 = vsub.f32 %v531_v26, %v249_v60  ;;  %v288_v20 = vsub.f32 %v535_v28, %v249_v60  ;;  %v289_v21 = vsub.f32 %v533_v27, %v249_v60 }
 0x16e   :  { %v271_v62 = vmul.f32 0.0022222223, %v264_v61  ;;  %v248_v0 = vpop.xlane.xlu0 %247  ;;  %v290_v22 = vsub.f32 %v537_v29, %v249_v60 }
 0x16f   :  { %v250_v2 = vmul.f32 0.0022222223, %v248_v0 }
 0x170   :  { %v275_v1 = vsub.f32 %v271_v62, %v273_v63 }
 0x171   :  { %v270_v3 = vpop.xlane.xlu1 %269  ;;  %v274_v6 = vmul.f32 %v250_v2, %v250_v2  ;;  %v291_v41 = vsub.f32 %v547_v34, %v250_v2  ;;  %v292_v26 = vsub.f32 %v554_v39, %v250_v2  ;;  %v293_v28 = vsub.f32 %v549_v35, %v250_v2 }
 0x172   :  { %v277_v4 = vmax.f32 %v275_v1, 0.0  ;;  %v272_v5 = vmul.f32 0.0022222223, %v270_v3  ;;  %v294_v27 = vsub.f32 %v556_v40, %v250_v2 }
 0x174   :  { %v279_v7 = vadd.f32 1e-05, %v277_v4  ;;  %v276_v8 = vsub.f32 %v272_v5, %v274_v6 }
 0x175   :  { %v318_v18 = vpop.permute.xlu1 %317 }
 0x176   :  { %440 = vrsqrt.f32 %v279_v7  ;;  %v278_v9 = vmax.f32 %v276_v8, 0.0 }
 0x178   :  { %v280_v10 = vadd.f32 1e-05, %v278_v9 }
 0x17a   :  { %442 = vrsqrt.f32 %v280_v10 }
 0x183   :  { %v441_v12 = vpop.eup %440 }
 0x184   :  { %v285_v13 = vmul.f32 %v441_v12, %v283_v11 }
 0x186   :  { %297 = vperm.xlu0 %409, %v285_v13  }
 0x187   :  { %v443_v15 = vpop.eup %442 }
 0x188   :  { %v286_v16 = vmul.f32 %v443_v15, %v284_v14 }
 0x18a   :  { %302 = vperm.xlu1 %410, %v286_v16  }
 0x18e   :  { %322 = vperm.xlu1 %410, %v314_v17  }
 0x201   :  { %v298_v23 = vpop.permute.xlu0 %297 }
 0x202   :  { %v305_v24 = vmul.f32 %v298_v23, %v287_v19  ;;  %v306_v25 = vmul.f32 %v298_v23, %v288_v20  ;;  %v307_v30 = vmul.f32 %v298_v23, %v289_v21  ;;  %v308_v31 = vmul.f32 %v298_v23, %v290_v22 }
 0x204   :  { %v325_v32 = vadd.f32 %v318_v18, %v305_v24  ;;  %v326_v33 = vadd.f32 %v318_v18, %v306_v25  ;;  %v327_v36 = vadd.f32 %v318_v18, %v307_v30  ;;  %v328_v37 = vadd.f32 %v318_v18, %v308_v31 }
 0x205   :  { %v303_v38 = vpop.permute.xlu1 %302 }
 0x206   :  { %v333_v29 = vmax.f32 %v325_v32, 0.0  ;;  %v334_v42 = vmax.f32 %v326_v33, 0.0  ;;  %v335_v43 = vmax.f32 %v327_v36, 0.0  ;;  %v336_v44 = vmax.f32 %v328_v37, 0.0 }
 0x207   :  { %v309_v46 = vmul.f32 %v303_v38, %v291_v41  ;;  %v310_v47 = vmul.f32 %v303_v38, %v292_v26  ;;  %v311_v34 = vmul.f32 %v303_v38, %v293_v28  ;;  %v312_v50 = vmul.f32 %v303_v38, %v294_v27 }
 0x208   :  { %v404_v48 = vpack.c.bf16 %v334_v42, %v333_v29  ;;  %v405_v49 = vpack.c.bf16 %v336_v44, %v335_v43 }
 0x209   :  { %v323_v39 = vpop.permute.xlu1 %322 }
 0x20a   :  { %365 = vst [vmem:[%s620_s4] sm:$0xff] %v404_v48  ;;  %368 = vst.msk [vmem:[%s620_s4 + $0x8] sm:$0xff] %vm596_vm4, %v405_v49  ;;  %v329_v35 = vadd.f32 %v323_v39, %v309_v46  ;;  %v330_v40 = vadd.f32 %v323_v39, %v310_v47  ;;  %v331_v51 = vadd.f32 %v323_v39, %v311_v34 }
 0x20b   :  { %v332_v52 = vadd.f32 %v323_v39, %v312_v50 }
 0x20c   :  { %v337_v53 = vmax.f32 %v329_v35, 0.0  ;;  %v338_v54 = vmax.f32 %v330_v40, 0.0  ;;  %v339_v55 = vmax.f32 %v331_v51, 0.0 }
 0x20d   :  { %v340_v56 = vmax.f32 %v332_v52, 0.0 }
 0x20e   :  { %v406_v57 = vpack.c.bf16 %v338_v54, %v337_v53 }
 0x20f   :  { %v407_v58 = vpack.c.bf16 %v340_v56, %v339_v55 }
 0x210   :  { %369 = vst [vmem:[%s620_s4 + $0x10] sm:$0xff] %v406_v57 }
 0x211   :  { %370 = vst.msk [vmem:[%s620_s4 + $0x18] sm:$0xff] %vm596_vm4, %v407_v58 }

// kernel: _lambda_.10
= control target key start
LH: loop header
LB: loop body
LE: loop exit
PB: predicated region body
PF: predicated region fallthrough
CT: control target
= control target key end

     0   :  { %v277_v0 = vmov 0   ;;  %vm133_vm0 = vcmask 130048   ;;  %vm209_vm1 = vcmask 797696   ;;  %s365_s1 = inlined_call_operand.vmem [shape: bf16[144,98], index: 1, kind: input, shape index: {}]   ;;  %s366_s0 = inlined_call_operand.vmem [shape: bf16[32,144], index: 0, kind: input, shape index: {}]   ;;  %s367_s2 = inlined_call_operand.vmem [shape: f32[32,1], index: 2, kind: input, shape index: {}]   ;;  %s368_s3 = inlined_call_operand.vmem [shape: bf16[32,98], index: 3, kind: output, shape index: {}]  }
   0x1   :  { %140 = vmatprep.subr.bf16.mxu0 %v277_v0  ;;  %241 = vmatprep.subr.bf16.mxu1 %v277_v0  ;;  %v262_v1 = vld [vmem:[%s365_s1 + $0x38] sm:$0xff]   ;;  %v263_v2 = vld [vmem:[%s365_s1 + $0x30] sm:$0xff]   ;;  %v264_v3 = vld [vmem:[%s365_s1 + $0x28] sm:$0xff]  }
   0x2   :  { %261 = vset.pattern.permute.xlu1 %v277_v0  ;;  %260 = vset.pattern.permute.xlu0 %v277_v0  ;;  %v265_v4 = vld [vmem:[%s365_s1 + $0x20] sm:$0xff]   ;;  %v276_v6 = vld [vmem:[%s366_s0 + $0x14] ss:$8 sps:$4 sm:$0xff]   ;;  %v38_v11 = vld [vmem:[%s367_s2 + $0x8] sm:$0xff] }
   0x3   :  { %141 = vmatpush1.bf16.msra.mxu0 %v262_v1  ;;  %250 = vmatpush1.bf16.msra.mxu1 %v262_v1  ;;  %v273_v5 = vld [vmem:[%s366_s0 + $0x4] ss:$8 sps:$4 sm:$0xff]   ;;  %v39_v7 = vld [vmem:[%s367_s2 + $0x10] sm:$0xff]  ;;  %v40_v9 = vld [vmem:[%s367_s2 + $0x18] sm:$0xff] }
   0x4   :  { %142 = vmatprep.subr.bf16.mxu0 %v277_v0  ;;  %242 = vmatprep.subr.bf16.mxu1 %v277_v0  ;;  %v37_v8 = vld [vmem:[%s367_s2] sm:$0xff]  ;;  %v266_v10 = vld [vmem:[%s365_s1 + $0x18] sm:$0xff]   ;;  %v267_v12 = vld [vmem:[%s365_s1 + $0x10] sm:$0xff]  }
   0x5   :  { %231 = vmatprep.mubr.msk.bf16.mxu0 %vm133_vm0, %v273_v5  ;;  %53 = vperm.xlu1 %261, %v39_v7   ;;  %v268_v13 = vld [vmem:[%s365_s1 + $0x8] sm:$0xff]   ;;  %v269_v14 = vld [vmem:[%s365_s1] sm:$0xff]   ;;  %v274_v17 = vld [vmem:[%s366_s0 + $0x10] ss:$8 sps:$4 sm:$0xff]  }
   0x6   :  { %232 = vmatprep.mubr.msk.bf16.mxu1 %vm133_vm0, %v276_v6  ;;  %43 = vperm.xlu0 %260, %v37_v8   ;;  %v270_v15 = vld [vmem:[%s365_s1 + $0x40] sm:$0xff]  }
   0x7   :  { %143 = vmatpush1.bf16.msra.mxu0 %v263_v2  ;;  %251 = vmatpush1.bf16.msra.mxu1 %v263_v2  ;;  %v271_v16 = vld [vmem:[%s366_s0] ss:$8 sps:$4 sm:$0xff]  }
   0x8   :  { %144 = vmatprep.subr.bf16.mxu0 %v277_v0  ;;  %243 = vmatprep.subr.bf16.mxu1 %v277_v0 }
   0x9   :  { %58 = vperm.xlu1 %261, %v40_v9  }
   0xa   :  { %48 = vperm.xlu0 %260, %v38_v11  }
   0xb   :  { %145 = vmatpush1.bf16.msra.mxu0 %v264_v3  ;;  %252 = vmatpush1.bf16.msra.mxu1 %v264_v3 }
   0xc   :  { %146 = vmatprep.subr.bf16.mxu0 %v277_v0  ;;  %244 = vmatprep.subr.bf16.mxu1 %v277_v0 }
   0xf   :  { %147 = vmatpush1.bf16.msra.mxu0 %v265_v4  ;;  %253 = vmatpush1.bf16.msra.mxu1 %v265_v4 }
  0x10   :  { %148 = vmatprep.subr.bf16.mxu0 %v277_v0  ;;  %245 = vmatprep.subr.bf16.mxu1 %v277_v0 }
  0x13   :  { %149 = vmatpush1.bf16.msra.mxu0 %v266_v10  ;;  %254 = vmatpush1.bf16.msra.mxu1 %v266_v10 }
  0x14   :  { %150 = vmatprep.subr.bf16.mxu0 %v277_v0  ;;  %246 = vmatprep.subr.bf16.mxu1 %v277_v0 }
  0x17   :  { %151 = vmatpush1.bf16.msra.mxu0 %v267_v12  ;;  %255 = vmatpush1.bf16.msra.mxu1 %v267_v12 }
  0x18   :  { %152 = vmatprep.subr.bf16.mxu0 %v277_v0  ;;  %247 = vmatprep.subr.bf16.mxu1 %v277_v0 }
  0x1b   :  { %153 = vmatpush1.bf16.msra.mxu0 %v268_v13  ;;  %256 = vmatpush1.bf16.msra.mxu1 %v268_v13 }
  0x1c   :  { %154 = vmatprep.subr.bf16.mxu0 %v277_v0  ;;  %248 = vmatprep.subr.bf16.mxu1 %v277_v0 }
  0x1f   :  { %155 = vmatpush1.bf16.msra.mxu0 %v269_v14  ;;  %257 = vmatpush1.bf16.msra.mxu1 %v269_v14 }
  0x20   :  { %170 = vmatprep.subr.bf16.mxu0 %v277_v0  ;;  %249 = vmatprep.subr.bf16.mxu1 %v277_v0 }
  0x23   :  { %171 = vmatpush2.bf16.msra.mxu0 %v270_v15  ;;  %258 = vmatpush2.bf16.msra.mxu1 %v270_v15 }
  0x26   :  { %173 = vmatmul.mubr.bf16.vlgmr.msra.gmra.mxu0 %v271_v16  ;;  %181 = vmatmul.mubr.bf16.vlgmr.msra.gmra.mxu1 %v274_v17 }
  0x80   :  { %v54_v18 = vpop.permute.xlu1 %53 }
  0x81   :  { %v44_v19 = vpop.permute.xlu0 %43 }
  0x84   :  { %v59_v26 = vpop.permute.xlu1 %58 }
  0x85   :  { %v49_v27 = vpop.permute.xlu0 %48 }
  0xe6   :  { %v174_v20 = vpop.f32.mrf.mxu0  ;;  %v182_v21 = vpop.f32.mrf.mxu1 }
  0xe7   :  { %v175_v22 = vadd.f32 %v174_v20, %v44_v19  ;;  %v183_v23 = vadd.f32 %v182_v21, %v54_v18 }
  0xe8   :  { %v176_v24 = vpop.f32.mrf.mxu0  ;;  %v184_v25 = vpop.f32.mrf.mxu1 }
  0xe9   :  { %v189_v28 = vmax.f32 %v175_v22, 0.0  ;;  %v191_v29 = vmax.f32 %v183_v23, 0.0 }
  0xea   :  { %v177_v30 = vpop.f32.mrf.mxu0  ;;  %v185_v31 = vpop.f32.mrf.mxu1 }
  0xeb   :  { %v237_v32 = vpack.c.bf16 %v189_v28, %v189_v28  ;;  %v239_v33 = vpack.c.bf16 %v191_v29, %v191_v29  ;;  %v178_v34 = vadd.f32 %v177_v30, %v49_v27  ;;  %v186_v35 = vadd.f32 %v185_v31, %v59_v26 }
  0xec   :  { %v179_v36 = vpop.f32.mrf.mxu0  ;;  %v187_v37 = vpop.f32.mrf.mxu1 }
  0xed   :  { %210 = vst.msk [vmem:[%s368_s3] sm:$0xf] %vm209_vm1, %v237_v32  ;;  %212 = vst.msk [vmem:[%s368_s3 + $0x8] sm:$0xf] %vm209_vm1, %v239_v33  ;;  %v190_v38 = vmax.f32 %v178_v34, 0.0  ;;  %v192_v39 = vmax.f32 %v186_v35, 0.0 }
  0xef   :  { %v238_v40 = vpack.c.bf16 %v190_v38, %v190_v38  ;;  %v240_v41 = vpack.c.bf16 %v192_v39, %v192_v39 }
  0xf1   :  { %211 = vst.msk [vmem:[%s368_s3 + $0x4] sm:$0xf] %vm209_vm1, %v238_v40  ;;  %213 = vst.msk [vmem:[%s368_s3 + $0xc] sm:$0xf] %vm209_vm1, %v240_v41 }

// kernel: _lambda_.11
= control target key start
LH: loop header
LB: loop body
LE: loop exit
PB: predicated region body
PF: predicated region fallthrough
CT: control target
= control target key end

     0   :  { %v2179_v22 = vmov 1966171168   ;;  %v244_v24 = vlaneseq  ;;  %vm2181_vm0 = vmmov 0   ;;  %vm928_vm1 = vcmask 261120   ;;  %s2711_s1 = inlined_call_operand.vmem [shape: bf16[1568,128], index: 1, kind: input, shape index: {}]   ;;  %s2712_s0 = inlined_call_operand.vmem [shape: bf16[2,1568], index: 0, kind: input, shape index: {}]   ;;  %s2713_s3 = inlined_call_operand.vmem [shape: bf16[128,16], index: 3, kind: input, shape index: {}]   ;;  %s2714_s5 = inlined_call_operand.vmem [shape: bf16[16,128], index: 5, kind: input, shape index: {}]   ;;  %s2715_s2 = inlined_call_operand.vmem [shape: f32[1,128], index: 2, kind: input, shape index: {}]   ;;  %s2716_s7 = inlined_call_operand.vmem [shape: bf16[128,288], index: 7, kind: input, shape index: {}]   ;;  %s2717_s4 = inlined_call_operand.vmem [shape: f32[1,16], index: 4, kind: input, shape index: {}]   ;;  %s2718_s6 = inlined_call_operand.vmem [shape: f32[1,128], index: 6, kind: input, shape index: {}]   ;;  %s2719_s8 = inlined_call_operand.vmem [shape: f32[1,288], index: 8, kind: input, shape index: {}]   ;;  %s2720_s9 = inlined_call_operand.vmem [shape: bf16[2,288], index: 9, kind: output, shape index: {}]  }
   0x1   :  { %v2038_v0 = vld [vmem:[%s2711_s1 + $0x78] sm:$0xff]   ;;  %v2042_v4 = vld [vmem:[%s2711_s1 + $0x70] sm:$0xff]   ;;  %v2046_v8 = vld [vmem:[%s2711_s1 + $0x68] sm:$0xff]   ;;  %v242_v23 = vunpack.c.l.s4 %v2179_v22  ;;  %vm1341_vm2 = vcmask 130048   ;;  %vm1678_vm3 = vcmask 1040384   ;;  %vm1679_vm4 = vcmask 1041409  }
   0x2   :  { %v2039_v1 = vld [vmem:[%s2711_s1 + $0xf8] sm:$0xff]   ;;  %1825 = vmatprep.subr.bf16.mxu0 %v2038_v0  ;;  %v2043_v5 = vld [vmem:[%s2711_s1 + $0xf0] sm:$0xff]   ;;  %v2047_v9 = vld [vmem:[%s2711_s1 + $0xe8] sm:$0xff]   ;;  %v2311_v30 = vshrl.u32 %v244_v24, 7  ;;  %vm1681_vm6 = vcmask 256002  }
   0x3   :  { %v2040_v2 = vld [vmem:[%s2711_s1 + $0x38] sm:$0xff]   ;;  %1847 = vmatprep.subr.bf16.mxu1 %v2039_v1  ;;  %v2044_v6 = vld [vmem:[%s2711_s1 + $0x30] sm:$0xff]   ;;  %v2048_v10 = vld [vmem:[%s2711_s1 + $0x28] sm:$0xff]   ;;  %v243_v29 = vunpack.c.0.s8 %v242_v23 }
   0x4   :  { %v2041_v3 = vld [vmem:[%s2711_s1 + $0xb8] sm:$0xff]   ;;  %1826 = vmatpush3.bf16.msra.mxu0 %v2040_v2  ;;  %v2045_v7 = vld [vmem:[%s2711_s1 + $0xb0] sm:$0xff]   ;;  %v2049_v11 = vld [vmem:[%s2711_s1 + $0xa8] sm:$0xff]  }
   0x5   :  { %1848 = vmatpush3.bf16.msra.mxu1 %v2041_v3  ;;  %1827 = vmatprep.subr.bf16.mxu0 %v2042_v4  ;;  %v2050_v12 = vld [vmem:[%s2711_s1 + $0x60] sm:$0xff]   ;;  %v2054_v16 = vld [vmem:[%s2711_s1 + $0x58] sm:$0xff]   ;;  %v2058_v20 = vld [vmem:[%s2711_s1 + $0x50] sm:$0xff]   ;;  %v2326_v35 = vsub.s32 %v243_v29, %v2311_v30 }
   0x6   :  { %1849 = vmatprep.subr.bf16.mxu1 %v2043_v5  ;;  %v2051_v13 = vld [vmem:[%s2711_s1 + $0xe0] sm:$0xff]   ;;  %v2055_v17 = vld [vmem:[%s2711_s1 + $0xd8] sm:$0xff]   ;;  %v2059_v21 = vld [vmem:[%s2711_s1 + $0xd0] sm:$0xff]  }
   0x7   :  { %v2052_v14 = vld [vmem:[%s2711_s1 + $0x20] sm:$0xff]   ;;  %v2056_v18 = vld [vmem:[%s2711_s1 + $0x18] sm:$0xff]   ;;  %v2060_v25 = vld [vmem:[%s2711_s1 + $0x10] sm:$0xff]  }
   0x8   :  { %1828 = vmatpush3.bf16.msra.mxu0 %v2044_v6  ;;  %v2053_v15 = vld [vmem:[%s2711_s1 + $0xa0] sm:$0xff]   ;;  %v2057_v19 = vld [vmem:[%s2711_s1 + $0x98] sm:$0xff]   ;;  %v2061_v26 = vld [vmem:[%s2711_s1 + $0x90] sm:$0xff]  }
   0x9   :  { %1850 = vmatpush3.bf16.msra.mxu1 %v2045_v7  ;;  %1829 = vmatprep.subr.bf16.mxu0 %v2046_v8  ;;  %v2062_v27 = vld [vmem:[%s2711_s1 + $0x48] sm:$0xff]   ;;  %v2066_v33 = vld [vmem:[%s2711_s1 + $0x40] sm:$0xff]   ;;  %v2072_v41 = vld [vmem:[%s2711_s1 + $0x178] sm:$0xff]  }
   0xa   :  { %1851 = vmatprep.subr.bf16.mxu1 %v2047_v9  ;;  %v2063_v28 = vld [vmem:[%s2711_s1 + $0xc8] sm:$0xff]   ;;  %v2067_v34 = vld [vmem:[%s2711_s1 + $0xc0] sm:$0xff]   ;;  %v2073_v42 = vld [vmem:[%s2711_s1 + $0x1f8] sm:$0xff]  }
   0xb   :  { %v2064_v31 = vld [vmem:[%s2711_s1 + $0x8] sm:$0xff]   ;;  %v2068_v36 = vld [vmem:[%s2711_s1] sm:$0xff]   ;;  %v2074_v47 = vld [vmem:[%s2711_s1 + $0x138] sm:$0xff]  }
   0xc   :  { %1830 = vmatpush3.bf16.msra.mxu0 %v2048_v10  ;;  %v2065_v32 = vld [vmem:[%s2711_s1 + $0x88] sm:$0xff]   ;;  %v2069_v37 = vld [vmem:[%s2711_s1 + $0x80] sm:$0xff]   ;;  %v2076_v50 = vld [vmem:[%s2711_s1 + $0x170] sm:$0xff]  }
   0xd   :  { %1852 = vmatpush3.bf16.msra.mxu1 %v2049_v11  ;;  %1831 = vmatprep.subr.bf16.mxu0 %v2050_v12  ;;  %v33_v38 = vld [vmem:[%s2712_s0] sm:$0xff]  ;;  %v2075_v52 = vld [vmem:[%s2711_s1 + $0x1b8] sm:$0xff]   ;;  %v2077_v54 = vld [vmem:[%s2711_s1 + $0x1f0] sm:$0xff]  }
   0xe   :  { %1853 = vmatprep.subr.bf16.mxu1 %v2051_v13  ;;  %v240_v39 = vcombine.high %v33_v38, %v33_v38  ;;  %v247_v40 = vrot.slane %v33_v38, %v2326_v35  ;;  %v2078_v55 = vld [vmem:[%s2711_s1 + $0x130] sm:$0xff]   ;;  %v2080_v57 = vld [vmem:[%s2711_s1 + $0x168] sm:$0xff]   ;;  %v2084_v61 = vld [vmem:[%s2711_s1 + $0x160] sm:$0xff]  }
   0xf   :  { %v2079_v58 = vld [vmem:[%s2711_s1 + $0x1b0] sm:$0xff]   ;;  %v2081_v59 = vld [vmem:[%s2711_s1 + $0x1e8] sm:$0xff]   ;;  %v2085_v63 = vld [vmem:[%s2711_s1 + $0x1e0] sm:$0xff]  }
  0x10   :  { %1832 = vmatpush3.bf16.msra.mxu0 %v2052_v14  ;;  %v255_v43 = vcombine.high %v247_v40, %v247_v40  ;;  %v263_v44 = vrot.slane %v247_v40, %v2326_v35  ;;  %v2346_v45 = vrot.slane %v240_v39, %v2326_v35  ;;  %v2082_v60 = vld [vmem:[%s2711_s1 + $0x128] sm:$0xff]   ;;  %v2086_v0 = vld [vmem:[%s2711_s1 + $0x120] sm:$0xff]   ;;  %v2088_v1 = vld [vmem:[%s2711_s1 + $0x158] sm:$0xff]  }
  0x11   :  { %1854 = vmatpush3.bf16.msra.mxu1 %v2053_v15  ;;  %1833 = vmatprep.subr.bf16.mxu0 %v2054_v16  ;;  %v2083_v62 = vld [vmem:[%s2711_s1 + $0x1a8] sm:$0xff]   ;;  %v2087_v2 = vld [vmem:[%s2711_s1 + $0x1a0] sm:$0xff]   ;;  %v2089_v3 = vld [vmem:[%s2711_s1 + $0x1d8] sm:$0xff]  }
  0x12   :  { %1855 = vmatprep.subr.bf16.mxu1 %v2055_v17  ;;  %v277_v46 = vrot.slane %v255_v43, %v2326_v35  ;;  %v256_v48 = vcombine.high %v2346_v45, %v2346_v45  ;;  %v285_v49 = vcombine.high %v263_v44, %v263_v44  ;;  %v2090_v4 = vld [vmem:[%s2711_s1 + $0x118] sm:$0xff]   ;;  %v2406_v5 = vld [vmem:[%s2712_s0 + $0x8] sm:$0x1f]  ;;  %v2092_v6 = vld [vmem:[%s2711_s1 + $0x150] sm:$0xff]  }
  0x13   :  { %v2091_v7 = vld [vmem:[%s2711_s1 + $0x198] sm:$0xff]   ;;  %v2093_v8 = vld [vmem:[%s2711_s1 + $0x1d0] sm:$0xff]   ;;  %v2096_v10 = vld [vmem:[%s2711_s1 + $0x148] sm:$0xff]   ;;  %v2428_v12 = vrot.slane %v2406_v5, %v2326_v35 }
  0x14   :  { %1834 = vmatpush3.bf16.msra.mxu0 %v2056_v18  ;;  %964 = vmatprep.mubr.bf16.mxu0 %v277_v46  ;;  %v287_v51 = vcombine.high %v277_v46, %v277_v46  ;;  %v284_v53 = vrot.slane %v256_v48, %v2326_v35  ;;  %v2094_v9 = vld [vmem:[%s2711_s1 + $0x110] sm:$0xff]   ;;  %v2097_v13 = vld [vmem:[%s2711_s1 + $0x1c8] sm:$0xff]   ;;  %v2100_v15 = vld [vmem:[%s2711_s1 + $0x140] sm:$0xff]  }
  0x15   :  { %1856 = vmatpush3.bf16.msra.mxu1 %v2057_v19  ;;  %1835 = vmatprep.subr.bf16.mxu0 %v2058_v20  ;;  %v2095_v11 = vld [vmem:[%s2711_s1 + $0x190] sm:$0xff]   ;;  %v2098_v14 = vld [vmem:[%s2711_s1 + $0x108] sm:$0xff]   ;;  %v304_v17 = vcombine.high %v2428_v12, %v2428_v12  ;;  %v2101_v18 = vld [vmem:[%s2711_s1 + $0x1c0] sm:$0xff]   ;;  %v270_v20 = vrot.slane %v2346_v45, %v2326_v35 }
  0x16   :  { %1857 = vmatprep.subr.bf16.mxu1 %v2059_v21  ;;  %1004 = vmatprep.mubr.bf16.mxu1 %v287_v51  ;;  %v288_v56 = vcombine.high %v284_v53, %v284_v53  ;;  %v2099_v16 = vld [vmem:[%s2711_s1 + $0x188] sm:$0xff]   ;;  %v2102_v19 = vld [vmem:[%s2711_s1 + $0x100] sm:$0xff]   ;;  %v2104_v21 = vld [vmem:[%s2711_s1 + $0x278] sm:$0xff]  }
  0x17   :  { %v2103_v22 = vld [vmem:[%s2711_s1 + $0x180] sm:$0xff]   ;;  %v325_v23 = vrot.slane %v304_v17, %v2326_v35  ;;  %v2105_v24 = vld [vmem:[%s2711_s1 + $0x2f8] sm:$0xff]   ;;  %v2115_v39 = vld [vmem:[%s2711_s1 + $0x2a8] sm:$0xff]  }
  0x18   :  { %1836 = vmatpush3.bf16.msra.mxu0 %v2060_v25  ;;  %v2106_v25 = vld [vmem:[%s2711_s1 + $0x238] sm:$0xff]   ;;  %v2116_v38 = vld [vmem:[%s2711_s1 + $0x260] sm:$0xff]   ;;  %v2124_v46 = vld [vmem:[%s2711_s1 + $0x250] sm:$0xff]  }
  0x19   :  { %1858 = vmatpush3.bf16.msra.mxu1 %v2061_v26  ;;  %1837 = vmatprep.subr.bf16.mxu0 %v2062_v27  ;;  %v286_v26 = vcombine.high %v270_v20, %v270_v20  ;;  %v2108_v27 = vld [vmem:[%s2711_s1 + $0x270] sm:$0xff]   ;;  %v327_v29 = vcombine.high %v325_v23, %v325_v23  ;;  %v2117_v40 = vld [vmem:[%s2711_s1 + $0x2e0] sm:$0xff]   ;;  %v2122_v45 = vld [vmem:[%s2711_s1 + $0x218] sm:$0xff]  }
  0x1a   :  { %1859 = vmatprep.subr.bf16.mxu1 %v2063_v28  ;;  %v2107_v28 = vld [vmem:[%s2711_s1 + $0x2b8] sm:$0xff]   ;;  %v2119_v43 = vld [vmem:[%s2711_s1 + $0x2a0] sm:$0xff]   ;;  %v2125_v48 = vld [vmem:[%s2711_s1 + $0x2d0] sm:$0xff]  }
  0x1b   :  { %v2127_v51 = vld [vmem:[%s2711_s1 + $0x290] sm:$0xff]   ;;  %vm1680_vm5 = vmor %vm1679_vm4, %vm1678_vm3 }
  0x1c   :  { %1838 = vmatpush3.bf16.msra.mxu0 %v2064_v31  ;;  %v2109_v31 = vld [vmem:[%s2711_s1 + $0x2f0] sm:$0xff]   ;;  %vm1682_vm7 = vmor %vm1681_vm6, %vm1680_vm5 }
  0x1d   :  { %1860 = vmatpush3.bf16.msra.mxu1 %v2065_v32  ;;  %1839 = vmatprep.subr.bf16.mxu0 %v2066_v33  ;;  %v2110_v32 = vld [vmem:[%s2711_s1 + $0x230] sm:$0xff]   ;;  %v2112_v33 = vld [vmem:[%s2711_s1 + $0x268] sm:$0xff]  }
  0x1e   :  { %1861 = vmatprep.subr.bf16.mxu1 %v2067_v34  ;;  %v2111_v34 = vld [vmem:[%s2711_s1 + $0x2b0] sm:$0xff]  }
  0x20   :  { %1840 = vmatpush3.bf16.msra.mxu0 %v2068_v36  ;;  %v2113_v36 = vld [vmem:[%s2711_s1 + $0x2e8] sm:$0xff]  }
  0x21   :  { %1862 = vmatpush3.bf16.msra.mxu1 %v2069_v37  ;;  %1869 = vmatprep.subr.bf16.mxu0 %v2072_v41  ;;  %v2114_v37 = vld [vmem:[%s2711_s1 + $0x228] sm:$0xff]   ;;  %v2118_v41 = vld [vmem:[%s2711_s1 + $0x220] sm:$0xff]  }
  0x22   :  { %1891 = vmatprep.subr.bf16.mxu1 %v2073_v42  ;;  %v2120_v42 = vld [vmem:[%s2711_s1 + $0x258] sm:$0xff]  }
  0x23   :  { %965 = vmatmul.mubr.bf16.vlgmr.msra.gmra.mxu0 %v263_v44  ;;  %v2121_v44 = vld [vmem:[%s2711_s1 + $0x2d8] sm:$0xff]  }
  0x24   :  { %1870 = vmatpush3.bf16.msra.mxu0 %v2074_v47  ;;  %1005 = vmatmul.mubr.bf16.vlgmr.msra.gmra.mxu1 %v285_v49  ;;  %v2123_v47 = vld [vmem:[%s2711_s1 + $0x298] sm:$0xff]   ;;  %v2126_v49 = vld [vmem:[%s2711_s1 + $0x210] sm:$0xff]  }
  0x25   :  { %1871 = vmatprep.subr.bf16.mxu0 %v2076_v50  ;;  %1892 = vmatpush3.bf16.msra.mxu1 %v2075_v52  ;;  %v2128_v50 = vld [vmem:[%s2711_s1 + $0x248] sm:$0xff]  }
  0x26   :  { %1044 = vmatprep.mubr.bf16.mxu0 %v284_v53  ;;  %1893 = vmatprep.subr.bf16.mxu1 %v2077_v54  ;;  %v2129_v52 = vld [vmem:[%s2711_s1 + $0x2c8] sm:$0xff]   ;;  %v2132_v54 = vld [vmem:[%s2711_s1 + $0x240] sm:$0xff]  }
  0x27   :  { %1084 = vmatprep.mubr.bf16.mxu1 %v288_v56  ;;  %v2130_v53 = vld [vmem:[%s2711_s1 + $0x208] sm:$0xff]   ;;  %v2133_v56 = vld [vmem:[%s2711_s1 + $0x2c0] sm:$0xff]  }
  0x28   :  { %1872 = vmatpush3.bf16.msra.mxu0 %v2078_v55  ;;  %v2131_v55 = vld [vmem:[%s2711_s1 + $0x288] sm:$0xff]  }
  0x29   :  { %1873 = vmatprep.subr.bf16.mxu0 %v2080_v57  ;;  %1894 = vmatpush3.bf16.msra.mxu1 %v2079_v58  ;;  %v2134_v57 = vld [vmem:[%s2711_s1 + $0x200] sm:$0xff]   ;;  %v311_v58 = vrot.slane %v2428_v12, %v2326_v35 }
  0x2a   :  { %1895 = vmatprep.subr.bf16.mxu1 %v2081_v59  ;;  %v2135_v59 = vld [vmem:[%s2711_s1 + $0x280] sm:$0xff]  }
  0x2c   :  { %1874 = vmatpush3.bf16.msra.mxu0 %v2082_v60  ;;  %v289_v60 = vcombine.high %v2406_v5, %v2406_v5  ;;  %v2140_v5 = vld [vmem:[%s2713_s3 + $0x28] sm:$0xff]  }
  0x2d   :  { %1875 = vmatprep.subr.bf16.mxu0 %v2084_v61  ;;  %1896 = vmatpush3.bf16.msra.mxu1 %v2083_v62  ;;  %v2136_v61 = vld [vmem:[%s2711_s1 + $0x308] sm:$0xff]   ;;  %v326_v62 = vcombine.high %v311_v58, %v311_v58 }
  0x2e   :  { %1897 = vmatprep.subr.bf16.mxu1 %v2085_v63  ;;  %v2180_v63 = vmov 0.0  }
  0x30   :  { %1876 = vmatpush3.bf16.msra.mxu0 %v2086_v0  ;;  %v303_v0 = vrot.slane %v289_v60, %v2326_v35  ;;  %v2154_v60 = vld [vmem:[%s2716_s7 + $0x98] ss:$12 sps:$4 sm:$0xff]  }
  0x31   :  { %1877 = vmatprep.subr.bf16.mxu0 %v2088_v1  ;;  %1898 = vmatpush3.bf16.msra.mxu1 %v2087_v2  ;;  %v2137_v1 = vld [vmem:[%s2711_s1 + $0x300] sm:$0xff]  }
  0x32   :  { %1899 = vmatprep.subr.bf16.mxu1 %v2089_v3  ;;  %v318_v2 = vrot.slane %v303_v0, %v2326_v35  ;;  %v2138_v3 = vld [vmem:[%s2713_s3 + $0x38] sm:$0xff]  }
  0x33   :  { %v2166_v0 = vld [vmem:[%s2716_s7 + $0x50] ss:$12 sps:$4 sm:$0xff]  }
  0x34   :  { %1878 = vmatpush3.bf16.msra.mxu0 %v2090_v4  ;;  %v2139_v4 = vld [vmem:[%s2713_s3 + $0x30] sm:$0xff]  }
  0x35   :  { %1879 = vmatprep.subr.bf16.mxu0 %v2092_v6  ;;  %1900 = vmatpush3.bf16.msra.mxu1 %v2091_v7  ;;  %v2141_v6 = vld [vmem:[%s2713_s3 + $0x20] sm:$0xff]   ;;  %v2142_v7 = vld [vmem:[%s2713_s3 + $0x18] sm:$0xff]  }
  0x36   :  { %1901 = vmatprep.subr.bf16.mxu1 %v2093_v8  ;;  %v2143_v8 = vld [vmem:[%s2713_s3 + $0x10] sm:$0xff]  }
  0x38   :  { %1880 = vmatpush3.bf16.msra.mxu0 %v2094_v9  ;;  %v2144_v9 = vld [vmem:[%s2713_s3 + $0x8] sm:$0xff]  }
  0x39   :  { %1881 = vmatprep.subr.bf16.mxu0 %v2096_v10  ;;  %1902 = vmatpush3.bf16.msra.mxu1 %v2095_v11  ;;  %v2145_v10 = vld [vmem:[%s2713_s3] sm:$0xff]  }
  0x3a   :  { %1903 = vmatprep.subr.bf16.mxu1 %v2097_v13  ;;  %v2146_v11 = vld [vmem:[%s2714_s5] sm:$0xff]  }
  0x3c   :  { %1882 = vmatpush3.bf16.msra.mxu0 %v2098_v14 }
  0x3d   :  { %1883 = vmatprep.subr.bf16.mxu0 %v2100_v15  ;;  %1904 = vmatpush3.bf16.msra.mxu1 %v2099_v16 }
  0x3e   :  { %1905 = vmatprep.subr.bf16.mxu1 %v2101_v18 }
  0x40   :  { %1884 = vmatpush3.bf16.msra.mxu0 %v2102_v19 }
  0x41   :  { %1913 = vmatprep.subr.bf16.mxu0 %v2104_v21  ;;  %1906 = vmatpush3.bf16.msra.mxu1 %v2103_v22 }
  0x42   :  { %1935 = vmatprep.subr.bf16.mxu1 %v2105_v24 }
  0x43   :  { %1045 = vmatmul.mubr.bf16.vlgmr.msra.gmra.mxu0 %v270_v20 }
  0x44   :  { %1914 = vmatpush3.bf16.msra.mxu0 %v2106_v25  ;;  %1124 = vmatprep.mubr.bf16.mxu0 %v325_v23 }
  0x45   :  { %1085 = vmatmul.mubr.bf16.vlgmr.msra.gmra.mxu1 %v286_v26  ;;  %1915 = vmatprep.subr.bf16.mxu0 %v2108_v27 }
  0x46   :  { %1936 = vmatpush3.bf16.msra.mxu1 %v2107_v28  ;;  %1164 = vmatprep.mubr.bf16.mxu1 %v327_v29  ;;  %v1688_v29 = vld [vmem:[%s2715_s2] ss:$0 sm:$0xff] }
  0x47   :  { %1937 = vmatprep.subr.bf16.mxu1 %v2109_v31 }
  0x48   :  { %1916 = vmatpush3.bf16.msra.mxu0 %v2110_v32 }
  0x49   :  { %1917 = vmatprep.subr.bf16.mxu0 %v2112_v33 }
  0x4a   :  { %1938 = vmatpush3.bf16.msra.mxu1 %v2111_v34 }
  0x4b   :  { %1939 = vmatprep.subr.bf16.mxu1 %v2113_v36 }
  0x4c   :  { %1918 = vmatpush3.bf16.msra.mxu0 %v2114_v37 }
  0x4d   :  { %1919 = vmatprep.subr.bf16.mxu0 %v2116_v38 }
  0x4e   :  { %1940 = vmatpush3.bf16.msra.mxu1 %v2115_v39 }
  0x4f   :  { %1941 = vmatprep.subr.bf16.mxu1 %v2117_v40 }
  0x50   :  { %1920 = vmatpush3.bf16.msra.mxu0 %v2118_v41 }
  0x51   :  { %1921 = vmatprep.subr.bf16.mxu0 %v2120_v42 }
  0x52   :  { %1942 = vmatpush3.bf16.msra.mxu1 %v2119_v43 }
  0x53   :  { %1943 = vmatprep.subr.bf16.mxu1 %v2121_v44 }
  0x54   :  { %1922 = vmatpush3.bf16.msra.mxu0 %v2122_v45 }
  0x55   :  { %1923 = vmatprep.subr.bf16.mxu0 %v2124_v46 }
  0x56   :  { %1944 = vmatpush3.bf16.msra.mxu1 %v2123_v47 }
  0x57   :  { %1945 = vmatprep.subr.bf16.mxu1 %v2125_v48 }
  0x58   :  { %1924 = vmatpush3.bf16.msra.mxu0 %v2126_v49 }
  0x59   :  { %1925 = vmatprep.subr.bf16.mxu0 %v2128_v50 }
  0x5a   :  { %1946 = vmatpush3.bf16.msra.mxu1 %v2127_v51 }
  0x5b   :  { %1947 = vmatprep.subr.bf16.mxu1 %v2129_v52 }
  0x5c   :  { %1926 = vmatpush3.bf16.msra.mxu0 %v2130_v53 }
  0x5d   :  { %1927 = vmatprep.subr.bf16.mxu0 %v2132_v54 }
  0x5e   :  { %1948 = vmatpush3.bf16.msra.mxu1 %v2131_v55 }
  0x5f   :  { %1949 = vmatprep.subr.bf16.mxu1 %v2133_v56 }
  0x60   :  { %1928 = vmatpush3.bf16.msra.mxu0 %v2134_v57 }
  0x61   :  { %1980 = vmatprep.subr.bf16.mxu0 %v2180_v63 }
  0x62   :  { %1950 = vmatpush3.bf16.msra.mxu1 %v2135_v59  ;;  %v2150_v59 = vld [vmem:[%s2716_s7 + $0xb0] ss:$12 sps:$4 sm:$0xff]  }
  0x63   :  { %1125 = vmatmul.mubr.bf16.vlgmr.msra.gmra.mxu0 %v311_v58  ;;  %1988 = vmatprep.subr.bf16.mxu1 %v2180_v63  ;;  %v2149_v58 = vld [vmem:[%s2716_s7 + $0xac] ss:$12 sps:$4 sm:$0xff]  }
  0x64   :  { %1981 = vmatpush3.bf16.msra.mxu0 %v2136_v61  ;;  %1984 = vmatprep.mubr.msk.bf16.mxu0 %vm2181_vm0, %v2180_v63  ;;  %v2158_v61 = vld [vmem:[%s2716_s7 + $0x80] ss:$12 sps:$4 sm:$0xff]  }
  0x65   :  { %1165 = vmatmul.mubr.bf16.vlgmr.msra.gmra.mxu1 %v326_v62  ;;  %1982 = vmatprep.subr.bf16.mxu0 %v2180_v63  ;;  %v2162_v62 = vld [vmem:[%s2716_s7 + $0x68] ss:$12 sps:$4 sm:$0xff]  }
  0x66   :  { %2004 = vmatprep.mubr.msk.bf16.mxu1 %vm2181_vm0, %v2180_v63  ;;  %1989 = vmatpush3.bf16.msra.mxu1 %v2138_v3 }
  0x67   :  { %1990 = vmatprep.subr.bf16.mxu1 %v2180_v63 }
  0x68   :  { %1983 = vmatpush3.bf16.msra.mxu0 %v2137_v1  ;;  %v2170_v1 = vld [vmem:[%s2716_s7 + $0x38] ss:$12 sps:$4 sm:$0xff]  }
  0x69   :  { %2008 = vmatprep.subr.bf16.mxu0 %v2180_v63 }
  0x6a   :  { %1991 = vmatpush3.bf16.msra.mxu1 %v2139_v4 }
  0x6b   :  { %1985 = vmatmul.mubr.msk.bf16.vlgmr.msra.gmra.mxu0 %vm928_vm1, %v318_v2  ;;  %1992 = vmatprep.subr.bf16.mxu1 %v2180_v63  ;;  %v1788_v2 = vld [vmem:[%s2717_s4] ss:$0 sm:$0xff] }
  0x6c   :  { %2010 = vmatprep.mubr.msk.bf16.mxu0 %vm2181_vm0, %v2180_v63  ;;  %2009 = vmatpush3.bf16.msra.mxu0 %v2146_v11  ;;  %v2151_v11 = vld [vmem:[%s2716_s7 + $0x90] ss:$12 sps:$4 sm:$0xff]  }
  0x6d   :  { %1564 = vmatprep.subr.bf16.mxu0 %v2149_v58 }
  0x6e   :  { %1993 = vmatpush3.bf16.msra.mxu1 %v2140_v5 }
  0x6f   :  { %1994 = vmatprep.subr.bf16.mxu1 %v2180_v63 }
  0x72   :  { %1995 = vmatpush3.bf16.msra.mxu1 %v2141_v6  ;;  %v2147_v6 = vld [vmem:[%s2716_s7 + $0xa8] ss:$12 sps:$4 sm:$0xff]  }
  0x73   :  { %1996 = vmatprep.subr.bf16.mxu1 %v2180_v63 }
  0x76   :  { %1997 = vmatpush3.bf16.msra.mxu1 %v2142_v7 }
  0x77   :  { %1998 = vmatprep.subr.bf16.mxu1 %v2180_v63 }
  0x7a   :  { %1999 = vmatpush3.bf16.msra.mxu1 %v2143_v8  ;;  %v2153_v8 = vld [vmem:[%s2716_s7 + $0x94] ss:$12 sps:$4 sm:$0xff]  }
  0x7b   :  { %2000 = vmatprep.subr.bf16.mxu1 %v2180_v63 }
  0x7e   :  { %2001 = vmatpush3.bf16.msra.mxu1 %v2144_v9 }
  0x7f   :  { %2002 = vmatprep.subr.bf16.mxu1 %v2180_v63 }
  0x82   :  { %2003 = vmatpush3.bf16.msra.mxu1 %v2145_v10 }
  0x83   :  { %2014 = vmatprep.subr.bf16.mxu1 %v2180_v63 }
  0xe3   :  { %v1841_v12 = vpop.f32.mrf.mxu0 }
  0xe4   :  { %v1863_v13 = vpop.f32.mrf.mxu1 }
  0xe5   :  { %v1842_v14 = vpop.f32.mrf.mxu0 }
  0xe6   :  { %v1864_v15 = vpop.f32.mrf.mxu1  ;;  %v1843_v28 = vadd.f32 %v1842_v14, %v1841_v12  ;;  %v2157_v12 = vld [vmem:[%s2716_s7 + $0x7c] ss:$12 sps:$4 sm:$0xff]   ;;  %v2161_v14 = vld [vmem:[%s2716_s7 + $0x64] ss:$12 sps:$4 sm:$0xff]  }
  0xe7   :  { %v1844_v16 = vpop.f32.mrf.mxu0  ;;  %v1865_v32 = vadd.f32 %v1864_v15, %v1863_v13  ;;  %v2155_v13 = vld [vmem:[%s2716_s7 + $0x78] ss:$12 sps:$4 sm:$0xff]   ;;  %v2159_v15 = vld [vmem:[%s2716_s7 + $0x60] ss:$12 sps:$4 sm:$0xff]  }
  0xe8   :  { %v1866_v17 = vpop.f32.mrf.mxu1  ;;  %v967_v31 = vadd.f32 %v1843_v28, %v1688_v29  ;;  %v2165_v16 = vld [vmem:[%s2716_s7 + $0x4c] ss:$12 sps:$4 sm:$0xff]  }
  0xe9   :  { %v1845_v18 = vpop.f32.mrf.mxu0  ;;  %v2163_v17 = vld [vmem:[%s2716_s7 + $0x48] ss:$12 sps:$4 sm:$0xff]  }
  0xea   :  { %v1867_v19 = vpop.f32.mrf.mxu1  ;;  %v1007_v34 = vadd.f32 %v1865_v32, %v967_v31  ;;  %v2169_v18 = vld [vmem:[%s2716_s7 + $0x34] ss:$12 sps:$4 sm:$0xff]  }
  0xeb   :  { %v2167_v19 = vld [vmem:[%s2716_s7 + $0x30] ss:$12 sps:$4 sm:$0xff]  }
 0x103   :  { %v1885_v20 = vpop.f32.mrf.mxu0 }
 0x105   :  { %v1907_v21 = vpop.f32.mrf.mxu1  ;;  %v1886_v22 = vpop.f32.mrf.mxu0 }
 0x106   :  { %v1887_v33 = vadd.f32 %v1886_v22, %v1885_v20  ;;  %v2173_v20 = vld [vmem:[%s2716_s7 + $0x1c] ss:$12 sps:$4 sm:$0xff]   ;;  %v2174_v22 = vld [vmem:[%s2716_s7 + $0x20] ss:$12 sps:$4 sm:$0xff]  }
 0x107   :  { %v1908_v23 = vpop.f32.mrf.mxu1  ;;  %v1888_v24 = vpop.f32.mrf.mxu0 }
 0x108   :  { %v1047_v36 = vadd.f32 %v1887_v33, %v1007_v34  ;;  %v1909_v37 = vadd.f32 %v1908_v23, %v1907_v21  ;;  %v2171_v21 = vld [vmem:[%s2716_s7 + $0x18] ss:$12 sps:$4 sm:$0xff]   ;;  %v2175_v24 = vld [vmem:[%s2716_s7] ss:$12 sps:$4 sm:$0xff]  }
 0x109   :  { %v1910_v25 = vpop.f32.mrf.mxu1  ;;  %v1889_v26 = vpop.f32.mrf.mxu0  ;;  %v2177_v23 = vld [vmem:[%s2716_s7 + $0x4] ss:$12 sps:$4 sm:$0xff]  }
 0x10a   :  { %v1087_v41 = vadd.f32 %v1909_v37, %v1047_v36  ;;  %v2178_v25 = vld [vmem:[%s2716_s7 + $0x8] ss:$12 sps:$4 sm:$0xff]   ;;  %v2182_v26 = vmov 0   ;;  %v1423_v36 = vsub.s32 0, %v2311_v30  ;;  %v1431_v37 = vsub.s32 2, %v2311_v30 }
 0x10b   :  { %v1911_v27 = vpop.f32.mrf.mxu1 }
 0x10c   :  { %v1797_v27 = vld [vmem:[%s2718_s6] ss:$0 sm:$0xff] }
 0x123   :  { %v1929_v38 = vpop.f32.mrf.mxu0 }
 0x125   :  { %v1951_v39 = vpop.f32.mrf.mxu1  ;;  %v1930_v40 = vpop.f32.mrf.mxu0 }
 0x126   :  { %v1931_v42 = vadd.f32 %v1930_v40, %v1929_v38  ;;  %v1419_v38 = vld [vmem:[%s2719_s8] sm:$0x7] }
 0x127   :  { %v1952_v43 = vpop.f32.mrf.mxu1  ;;  %v1932_v44 = vpop.f32.mrf.mxu0  ;;  %v1424_v40 = vrot.slane %v1419_v38, %v1423_v36 }
 0x128   :  { %v1127_v45 = vadd.f32 %v1931_v42, %v1087_v41  ;;  %v1953_v46 = vadd.f32 %v1952_v43, %v1951_v39  ;;  %v1427_v39 = vsub.s32 1, %v2311_v30  ;;  %v1432_v41 = vrot.slane %v1419_v38, %v1431_v37 }
 0x129   :  { %v1954_v47 = vpop.f32.mrf.mxu1  ;;  %v1933_v48 = vpop.f32.mrf.mxu0 }
 0x12a   :  { %v1167_v49 = vadd.f32 %v1953_v46, %v1127_v45  ;;  %v1428_v42 = vrot.slane %v1419_v38, %v1427_v39 }
 0x12b   :  { %v1955_v50 = vpop.f32.mrf.mxu1  ;;  %v1206_v51 = vpop.f32.mrf.mxu0 }
 0x12c   :  { %v1207_v52 = vadd.f32 %v1206_v51, %v1167_v49 }
 0x12d   :  { %v1986_v53 = vpop.f32.mrf.mxu0 }
 0x12e   :  { %v1212_v54 = vmax.f32 %v1207_v52, 0.0 }
 0x12f   :  { %v1209_v55 = vpop.f32.mrf.mxu0 }
 0x130   :  { %v1213_v56 = vpack.c.bf16 %v1212_v54, %v1212_v54 }
 0x131   :  { %v1987_v57 = vpop.f32.mrf.mxu0 }
 0x132   :  { %2005 = vmatmul.mubr.bf16.vlgmr.msra.gmra.mxu1 %v1213_v56 }
 0x133   :  { %2030 = vmatprep.mubr.msk.bf16.mxu1 %vm2181_vm0, %v2180_v63  ;;  %2015 = vmatpush3.bf16.msra.mxu1 %v2150_v59 }
 0x134   :  { %2016 = vmatprep.subr.bf16.mxu1 %v2180_v63 }
 0x137   :  { %2017 = vmatpush3.bf16.msra.mxu1 %v2154_v60 }
 0x138   :  { %2018 = vmatprep.subr.bf16.mxu1 %v2180_v63 }
 0x13b   :  { %2019 = vmatpush3.bf16.msra.mxu1 %v2158_v61 }
 0x13c   :  { %2020 = vmatprep.subr.bf16.mxu1 %v2180_v63 }
 0x13f   :  { %2021 = vmatpush3.bf16.msra.mxu1 %v2162_v62 }
 0x140   :  { %2022 = vmatprep.subr.bf16.mxu1 %v2180_v63 }
 0x143   :  { %2023 = vmatpush3.bf16.msra.mxu1 %v2166_v0 }
 0x144   :  { %2024 = vmatprep.subr.bf16.mxu1 %v2180_v63 }
 0x147   :  { %2025 = vmatpush3.bf16.msra.mxu1 %v2170_v1 }
 0x148   :  { %2026 = vmatprep.subr.bf16.mxu1 %v2180_v63 }
 0x14b   :  { %2027 = vmatpush3.bf16.msra.mxu1 %v2174_v22 }
 0x14c   :  { %2028 = vmatprep.subr.bf16.mxu1 %v2180_v63 }
 0x14f   :  { %2029 = vmatpush3.bf16.msra.mxu1 %v2178_v25 }
 0x1f2   :  { %v1319_v3 = vpop.f32.mrf.mxu1 }
 0x1f3   :  { %v1320_v4 = vadd.f32 %v1788_v2, %v1319_v3 }
 0x1f4   :  { %v2006_v5 = vpop.f32.mrf.mxu1 }
 0x1f5   :  { %v1325_v7 = vpack.c.bf16 %v1320_v4, %v1320_v4 }
 0x1f6   :  { %v1322_v9 = vpop.f32.mrf.mxu1 }
 0x1f7   :  { %2011 = vmatmul.mubr.msk.bf16.vlgmr.msra.gmra.mxu0 %vm1341_vm2, %v1325_v7 }
 0x1f8   :  { %v2007_v10 = vpop.f32.mrf.mxu1  ;;  %1565 = vmatpush1.bf16.msra.mxu0 %v2147_v6  ;;  %1596 = vmatprep.mubr.bf16.mxu0 %v2182_v26 }
 0x1f9   :  { %1566 = vmatprep.subr.bf16.mxu0 %v2153_v8 }
 0x1fc   :  { %1567 = vmatpush1.bf16.msra.mxu0 %v2151_v11 }
 0x1fd   :  { %1568 = vmatprep.subr.bf16.mxu0 %v2157_v12 }
 0x200   :  { %1569 = vmatpush1.bf16.msra.mxu0 %v2155_v13 }
 0x201   :  { %1570 = vmatprep.subr.bf16.mxu0 %v2161_v14 }
 0x204   :  { %1571 = vmatpush1.bf16.msra.mxu0 %v2159_v15 }
 0x205   :  { %1572 = vmatprep.subr.bf16.mxu0 %v2165_v16 }
 0x208   :  { %1573 = vmatpush1.bf16.msra.mxu0 %v2163_v17 }
 0x209   :  { %1574 = vmatprep.subr.bf16.mxu0 %v2169_v18 }
 0x20c   :  { %1575 = vmatpush1.bf16.msra.mxu0 %v2167_v19 }
 0x20d   :  { %1576 = vmatprep.subr.bf16.mxu0 %v2173_v20 }
 0x210   :  { %1577 = vmatpush1.bf16.msra.mxu0 %v2171_v21 }
 0x211   :  { %1578 = vmatprep.subr.bf16.mxu0 %v2177_v23 }
 0x214   :  { %1579 = vmatpush1.bf16.msra.mxu0 %v2175_v24 }
 0x2b7   :  { %v1379_v28 = vpop.f32.mrf.mxu0 }
 0x2b8   :  { %v1380_v29 = vadd.f32 %v1797_v27, %v1379_v28 }
 0x2b9   :  { %v2012_v63 = vpop.f32.mrf.mxu0 }
 0x2ba   :  { %v1385_v31 = vmax.f32 %v1380_v29, 0.0 }
 0x2bb   :  { %v1382_v32 = vpop.f32.mrf.mxu0 }
 0x2bc   :  { %v1386_v33 = vpack.c.bf16 %v1385_v31, %v1385_v31 }
 0x2bd   :  { %v2013_v34 = vpop.f32.mrf.mxu0 }
 0x2be   :  { %1597 = vmatmul.mubr.bf16.vlgmr.msra.gmra.mxu0 %v1386_v33  ;;  %2031 = vmatmul.mubr.bf16.vlgmr.msra.gmra.mxu1 %v1386_v33 }
 0x37e   :  { %v1598_v43 = vpop.f32.mrf.mxu0  ;;  %v1639_v44 = vpop.f32.mrf.mxu1 }
 0x37f   :  { %v1599_v45 = vadd.f32 %v1598_v43, %v1424_v40  ;;  %v1640_v46 = vadd.f32 %v1639_v44, %v1432_v41 }
 0x380   :  { %v1600_v47 = vpop.f32.mrf.mxu0  ;;  %v2032_v48 = vpop.f32.mrf.mxu1 }
 0x381   :  { %v1647_v49 = vmax.f32 %v1640_v46, 0.0  ;;  %v1601_v50 = vadd.f32 %v1600_v47, %v1428_v42  ;;  %v1645_v53 = vmax.f32 %v1599_v45, 0.0 }
 0x382   :  { %v1602_v51 = vpop.f32.mrf.mxu0  ;;  %v1642_v52 = vpop.f32.mrf.mxu1 }
 0x383   :  { %v1650_v54 = vpack.c.bf16 %v1647_v49, %v1647_v49  ;;  %v1646_v55 = vmax.f32 %v1601_v50, 0.0 }
 0x384   :  { %v1603_v56 = vpop.f32.mrf.mxu0  ;;  %v2033_v30 = vpop.f32.mrf.mxu1 }
 0x385   :  { %v1824_v57 = vpack.c.bf16 %v1646_v55, %v1645_v53  ;;  %v1668_v58 = vrot.slane %v1650_v54, %v2326_v35 }
 0x387   :  { %v1661_v59 = vrot.slane %v1824_v57, %v2326_v35 }
 0x389   :  { %v1669_v60 = vcombine.low %v1661_v59, %v1668_v58 }
 0x38b   :  { %v1676_v61 = vrot.slane %v1669_v60, %v2326_v35 }
 0x38d   :  { %1683 = vst.msk [vmem:[%s2720_s9] sm:$0x7] %vm1682_vm7, %v1676_v61 }

// kernel: _lambda_.12
= control target key start
LH: loop header
LB: loop body
LE: loop exit
PB: predicated region body
PF: predicated region fallthrough
CT: control target
= control target key end

     0   :  { %v435_v1 = vmov 0.0   ;;  %vm436_vm0 = vmmov 0   ;;  %vm181_vm1 = vcmask 261120   ;;  %vm267_vm2 = vcmask 801792   ;;  %s544_s1 = inlined_call_operand.vmem [shape: bf16[288,98], index: 1, kind: input, shape index: {}]   ;;  %s545_s0 = inlined_call_operand.vmem [shape: bf16[16,288], index: 0, kind: input, shape index: {}]   ;;  %s546_s3 = inlined_call_operand.vmem [shape: f32[16,1], index: 3, kind: input, shape index: {}]   ;;  %s547_s2 = inlined_call_operand.vmem [shape: f32[16,1], index: 2, kind: input, shape index: {}]   ;;  %s548_s4 = inlined_call_operand.vmem [shape: bf16[16,98], index: 4, kind: output, shape index: {}]  }
   0x1   :  { %v409_v0 = vld [vmem:[%s544_s1 + $0x78] sm:$0xff]   ;;  %396 = vmatprep.subr.bf16.mxu1 %v435_v1  ;;  %400 = vmatprep.mubr.msk.bf16.mxu1 %vm436_vm0, %v435_v1  ;;  %v411_v3 = vld [vmem:[%s544_s1 + $0x70] sm:$0xff]   ;;  %v413_v5 = vld [vmem:[%s544_s1 + $0x68] sm:$0xff]   ;;  %v437_v40 = vmov 0   ;;  %vm338_vm3 = vcmask 797696  }
   0x2   :  { %v410_v2 = vld [vmem:[%s544_s1 + $0x38] sm:$0xff]   ;;  %371 = vmatprep.subr.bf16.mxu0 %v409_v0  ;;  %v412_v4 = vld [vmem:[%s544_s1 + $0x30] sm:$0xff]   ;;  %v414_v6 = vld [vmem:[%s544_s1 + $0x28] sm:$0xff]   ;;  %408 = vset.pattern.permute.xlu1 %v437_v40 }
   0x3   :  { %372 = vmatpush3.bf16.msra.mxu0 %v410_v2  ;;  %v415_v7 = vld [vmem:[%s544_s1 + $0x60] sm:$0xff]   ;;  %v417_v9 = vld [vmem:[%s544_s1 + $0x58] sm:$0xff]   ;;  %v421_v10 = vld [vmem:[%s544_s1 + $0x88] sm:$0xff]   ;;  %407 = vset.pattern.permute.xlu0 %v437_v40 }
   0x4   :  { %373 = vmatprep.subr.bf16.mxu0 %v411_v3  ;;  %v416_v8 = vld [vmem:[%s544_s1 + $0x20] sm:$0xff]   ;;  %v418_v11 = vld [vmem:[%s544_s1 + $0x18] sm:$0xff]   ;;  %397 = vmatpush3.bf16.msra.mxu1 %v421_v10  ;;  %v419_v13 = vld [vmem:[%s544_s1 + $0x50] sm:$0xff]  }
   0x5   :  { %398 = vmatprep.subr.bf16.mxu1 %v435_v1  ;;  %v424_v12 = vld [vmem:[%s544_s1 + $0x80] sm:$0xff]   ;;  %v427_v14 = vld [vmem:[%s545_s0 + $0x8] ss:$12 sps:$4 sm:$0xff]  }
   0x6   :  { %v420_v15 = vld [vmem:[%s544_s1 + $0x10] sm:$0xff]   ;;  %v422_v16 = vld [vmem:[%s544_s1 + $0x48] sm:$0xff]   ;;  %v425_v19 = vld [vmem:[%s544_s1 + $0x40] sm:$0xff]  }
   0x7   :  { %374 = vmatpush3.bf16.msra.mxu0 %v412_v4  ;;  %v430_v17 = vld [vmem:[%s545_s0 + $0x4] ss:$12 sps:$4 sm:$0xff]   ;;  %v423_v18 = vld [vmem:[%s544_s1 + $0x8] sm:$0xff]  }
   0x8   :  { %375 = vmatprep.subr.bf16.mxu0 %v413_v5  ;;  %399 = vmatpush3.bf16.msra.mxu1 %v424_v12  ;;  %v426_v20 = vld [vmem:[%s544_s1] sm:$0xff]   ;;  %v297_v61 = vld [vmem:[%s547_s2 + $0x8] sm:$0xff] }
   0x9   :  { %217 = vmatprep.mubr.bf16.mxu0 %v430_v17  ;;  %v428_v21 = vld [vmem:[%s545_s0] ss:$12 sps:$4 sm:$0xff]  }
   0xa   :  { %v314_v41 = vld [vmem:[%s546_s3] sm:$0xff]  ;;  %v315_v0 = vld [vmem:[%s546_s3 + $0x8] sm:$0xff] }
   0xb   :  { %376 = vmatpush3.bf16.msra.mxu0 %v414_v6  ;;  %401 = vmatmul.mubr.msk.bf16.vlgmr.msra.gmra.mxu1 %vm181_vm1, %v427_v14  ;;  %v296_v58 = vld [vmem:[%s547_s2] sm:$0xff] }
   0xc   :  { %377 = vmatprep.subr.bf16.mxu0 %v415_v7 }
   0xf   :  { %378 = vmatpush3.bf16.msra.mxu0 %v416_v8 }
  0x10   :  { %379 = vmatprep.subr.bf16.mxu0 %v417_v9 }
  0x13   :  { %380 = vmatpush3.bf16.msra.mxu0 %v418_v11 }
  0x14   :  { %381 = vmatprep.subr.bf16.mxu0 %v419_v13 }
  0x17   :  { %382 = vmatpush3.bf16.msra.mxu0 %v420_v15 }
  0x18   :  { %383 = vmatprep.subr.bf16.mxu0 %v422_v16 }
  0x1b   :  { %384 = vmatpush3.bf16.msra.mxu0 %v423_v18 }
  0x1c   :  { %385 = vmatprep.subr.bf16.mxu0 %v425_v19 }
  0x1f   :  { %386 = vmatpush3.bf16.msra.mxu0 %v426_v20 }
  0x22   :  { %218 = vmatmul.mubr.bf16.vlgmr.msra.gmra.mxu0 %v428_v21 }
  0xcb   :  { %v260_v22 = vpop.f32.mrf.mxu1 }
  0xcd   :  { %v402_v23 = vpop.f32.mrf.mxu1 }
  0xcf   :  { %v263_v24 = vpop.f32.mrf.mxu1 }
  0xd1   :  { %v403_v25 = vpop.f32.mrf.mxu1 }
  0xe2   :  { %v387_v26 = vpop.f32.mrf.mxu0 }
  0xe4   :  { %v388_v27 = vpop.f32.mrf.mxu0 }
  0xe5   :  { %v389_v28 = vadd.f32 %v388_v27, %v387_v26 }
  0xe6   :  { %v390_v29 = vpop.f32.mrf.mxu0 }
  0xe7   :  { %v261_v30 = vadd.f32 %v389_v28, %v260_v22 }
  0xe8   :  { %v391_v31 = vpop.f32.mrf.mxu0 }
  0xe9   :  { %v392_v32 = vadd.f32 %v391_v31, %v390_v29  ;;  %v268_v33 = vsel %vm267_vm2, %v261_v30, 0.0  ;;  %v276_v34 = vmul.f32 %v261_v30, %v261_v30 }
  0xea   :  { %269 = vadd.xlane.f32.xlu0 %v268_v33 }
  0xeb   :  { %v264_v35 = vadd.f32 %v392_v32, %v263_v24  ;;  %v278_v36 = vsel %vm267_vm2, %v276_v34, 0.0 }
  0xec   :  { %279 = vadd.xlane.f32.xlu1 %v278_v36 }
  0xed   :  { %v271_v37 = vsel %vm267_vm2, %v264_v35, 0.0  ;;  %v277_v38 = vmul.f32 %v264_v35, %v264_v35 }
  0xee   :  { %272 = vadd.xlane.f32.xlu0 %v271_v37 }
  0xef   :  { %v281_v39 = vsel %vm267_vm2, %v277_v38, 0.0 }
  0xf0   :  { %282 = vadd.xlane.f32.xlu1 %v281_v39 }
 0x101   :  { %318 = vperm.xlu1 %408, %v314_v41  }
 0x173   :  { %v270_v42 = vpop.xlane.xlu0 %269 }
 0x174   :  { %v274_v43 = vmul.f32 0.010204081, %v270_v42 }
 0x175   :  { %v280_v44 = vpop.xlane.xlu1 %279 }
 0x176   :  { %v286_v45 = vmul.f32 %v274_v43, %v274_v43  ;;  %v284_v46 = vmul.f32 0.010204081, %v280_v44  ;;  %v300_v2 = vsub.f32 %v261_v30, %v274_v43 }
 0x177   :  { %v273_v47 = vpop.xlane.xlu0 %272 }
 0x178   :  { %v288_v48 = vsub.f32 %v284_v46, %v286_v45  ;;  %v275_v49 = vmul.f32 0.010204081, %v273_v47 }
 0x179   :  { %v283_v50 = vpop.xlane.xlu1 %282 }
 0x17a   :  { %v290_v51 = vmax.f32 %v288_v48, 0.0  ;;  %v287_v52 = vmul.f32 %v275_v49, %v275_v49  ;;  %v285_v53 = vmul.f32 0.010204081, %v283_v50  ;;  %v301_v8 = vsub.f32 %v264_v35, %v275_v49 }
 0x17c   :  { %v292_v54 = vadd.f32 1e-05, %v290_v51  ;;  %v289_v55 = vsub.f32 %v285_v53, %v287_v52 }
 0x17d   :  { %v319_v1 = vpop.permute.xlu1 %318 }
 0x17e   :  { %431 = vrsqrt.f32 %v292_v54  ;;  %v291_v56 = vmax.f32 %v289_v55, 0.0 }
 0x180   :  { %v293_v57 = vadd.f32 1e-05, %v291_v56 }
 0x182   :  { %433 = vrsqrt.f32 %v293_v57 }
 0x18b   :  { %v432_v59 = vpop.eup %431 }
 0x18c   :  { %v298_v60 = vmul.f32 %v432_v59, %v296_v58 }
 0x18e   :  { %304 = vperm.xlu0 %407, %v298_v60  }
 0x18f   :  { %v434_v62 = vpop.eup %433 }
 0x190   :  { %v299_v63 = vmul.f32 %v434_v62, %v297_v61 }
 0x192   :  { %309 = vperm.xlu1 %408, %v299_v63  }
 0x196   :  { %323 = vperm.xlu1 %408, %v315_v0  }
 0x209   :  { %v305_v3 = vpop.permute.xlu0 %304 }
 0x20a   :  { %v312_v4 = vmul.f32 %v305_v3, %v300_v2 }
 0x20c   :  { %v326_v5 = vadd.f32 %v319_v1, %v312_v4 }
 0x20d   :  { %v310_v6 = vpop.permute.xlu1 %309 }
 0x20e   :  { %v328_v7 = vmax.f32 %v326_v5, 0.0  ;;  %v313_v10 = vmul.f32 %v310_v6, %v301_v8 }
 0x210   :  { %v369_v9 = vpack.c.bf16 %v328_v7, %v328_v7 }
 0x211   :  { %v324_v11 = vpop.permute.xlu1 %323 }
 0x212   :  { %339 = vst.msk [vmem:[%s548_s4] sm:$0xf] %vm338_vm3, %v369_v9  ;;  %v327_v12 = vadd.f32 %v324_v11, %v313_v10 }
 0x214   :  { %v329_v13 = vmax.f32 %v327_v12, 0.0 }
 0x216   :  { %v370_v14 = vpack.c.bf16 %v329_v13, %v329_v13 }
 0x218   :  { %340 = vst.msk [vmem:[%s548_s4 + $0x4] sm:$0xf] %vm338_vm3, %v370_v14 }

// kernel: _lambda_.13
= control target key start
LH: loop header
LB: loop body
LE: loop exit
PB: predicated region body
PF: predicated region fallthrough
CT: control target
= control target key end

     0   :  { %vm493_vm0 = vcmask 539648   ;;  %vm561_vm1 = vcmask 1043456   ;;  %vm562_vm2 = vcmask 539652   ;;  %s977_s1 = inlined_call_operand.vmem [shape: bf16[256,450], index: 1, kind: input, shape index: {}]   ;;  %s978_s0 = inlined_call_operand.vmem [shape: bf16[8,256], index: 0, kind: input, shape index: {}]   ;;  %s979_s2 = inlined_call_operand.vmem [shape: f32[8,1], index: 2, kind: input, shape index: {}]   ;;  %s980_s3 = inlined_call_operand.vmem [shape: f32[8,1], index: 3, kind: input, shape index: {}]   ;;  %s981_s4 = inlined_call_operand.vmem [shape: bf16[8,450], index: 4, kind: output, shape index: {}]  }
   0x1   :  { %v642_v0 = vld [vmem:[%s977_s1 + $0xe4] ss:$16 sps:$4 sm:$0xff]   ;;  %v644_v1 = vld [vmem:[%s977_s1 + $0xec] ss:$16 sps:$4 sm:$0xff]   ;;  %v646_v2 = vld [vmem:[%s977_s1 + $0xe0] ss:$16 sps:$4 sm:$0xff]  }
   0x2   :  { %409 = vmatprep.subr.bf16.mxu0 %v642_v0  ;;  %v647_v3 = vld [vmem:[%s977_s1 + $0xe8] ss:$16 sps:$4 sm:$0xff]   ;;  %450 = vmatprep.subr.bf16.mxu1 %v644_v1  ;;  %v648_v4 = vld [vmem:[%s977_s1 + $0xc4] ss:$16 sps:$4 sm:$0xff]   ;;  %v650_v5 = vld [vmem:[%s977_s1 + $0xcc] ss:$16 sps:$4 sm:$0xff]  }
   0x3   :  { %410 = vmatpush1.bf16.msra.mxu0 %v646_v2  ;;  %451 = vmatpush1.bf16.msra.mxu1 %v647_v3  ;;  %v652_v6 = vld [vmem:[%s977_s1 + $0xc0] ss:$16 sps:$4 sm:$0xff]   ;;  %v653_v7 = vld [vmem:[%s977_s1 + $0xc8] ss:$16 sps:$4 sm:$0xff]   ;;  %v654_v8 = vld [vmem:[%s977_s1 + $0xa4] ss:$16 sps:$4 sm:$0xff]  }
   0x4   :  { %411 = vmatprep.subr.bf16.mxu0 %v648_v4  ;;  %452 = vmatprep.subr.bf16.mxu1 %v650_v5  ;;  %v656_v9 = vld [vmem:[%s977_s1 + $0xac] ss:$16 sps:$4 sm:$0xff]   ;;  %v658_v10 = vld [vmem:[%s977_s1 + $0xa0] ss:$16 sps:$4 sm:$0xff]   ;;  %v659_v11 = vld [vmem:[%s977_s1 + $0xa8] ss:$16 sps:$4 sm:$0xff]  }
   0x5   :  { %v660_v12 = vld [vmem:[%s977_s1 + $0x84] ss:$16 sps:$4 sm:$0xff]   ;;  %v662_v13 = vld [vmem:[%s977_s1 + $0x8c] ss:$16 sps:$4 sm:$0xff]   ;;  %v664_v14 = vld [vmem:[%s977_s1 + $0x80] ss:$16 sps:$4 sm:$0xff]  }
   0x6   :  { %v665_v15 = vld [vmem:[%s977_s1 + $0x88] ss:$16 sps:$4 sm:$0xff]   ;;  %v666_v16 = vld [vmem:[%s977_s1 + $0x64] ss:$16 sps:$4 sm:$0xff]   ;;  %v668_v17 = vld [vmem:[%s977_s1 + $0x6c] ss:$16 sps:$4 sm:$0xff]  }
   0x7   :  { %412 = vmatpush1.bf16.msra.mxu0 %v652_v6  ;;  %453 = vmatpush1.bf16.msra.mxu1 %v653_v7  ;;  %v670_v18 = vld [vmem:[%s977_s1 + $0x60] ss:$16 sps:$4 sm:$0xff]   ;;  %v671_v19 = vld [vmem:[%s977_s1 + $0x68] ss:$16 sps:$4 sm:$0xff]   ;;  %v672_v20 = vld [vmem:[%s977_s1 + $0x44] ss:$16 sps:$4 sm:$0xff]  }
   0x8   :  { %413 = vmatprep.subr.bf16.mxu0 %v654_v8  ;;  %454 = vmatprep.subr.bf16.mxu1 %v656_v9  ;;  %v674_v21 = vld [vmem:[%s977_s1 + $0x4c] ss:$16 sps:$4 sm:$0xff]   ;;  %v676_v22 = vld [vmem:[%s977_s1 + $0x40] ss:$16 sps:$4 sm:$0xff]   ;;  %v677_v23 = vld [vmem:[%s977_s1 + $0x48] ss:$16 sps:$4 sm:$0xff]  }
   0x9   :  { %v678_v24 = vld [vmem:[%s977_s1 + $0x24] ss:$16 sps:$4 sm:$0xff]   ;;  %v680_v25 = vld [vmem:[%s977_s1 + $0x2c] ss:$16 sps:$4 sm:$0xff]   ;;  %v682_v26 = vld [vmem:[%s977_s1 + $0x20] ss:$16 sps:$4 sm:$0xff]  }
   0xa   :  { %v683_v27 = vld [vmem:[%s977_s1 + $0x28] ss:$16 sps:$4 sm:$0xff]   ;;  %v684_v28 = vld [vmem:[%s977_s1 + $0x4] ss:$16 sps:$4 sm:$0xff]   ;;  %v686_v29 = vld [vmem:[%s977_s1 + $0xc] ss:$16 sps:$4 sm:$0xff]  }
   0xb   :  { %414 = vmatpush1.bf16.msra.mxu0 %v658_v10  ;;  %455 = vmatpush1.bf16.msra.mxu1 %v659_v11  ;;  %v688_v30 = vld [vmem:[%s977_s1] ss:$16 sps:$4 sm:$0xff]   ;;  %v689_v31 = vld [vmem:[%s977_s1 + $0x8] ss:$16 sps:$4 sm:$0xff]   ;;  %v690_v32 = vld [vmem:[%s977_s1 + $0x1e4] ss:$16 sps:$4 sm:$0xff]  }
   0xc   :  { %415 = vmatprep.subr.bf16.mxu0 %v660_v12  ;;  %456 = vmatprep.subr.bf16.mxu1 %v662_v13  ;;  %v692_v33 = vld [vmem:[%s977_s1 + $0x1ec] ss:$16 sps:$4 sm:$0xff]   ;;  %v694_v34 = vld [vmem:[%s977_s1 + $0x1e0] ss:$16 sps:$4 sm:$0xff]   ;;  %v695_v35 = vld [vmem:[%s977_s1 + $0x1e8] ss:$16 sps:$4 sm:$0xff]  }
   0xd   :  { %v696_v36 = vld [vmem:[%s977_s1 + $0x1c4] ss:$16 sps:$4 sm:$0xff]   ;;  %v698_v37 = vld [vmem:[%s977_s1 + $0x1cc] ss:$16 sps:$4 sm:$0xff]   ;;  %v700_v38 = vld [vmem:[%s977_s1 + $0x1c0] ss:$16 sps:$4 sm:$0xff]  }
   0xe   :  { %v701_v39 = vld [vmem:[%s977_s1 + $0x1c8] ss:$16 sps:$4 sm:$0xff]   ;;  %v702_v40 = vld [vmem:[%s977_s1 + $0x1a4] ss:$16 sps:$4 sm:$0xff]   ;;  %v704_v41 = vld [vmem:[%s977_s1 + $0x1ac] ss:$16 sps:$4 sm:$0xff]  }
   0xf   :  { %416 = vmatpush1.bf16.msra.mxu0 %v664_v14  ;;  %457 = vmatpush1.bf16.msra.mxu1 %v665_v15  ;;  %v706_v42 = vld [vmem:[%s977_s1 + $0x1a0] ss:$16 sps:$4 sm:$0xff]   ;;  %v707_v43 = vld [vmem:[%s977_s1 + $0x1a8] ss:$16 sps:$4 sm:$0xff]   ;;  %v708_v44 = vld [vmem:[%s977_s1 + $0x184] ss:$16 sps:$4 sm:$0xff]  }
  0x10   :  { %417 = vmatprep.subr.bf16.mxu0 %v666_v16  ;;  %458 = vmatprep.subr.bf16.mxu1 %v668_v17  ;;  %v710_v45 = vld [vmem:[%s977_s1 + $0x18c] ss:$16 sps:$4 sm:$0xff]   ;;  %v17_v46 = vld [vmem:[%s978_s0] sm:$0xff]  ;;  %v713_v49 = vld [vmem:[%s977_s1 + $0x188] ss:$16 sps:$4 sm:$0xff]  }
  0x11   :  { %v570_v47 = vcombine.high %v17_v46, %v17_v46  ;;  %v712_v48 = vld [vmem:[%s977_s1 + $0x180] ss:$16 sps:$4 sm:$0xff]   ;;  %v714_v50 = vld [vmem:[%s977_s1 + $0x164] ss:$16 sps:$4 sm:$0xff]   ;;  %v716_v51 = vld [vmem:[%s977_s1 + $0x16c] ss:$16 sps:$4 sm:$0xff]   ;;  %v569_v2 = vcombine.low %v17_v46, %v17_v46 }
  0x12   :  { %v718_v52 = vld [vmem:[%s977_s1 + $0x160] ss:$16 sps:$4 sm:$0xff]   ;;  %v719_v53 = vld [vmem:[%s977_s1 + $0x168] ss:$16 sps:$4 sm:$0xff]   ;;  %v720_v54 = vld [vmem:[%s977_s1 + $0x144] ss:$16 sps:$4 sm:$0xff]  }
  0x13   :  { %418 = vmatpush1.bf16.msra.mxu0 %v670_v18  ;;  %459 = vmatpush1.bf16.msra.mxu1 %v671_v19  ;;  %v722_v55 = vld [vmem:[%s977_s1 + $0x14c] ss:$16 sps:$4 sm:$0xff]   ;;  %v724_v56 = vld [vmem:[%s977_s1 + $0x140] ss:$16 sps:$4 sm:$0xff]   ;;  %v725_v57 = vld [vmem:[%s977_s1 + $0x148] ss:$16 sps:$4 sm:$0xff]  }
  0x14   :  { %419 = vmatprep.subr.bf16.mxu0 %v672_v20  ;;  %460 = vmatprep.subr.bf16.mxu1 %v674_v21  ;;  %v726_v58 = vld [vmem:[%s977_s1 + $0x124] ss:$16 sps:$4 sm:$0xff]   ;;  %v728_v59 = vld [vmem:[%s977_s1 + $0x12c] ss:$16 sps:$4 sm:$0xff]   ;;  %v730_v60 = vld [vmem:[%s977_s1 + $0x120] ss:$16 sps:$4 sm:$0xff]  }
  0x15   :  { %441 = vmatprep.mubr.bf16.mxu0 %v570_v47  ;;  %482 = vmatprep.mubr.bf16.mxu1 %v570_v47  ;;  %v731_v61 = vld [vmem:[%s977_s1 + $0x128] ss:$16 sps:$4 sm:$0xff]   ;;  %v732_v62 = vld [vmem:[%s977_s1 + $0x104] ss:$16 sps:$4 sm:$0xff]   ;;  %v734_v63 = vld [vmem:[%s977_s1 + $0x10c] ss:$16 sps:$4 sm:$0xff]  }
  0x16   :  { %v736_v0 = vld [vmem:[%s977_s1 + $0x100] ss:$16 sps:$4 sm:$0xff]   ;;  %v737_v1 = vld [vmem:[%s977_s1 + $0x108] ss:$16 sps:$4 sm:$0xff]   ;;  %vm563_vm3 = vmor %vm562_vm2, %vm561_vm1 }
  0x17   :  { %420 = vmatpush1.bf16.msra.mxu0 %v676_v22  ;;  %461 = vmatpush1.bf16.msra.mxu1 %v677_v23  ;;  %v742_v23 = vmov 0  }
  0x18   :  { %421 = vmatprep.subr.bf16.mxu0 %v678_v24  ;;  %462 = vmatprep.subr.bf16.mxu1 %v680_v25 }
  0x19   :  { %640 = vset.pattern.permute.xlu1 %v742_v23  ;;  %641 = vset.pattern.permute.xlu0 %v742_v23 }
  0x1b   :  { %422 = vmatpush1.bf16.msra.mxu0 %v682_v26  ;;  %463 = vmatpush1.bf16.msra.mxu1 %v683_v27 }
  0x1c   :  { %423 = vmatprep.subr.bf16.mxu0 %v684_v28  ;;  %464 = vmatprep.subr.bf16.mxu1 %v686_v29 }
  0x1f   :  { %424 = vmatpush1.bf16.msra.mxu0 %v688_v30  ;;  %465 = vmatpush1.bf16.msra.mxu1 %v689_v31 }
  0x20   :  { %425 = vmatprep.subr.bf16.mxu0 %v690_v32  ;;  %466 = vmatprep.subr.bf16.mxu1 %v692_v33  ;;  %v515_v32 = vld [vmem:[%s979_s2] sm:$0xff] }
  0x23   :  { %426 = vmatpush2.bf16.msra.mxu0 %v694_v34  ;;  %467 = vmatpush2.bf16.msra.mxu1 %v695_v35  ;;  %v530_v35 = vld [vmem:[%s980_s3] sm:$0xff] }
  0x24   :  { %427 = vmatprep.subr.bf16.mxu0 %v696_v36  ;;  %468 = vmatprep.subr.bf16.mxu1 %v698_v37 }
  0x27   :  { %428 = vmatpush2.bf16.msra.mxu0 %v700_v38  ;;  %469 = vmatpush2.bf16.msra.mxu1 %v701_v39 }
  0x28   :  { %429 = vmatprep.subr.bf16.mxu0 %v702_v40  ;;  %470 = vmatprep.subr.bf16.mxu1 %v704_v41 }
  0x2b   :  { %430 = vmatpush2.bf16.msra.mxu0 %v706_v42  ;;  %471 = vmatpush2.bf16.msra.mxu1 %v707_v43 }
  0x2c   :  { %431 = vmatprep.subr.bf16.mxu0 %v708_v44  ;;  %472 = vmatprep.subr.bf16.mxu1 %v710_v45 }
  0x2f   :  { %432 = vmatpush2.bf16.msra.mxu0 %v712_v48  ;;  %473 = vmatpush2.bf16.msra.mxu1 %v713_v49 }
  0x30   :  { %433 = vmatprep.subr.bf16.mxu0 %v714_v50  ;;  %474 = vmatprep.subr.bf16.mxu1 %v716_v51 }
  0x33   :  { %434 = vmatpush2.bf16.msra.mxu0 %v718_v52  ;;  %475 = vmatpush2.bf16.msra.mxu1 %v719_v53 }
  0x34   :  { %435 = vmatprep.subr.bf16.mxu0 %v720_v54  ;;  %476 = vmatprep.subr.bf16.mxu1 %v722_v55 }
  0x37   :  { %436 = vmatpush2.bf16.msra.mxu0 %v724_v56  ;;  %477 = vmatpush2.bf16.msra.mxu1 %v725_v57 }
  0x38   :  { %437 = vmatprep.subr.bf16.mxu0 %v726_v58  ;;  %478 = vmatprep.subr.bf16.mxu1 %v728_v59 }
  0x3b   :  { %438 = vmatpush2.bf16.msra.mxu0 %v730_v60  ;;  %479 = vmatpush2.bf16.msra.mxu1 %v731_v61 }
  0x3c   :  { %439 = vmatprep.subr.bf16.mxu0 %v732_v62  ;;  %480 = vmatprep.subr.bf16.mxu1 %v734_v63 }
  0x3f   :  { %440 = vmatpush2.bf16.msra.mxu0 %v736_v0  ;;  %481 = vmatpush2.bf16.msra.mxu1 %v737_v1 }
  0x42   :  { %442 = vmatmul.mubr.bf16.vlgmr.msra.gmra.mxu0 %v569_v2  ;;  %483 = vmatmul.mubr.bf16.vlgmr.msra.gmra.mxu1 %v569_v2 }
 0x102   :  { %v443_v3 = vpop.f32.mrf.mxu0  ;;  %v484_v4 = vpop.f32.mrf.mxu1 }
 0x103   :  { %v499_v7 = vmul.f32 %v443_v3, %v443_v3  ;;  %v501_v8 = vmul.f32 %v484_v4, %v484_v4 }
 0x104   :  { %v445_v5 = vpop.f32.mrf.mxu0  ;;  %v486_v6 = vpop.f32.mrf.mxu1 }
 0x105   :  { %v491_v9 = vadd.f32 %v445_v5, %v443_v3  ;;  %v500_v10 = vmul.f32 %v445_v5, %v445_v5  ;;  %v502_v15 = vmul.f32 %v486_v6, %v486_v6  ;;  %v494_v18 = vsel %vm493_vm0, %v486_v6, 0.0 }
 0x106   :  { %v447_v11 = vpop.f32.mrf.mxu0  ;;  %v488_v12 = vpop.f32.mrf.mxu1 }
 0x107   :  { %v492_v13 = vadd.f32 %v491_v9, %v484_v4  ;;  %v503_v14 = vadd.f32 %v500_v10, %v499_v7  ;;  %v505_v21 = vsel %vm493_vm0, %v502_v15, 0.0 }
 0x108   :  { %v448_v16 = vpop.f32.mrf.mxu0  ;;  %v489_v17 = vpop.f32.mrf.mxu1 }
 0x109   :  { %v495_v19 = vadd.f32 %v494_v18, %v492_v13  ;;  %v504_v20 = vadd.f32 %v503_v14, %v501_v8 }
 0x10b   :  { %496 = vadd.xlane.f32.xlu0 %v495_v19  ;;  %v506_v22 = vadd.f32 %v505_v21, %v504_v20 }
 0x10f   :  { %507 = vadd.xlane.f32.xlu0 %v506_v22 }
 0x194   :  { %v497_v24 = vpop.xlane.xlu0 %496 }
 0x195   :  { %v498_v25 = vmul.f32 0.0022222223, %v497_v24 }
 0x197   :  { %v510_v27 = vmul.f32 %v498_v25, %v498_v25  ;;  %v517_v37 = vsub.f32 %v443_v3, %v498_v25  ;;  %v518_v38 = vsub.f32 %v445_v5, %v498_v25  ;;  %v519_v39 = vsub.f32 %v484_v4, %v498_v25 }
 0x198   :  { %v508_v26 = vpop.xlane.xlu0 %507  ;;  %v520_v40 = vsub.f32 %v486_v6, %v498_v25 }
 0x199   :  { %v509_v28 = vmul.f32 0.0022222223, %v508_v26 }
 0x19b   :  { %v511_v29 = vsub.f32 %v509_v28, %v510_v27 }
 0x19d   :  { %v512_v30 = vmax.f32 %v511_v29, 0.0 }
 0x19f   :  { %v513_v31 = vadd.f32 1e-05, %v512_v30 }
 0x1a1   :  { %740 = vrsqrt.f32 %v513_v31 }
 0x1ae   :  { %v741_v33 = vpop.eup %740 }
 0x1af   :  { %v516_v34 = vmul.f32 %v741_v33, %v515_v32 }
 0x1b1   :  { %523 = vperm.xlu1 %640, %v516_v34  }
 0x1b5   :  { %533 = vperm.xlu1 %640, %v530_v35  }
 0x22c   :  { %v524_v36 = vpop.permute.xlu1 %523 }
 0x22d   :  { %v526_v41 = vmul.f32 %v524_v36, %v517_v37  ;;  %v527_v42 = vmul.f32 %v524_v36, %v518_v38  ;;  %v528_v43 = vmul.f32 %v524_v36, %v519_v39  ;;  %v529_v44 = vmul.f32 %v524_v36, %v520_v40 }
 0x230   :  { %v534_v45 = vpop.permute.xlu1 %533 }
 0x231   :  { %v536_v46 = vadd.f32 %v534_v45, %v526_v41  ;;  %v537_v47 = vadd.f32 %v534_v45, %v527_v42  ;;  %v538_v48 = vadd.f32 %v534_v45, %v528_v43  ;;  %v539_v49 = vadd.f32 %v534_v45, %v529_v44 }
 0x233   :  { %v540_v50 = vmax.f32 %v536_v46, 0.0  ;;  %v541_v51 = vmax.f32 %v537_v47, 0.0  ;;  %v542_v52 = vmax.f32 %v538_v48, 0.0  ;;  %v543_v53 = vmax.f32 %v539_v49, 0.0 }
 0x235   :  { %v637_v54 = vpack.c.bf16 %v541_v51, %v540_v50  ;;  %v638_v55 = vpack.c.bf16 %v543_v53, %v542_v52 }
 0x237   :  { %560 = vst [vmem:[%s981_s4] sm:$0xff] %v637_v54  ;;  %564 = vst.msk [vmem:[%s981_s4 + $0x8] sm:$0xff] %vm563_vm3, %v638_v55 }

// kernel: _lambda_.14
= control target key start
LH: loop header
LB: loop body
LE: loop exit
PB: predicated region body
PF: predicated region fallthrough
CT: control target
= control target key end

     0   :  { %v1359_v3 = vmov 0   ;;  %vm1205_vm0 = vcmask 1043456   ;;  %vm1206_vm1 = vcmask 15364   ;;  %s1831_s1 = inlined_call_operand.vmem [shape: bf16[128,1922], index: 1, kind: input, shape index: {}]   ;;  %s1832_s0 = inlined_call_operand.vmem [shape: bf16[8,128], index: 0, kind: input, shape index: {}]   ;;  %s1833_s2 = inlined_call_operand.vmem [shape: f32[8,1], index: 2, kind: input, shape index: {}]   ;;  %s1834_s3 = inlined_call_operand.vmem [shape: bf16[8,1922], index: 3, kind: output, shape index: {}]  }
   0x1   :  { %v128_v0 = vld [vmem:[%s1831_s1 + $0x380] sm:$0xff]  ;;  %v129_v2 = vld [vmem:[%s1831_s1 + $0x388] sm:$0xff]  ;;  %822 = vmatprep.mubr.bf16.mxu0 %v1359_v3  ;;  %863 = vmatprep.mubr.bf16.mxu1 %v1359_v3  ;;  %v130_v63 = vld [vmem:[%s1831_s1 + $0x390] sm:$0xff] }
   0x2   :  { %v136_v1 = vld [vmem:[%s1831_s1 + $0x3c0] sm:$0xff]  ;;  %v137_v5 = vld [vmem:[%s1831_s1 + $0x3c8] sm:$0xff]  ;;  %1358 = vset.pattern.permute.xlu0 %v1359_v3  ;;  %vm1207_vm2 = vmor %vm1206_vm1, %vm1205_vm0 }
   0x3   :  { %v1326_v4 = vcombine.high %v128_v0, %v136_v1  ;;  %v1325_v6 = vcombine.low %v128_v0, %v136_v1  ;;  %v112_v7 = vld [vmem:[%s1831_s1 + $0x300] sm:$0xff]  ;;  %v1328_v9 = vcombine.high %v129_v2, %v137_v5  ;;  %v1327_v10 = vcombine.low %v129_v2, %v137_v5  ;;  %v113_v12 = vld [vmem:[%s1831_s1 + $0x308] sm:$0xff]  ;;  %v138_v0 = vld [vmem:[%s1831_s1 + $0x3d0] sm:$0xff] }
   0x4   :  { %v120_v8 = vld [vmem:[%s1831_s1 + $0x340] sm:$0xff]  ;;  %v121_v13 = vld [vmem:[%s1831_s1 + $0x348] sm:$0xff]  ;;  %v131_v1 = vld [vmem:[%s1831_s1 + $0x398] sm:$0xff] }
   0x5   :  { %v1310_v11 = vcombine.high %v112_v7, %v120_v8  ;;  %v96_v14 = vld [vmem:[%s1831_s1 + $0x280] sm:$0xff]  ;;  %790 = vmatprep.subr.bf16.mxu0 %v1326_v4  ;;  %v1312_v15 = vcombine.high %v113_v12, %v121_v13  ;;  %v97_v17 = vld [vmem:[%s1831_s1 + $0x288] sm:$0xff]  ;;  %831 = vmatprep.subr.bf16.mxu1 %v1328_v9  ;;  %v1309_v19 = vcombine.low %v112_v7, %v120_v8  ;;  %v139_v2 = vld [vmem:[%s1831_s1 + $0x3d8] sm:$0xff] }
   0x6   :  { %v104_v16 = vld [vmem:[%s1831_s1 + $0x2c0] sm:$0xff]  ;;  %v105_v18 = vld [vmem:[%s1831_s1 + $0x2c8] sm:$0xff]  ;;  %791 = vmatpush1.bf16.msra.mxu0 %v1325_v6  ;;  %832 = vmatpush1.bf16.msra.mxu1 %v1327_v10  ;;  %v1311_v20 = vcombine.low %v113_v12, %v121_v13  ;;  %v1330_v6 = vcombine.high %v130_v63, %v138_v0  ;;  %v1332_v7 = vcombine.high %v131_v1, %v139_v2  ;;  %v114_v8 = vld [vmem:[%s1831_s1 + $0x310] sm:$0xff] }
   0x7   :  { %792 = vmatprep.subr.bf16.mxu0 %v1310_v11  ;;  %v1294_v21 = vcombine.high %v96_v14, %v104_v16  ;;  %833 = vmatprep.subr.bf16.mxu1 %v1312_v15  ;;  %v1296_v22 = vcombine.high %v97_v17, %v105_v18  ;;  %v80_v23 = vld [vmem:[%s1831_s1 + $0x200] sm:$0xff]  ;;  %v81_v25 = vld [vmem:[%s1831_s1 + $0x208] sm:$0xff]  ;;  %v1293_v27 = vcombine.low %v96_v14, %v104_v16  ;;  %v122_v9 = vld [vmem:[%s1831_s1 + $0x350] sm:$0xff] }
   0x8   :  { %v88_v24 = vld [vmem:[%s1831_s1 + $0x240] sm:$0xff]  ;;  %v89_v26 = vld [vmem:[%s1831_s1 + $0x248] sm:$0xff]  ;;  %v1295_v28 = vcombine.low %v97_v17, %v105_v18  ;;  %v115_v10 = vld [vmem:[%s1831_s1 + $0x318] sm:$0xff]  ;;  %v1329_v13 = vcombine.low %v130_v63, %v138_v0  ;;  %v1331_v14 = vcombine.low %v131_v1, %v139_v2  ;;  %v1314_v15 = vcombine.high %v114_v8, %v122_v9 }
   0x9   :  { %v1278_v29 = vcombine.high %v80_v23, %v88_v24  ;;  %v1280_v30 = vcombine.high %v81_v25, %v89_v26  ;;  %v64_v31 = vld [vmem:[%s1831_s1 + $0x180] sm:$0xff]  ;;  %v65_v33 = vld [vmem:[%s1831_s1 + $0x188] sm:$0xff]  ;;  %v1277_v35 = vcombine.low %v80_v23, %v88_v24  ;;  %v1279_v36 = vcombine.low %v81_v25, %v89_v26  ;;  %v123_v11 = vld [vmem:[%s1831_s1 + $0x358] sm:$0xff] }
   0xa   :  { %793 = vmatpush1.bf16.msra.mxu0 %v1309_v19  ;;  %834 = vmatpush1.bf16.msra.mxu1 %v1311_v20  ;;  %v72_v32 = vld [vmem:[%s1831_s1 + $0x1c0] sm:$0xff]  ;;  %v73_v34 = vld [vmem:[%s1831_s1 + $0x1c8] sm:$0xff]  ;;  %v1316_v16 = vcombine.high %v115_v10, %v123_v11  ;;  %v98_v17 = vld [vmem:[%s1831_s1 + $0x290] sm:$0xff]  ;;  %v1315_v23 = vcombine.low %v115_v10, %v123_v11 }
   0xb   :  { %794 = vmatprep.subr.bf16.mxu0 %v1294_v21  ;;  %835 = vmatprep.subr.bf16.mxu1 %v1296_v22  ;;  %v1262_v37 = vcombine.high %v64_v31, %v72_v32  ;;  %v1264_v38 = vcombine.high %v65_v33, %v73_v34  ;;  %v48_v39 = vld [vmem:[%s1831_s1 + $0x100] sm:$0xff]  ;;  %v49_v41 = vld [vmem:[%s1831_s1 + $0x108] sm:$0xff]  ;;  %v1261_v43 = vcombine.low %v64_v31, %v72_v32  ;;  %v106_v18 = vld [vmem:[%s1831_s1 + $0x2d0] sm:$0xff] }
   0xc   :  { %v56_v40 = vld [vmem:[%s1831_s1 + $0x140] sm:$0xff]  ;;  %v57_v42 = vld [vmem:[%s1831_s1 + $0x148] sm:$0xff]  ;;  %v1263_v44 = vcombine.low %v65_v33, %v73_v34  ;;  %v99_v19 = vld [vmem:[%s1831_s1 + $0x298] sm:$0xff]  ;;  %v1313_v21 = vcombine.low %v114_v8, %v122_v9  ;;  %v1298_v24 = vcombine.high %v98_v17, %v106_v18 }
   0xd   :  { %v1246_v45 = vcombine.high %v48_v39, %v56_v40  ;;  %v1248_v46 = vcombine.high %v49_v41, %v57_v42  ;;  %v32_v47 = vld [vmem:[%s1831_s1 + $0x80] sm:$0xff]  ;;  %v33_v49 = vld [vmem:[%s1831_s1 + $0x88] sm:$0xff]  ;;  %v1245_v51 = vcombine.low %v48_v39, %v56_v40  ;;  %v1247_v52 = vcombine.low %v49_v41, %v57_v42  ;;  %v107_v20 = vld [vmem:[%s1831_s1 + $0x2d8] sm:$0xff] }
   0xe   :  { %795 = vmatpush1.bf16.msra.mxu0 %v1293_v27  ;;  %836 = vmatpush1.bf16.msra.mxu1 %v1295_v28  ;;  %v40_v48 = vld [vmem:[%s1831_s1 + $0xc0] sm:$0xff]  ;;  %v41_v50 = vld [vmem:[%s1831_s1 + $0xc8] sm:$0xff]  ;;  %v1300_v25 = vcombine.high %v99_v19, %v107_v20  ;;  %v82_v26 = vld [vmem:[%s1831_s1 + $0x210] sm:$0xff]  ;;  %v1299_v31 = vcombine.low %v99_v19, %v107_v20 }
   0xf   :  { %796 = vmatprep.subr.bf16.mxu0 %v1278_v29  ;;  %837 = vmatprep.subr.bf16.mxu1 %v1280_v30  ;;  %v1230_v53 = vcombine.high %v32_v47, %v40_v48  ;;  %v1232_v54 = vcombine.high %v33_v49, %v41_v50  ;;  %v16_v55 = vld [vmem:[%s1831_s1] sm:$0xff]  ;;  %v17_v57 = vld [vmem:[%s1831_s1 + $0x8] sm:$0xff]  ;;  %v1229_v59 = vcombine.low %v32_v47, %v40_v48  ;;  %v90_v27 = vld [vmem:[%s1831_s1 + $0x250] sm:$0xff] }
  0x10   :  { %v24_v56 = vld [vmem:[%s1831_s1 + $0x40] sm:$0xff]  ;;  %v25_v58 = vld [vmem:[%s1831_s1 + $0x48] sm:$0xff]  ;;  %v1231_v60 = vcombine.low %v33_v49, %v41_v50  ;;  %v83_v28 = vld [vmem:[%s1831_s1 + $0x218] sm:$0xff]  ;;  %v1297_v30 = vcombine.low %v98_v17, %v106_v18  ;;  %v1282_v32 = vcombine.high %v82_v26, %v90_v27 }
  0x11   :  { %v1214_v61 = vcombine.high %v16_v55, %v24_v56  ;;  %v1216_v62 = vcombine.high %v17_v57, %v25_v58  ;;  %v1213_v4 = vcombine.low %v16_v55, %v24_v56  ;;  %v1215_v5 = vcombine.low %v17_v57, %v25_v58  ;;  %v1506_v12 = vld [vmem:[%s1832_s0] sm:$0xf]  ;;  %v91_v29 = vld [vmem:[%s1831_s1 + $0x258] sm:$0xff]  ;;  %v66_v34 = vld [vmem:[%s1831_s1 + $0x190] sm:$0xff] }
  0x12   :  { %797 = vmatpush1.bf16.msra.mxu0 %v1277_v35  ;;  %838 = vmatpush1.bf16.msra.mxu1 %v1279_v36  ;;  %v144_v22 = vld [vmem:[%s1833_s2] sm:$0xff]  ;;  %v1284_v33 = vcombine.high %v83_v28, %v91_v29  ;;  %v74_v35 = vld [vmem:[%s1831_s1 + $0x1d0] sm:$0xff]  ;;  %v67_v36 = vld [vmem:[%s1831_s1 + $0x198] sm:$0xff]  ;;  %v1283_v39 = vcombine.low %v83_v28, %v91_v29 }
  0x13   :  { %798 = vmatprep.subr.bf16.mxu0 %v1262_v37  ;;  %839 = vmatprep.subr.bf16.mxu1 %v1264_v38  ;;  %v75_v37 = vld [vmem:[%s1831_s1 + $0x1d8] sm:$0xff]  ;;  %v1281_v38 = vcombine.low %v82_v26, %v90_v27  ;;  %v1266_v40 = vcombine.high %v66_v34, %v74_v35  ;;  %v50_v42 = vld [vmem:[%s1831_s1 + $0x110] sm:$0xff]  ;;  %v132_v2 = vld [vmem:[%s1831_s1 + $0x3a0] sm:$0xff] }
  0x14   :  { %147 = vperm.xlu0 %1358, %v144_v22   ;;  %v1268_v41 = vcombine.high %v67_v36, %v75_v37  ;;  %v1267_v47 = vcombine.low %v67_v36, %v75_v37  ;;  %v34_v50 = vld [vmem:[%s1831_s1 + $0x90] sm:$0xff]  ;;  %v116_v11 = vld [vmem:[%s1831_s1 + $0x320] sm:$0xff]  ;;  %v101_v22 = vld [vmem:[%s1831_s1 + $0x2a8] sm:$0xff] }
  0x15   :  { %v18_v58 = vld [vmem:[%s1831_s1 + $0x10] sm:$0xff]  ;;  %v100_v20 = vld [vmem:[%s1831_s1 + $0x2a0] sm:$0xff] }
  0x16   :  { %799 = vmatpush1.bf16.msra.mxu0 %v1261_v43  ;;  %840 = vmatpush1.bf16.msra.mxu1 %v1263_v44  ;;  %v58_v43 = vld [vmem:[%s1831_s1 + $0x150] sm:$0xff]  ;;  %v51_v44 = vld [vmem:[%s1831_s1 + $0x118] sm:$0xff]  ;;  %v84_v28 = vld [vmem:[%s1831_s1 + $0x220] sm:$0xff] }
  0x17   :  { %800 = vmatprep.subr.bf16.mxu0 %v1246_v45  ;;  %841 = vmatprep.subr.bf16.mxu1 %v1248_v46  ;;  %v59_v45 = vld [vmem:[%s1831_s1 + $0x158] sm:$0xff]  ;;  %v1265_v46 = vcombine.low %v66_v34, %v74_v35  ;;  %v1250_v48 = vcombine.high %v50_v42, %v58_v43  ;;  %v92_v29 = vld [vmem:[%s1831_s1 + $0x260] sm:$0xff] }
  0x18   :  { %v1252_v49 = vcombine.high %v51_v44, %v59_v45  ;;  %v1251_v55 = vcombine.low %v51_v44, %v59_v45  ;;  %v1286_v34 = vcombine.high %v84_v28, %v92_v29  ;;  %v68_v36 = vld [vmem:[%s1831_s1 + $0x1a0] sm:$0xff] }
  0x19   :  { %v76_v37 = vld [vmem:[%s1831_s1 + $0x1e0] sm:$0xff] }
  0x1a   :  { %801 = vmatpush1.bf16.msra.mxu0 %v1245_v51  ;;  %842 = vmatpush1.bf16.msra.mxu1 %v1247_v52  ;;  %v42_v51 = vld [vmem:[%s1831_s1 + $0xd0] sm:$0xff]  ;;  %v35_v52 = vld [vmem:[%s1831_s1 + $0x98] sm:$0xff]  ;;  %v52_v44 = vld [vmem:[%s1831_s1 + $0x120] sm:$0xff] }
  0x1b   :  { %802 = vmatprep.subr.bf16.mxu0 %v1230_v53  ;;  %843 = vmatprep.subr.bf16.mxu1 %v1232_v54  ;;  %v43_v53 = vld [vmem:[%s1831_s1 + $0xd8] sm:$0xff]  ;;  %v1249_v54 = vcombine.low %v50_v42, %v58_v43  ;;  %v1234_v56 = vcombine.high %v34_v50, %v42_v51  ;;  %v1270_v42 = vcombine.high %v68_v36, %v76_v37  ;;  %v60_v45 = vld [vmem:[%s1831_s1 + $0x160] sm:$0xff] }
  0x1c   :  { %v1236_v57 = vcombine.high %v35_v52, %v43_v53  ;;  %v1235_v63 = vcombine.low %v35_v52, %v43_v53  ;;  %v36_v52 = vld [vmem:[%s1831_s1 + $0xa0] sm:$0xff] }
  0x1d   :  { %v44_v53 = vld [vmem:[%s1831_s1 + $0xe0] sm:$0xff] }
  0x1e   :  { %803 = vmatpush1.bf16.msra.mxu0 %v1229_v59  ;;  %844 = vmatpush1.bf16.msra.mxu1 %v1231_v60  ;;  %v26_v59 = vld [vmem:[%s1831_s1 + $0x50] sm:$0xff]  ;;  %v19_v60 = vld [vmem:[%s1831_s1 + $0x18] sm:$0xff] }
  0x1f   :  { %804 = vmatprep.subr.bf16.mxu0 %v1214_v61  ;;  %845 = vmatprep.subr.bf16.mxu1 %v1216_v62  ;;  %v27_v61 = vld [vmem:[%s1831_s1 + $0x58] sm:$0xff]  ;;  %v1233_v62 = vcombine.low %v34_v50, %v42_v51  ;;  %v1218_v0 = vcombine.high %v18_v58, %v26_v59  ;;  %v1254_v50 = vcombine.high %v52_v44, %v60_v45 }
  0x20   :  { %v1220_v1 = vcombine.high %v19_v60, %v27_v61  ;;  %v1219_v8 = vcombine.low %v19_v60, %v27_v61  ;;  %v20_v60 = vld [vmem:[%s1831_s1 + $0x20] sm:$0xff] }
  0x21   :  { %v28_v61 = vld [vmem:[%s1831_s1 + $0x60] sm:$0xff] }
  0x22   :  { %805 = vmatpush1.bf16.msra.mxu0 %v1213_v4  ;;  %846 = vmatpush1.bf16.msra.mxu1 %v1215_v5  ;;  %v140_v4 = vld [vmem:[%s1831_s1 + $0x3e0] sm:$0xff]  ;;  %v133_v5 = vld [vmem:[%s1831_s1 + $0x3a8] sm:$0xff] }
  0x23   :  { %872 = vmatprep.subr.bf16.mxu0 %v1330_v6  ;;  %913 = vmatprep.subr.bf16.mxu1 %v1332_v7  ;;  %v141_v6 = vld [vmem:[%s1831_s1 + $0x3e8] sm:$0xff]  ;;  %v1217_v7 = vcombine.low %v18_v58, %v26_v59  ;;  %v1334_v9 = vcombine.high %v132_v2, %v140_v4  ;;  %v1238_v58 = vcombine.high %v36_v52, %v44_v53 }
  0x24   :  { %v1336_v10 = vcombine.high %v133_v5, %v141_v6  ;;  %v1335_v17 = vcombine.low %v133_v5, %v141_v6  ;;  %v134_v5 = vld [vmem:[%s1831_s1 + $0x3b0] sm:$0xff] }
  0x25   :  { %823 = vmatmul.mubr.bf16.vlgmr.msra.gmra.mxu0 %v1506_v12  ;;  %864 = vmatmul.mubr.bf16.vlgmr.msra.gmra.mxu1 %v1506_v12  ;;  %v142_v6 = vld [vmem:[%s1831_s1 + $0x3f0] sm:$0xff] }
  0x26   :  { %873 = vmatpush1.bf16.msra.mxu0 %v1329_v13  ;;  %914 = vmatpush1.bf16.msra.mxu1 %v1331_v14  ;;  %v124_v13 = vld [vmem:[%s1831_s1 + $0x360] sm:$0xff]  ;;  %v117_v14 = vld [vmem:[%s1831_s1 + $0x328] sm:$0xff] }
  0x27   :  { %874 = vmatprep.subr.bf16.mxu0 %v1314_v15  ;;  %915 = vmatprep.subr.bf16.mxu1 %v1316_v16  ;;  %v125_v15 = vld [vmem:[%s1831_s1 + $0x368] sm:$0xff]  ;;  %v1333_v16 = vcombine.low %v132_v2, %v140_v4  ;;  %v1318_v18 = vcombine.high %v116_v11, %v124_v13  ;;  %v1222_v2 = vcombine.high %v20_v60, %v28_v61 }
  0x28   :  { %904 = vmatprep.mubr.bf16.mxu0 %v1359_v3  ;;  %945 = vmatprep.mubr.bf16.mxu1 %v1359_v3  ;;  %v1320_v19 = vcombine.high %v117_v14, %v125_v15 }
  0x2a   :  { %875 = vmatpush1.bf16.msra.mxu0 %v1313_v21  ;;  %916 = vmatpush1.bf16.msra.mxu1 %v1315_v23  ;;  %v108_v21 = vld [vmem:[%s1831_s1 + $0x2e0] sm:$0xff]  ;;  %v109_v23 = vld [vmem:[%s1831_s1 + $0x2e8] sm:$0xff] }
  0x2b   :  { %876 = vmatprep.subr.bf16.mxu0 %v1298_v24  ;;  %917 = vmatprep.subr.bf16.mxu1 %v1300_v25  ;;  %v1317_v24 = vcombine.low %v116_v11, %v124_v13  ;;  %v1319_v25 = vcombine.low %v117_v14, %v125_v15  ;;  %v1302_v26 = vcombine.high %v100_v20, %v108_v21  ;;  %v118_v14 = vld [vmem:[%s1831_s1 + $0x330] sm:$0xff] }
  0x2c   :  { %v1304_v27 = vcombine.high %v101_v22, %v109_v23  ;;  %v1338_v11 = vcombine.high %v134_v5, %v142_v6  ;;  %v126_v15 = vld [vmem:[%s1831_s1 + $0x370] sm:$0xff] }
  0x2e   :  { %877 = vmatpush1.bf16.msra.mxu0 %v1297_v30  ;;  %918 = vmatpush1.bf16.msra.mxu1 %v1299_v31  ;;  %v85_v30 = vld [vmem:[%s1831_s1 + $0x228] sm:$0xff] }
  0x2f   :  { %878 = vmatprep.subr.bf16.mxu0 %v1282_v32  ;;  %919 = vmatprep.subr.bf16.mxu1 %v1284_v33  ;;  %v93_v31 = vld [vmem:[%s1831_s1 + $0x268] sm:$0xff]  ;;  %v1301_v32 = vcombine.low %v100_v20, %v108_v21  ;;  %v1303_v33 = vcombine.low %v101_v22, %v109_v23  ;;  %v1322_v20 = vcombine.high %v118_v14, %v126_v15  ;;  %v102_v22 = vld [vmem:[%s1831_s1 + $0x2b0] sm:$0xff] }
  0x30   :  { %v1288_v35 = vcombine.high %v85_v30, %v93_v31  ;;  %v110_v23 = vld [vmem:[%s1831_s1 + $0x2f0] sm:$0xff] }
  0x32   :  { %879 = vmatpush1.bf16.msra.mxu0 %v1281_v38  ;;  %920 = vmatpush1.bf16.msra.mxu1 %v1283_v39  ;;  %v69_v38 = vld [vmem:[%s1831_s1 + $0x1a8] sm:$0xff] }
  0x33   :  { %880 = vmatprep.subr.bf16.mxu0 %v1266_v40  ;;  %921 = vmatprep.subr.bf16.mxu1 %v1268_v41  ;;  %v77_v39 = vld [vmem:[%s1831_s1 + $0x1e8] sm:$0xff]  ;;  %v1285_v40 = vcombine.low %v84_v28, %v92_v29  ;;  %v1287_v41 = vcombine.low %v85_v30, %v93_v31  ;;  %v1306_v28 = vcombine.high %v102_v22, %v110_v23  ;;  %v86_v30 = vld [vmem:[%s1831_s1 + $0x230] sm:$0xff] }
  0x34   :  { %v1272_v43 = vcombine.high %v69_v38, %v77_v39  ;;  %v94_v31 = vld [vmem:[%s1831_s1 + $0x270] sm:$0xff] }
  0x36   :  { %881 = vmatpush1.bf16.msra.mxu0 %v1265_v46  ;;  %922 = vmatpush1.bf16.msra.mxu1 %v1267_v47  ;;  %v53_v46 = vld [vmem:[%s1831_s1 + $0x128] sm:$0xff] }
  0x37   :  { %882 = vmatprep.subr.bf16.mxu0 %v1250_v48  ;;  %923 = vmatprep.subr.bf16.mxu1 %v1252_v49  ;;  %v61_v47 = vld [vmem:[%s1831_s1 + $0x168] sm:$0xff]  ;;  %v1269_v48 = vcombine.low %v68_v36, %v76_v37  ;;  %v1271_v49 = vcombine.low %v69_v38, %v77_v39  ;;  %v1290_v36 = vcombine.high %v86_v30, %v94_v31  ;;  %v70_v38 = vld [vmem:[%s1831_s1 + $0x1b0] sm:$0xff] }
  0x38   :  { %v1256_v51 = vcombine.high %v53_v46, %v61_v47  ;;  %v78_v39 = vld [vmem:[%s1831_s1 + $0x1f0] sm:$0xff] }
  0x3a   :  { %883 = vmatpush1.bf16.msra.mxu0 %v1249_v54  ;;  %924 = vmatpush1.bf16.msra.mxu1 %v1251_v55  ;;  %v37_v54 = vld [vmem:[%s1831_s1 + $0xa8] sm:$0xff] }
  0x3b   :  { %884 = vmatprep.subr.bf16.mxu0 %v1234_v56  ;;  %925 = vmatprep.subr.bf16.mxu1 %v1236_v57  ;;  %v45_v55 = vld [vmem:[%s1831_s1 + $0xe8] sm:$0xff]  ;;  %v1253_v56 = vcombine.low %v52_v44, %v60_v45  ;;  %v1255_v57 = vcombine.low %v53_v46, %v61_v47  ;;  %v54_v45 = vld [vmem:[%s1831_s1 + $0x130] sm:$0xff]  ;;  %v55_v47 = vld [vmem:[%s1831_s1 + $0x138] sm:$0xff] }
  0x3c   :  { %v1240_v59 = vcombine.high %v37_v54, %v45_v55  ;;  %v62_v46 = vld [vmem:[%s1831_s1 + $0x170] sm:$0xff] }
  0x3e   :  { %885 = vmatpush1.bf16.msra.mxu0 %v1233_v62  ;;  %926 = vmatpush1.bf16.msra.mxu1 %v1235_v63  ;;  %v21_v62 = vld [vmem:[%s1831_s1 + $0x28] sm:$0xff] }
  0x3f   :  { %886 = vmatprep.subr.bf16.mxu0 %v1218_v0  ;;  %927 = vmatprep.subr.bf16.mxu1 %v1220_v1  ;;  %v29_v63 = vld [vmem:[%s1831_s1 + $0x68] sm:$0xff]  ;;  %v1237_v0 = vcombine.low %v36_v52, %v44_v53  ;;  %v1239_v1 = vcombine.low %v37_v54, %v45_v55  ;;  %v38_v53 = vld [vmem:[%s1831_s1 + $0xb0] sm:$0xff]  ;;  %v39_v55 = vld [vmem:[%s1831_s1 + $0xb8] sm:$0xff] }
  0x40   :  { %v1224_v4 = vcombine.high %v21_v62, %v29_v63  ;;  %v46_v54 = vld [vmem:[%s1831_s1 + $0xf0] sm:$0xff] }
  0x42   :  { %887 = vmatpush1.bf16.msra.mxu0 %v1217_v7  ;;  %928 = vmatpush1.bf16.msra.mxu1 %v1219_v8  ;;  %v135_v7 = vld [vmem:[%s1831_s1 + $0x3b8] sm:$0xff] }
  0x43   :  { %954 = vmatprep.subr.bf16.mxu0 %v1334_v9  ;;  %995 = vmatprep.subr.bf16.mxu1 %v1336_v10  ;;  %v143_v8 = vld [vmem:[%s1831_s1 + $0x3f8] sm:$0xff]  ;;  %v1221_v9 = vcombine.low %v20_v60, %v28_v61  ;;  %v1223_v10 = vcombine.low %v21_v62, %v29_v63  ;;  %v22_v61 = vld [vmem:[%s1831_s1 + $0x30] sm:$0xff] }
  0x44   :  { %v1340_v13 = vcombine.high %v135_v7, %v143_v8  ;;  %v30_v62 = vld [vmem:[%s1831_s1 + $0x70] sm:$0xff]  ;;  %v23_v63 = vld [vmem:[%s1831_s1 + $0x38] sm:$0xff] }
  0x45   :  { %905 = vmatmul.mubr.bf16.vlgmr.msra.gmra.mxu0 %v1506_v12  ;;  %946 = vmatmul.mubr.bf16.vlgmr.msra.gmra.mxu1 %v1506_v12 }
  0x46   :  { %955 = vmatpush1.bf16.msra.mxu0 %v1333_v16  ;;  %996 = vmatpush1.bf16.msra.mxu1 %v1335_v17  ;;  %v119_v16 = vld [vmem:[%s1831_s1 + $0x338] sm:$0xff] }
  0x47   :  { %956 = vmatprep.subr.bf16.mxu0 %v1318_v18  ;;  %997 = vmatprep.subr.bf16.mxu1 %v1320_v19  ;;  %v127_v17 = vld [vmem:[%s1831_s1 + $0x378] sm:$0xff]  ;;  %v1337_v18 = vcombine.low %v134_v5, %v142_v6  ;;  %v1339_v19 = vcombine.low %v135_v7, %v143_v8  ;;  %v1225_v6 = vcombine.low %v22_v61, %v30_v62 }
  0x48   :  { %986 = vmatprep.mubr.bf16.mxu0 %v1359_v3  ;;  %1027 = vmatprep.mubr.bf16.mxu1 %v1359_v3  ;;  %v1324_v21 = vcombine.high %v119_v16, %v127_v17 }
  0x4a   :  { %957 = vmatpush1.bf16.msra.mxu0 %v1317_v24  ;;  %998 = vmatpush1.bf16.msra.mxu1 %v1319_v25  ;;  %v103_v24 = vld [vmem:[%s1831_s1 + $0x2b8] sm:$0xff] }
  0x4b   :  { %958 = vmatprep.subr.bf16.mxu0 %v1302_v26  ;;  %999 = vmatprep.subr.bf16.mxu1 %v1304_v27  ;;  %v111_v25 = vld [vmem:[%s1831_s1 + $0x2f8] sm:$0xff]  ;;  %v1321_v26 = vcombine.low %v118_v14, %v126_v15  ;;  %v1323_v27 = vcombine.low %v119_v16, %v127_v17 }
  0x4c   :  { %v1308_v29 = vcombine.high %v103_v24, %v111_v25 }
  0x4e   :  { %959 = vmatpush1.bf16.msra.mxu0 %v1301_v32  ;;  %1000 = vmatpush1.bf16.msra.mxu1 %v1303_v33  ;;  %v87_v32 = vld [vmem:[%s1831_s1 + $0x238] sm:$0xff] }
  0x4f   :  { %960 = vmatprep.subr.bf16.mxu0 %v1286_v34  ;;  %1001 = vmatprep.subr.bf16.mxu1 %v1288_v35  ;;  %v95_v33 = vld [vmem:[%s1831_s1 + $0x278] sm:$0xff]  ;;  %v1305_v34 = vcombine.low %v102_v22, %v110_v23  ;;  %v1307_v35 = vcombine.low %v103_v24, %v111_v25 }
  0x50   :  { %v1292_v37 = vcombine.high %v87_v32, %v95_v33 }
  0x52   :  { %961 = vmatpush1.bf16.msra.mxu0 %v1285_v40  ;;  %1002 = vmatpush1.bf16.msra.mxu1 %v1287_v41  ;;  %v79_v40 = vld [vmem:[%s1831_s1 + $0x1f8] sm:$0xff]  ;;  %v1289_v41 = vcombine.low %v86_v30, %v94_v31 }
  0x53   :  { %962 = vmatprep.subr.bf16.mxu0 %v1270_v42  ;;  %1003 = vmatprep.subr.bf16.mxu1 %v1272_v43  ;;  %v1291_v42 = vcombine.low %v87_v32, %v95_v33  ;;  %v1274_v43 = vcombine.high %v70_v38, %v78_v39 }
  0x56   :  { %963 = vmatpush1.bf16.msra.mxu0 %v1269_v48  ;;  %1004 = vmatpush1.bf16.msra.mxu1 %v1271_v49  ;;  %v63_v48 = vld [vmem:[%s1831_s1 + $0x178] sm:$0xff]  ;;  %v1273_v49 = vcombine.low %v70_v38, %v78_v39 }
  0x57   :  { %964 = vmatprep.subr.bf16.mxu0 %v1254_v50  ;;  %1005 = vmatprep.subr.bf16.mxu1 %v1256_v51  ;;  %v1258_v51 = vcombine.high %v54_v45, %v62_v46  ;;  %v1260_v52 = vcombine.high %v55_v47, %v63_v48 }
  0x5a   :  { %965 = vmatpush1.bf16.msra.mxu0 %v1253_v56  ;;  %1006 = vmatpush1.bf16.msra.mxu1 %v1255_v57  ;;  %v47_v56 = vld [vmem:[%s1831_s1 + $0xf8] sm:$0xff]  ;;  %v1257_v57 = vcombine.low %v54_v45, %v62_v46 }
  0x5b   :  { %966 = vmatprep.subr.bf16.mxu0 %v1238_v58  ;;  %1007 = vmatprep.subr.bf16.mxu1 %v1240_v59  ;;  %v1259_v58 = vcombine.low %v55_v47, %v63_v48  ;;  %v1242_v59 = vcombine.high %v38_v53, %v46_v54  ;;  %v1244_v60 = vcombine.high %v39_v55, %v47_v56 }
  0x5e   :  { %967 = vmatpush1.bf16.msra.mxu0 %v1237_v0  ;;  %1008 = vmatpush1.bf16.msra.mxu1 %v1239_v1  ;;  %v31_v0 = vld [vmem:[%s1831_s1 + $0x78] sm:$0xff]  ;;  %v1241_v1 = vcombine.low %v38_v53, %v46_v54 }
  0x5f   :  { %968 = vmatprep.subr.bf16.mxu0 %v1222_v2  ;;  %1009 = vmatprep.subr.bf16.mxu1 %v1224_v4  ;;  %v1243_v2 = vcombine.low %v39_v55, %v47_v56  ;;  %v1226_v4 = vcombine.high %v22_v61, %v30_v62  ;;  %v1228_v5 = vcombine.high %v23_v63, %v31_v0 }
  0x60   :  { %v1227_v7 = vcombine.low %v23_v63, %v31_v0 }
  0x62   :  { %969 = vmatpush1.bf16.msra.mxu0 %v1221_v9  ;;  %1010 = vmatpush1.bf16.msra.mxu1 %v1223_v10 }
  0x63   :  { %1036 = vmatprep.subr.bf16.mxu0 %v1338_v11  ;;  %1077 = vmatprep.subr.bf16.mxu1 %v1340_v13 }
  0x65   :  { %987 = vmatmul.mubr.bf16.vlgmr.msra.gmra.mxu0 %v1506_v12  ;;  %1028 = vmatmul.mubr.bf16.vlgmr.msra.gmra.mxu1 %v1506_v12 }
  0x66   :  { %1037 = vmatpush1.bf16.msra.mxu0 %v1337_v18  ;;  %1078 = vmatpush1.bf16.msra.mxu1 %v1339_v19 }
  0x67   :  { %1038 = vmatprep.subr.bf16.mxu0 %v1322_v20  ;;  %1079 = vmatprep.subr.bf16.mxu1 %v1324_v21 }
  0x68   :  { %1068 = vmatprep.mubr.bf16.mxu0 %v1359_v3  ;;  %1109 = vmatprep.mubr.bf16.mxu1 %v1359_v3  ;;  %v71_v3 = vld [vmem:[%s1831_s1 + $0x1b8] sm:$0xff] }
  0x69   :  { %v1276_v44 = vcombine.high %v71_v3, %v79_v40  ;;  %v1275_v50 = vcombine.low %v71_v3, %v79_v40 }
  0x6a   :  { %1039 = vmatpush1.bf16.msra.mxu0 %v1321_v26  ;;  %1080 = vmatpush1.bf16.msra.mxu1 %v1323_v27 }
  0x6b   :  { %1040 = vmatprep.subr.bf16.mxu0 %v1306_v28  ;;  %1081 = vmatprep.subr.bf16.mxu1 %v1308_v29 }
  0x6e   :  { %1041 = vmatpush1.bf16.msra.mxu0 %v1305_v34  ;;  %1082 = vmatpush1.bf16.msra.mxu1 %v1307_v35 }
  0x6f   :  { %1042 = vmatprep.subr.bf16.mxu0 %v1290_v36  ;;  %1083 = vmatprep.subr.bf16.mxu1 %v1292_v37 }
  0x72   :  { %1043 = vmatpush1.bf16.msra.mxu0 %v1289_v41  ;;  %1084 = vmatpush1.bf16.msra.mxu1 %v1291_v42 }
  0x73   :  { %1044 = vmatprep.subr.bf16.mxu0 %v1274_v43  ;;  %1085 = vmatprep.subr.bf16.mxu1 %v1276_v44 }
  0x76   :  { %1045 = vmatpush1.bf16.msra.mxu0 %v1273_v49  ;;  %1086 = vmatpush1.bf16.msra.mxu1 %v1275_v50 }
  0x77   :  { %1046 = vmatprep.subr.bf16.mxu0 %v1258_v51  ;;  %1087 = vmatprep.subr.bf16.mxu1 %v1260_v52 }
  0x7a   :  { %1047 = vmatpush1.bf16.msra.mxu0 %v1257_v57  ;;  %1088 = vmatpush1.bf16.msra.mxu1 %v1259_v58 }
  0x7b   :  { %1048 = vmatprep.subr.bf16.mxu0 %v1242_v59  ;;  %1089 = vmatprep.subr.bf16.mxu1 %v1244_v60 }
  0x7e   :  { %1049 = vmatpush1.bf16.msra.mxu0 %v1241_v1  ;;  %1090 = vmatpush1.bf16.msra.mxu1 %v1243_v2 }
  0x7f   :  { %1050 = vmatprep.subr.bf16.mxu0 %v1226_v4  ;;  %1091 = vmatprep.subr.bf16.mxu1 %v1228_v5 }
  0x82   :  { %1051 = vmatpush1.bf16.msra.mxu0 %v1225_v6  ;;  %1092 = vmatpush1.bf16.msra.mxu1 %v1227_v7 }
  0x85   :  { %1069 = vmatmul.mubr.bf16.vlgmr.msra.gmra.mxu0 %v1506_v12  ;;  %1110 = vmatmul.mubr.bf16.vlgmr.msra.gmra.mxu1 %v1506_v12 }
  0x8f   :  { %v1789_v8 = vpop.permute.xlu0 %147 }
  0xe5   :  { %v824_v9 = vpop.f32.mrf.mxu0  ;;  %v865_v10 = vpop.f32.mrf.mxu1 }
  0xe6   :  { %v825_v11 = vadd.f32 %v824_v9, %v1789_v8  ;;  %v866_v14 = vadd.f32 %v865_v10, %v1789_v8 }
  0xe7   :  { %v826_v13 = vpop.f32.mrf.mxu0  ;;  %v867_v17 = vpop.f32.mrf.mxu1 }
  0xe8   :  { %v827_v15 = vadd.f32 %v826_v13, %v1789_v8  ;;  %v1118_v16 = vmax.f32 %v825_v11, 0.0  ;;  %v868_v18 = vadd.f32 %v867_v17, %v1789_v8  ;;  %v1120_v19 = vmax.f32 %v866_v14, 0.0 }
  0xe9   :  { %v828_v20 = vpop.f32.mrf.mxu0  ;;  %v869_v22 = vpop.f32.mrf.mxu1 }
  0xea   :  { %v1119_v21 = vmax.f32 %v827_v15, 0.0  ;;  %v1121_v12 = vmax.f32 %v868_v18, 0.0 }
  0xeb   :  { %v829_v23 = vpop.f32.mrf.mxu0  ;;  %v870_v25 = vpop.f32.mrf.mxu1 }
  0xec   :  { %v1349_v24 = vpack.c.bf16 %v1119_v21, %v1118_v16  ;;  %v1350_v26 = vpack.c.bf16 %v1121_v12, %v1120_v19 }
  0xee   :  { %1198 = vst [vmem:[%s1834_s3] sm:$0xff] %v1349_v24  ;;  %1199 = vst [vmem:[%s1834_s3 + $0x8] sm:$0xff] %v1350_v26 }
 0x105   :  { %v906_v27 = vpop.f32.mrf.mxu0  ;;  %v947_v29 = vpop.f32.mrf.mxu1 }
 0x106   :  { %v907_v28 = vadd.f32 %v906_v27, %v1789_v8  ;;  %v948_v30 = vadd.f32 %v947_v29, %v1789_v8 }
 0x107   :  { %v908_v31 = vpop.f32.mrf.mxu0  ;;  %v949_v34 = vpop.f32.mrf.mxu1 }
 0x108   :  { %v1122_v32 = vmax.f32 %v907_v28, 0.0  ;;  %v909_v33 = vadd.f32 %v908_v31, %v1789_v8  ;;  %v1124_v35 = vmax.f32 %v948_v30, 0.0  ;;  %v950_v36 = vadd.f32 %v949_v34, %v1789_v8 }
 0x109   :  { %v910_v37 = vpop.f32.mrf.mxu0  ;;  %v951_v39 = vpop.f32.mrf.mxu1 }
 0x10a   :  { %v1123_v38 = vmax.f32 %v909_v33, 0.0  ;;  %v1125_v3 = vmax.f32 %v950_v36, 0.0 }
 0x10b   :  { %v911_v40 = vpop.f32.mrf.mxu0  ;;  %v952_v42 = vpop.f32.mrf.mxu1 }
 0x10c   :  { %v1351_v41 = vpack.c.bf16 %v1123_v38, %v1122_v32  ;;  %v1352_v43 = vpack.c.bf16 %v1125_v3, %v1124_v35 }
 0x10e   :  { %1200 = vst [vmem:[%s1834_s3 + $0x10] sm:$0xff] %v1351_v41  ;;  %1201 = vst [vmem:[%s1834_s3 + $0x18] sm:$0xff] %v1352_v43 }
 0x125   :  { %v988_v44 = vpop.f32.mrf.mxu0  ;;  %v1029_v46 = vpop.f32.mrf.mxu1 }
 0x126   :  { %v989_v45 = vadd.f32 %v988_v44, %v1789_v8  ;;  %v1030_v47 = vadd.f32 %v1029_v46, %v1789_v8 }
 0x127   :  { %v990_v48 = vpop.f32.mrf.mxu0  ;;  %v1031_v51 = vpop.f32.mrf.mxu1 }
 0x128   :  { %v1126_v49 = vmax.f32 %v989_v45, 0.0  ;;  %v991_v50 = vadd.f32 %v990_v48, %v1789_v8  ;;  %v1128_v52 = vmax.f32 %v1030_v47, 0.0  ;;  %v1032_v53 = vadd.f32 %v1031_v51, %v1789_v8 }
 0x129   :  { %v992_v54 = vpop.f32.mrf.mxu0  ;;  %v1033_v56 = vpop.f32.mrf.mxu1 }
 0x12a   :  { %v1127_v55 = vmax.f32 %v991_v50, 0.0  ;;  %v1129_v57 = vmax.f32 %v1032_v53, 0.0 }
 0x12b   :  { %v993_v58 = vpop.f32.mrf.mxu0  ;;  %v1034_v60 = vpop.f32.mrf.mxu1 }
 0x12c   :  { %v1353_v59 = vpack.c.bf16 %v1127_v55, %v1126_v49  ;;  %v1354_v61 = vpack.c.bf16 %v1129_v57, %v1128_v52 }
 0x12e   :  { %1202 = vst [vmem:[%s1834_s3 + $0x20] sm:$0xff] %v1353_v59  ;;  %1203 = vst [vmem:[%s1834_s3 + $0x28] sm:$0xff] %v1354_v61 }
 0x145   :  { %v1070_v62 = vpop.f32.mrf.mxu0  ;;  %v1111_v0 = vpop.f32.mrf.mxu1 }
 0x146   :  { %v1071_v63 = vadd.f32 %v1070_v62, %v1789_v8  ;;  %v1112_v1 = vadd.f32 %v1111_v0, %v1789_v8 }
 0x147   :  { %v1072_v2 = vpop.f32.mrf.mxu0  ;;  %v1113_v5 = vpop.f32.mrf.mxu1 }
 0x148   :  { %v1073_v4 = vadd.f32 %v1072_v2, %v1789_v8  ;;  %v1114_v6 = vadd.f32 %v1113_v5, %v1789_v8  ;;  %v1130_v9 = vmax.f32 %v1071_v63, 0.0  ;;  %v1132_v13 = vmax.f32 %v1112_v1, 0.0 }
 0x149   :  { %v1074_v7 = vpop.f32.mrf.mxu0  ;;  %v1115_v11 = vpop.f32.mrf.mxu1 }
 0x14a   :  { %v1131_v10 = vmax.f32 %v1073_v4, 0.0  ;;  %v1133_v14 = vmax.f32 %v1114_v6, 0.0 }
 0x14b   :  { %v1075_v15 = vpop.f32.mrf.mxu0  ;;  %v1116_v17 = vpop.f32.mrf.mxu1 }
 0x14c   :  { %v1355_v16 = vpack.c.bf16 %v1131_v10, %v1130_v9  ;;  %v1356_v18 = vpack.c.bf16 %v1133_v14, %v1132_v13 }
 0x14e   :  { %1204 = vst [vmem:[%s1834_s3 + $0x30] sm:$0xff] %v1355_v16  ;;  %1208 = vst.msk [vmem:[%s1834_s3 + $0x38] sm:$0xff] %vm1207_vm2, %v1356_v18 }

// kernel: _lambda_.15
= control target key start
LH: loop header
LB: loop body
LE: loop exit
PB: predicated region body
PF: predicated region fallthrough
CT: control target
= control target key end

     0   :  { %v8177_v3 = vmov 0   ;;  %vm4832_vm0 = vcmask 588800   ;;  %vm4836_vm1 = vcmask 1043456   ;;  %s10953_s1 = inlined_call_operand.vmem [shape: bf16[200,8192], index: 1, kind: input, shape index: {}]   ;;  %s10954_s0 = inlined_call_operand.vmem [shape: bf16[3,200], index: 0, kind: input, shape index: {}]   ;;  %s10955_s2 = inlined_call_operand.vmem [shape: f32[3,1], index: 2, kind: input, shape index: {}]   ;;  %s10956_s3 = inlined_call_operand.vmem [shape: f32[3,8192], index: 3, kind: output, shape index: {}]  }
   0x1   :  { %v464_v0 = vld [vmem:[%s10953_s1 + $0xe00] sm:$0xff]  ;;  %v465_v2 = vld [vmem:[%s10953_s1 + $0xe08] sm:$0xff]  ;;  %7851 = vset.pattern.permute.xlu0 %v8177_v3 }
   0x2   :  { %v496_v1 = vld [vmem:[%s10953_s1 + $0xf00] sm:$0xff]  ;;  %v497_v5 = vld [vmem:[%s10953_s1 + $0xf08] sm:$0xff] }
   0x3   :  { %v7339_v4 = vcombine.high %v464_v0, %v496_v1  ;;  %v7338_v6 = vcombine.low %v464_v0, %v496_v1  ;;  %v400_v7 = vld [vmem:[%s10953_s1 + $0xc00] sm:$0xff]  ;;  %v7341_v9 = vcombine.high %v465_v2, %v497_v5  ;;  %v7340_v10 = vcombine.low %v465_v2, %v497_v5  ;;  %v401_v12 = vld [vmem:[%s10953_s1 + $0xc08] sm:$0xff] }
   0x4   :  { %v432_v8 = vld [vmem:[%s10953_s1 + $0xd00] sm:$0xff]  ;;  %v433_v13 = vld [vmem:[%s10953_s1 + $0xd08] sm:$0xff] }
   0x5   :  { %v7275_v11 = vcombine.high %v400_v7, %v432_v8  ;;  %v336_v14 = vld [vmem:[%s10953_s1 + $0xa00] sm:$0xff]  ;;  %5029 = vmatprep.subr.bf16.mxu0 %v7339_v4  ;;  %v7277_v15 = vcombine.high %v401_v12, %v433_v13  ;;  %v337_v17 = vld [vmem:[%s10953_s1 + $0xa08] sm:$0xff]  ;;  %5070 = vmatprep.subr.bf16.mxu1 %v7341_v9  ;;  %v7274_v19 = vcombine.low %v400_v7, %v432_v8 }
   0x6   :  { %v368_v16 = vld [vmem:[%s10953_s1 + $0xb00] sm:$0xff]  ;;  %v369_v18 = vld [vmem:[%s10953_s1 + $0xb08] sm:$0xff]  ;;  %5030 = vmatpush1.bf16.msra.mxu0 %v7338_v6  ;;  %5071 = vmatpush1.bf16.msra.mxu1 %v7340_v10  ;;  %v7276_v20 = vcombine.low %v401_v12, %v433_v13 }
   0x7   :  { %5031 = vmatprep.subr.bf16.mxu0 %v7275_v11  ;;  %v7211_v21 = vcombine.high %v336_v14, %v368_v16  ;;  %5072 = vmatprep.subr.bf16.mxu1 %v7277_v15  ;;  %v7213_v22 = vcombine.high %v337_v17, %v369_v18  ;;  %v272_v23 = vld [vmem:[%s10953_s1 + $0x800] sm:$0xff]  ;;  %v273_v25 = vld [vmem:[%s10953_s1 + $0x808] sm:$0xff]  ;;  %v7210_v27 = vcombine.low %v336_v14, %v368_v16 }
   0x8   :  { %v304_v24 = vld [vmem:[%s10953_s1 + $0x900] sm:$0xff]  ;;  %v305_v26 = vld [vmem:[%s10953_s1 + $0x908] sm:$0xff]  ;;  %v7212_v28 = vcombine.low %v337_v17, %v369_v18 }
   0x9   :  { %v7147_v29 = vcombine.high %v272_v23, %v304_v24  ;;  %v7149_v30 = vcombine.high %v273_v25, %v305_v26  ;;  %v208_v31 = vld [vmem:[%s10953_s1 + $0x600] sm:$0xff]  ;;  %v209_v33 = vld [vmem:[%s10953_s1 + $0x608] sm:$0xff]  ;;  %v7146_v35 = vcombine.low %v272_v23, %v304_v24  ;;  %v7148_v36 = vcombine.low %v273_v25, %v305_v26 }
   0xa   :  { %5032 = vmatpush1.bf16.msra.mxu0 %v7274_v19  ;;  %5073 = vmatpush1.bf16.msra.mxu1 %v7276_v20  ;;  %v240_v32 = vld [vmem:[%s10953_s1 + $0x700] sm:$0xff]  ;;  %v241_v34 = vld [vmem:[%s10953_s1 + $0x708] sm:$0xff] }
   0xb   :  { %5033 = vmatprep.subr.bf16.mxu0 %v7211_v21  ;;  %5074 = vmatprep.subr.bf16.mxu1 %v7213_v22  ;;  %v7083_v37 = vcombine.high %v208_v31, %v240_v32  ;;  %v7085_v38 = vcombine.high %v209_v33, %v241_v34  ;;  %v144_v39 = vld [vmem:[%s10953_s1 + $0x400] sm:$0xff]  ;;  %v145_v41 = vld [vmem:[%s10953_s1 + $0x408] sm:$0xff]  ;;  %v7082_v43 = vcombine.low %v208_v31, %v240_v32 }
   0xc   :  { %v176_v40 = vld [vmem:[%s10953_s1 + $0x500] sm:$0xff]  ;;  %v177_v42 = vld [vmem:[%s10953_s1 + $0x508] sm:$0xff]  ;;  %v7084_v45 = vcombine.low %v209_v33, %v241_v34 }
   0xd   :  { %v8273_v44 = vld.sshfl [vmem:[%s10954_s0] sm:$0x33 pattern:$0x76325410]  ;;  %v7019_v46 = vcombine.high %v144_v39, %v176_v40  ;;  %v7021_v48 = vcombine.high %v145_v41, %v177_v42  ;;  %v81_v51 = vld [vmem:[%s10953_s1 + $0x208] sm:$0xff]  ;;  %v7018_v53 = vcombine.low %v144_v39, %v176_v40  ;;  %v7020_v54 = vcombine.low %v145_v41, %v177_v42  ;;  %v466_v42 = vld [vmem:[%s10953_s1 + $0xe10] sm:$0xff] }
   0xe   :  { %5034 = vmatpush1.bf16.msra.mxu0 %v7210_v27  ;;  %5075 = vmatpush1.bf16.msra.mxu1 %v7212_v28  ;;  %v8277_v47 = vcombine.high %v8273_v44, %v8273_v44  ;;  %v80_v49 = vld [vmem:[%s10953_s1 + $0x200] sm:$0xff]  ;;  %v113_v52 = vld [vmem:[%s10953_s1 + $0x308] sm:$0xff] }
   0xf   :  { %5035 = vmatprep.subr.bf16.mxu0 %v7147_v29  ;;  %5076 = vmatprep.subr.bf16.mxu1 %v7149_v30  ;;  %v112_v50 = vld [vmem:[%s10953_s1 + $0x300] sm:$0xff]  ;;  %v6957_v56 = vcombine.high %v81_v51, %v113_v52  ;;  %v17_v59 = vld [vmem:[%s10953_s1 + $0x8] sm:$0xff]  ;;  %v6956_v62 = vcombine.low %v81_v51, %v113_v52  ;;  %v402_v52 = vld [vmem:[%s10953_s1 + $0xc10] sm:$0xff] }
  0x10   :  { %7723 = vmatprep.mubr.msk.bf16.mxu0 %vm4832_vm0, %v8277_v47  ;;  %7725 = vmatprep.mubr.msk.bf16.mxu1 %vm4832_vm0, %v8277_v47  ;;  %v6955_v55 = vcombine.high %v80_v49, %v112_v50  ;;  %v16_v57 = vld [vmem:[%s10953_s1] sm:$0xff]  ;;  %v49_v60 = vld [vmem:[%s10953_s1 + $0x108] sm:$0xff]  ;;  %v6954_v61 = vcombine.low %v80_v49, %v112_v50 }
  0x11   :  { %v48_v58 = vld [vmem:[%s10953_s1 + $0x100] sm:$0xff]  ;;  %v6893_v0 = vcombine.high %v17_v59, %v49_v60  ;;  %v785_v2 = vld [vmem:[%s10953_s1 + $0x1808] sm:$0xff]  ;;  %v6892_v4 = vcombine.low %v17_v59, %v49_v60  ;;  %v338_v60 = vld [vmem:[%s10953_s1 + $0xa10] sm:$0xff] }
  0x12   :  { %5036 = vmatpush1.bf16.msra.mxu0 %v7146_v35  ;;  %5077 = vmatpush1.bf16.msra.mxu1 %v7148_v36  ;;  %v6891_v63 = vcombine.high %v16_v57, %v48_v58  ;;  %v784_v1 = vld [vmem:[%s10953_s1 + $0x1800] sm:$0xff]  ;;  %v6890_v3 = vcombine.low %v16_v57, %v48_v58  ;;  %v7661_v7 = vcombine.high %v785_v2, %v785_v2  ;;  %v721_v11 = vld [vmem:[%s10953_s1 + $0x1608] sm:$0xff] }
  0x13   :  { %5037 = vmatprep.subr.bf16.mxu0 %v7083_v37  ;;  %5078 = vmatprep.subr.bf16.mxu1 %v7085_v38  ;;  %v7659_v5 = vcombine.high %v784_v1, %v784_v1  ;;  %v7658_v6 = vcombine.low %v784_v1, %v784_v1  ;;  %v7660_v8 = vcombine.low %v785_v2, %v785_v2  ;;  %v720_v9 = vld [vmem:[%s10953_s1 + $0x1600] sm:$0xff]  ;;  %v753_v12 = vld [vmem:[%s10953_s1 + $0x1708] sm:$0xff] }
  0x14   :  { %v752_v10 = vld [vmem:[%s10953_s1 + $0x1700] sm:$0xff]  ;;  %v7597_v16 = vcombine.high %v721_v11, %v753_v12  ;;  %v657_v19 = vld [vmem:[%s10953_s1 + $0x1408] sm:$0xff]  ;;  %v7596_v22 = vcombine.low %v721_v11, %v753_v12  ;;  %v210_v12 = vld [vmem:[%s10953_s1 + $0x610] sm:$0xff] }
  0x15   :  { %v4838_v13 = vsel %vm4836_vm1, %v7658_v6, 0  ;;  %v7595_v14 = vcombine.high %v720_v9, %v752_v10  ;;  %v4844_v15 = vsel %vm4836_vm1, %v7660_v8, 0  ;;  %v656_v17 = vld [vmem:[%s10953_s1 + $0x1400] sm:$0xff]  ;;  %v689_v20 = vld [vmem:[%s10953_s1 + $0x1508] sm:$0xff]  ;;  %v7594_v21 = vcombine.low %v720_v9, %v752_v10  ;;  %v275_v6 = vld [vmem:[%s10953_s1 + $0x818] sm:$0xff] }
  0x16   :  { %5038 = vmatpush1.bf16.msra.mxu0 %v7082_v43  ;;  %5079 = vmatpush1.bf16.msra.mxu1 %v7084_v45  ;;  %v688_v18 = vld [vmem:[%s10953_s1 + $0x1500] sm:$0xff]  ;;  %v7533_v24 = vcombine.high %v657_v19, %v689_v20  ;;  %v593_v27 = vld [vmem:[%s10953_s1 + $0x1208] sm:$0xff]  ;;  %v7532_v31 = vcombine.low %v657_v19, %v689_v20  ;;  %v498_v43 = vld [vmem:[%s10953_s1 + $0xf10] sm:$0xff] }
  0x17   :  { %5039 = vmatprep.subr.bf16.mxu0 %v7019_v46  ;;  %5080 = vmatprep.subr.bf16.mxu1 %v7021_v48  ;;  %v7531_v23 = vcombine.high %v656_v17, %v688_v18  ;;  %v592_v25 = vld [vmem:[%s10953_s1 + $0x1200] sm:$0xff]  ;;  %v625_v28 = vld [vmem:[%s10953_s1 + $0x1308] sm:$0xff]  ;;  %v7530_v29 = vcombine.low %v656_v17, %v688_v18  ;;  %v467_v45 = vld [vmem:[%s10953_s1 + $0xe18] sm:$0xff]  ;;  %v7343_v50 = vcombine.high %v466_v42, %v498_v43 }
  0x18   :  { %v624_v26 = vld [vmem:[%s10953_s1 + $0x1300] sm:$0xff]  ;;  %v7469_v33 = vcombine.high %v593_v27, %v625_v28  ;;  %v529_v36 = vld [vmem:[%s10953_s1 + $0x1008] sm:$0xff]  ;;  %v7468_v39 = vcombine.low %v593_v27, %v625_v28  ;;  %v499_v46 = vld [vmem:[%s10953_s1 + $0xf18] sm:$0xff] }
  0x19   :  { %v816_v30 = vld [vmem:[%s10955_s2] sm:$0x7]  ;;  %v7467_v32 = vcombine.high %v592_v25, %v624_v26  ;;  %v561_v37 = vld [vmem:[%s10953_s1 + $0x1108] sm:$0xff]  ;;  %v7466_v38 = vcombine.low %v592_v25, %v624_v26  ;;  %v7345_v51 = vcombine.high %v467_v45, %v499_v46  ;;  %v7344_v57 = vcombine.low %v467_v45, %v499_v46  ;;  %v146_v20 = vld [vmem:[%s10953_s1 + $0x410] sm:$0xff] }
  0x1a   :  { %5040 = vmatpush1.bf16.msra.mxu0 %v7018_v53  ;;  %5081 = vmatpush1.bf16.msra.mxu1 %v7020_v54  ;;  %v528_v34 = vld [vmem:[%s10953_s1 + $0x1000] sm:$0xff]  ;;  %v7405_v41 = vcombine.high %v529_v36, %v561_v37  ;;  %v7404_v49 = vcombine.low %v529_v36, %v561_v37  ;;  %v434_v53 = vld [vmem:[%s10953_s1 + $0xd10] sm:$0xff]  ;;  %v403_v54 = vld [vmem:[%s10953_s1 + $0xc18] sm:$0xff] }
  0x1b   :  { %5041 = vmatprep.subr.bf16.mxu0 %v6955_v55  ;;  %5082 = vmatprep.subr.bf16.mxu1 %v6957_v56  ;;  %v560_v35 = vld [vmem:[%s10953_s1 + $0x1100] sm:$0xff]  ;;  %v435_v55 = vld [vmem:[%s10953_s1 + $0xd18] sm:$0xff]  ;;  %v7342_v56 = vcombine.low %v466_v42, %v498_v43  ;;  %v7279_v58 = vcombine.high %v402_v52, %v434_v53  ;;  %v82_v28 = vld [vmem:[%s10953_s1 + $0x210] sm:$0xff] }
  0x1c   :  { %819 = vperm.xlu0 %7851, %v816_v30   ;;  %v7403_v40 = vcombine.high %v528_v34, %v560_v35  ;;  %v7402_v48 = vcombine.low %v528_v34, %v560_v35  ;;  %v7281_v59 = vcombine.high %v403_v54, %v435_v55  ;;  %v7280_v1 = vcombine.low %v403_v54, %v435_v55  ;;  %v83_v30 = vld [vmem:[%s10953_s1 + $0x218] sm:$0xff]  ;;  %v18_v36 = vld [vmem:[%s10953_s1 + $0x10] sm:$0xff] }
  0x1d   :  { %v50_v37 = vld [vmem:[%s10953_s1 + $0x110] sm:$0xff]  ;;  %v787_v46 = vld [vmem:[%s10953_s1 + $0x1818] sm:$0xff] }
  0x1e   :  { %5042 = vmatpush1.bf16.msra.mxu0 %v6954_v61  ;;  %5083 = vmatpush1.bf16.msra.mxu1 %v6956_v62  ;;  %v370_v61 = vld [vmem:[%s10953_s1 + $0xb10] sm:$0xff]  ;;  %v339_v62 = vld [vmem:[%s10953_s1 + $0xa18] sm:$0xff]  ;;  %v6895_v42 = vcombine.high %v18_v36, %v50_v37 }
  0x1f   :  { %5043 = vmatprep.subr.bf16.mxu0 %v6891_v63  ;;  %5084 = vmatprep.subr.bf16.mxu1 %v6893_v0  ;;  %v371_v63 = vld [vmem:[%s10953_s1 + $0xb18] sm:$0xff]  ;;  %v7278_v0 = vcombine.low %v402_v52, %v434_v53  ;;  %v7215_v2 = vcombine.high %v338_v60, %v370_v61  ;;  %v7214_v8 = vcombine.low %v338_v60, %v370_v61  ;;  %v786_v45 = vld [vmem:[%s10953_s1 + $0x1810] sm:$0xff] }
  0x20   :  { %v7216_v9 = vcombine.low %v339_v62, %v371_v63  ;;  %v7665_v52 = vcombine.high %v787_v46, %v787_v46  ;;  %v7664_v53 = vcombine.low %v787_v46, %v787_v46  ;;  %v722_v54 = vld [vmem:[%s10953_s1 + $0x1610] sm:$0xff] }
  0x21   :  { %v754_v55 = vld [vmem:[%s10953_s1 + $0x1710] sm:$0xff] }
  0x22   :  { %5044 = vmatpush1.bf16.msra.mxu0 %v6890_v3  ;;  %5085 = vmatpush1.bf16.msra.mxu1 %v6892_v4  ;;  %v7217_v3 = vcombine.high %v339_v62, %v371_v63  ;;  %v274_v4 = vld [vmem:[%s10953_s1 + $0x810] sm:$0xff]  ;;  %v4856_v60 = vsel %vm4836_vm1, %v7664_v53, 0 }
  0x23   :  { %7722 = vmatprep.subr.msk.bf16.mxu0 %vm4836_vm1, %v7659_v5  ;;  %7724 = vmatprep.subr.msk.bf16.mxu1 %vm4836_vm1, %v7661_v7  ;;  %v306_v5 = vld [vmem:[%s10953_s1 + $0x910] sm:$0xff]  ;;  %v307_v7 = vld [vmem:[%s10953_s1 + $0x918] sm:$0xff] }
  0x24   :  { %v7151_v10 = vcombine.high %v274_v4, %v306_v5  ;;  %v7153_v11 = vcombine.high %v275_v6, %v307_v7  ;;  %v7152_v17 = vcombine.low %v275_v6, %v307_v7  ;;  %v658_v62 = vld [vmem:[%s10953_s1 + $0x1410] sm:$0xff] }
  0x25   :  { %v690_v63 = vld [vmem:[%s10953_s1 + $0x1510] sm:$0xff] }
  0x26   :  { %5052 = vmatpush2.bf16.msra.mxu0 %v4838_v13  ;;  %5093 = vmatpush2.bf16.msra.mxu1 %v4844_v15  ;;  %v242_v13 = vld [vmem:[%s10953_s1 + $0x710] sm:$0xff]  ;;  %v243_v15 = vld [vmem:[%s10953_s1 + $0x718] sm:$0xff] }
  0x27   :  { %5053 = vmatprep.subr.bf16.mxu0 %v7595_v14  ;;  %5094 = vmatprep.subr.bf16.mxu1 %v7597_v16  ;;  %v211_v14 = vld [vmem:[%s10953_s1 + $0x618] sm:$0xff]  ;;  %v7150_v16 = vcombine.low %v274_v4, %v306_v5  ;;  %v7087_v18 = vcombine.high %v210_v12, %v242_v13  ;;  %v7535_v4 = vcombine.high %v658_v62, %v690_v63  ;;  %v594_v6 = vld [vmem:[%s10953_s1 + $0x1210] sm:$0xff] }
  0x28   :  { %v7089_v19 = vcombine.high %v211_v14, %v243_v15  ;;  %v7088_v25 = vcombine.low %v211_v14, %v243_v15  ;;  %v626_v7 = vld [vmem:[%s10953_s1 + $0x1310] sm:$0xff] }
  0x29   :  { %v530_v14 = vld [vmem:[%s10953_s1 + $0x1010] sm:$0xff] }
  0x2a   :  { %5054 = vmatpush2.bf16.msra.mxu0 %v7594_v21  ;;  %5095 = vmatpush2.bf16.msra.mxu1 %v7596_v22  ;;  %v178_v21 = vld [vmem:[%s10953_s1 + $0x510] sm:$0xff]  ;;  %v147_v22 = vld [vmem:[%s10953_s1 + $0x418] sm:$0xff] }
  0x2b   :  { %5055 = vmatprep.subr.bf16.mxu0 %v7531_v23  ;;  %5096 = vmatprep.subr.bf16.mxu1 %v7533_v24  ;;  %v179_v23 = vld [vmem:[%s10953_s1 + $0x518] sm:$0xff]  ;;  %v7086_v24 = vcombine.low %v210_v12, %v242_v13  ;;  %v7023_v26 = vcombine.high %v146_v20, %v178_v21  ;;  %v7471_v12 = vcombine.high %v594_v6, %v626_v7  ;;  %v562_v15 = vld [vmem:[%s10953_s1 + $0x1110] sm:$0xff] }
  0x2c   :  { %v7025_v27 = vcombine.high %v147_v22, %v179_v23 }
  0x2e   :  { %5056 = vmatpush2.bf16.msra.mxu0 %v7530_v29  ;;  %5097 = vmatpush2.bf16.msra.mxu1 %v7532_v31  ;;  %v114_v29 = vld [vmem:[%s10953_s1 + $0x310] sm:$0xff]  ;;  %v115_v31 = vld [vmem:[%s10953_s1 + $0x318] sm:$0xff] }
  0x2f   :  { %5057 = vmatprep.subr.bf16.mxu0 %v7467_v32  ;;  %5098 = vmatprep.subr.bf16.mxu1 %v7469_v33  ;;  %v7022_v32 = vcombine.low %v146_v20, %v178_v21  ;;  %v7024_v33 = vcombine.low %v147_v22, %v179_v23  ;;  %v6959_v34 = vcombine.high %v82_v28, %v114_v29  ;;  %v468_v22 = vld [vmem:[%s10953_s1 + $0xe20] sm:$0xff] }
  0x30   :  { %v6961_v35 = vcombine.high %v83_v30, %v115_v31  ;;  %v7407_v20 = vcombine.high %v530_v14, %v562_v15  ;;  %v500_v23 = vld [vmem:[%s10953_s1 + $0xf20] sm:$0xff] }
  0x32   :  { %5058 = vmatpush2.bf16.msra.mxu0 %v7466_v38  ;;  %5099 = vmatpush2.bf16.msra.mxu1 %v7468_v39  ;;  %v19_v38 = vld [vmem:[%s10953_s1 + $0x18] sm:$0xff] }
  0x33   :  { %5059 = vmatprep.subr.bf16.mxu0 %v7403_v40  ;;  %5100 = vmatprep.subr.bf16.mxu1 %v7405_v41  ;;  %v51_v39 = vld [vmem:[%s10953_s1 + $0x118] sm:$0xff]  ;;  %v6958_v40 = vcombine.low %v82_v28, %v114_v29  ;;  %v6960_v41 = vcombine.low %v83_v30, %v115_v31  ;;  %v7347_v28 = vcombine.high %v468_v22, %v500_v23  ;;  %v404_v30 = vld [vmem:[%s10953_s1 + $0xc20] sm:$0xff] }
  0x34   :  { %v6897_v43 = vcombine.high %v19_v38, %v51_v39  ;;  %v436_v31 = vld [vmem:[%s10953_s1 + $0xd20] sm:$0xff] }
  0x36   :  { %5060 = vmatpush2.bf16.msra.mxu0 %v7402_v48  ;;  %5101 = vmatpush2.bf16.msra.mxu1 %v7404_v49  ;;  %v6894_v48 = vcombine.low %v18_v36, %v50_v37  ;;  %v6896_v49 = vcombine.low %v19_v38, %v51_v39  ;;  %v7283_v36 = vcombine.high %v404_v30, %v436_v31  ;;  %v340_v38 = vld [vmem:[%s10953_s1 + $0xa20] sm:$0xff] }
  0x37   :  { %5111 = vmatprep.subr.bf16.mxu0 %v7343_v50  ;;  %5152 = vmatprep.subr.bf16.mxu1 %v7345_v51  ;;  %v7663_v50 = vcombine.high %v786_v45, %v786_v45  ;;  %v7662_v51 = vcombine.low %v786_v45, %v786_v45  ;;  %v372_v39 = vld [vmem:[%s10953_s1 + $0xb20] sm:$0xff] }
  0x38   :  { %v7219_v45 = vcombine.high %v340_v38, %v372_v39 }
  0x39   :  { %5062 = vmatmul.mubr.bf16.vlgmr.msra.gmra.mxu0 %v8273_v44  ;;  %5103 = vmatmul.mubr.bf16.vlgmr.msra.gmra.mxu1 %v8273_v44 }
  0x3a   :  { %5112 = vmatpush1.bf16.msra.mxu0 %v7342_v56  ;;  %5153 = vmatpush1.bf16.msra.mxu1 %v7344_v57  ;;  %v723_v56 = vld [vmem:[%s10953_s1 + $0x1618] sm:$0xff] }
  0x3b   :  { %5113 = vmatprep.subr.bf16.mxu0 %v7279_v58  ;;  %5154 = vmatprep.subr.bf16.mxu1 %v7281_v59  ;;  %v755_v57 = vld [vmem:[%s10953_s1 + $0x1718] sm:$0xff]  ;;  %v4850_v58 = vsel %vm4836_vm1, %v7662_v51, 0  ;;  %v7599_v59 = vcombine.high %v722_v54, %v754_v55  ;;  %v309_v51 = vld [vmem:[%s10953_s1 + $0x928] sm:$0xff] }
  0x3c   :  { %7727 = vmatprep.mubr.msk.bf16.mxu0 %vm4832_vm0, %v8277_v47  ;;  %7729 = vmatprep.mubr.msk.bf16.mxu1 %vm4832_vm0, %v8277_v47  ;;  %v7601_v61 = vcombine.high %v723_v56, %v755_v57 }
  0x3e   :  { %5114 = vmatpush1.bf16.msra.mxu0 %v7278_v0  ;;  %5155 = vmatpush1.bf16.msra.mxu1 %v7280_v1  ;;  %v659_v0 = vld [vmem:[%s10953_s1 + $0x1418] sm:$0xff] }
  0x3f   :  { %5115 = vmatprep.subr.bf16.mxu0 %v7215_v2  ;;  %5156 = vmatprep.subr.bf16.mxu1 %v7217_v3  ;;  %v691_v1 = vld [vmem:[%s10953_s1 + $0x1518] sm:$0xff]  ;;  %v7598_v2 = vcombine.low %v722_v54, %v754_v55  ;;  %v7600_v3 = vcombine.low %v723_v56, %v755_v57  ;;  %v212_v56 = vld [vmem:[%s10953_s1 + $0x620] sm:$0xff] }
  0x40   :  { %v7537_v5 = vcombine.high %v659_v0, %v691_v1  ;;  %v244_v57 = vld [vmem:[%s10953_s1 + $0x720] sm:$0xff] }
  0x42   :  { %5116 = vmatpush1.bf16.msra.mxu0 %v7214_v8  ;;  %5157 = vmatpush1.bf16.msra.mxu1 %v7216_v9  ;;  %v595_v8 = vld [vmem:[%s10953_s1 + $0x1218] sm:$0xff] }
  0x43   :  { %5117 = vmatprep.subr.bf16.mxu0 %v7151_v10  ;;  %5158 = vmatprep.subr.bf16.mxu1 %v7153_v11  ;;  %v627_v9 = vld [vmem:[%s10953_s1 + $0x1318] sm:$0xff]  ;;  %v7534_v10 = vcombine.low %v658_v62, %v690_v63  ;;  %v7536_v11 = vcombine.low %v659_v0, %v691_v1  ;;  %v7091_v62 = vcombine.high %v212_v56, %v244_v57  ;;  %v148_v0 = vld [vmem:[%s10953_s1 + $0x420] sm:$0xff] }
  0x44   :  { %v7473_v13 = vcombine.high %v595_v8, %v627_v9  ;;  %v180_v1 = vld [vmem:[%s10953_s1 + $0x520] sm:$0xff] }
  0x46   :  { %5118 = vmatpush1.bf16.msra.mxu0 %v7150_v16  ;;  %5159 = vmatpush1.bf16.msra.mxu1 %v7152_v17  ;;  %v531_v16 = vld [vmem:[%s10953_s1 + $0x1018] sm:$0xff] }
  0x47   :  { %5119 = vmatprep.subr.bf16.mxu0 %v7087_v18  ;;  %5160 = vmatprep.subr.bf16.mxu1 %v7089_v19  ;;  %v563_v17 = vld [vmem:[%s10953_s1 + $0x1118] sm:$0xff]  ;;  %v7470_v18 = vcombine.low %v594_v6, %v626_v7  ;;  %v7472_v19 = vcombine.low %v595_v8, %v627_v9  ;;  %v7027_v6 = vcombine.high %v148_v0, %v180_v1  ;;  %v84_v8 = vld [vmem:[%s10953_s1 + $0x220] sm:$0xff] }
  0x48   :  { %v7409_v21 = vcombine.high %v531_v16, %v563_v17  ;;  %v116_v9 = vld [vmem:[%s10953_s1 + $0x320] sm:$0xff] }
  0x4a   :  { %5120 = vmatpush1.bf16.msra.mxu0 %v7086_v24  ;;  %5161 = vmatpush1.bf16.msra.mxu1 %v7088_v25  ;;  %v469_v24 = vld [vmem:[%s10953_s1 + $0xe28] sm:$0xff] }
  0x4b   :  { %5121 = vmatprep.subr.bf16.mxu0 %v7023_v26  ;;  %5162 = vmatprep.subr.bf16.mxu1 %v7025_v27  ;;  %v501_v25 = vld [vmem:[%s10953_s1 + $0xf28] sm:$0xff]  ;;  %v7406_v26 = vcombine.low %v530_v14, %v562_v15  ;;  %v7408_v27 = vcombine.low %v531_v16, %v563_v17  ;;  %v6963_v14 = vcombine.high %v84_v8, %v116_v9  ;;  %v20_v16 = vld [vmem:[%s10953_s1 + $0x20] sm:$0xff] }
  0x4c   :  { %v7349_v29 = vcombine.high %v469_v24, %v501_v25  ;;  %v52_v17 = vld [vmem:[%s10953_s1 + $0x120] sm:$0xff] }
  0x4e   :  { %5122 = vmatpush1.bf16.msra.mxu0 %v7022_v32  ;;  %5163 = vmatpush1.bf16.msra.mxu1 %v7024_v33  ;;  %v405_v32 = vld [vmem:[%s10953_s1 + $0xc28] sm:$0xff] }
  0x4f   :  { %5123 = vmatprep.subr.bf16.mxu0 %v6959_v34  ;;  %5164 = vmatprep.subr.bf16.mxu1 %v6961_v35  ;;  %v437_v33 = vld [vmem:[%s10953_s1 + $0xd28] sm:$0xff]  ;;  %v7346_v34 = vcombine.low %v468_v22, %v500_v23  ;;  %v7348_v35 = vcombine.low %v469_v24, %v501_v25  ;;  %v6899_v22 = vcombine.high %v20_v16, %v52_v17  ;;  %v788_v24 = vld [vmem:[%s10953_s1 + $0x1820] sm:$0xff] }
  0x50   :  { %v7285_v37 = vcombine.high %v405_v32, %v437_v33  ;;  %v789_v25 = vld [vmem:[%s10953_s1 + $0x1828] sm:$0xff] }
  0x52   :  { %5124 = vmatpush1.bf16.msra.mxu0 %v6958_v40  ;;  %5165 = vmatpush1.bf16.msra.mxu1 %v6960_v41  ;;  %v341_v40 = vld [vmem:[%s10953_s1 + $0xa28] sm:$0xff] }
  0x53   :  { %5125 = vmatprep.subr.bf16.mxu0 %v6895_v42  ;;  %5166 = vmatprep.subr.bf16.mxu1 %v6897_v43  ;;  %v373_v41 = vld [vmem:[%s10953_s1 + $0xb28] sm:$0xff]  ;;  %v7282_v42 = vcombine.low %v404_v30, %v436_v31  ;;  %v7284_v43 = vcombine.low %v405_v32, %v437_v33  ;;  %v7669_v30 = vcombine.high %v789_v25, %v789_v25  ;;  %v724_v32 = vld [vmem:[%s10953_s1 + $0x1620] sm:$0xff] }
  0x54   :  { %v7221_v46 = vcombine.high %v341_v40, %v373_v41  ;;  %v7220_v53 = vcombine.low %v341_v40, %v373_v41  ;;  %v7668_v31 = vcombine.low %v789_v25, %v789_v25  ;;  %v756_v33 = vld [vmem:[%s10953_s1 + $0x1720] sm:$0xff] }
  0x55   :  { %v660_v40 = vld [vmem:[%s10953_s1 + $0x1420] sm:$0xff] }
  0x56   :  { %5126 = vmatpush1.bf16.msra.mxu0 %v6894_v48  ;;  %5167 = vmatpush1.bf16.msra.mxu1 %v6896_v49  ;;  %v276_v48 = vld [vmem:[%s10953_s1 + $0x820] sm:$0xff] }
  0x57   :  { %7726 = vmatprep.subr.msk.bf16.mxu0 %vm4836_vm1, %v7663_v50  ;;  %7728 = vmatprep.subr.msk.bf16.mxu1 %vm4836_vm1, %v7665_v52  ;;  %v308_v49 = vld [vmem:[%s10953_s1 + $0x920] sm:$0xff]  ;;  %v277_v50 = vld [vmem:[%s10953_s1 + $0x828] sm:$0xff]  ;;  %v7218_v52 = vcombine.low %v340_v38, %v372_v39  ;;  %v4868_v38 = vsel %vm4836_vm1, %v7668_v31, 0 }
  0x58   :  { %v7155_v54 = vcombine.high %v276_v48, %v308_v49  ;;  %v7157_v55 = vcombine.high %v277_v50, %v309_v51  ;;  %v692_v41 = vld [vmem:[%s10953_s1 + $0x1520] sm:$0xff] }
  0x5a   :  { %5134 = vmatpush2.bf16.msra.mxu0 %v4850_v58  ;;  %5175 = vmatpush2.bf16.msra.mxu1 %v4856_v60  ;;  %v213_v58 = vld [vmem:[%s10953_s1 + $0x628] sm:$0xff]  ;;  %v7154_v60 = vcombine.low %v276_v48, %v308_v49  ;;  %v7539_v48 = vcombine.high %v660_v40, %v692_v41 }
  0x5b   :  { %5135 = vmatprep.subr.bf16.mxu0 %v7599_v59  ;;  %5176 = vmatprep.subr.bf16.mxu1 %v7601_v61  ;;  %v245_v59 = vld [vmem:[%s10953_s1 + $0x728] sm:$0xff]  ;;  %v7156_v61 = vcombine.low %v277_v50, %v309_v51  ;;  %v596_v50 = vld [vmem:[%s10953_s1 + $0x1220] sm:$0xff] }
  0x5c   :  { %v7093_v63 = vcombine.high %v213_v58, %v245_v59  ;;  %v628_v51 = vld [vmem:[%s10953_s1 + $0x1320] sm:$0xff] }
  0x5e   :  { %5136 = vmatpush2.bf16.msra.mxu0 %v7598_v2  ;;  %5177 = vmatpush2.bf16.msra.mxu1 %v7600_v3  ;;  %v149_v2 = vld [vmem:[%s10953_s1 + $0x428] sm:$0xff] }
  0x5f   :  { %5137 = vmatprep.subr.bf16.mxu0 %v7535_v4  ;;  %5178 = vmatprep.subr.bf16.mxu1 %v7537_v5  ;;  %v181_v3 = vld [vmem:[%s10953_s1 + $0x528] sm:$0xff]  ;;  %v7090_v4 = vcombine.low %v212_v56, %v244_v57  ;;  %v7092_v5 = vcombine.low %v213_v58, %v245_v59  ;;  %v7475_v56 = vcombine.high %v596_v50, %v628_v51  ;;  %v532_v58 = vld [vmem:[%s10953_s1 + $0x1020] sm:$0xff] }
  0x60   :  { %v7029_v7 = vcombine.high %v149_v2, %v181_v3  ;;  %v564_v59 = vld [vmem:[%s10953_s1 + $0x1120] sm:$0xff] }
  0x62   :  { %5138 = vmatpush2.bf16.msra.mxu0 %v7534_v10  ;;  %5179 = vmatpush2.bf16.msra.mxu1 %v7536_v11  ;;  %v85_v10 = vld [vmem:[%s10953_s1 + $0x228] sm:$0xff] }
  0x63   :  { %5139 = vmatprep.subr.bf16.mxu0 %v7471_v12  ;;  %5180 = vmatprep.subr.bf16.mxu1 %v7473_v13  ;;  %v117_v11 = vld [vmem:[%s10953_s1 + $0x328] sm:$0xff]  ;;  %v7026_v12 = vcombine.low %v148_v0, %v180_v1  ;;  %v7028_v13 = vcombine.low %v149_v2, %v181_v3  ;;  %v7411_v0 = vcombine.high %v532_v58, %v564_v59  ;;  %v470_v2 = vld [vmem:[%s10953_s1 + $0xe30] sm:$0xff] }
  0x64   :  { %v6965_v15 = vcombine.high %v85_v10, %v117_v11  ;;  %v502_v3 = vld [vmem:[%s10953_s1 + $0xf30] sm:$0xff] }
  0x66   :  { %5140 = vmatpush2.bf16.msra.mxu0 %v7470_v18  ;;  %5181 = vmatpush2.bf16.msra.mxu1 %v7472_v19  ;;  %v21_v18 = vld [vmem:[%s10953_s1 + $0x28] sm:$0xff] }
  0x67   :  { %5141 = vmatprep.subr.bf16.mxu0 %v7407_v20  ;;  %5182 = vmatprep.subr.bf16.mxu1 %v7409_v21  ;;  %v53_v19 = vld [vmem:[%s10953_s1 + $0x128] sm:$0xff]  ;;  %v6962_v20 = vcombine.low %v84_v8, %v116_v9  ;;  %v6964_v21 = vcombine.low %v85_v10, %v117_v11  ;;  %v7351_v8 = vcombine.high %v470_v2, %v502_v3  ;;  %v406_v10 = vld [vmem:[%s10953_s1 + $0xc30] sm:$0xff] }
  0x68   :  { %v6901_v23 = vcombine.high %v21_v18, %v53_v19  ;;  %v438_v11 = vld [vmem:[%s10953_s1 + $0xd30] sm:$0xff] }
  0x6a   :  { %5142 = vmatpush2.bf16.msra.mxu0 %v7406_v26  ;;  %5183 = vmatpush2.bf16.msra.mxu1 %v7408_v27  ;;  %v6898_v26 = vcombine.low %v20_v16, %v52_v17  ;;  %v6900_v27 = vcombine.low %v21_v18, %v53_v19  ;;  %v7287_v16 = vcombine.high %v406_v10, %v438_v11  ;;  %v342_v18 = vld [vmem:[%s10953_s1 + $0xa30] sm:$0xff] }
  0x6b   :  { %5193 = vmatprep.subr.bf16.mxu0 %v7347_v28  ;;  %5234 = vmatprep.subr.bf16.mxu1 %v7349_v29  ;;  %v7667_v28 = vcombine.high %v788_v24, %v788_v24  ;;  %v7666_v29 = vcombine.low %v788_v24, %v788_v24  ;;  %v374_v19 = vld [vmem:[%s10953_s1 + $0xb30] sm:$0xff] }
  0x6c   :  { %v7223_v24 = vcombine.high %v342_v18, %v374_v19 }
  0x6d   :  { %5144 = vmatmul.mubr.bf16.vlgmr.msra.gmra.mxu0 %v8273_v44  ;;  %5185 = vmatmul.mubr.bf16.vlgmr.msra.gmra.mxu1 %v8273_v44 }
  0x6e   :  { %5194 = vmatpush1.bf16.msra.mxu0 %v7346_v34  ;;  %5235 = vmatpush1.bf16.msra.mxu1 %v7348_v35  ;;  %v725_v34 = vld [vmem:[%s10953_s1 + $0x1628] sm:$0xff] }
  0x6f   :  { %5195 = vmatprep.subr.bf16.mxu0 %v7283_v36  ;;  %5236 = vmatprep.subr.bf16.mxu1 %v7285_v37  ;;  %v757_v35 = vld [vmem:[%s10953_s1 + $0x1728] sm:$0xff]  ;;  %v4862_v36 = vsel %vm4836_vm1, %v7666_v29, 0  ;;  %v7603_v37 = vcombine.high %v724_v32, %v756_v33  ;;  %v7222_v29 = vcombine.low %v342_v18, %v374_v19  ;;  %v662_v19 = vld [vmem:[%s10953_s1 + $0x1430] sm:$0xff] }
  0x70   :  { %7731 = vmatprep.mubr.msk.bf16.mxu0 %vm4832_vm0, %v8277_v47  ;;  %7733 = vmatprep.mubr.msk.bf16.mxu1 %vm4832_vm0, %v8277_v47  ;;  %v7605_v39 = vcombine.high %v725_v34, %v757_v35 }
  0x72   :  { %5196 = vmatpush1.bf16.msra.mxu0 %v7282_v42  ;;  %5237 = vmatpush1.bf16.msra.mxu1 %v7284_v43  ;;  %v661_v42 = vld [vmem:[%s10953_s1 + $0x1428] sm:$0xff] }
  0x73   :  { %5197 = vmatprep.subr.bf16.mxu0 %v7219_v45  ;;  %5238 = vmatprep.subr.bf16.mxu1 %v7221_v46  ;;  %v693_v43 = vld [vmem:[%s10953_s1 + $0x1528] sm:$0xff]  ;;  %v7602_v45 = vcombine.low %v724_v32, %v756_v33  ;;  %v7604_v46 = vcombine.low %v725_v34, %v757_v35  ;;  %v214_v33 = vld [vmem:[%s10953_s1 + $0x630] sm:$0xff]  ;;  %v215_v35 = vld [vmem:[%s10953_s1 + $0x638] sm:$0xff] }
  0x74   :  { %v7541_v49 = vcombine.high %v661_v42, %v693_v43  ;;  %v246_v34 = vld [vmem:[%s10953_s1 + $0x730] sm:$0xff] }
  0x76   :  { %5198 = vmatpush1.bf16.msra.mxu0 %v7218_v52  ;;  %5239 = vmatpush1.bf16.msra.mxu1 %v7220_v53  ;;  %v597_v52 = vld [vmem:[%s10953_s1 + $0x1228] sm:$0xff] }
  0x77   :  { %5199 = vmatprep.subr.bf16.mxu0 %v7155_v54  ;;  %5240 = vmatprep.subr.bf16.mxu1 %v7157_v55  ;;  %v629_v53 = vld [vmem:[%s10953_s1 + $0x1328] sm:$0xff]  ;;  %v7538_v54 = vcombine.low %v660_v40, %v692_v41  ;;  %v7540_v55 = vcombine.low %v661_v42, %v693_v43  ;;  %v150_v41 = vld [vmem:[%s10953_s1 + $0x430] sm:$0xff]  ;;  %v151_v43 = vld [vmem:[%s10953_s1 + $0x438] sm:$0xff] }
  0x78   :  { %v7477_v57 = vcombine.high %v597_v52, %v629_v53  ;;  %v182_v42 = vld [vmem:[%s10953_s1 + $0x530] sm:$0xff] }
  0x7a   :  { %5200 = vmatpush1.bf16.msra.mxu0 %v7154_v60  ;;  %5241 = vmatpush1.bf16.msra.mxu1 %v7156_v61  ;;  %v533_v60 = vld [vmem:[%s10953_s1 + $0x1028] sm:$0xff] }
  0x7b   :  { %5201 = vmatprep.subr.bf16.mxu0 %v7091_v62  ;;  %5242 = vmatprep.subr.bf16.mxu1 %v7093_v63  ;;  %v565_v61 = vld [vmem:[%s10953_s1 + $0x1128] sm:$0xff]  ;;  %v7474_v62 = vcombine.low %v596_v50, %v628_v51  ;;  %v7476_v63 = vcombine.low %v597_v52, %v629_v53  ;;  %v86_v51 = vld [vmem:[%s10953_s1 + $0x230] sm:$0xff]  ;;  %v87_v53 = vld [vmem:[%s10953_s1 + $0x238] sm:$0xff] }
  0x7c   :  { %v7413_v1 = vcombine.high %v533_v60, %v565_v61  ;;  %v118_v52 = vld [vmem:[%s10953_s1 + $0x330] sm:$0xff] }
  0x7e   :  { %5202 = vmatpush1.bf16.msra.mxu0 %v7090_v4  ;;  %5243 = vmatpush1.bf16.msra.mxu1 %v7092_v5  ;;  %v471_v4 = vld [vmem:[%s10953_s1 + $0xe38] sm:$0xff] }
  0x7f   :  { %5203 = vmatprep.subr.bf16.mxu0 %v7027_v6  ;;  %5244 = vmatprep.subr.bf16.mxu1 %v7029_v7  ;;  %v503_v5 = vld [vmem:[%s10953_s1 + $0xf38] sm:$0xff]  ;;  %v7410_v6 = vcombine.low %v532_v58, %v564_v59  ;;  %v7412_v7 = vcombine.low %v533_v60, %v565_v61  ;;  %v22_v59 = vld [vmem:[%s10953_s1 + $0x30] sm:$0xff] }
  0x80   :  { %v7353_v9 = vcombine.high %v471_v4, %v503_v5  ;;  %v54_v60 = vld [vmem:[%s10953_s1 + $0x130] sm:$0xff]  ;;  %v23_v61 = vld [vmem:[%s10953_s1 + $0x38] sm:$0xff] }
  0x82   :  { %5204 = vmatpush1.bf16.msra.mxu0 %v7026_v12  ;;  %5245 = vmatpush1.bf16.msra.mxu1 %v7028_v13  ;;  %v407_v12 = vld [vmem:[%s10953_s1 + $0xc38] sm:$0xff] }
  0x83   :  { %5205 = vmatprep.subr.bf16.mxu0 %v6963_v14  ;;  %5246 = vmatprep.subr.bf16.mxu1 %v6965_v15  ;;  %v439_v13 = vld [vmem:[%s10953_s1 + $0xd38] sm:$0xff]  ;;  %v7350_v14 = vcombine.low %v470_v2, %v502_v3  ;;  %v7352_v15 = vcombine.low %v471_v4, %v503_v5  ;;  %v790_v3 = vld [vmem:[%s10953_s1 + $0x1830] sm:$0xff]  ;;  %v6902_v5 = vcombine.low %v22_v59, %v54_v60 }
  0x84   :  { %v7289_v17 = vcombine.high %v407_v12, %v439_v13  ;;  %v791_v4 = vld [vmem:[%s10953_s1 + $0x1838] sm:$0xff] }
  0x86   :  { %5206 = vmatpush1.bf16.msra.mxu0 %v6962_v20  ;;  %5247 = vmatpush1.bf16.msra.mxu1 %v6964_v21  ;;  %v343_v20 = vld [vmem:[%s10953_s1 + $0xa38] sm:$0xff] }
  0x87   :  { %5207 = vmatprep.subr.bf16.mxu0 %v6899_v22  ;;  %5248 = vmatprep.subr.bf16.mxu1 %v6901_v23  ;;  %v375_v21 = vld [vmem:[%s10953_s1 + $0xb38] sm:$0xff]  ;;  %v7286_v22 = vcombine.low %v406_v10, %v438_v11  ;;  %v7288_v23 = vcombine.low %v407_v12, %v439_v13  ;;  %v7672_v10 = vcombine.low %v791_v4, %v791_v4  ;;  %v726_v11 = vld [vmem:[%s10953_s1 + $0x1630] sm:$0xff] }
  0x88   :  { %v7225_v25 = vcombine.high %v343_v20, %v375_v21  ;;  %v758_v12 = vld [vmem:[%s10953_s1 + $0x1730] sm:$0xff]  ;;  %v727_v13 = vld [vmem:[%s10953_s1 + $0x1638] sm:$0xff] }
  0x8a   :  { %5208 = vmatpush1.bf16.msra.mxu0 %v6898_v26  ;;  %5249 = vmatpush1.bf16.msra.mxu1 %v6900_v27  ;;  %v278_v26 = vld [vmem:[%s10953_s1 + $0x830] sm:$0xff] }
  0x8b   :  { %7730 = vmatprep.subr.msk.bf16.mxu0 %vm4836_vm1, %v7667_v28  ;;  %7732 = vmatprep.subr.msk.bf16.mxu1 %vm4836_vm1, %v7669_v30  ;;  %v310_v27 = vld [vmem:[%s10953_s1 + $0x930] sm:$0xff]  ;;  %v311_v28 = vld [vmem:[%s10953_s1 + $0x938] sm:$0xff]  ;;  %v7224_v30 = vcombine.low %v343_v20, %v375_v21 }
  0x8c   :  { %v7159_v31 = vcombine.high %v278_v26, %v310_v27  ;;  %v694_v20 = vld [vmem:[%s10953_s1 + $0x1530] sm:$0xff]  ;;  %v663_v21 = vld [vmem:[%s10953_s1 + $0x1438] sm:$0xff] }
  0x8e   :  { %5216 = vmatpush2.bf16.msra.mxu0 %v4862_v36  ;;  %5257 = vmatpush2.bf16.msra.mxu1 %v4868_v38  ;;  %v247_v36 = vld [vmem:[%s10953_s1 + $0x738] sm:$0xff] }
  0x8f   :  { %5217 = vmatprep.subr.bf16.mxu0 %v7603_v37  ;;  %5258 = vmatprep.subr.bf16.mxu1 %v7605_v39  ;;  %v7158_v37 = vcombine.low %v278_v26, %v310_v27  ;;  %v7095_v39 = vcombine.high %v214_v33, %v246_v34  ;;  %v7097_v40 = vcombine.high %v215_v35, %v247_v36  ;;  %v598_v27 = vld [vmem:[%s10953_s1 + $0x1230] sm:$0xff] }
  0x92   :  { %5218 = vmatpush2.bf16.msra.mxu0 %v7602_v45  ;;  %5259 = vmatpush2.bf16.msra.mxu1 %v7604_v46  ;;  %v183_v45 = vld [vmem:[%s10953_s1 + $0x538] sm:$0xff]  ;;  %v7094_v46 = vcombine.low %v214_v33, %v246_v34  ;;  %v534_v34 = vld [vmem:[%s10953_s1 + $0x1030] sm:$0xff] }
  0x93   :  { %5219 = vmatprep.subr.bf16.mxu0 %v7539_v48  ;;  %5260 = vmatprep.subr.bf16.mxu1 %v7541_v49  ;;  %v7096_v48 = vcombine.low %v215_v35, %v247_v36  ;;  %v7031_v49 = vcombine.high %v150_v41, %v182_v42  ;;  %v7033_v50 = vcombine.high %v151_v43, %v183_v45  ;;  %v566_v35 = vld [vmem:[%s10953_s1 + $0x1130] sm:$0xff]  ;;  %v535_v36 = vld [vmem:[%s10953_s1 + $0x1038] sm:$0xff] }
  0x96   :  { %5220 = vmatpush2.bf16.msra.mxu0 %v7538_v54  ;;  %5261 = vmatpush2.bf16.msra.mxu1 %v7540_v55  ;;  %v119_v54 = vld [vmem:[%s10953_s1 + $0x338] sm:$0xff]  ;;  %v7030_v55 = vcombine.low %v150_v41, %v182_v42  ;;  %v472_v42 = vld [vmem:[%s10953_s1 + $0xe40] sm:$0xff] }
  0x97   :  { %5221 = vmatprep.subr.bf16.mxu0 %v7475_v56  ;;  %5262 = vmatprep.subr.bf16.mxu1 %v7477_v57  ;;  %v7032_v56 = vcombine.low %v151_v43, %v183_v45  ;;  %v6967_v57 = vcombine.high %v86_v51, %v118_v52  ;;  %v6969_v58 = vcombine.high %v87_v53, %v119_v54  ;;  %v504_v43 = vld [vmem:[%s10953_s1 + $0xf40] sm:$0xff]  ;;  %v473_v45 = vld [vmem:[%s10953_s1 + $0xe48] sm:$0xff] }
  0x9a   :  { %5222 = vmatpush2.bf16.msra.mxu0 %v7474_v62  ;;  %5263 = vmatpush2.bf16.msra.mxu1 %v7476_v63  ;;  %v55_v62 = vld [vmem:[%s10953_s1 + $0x138] sm:$0xff]  ;;  %v6966_v63 = vcombine.low %v86_v51, %v118_v52  ;;  %v408_v52 = vld [vmem:[%s10953_s1 + $0xc40] sm:$0xff] }
  0x9b   :  { %5223 = vmatprep.subr.bf16.mxu0 %v7411_v0  ;;  %5264 = vmatprep.subr.bf16.mxu1 %v7413_v1  ;;  %v6968_v0 = vcombine.low %v87_v53, %v119_v54  ;;  %v6903_v1 = vcombine.high %v22_v59, %v54_v60  ;;  %v6905_v2 = vcombine.high %v23_v61, %v55_v62  ;;  %v440_v53 = vld [vmem:[%s10953_s1 + $0xd40] sm:$0xff]  ;;  %v409_v54 = vld [vmem:[%s10953_s1 + $0xc48] sm:$0xff] }
  0x9c   :  { %v344_v60 = vld [vmem:[%s10953_s1 + $0xa40] sm:$0xff] }
  0x9e   :  { %5224 = vmatpush2.bf16.msra.mxu0 %v7410_v6  ;;  %5265 = vmatpush2.bf16.msra.mxu1 %v7412_v7  ;;  %v6904_v6 = vcombine.low %v23_v61, %v55_v62  ;;  %v7671_v7 = vcombine.high %v790_v3, %v790_v3  ;;  %v376_v61 = vld [vmem:[%s10953_s1 + $0xb40] sm:$0xff] }
  0x9f   :  { %5275 = vmatprep.subr.bf16.mxu0 %v7351_v8  ;;  %5316 = vmatprep.subr.bf16.mxu1 %v7353_v9  ;;  %v7670_v8 = vcombine.low %v790_v3, %v790_v3  ;;  %v7673_v9 = vcombine.high %v791_v4, %v791_v4  ;;  %v8881_v62 = vld.sshfl [vmem:[%s10954_s0] sm:$0x33 pattern:$0x76325410]  ;;  %v7227_v3 = vcombine.high %v344_v60, %v376_v61 }
  0xa1   :  { %5226 = vmatmul.mubr.bf16.vlgmr.msra.gmra.mxu0 %v8273_v44  ;;  %5267 = vmatmul.mubr.bf16.vlgmr.msra.gmra.mxu1 %v8273_v44  ;;  %v279_v44 = vld [vmem:[%s10953_s1 + $0x838] sm:$0xff] }
  0xa2   :  { %5276 = vmatpush1.bf16.msra.mxu0 %v7350_v14  ;;  %5317 = vmatpush1.bf16.msra.mxu1 %v7352_v15  ;;  %v7161_v32 = vcombine.high %v279_v44, %v311_v28  ;;  %v7160_v38 = vcombine.low %v279_v44, %v311_v28  ;;  %v759_v14 = vld [vmem:[%s10953_s1 + $0x1738] sm:$0xff]  ;;  %v4874_v15 = vsel %vm4836_vm1, %v7670_v8, 0  ;;  %v630_v44 = vld [vmem:[%s10953_s1 + $0x1330] sm:$0xff]  ;;  %v313_v8 = vld [vmem:[%s10953_s1 + $0x948] sm:$0xff] }
  0xa3   :  { %5277 = vmatprep.subr.bf16.mxu0 %v7287_v16  ;;  %5318 = vmatprep.subr.bf16.mxu1 %v7289_v17  ;;  %v7607_v16 = vcombine.high %v726_v11, %v758_v12  ;;  %v4880_v17 = vsel %vm4836_vm1, %v7672_v10, 0  ;;  %v7609_v18 = vcombine.high %v727_v13, %v759_v14  ;;  %v599_v28 = vld [vmem:[%s10953_s1 + $0x1238] sm:$0xff] }
  0xa4   :  { %7735 = vmatprep.mubr.msk.bf16.mxu0 %vm4832_vm0, %v8277_v47  ;;  %7737 = vmatprep.mubr.msk.bf16.mxu1 %vm4832_vm0, %v8277_v47 }
  0xa6   :  { %5278 = vmatpush1.bf16.msra.mxu0 %v7286_v22  ;;  %5319 = vmatpush1.bf16.msra.mxu1 %v7288_v23  ;;  %v695_v22 = vld [vmem:[%s10953_s1 + $0x1538] sm:$0xff]  ;;  %v7606_v23 = vcombine.low %v726_v11, %v758_v12 }
  0xa7   :  { %5279 = vmatprep.subr.bf16.mxu0 %v7223_v24  ;;  %5320 = vmatprep.subr.bf16.mxu1 %v7225_v25  ;;  %v7608_v24 = vcombine.low %v727_v13, %v759_v14  ;;  %v7543_v25 = vcombine.high %v662_v19, %v694_v20  ;;  %v7545_v26 = vcombine.high %v663_v21, %v695_v22  ;;  %v216_v13 = vld [vmem:[%s10953_s1 + $0x640] sm:$0xff] }
  0xa8   :  { %v248_v14 = vld [vmem:[%s10953_s1 + $0x740] sm:$0xff] }
  0xaa   :  { %5280 = vmatpush1.bf16.msra.mxu0 %v7222_v29  ;;  %5321 = vmatpush1.bf16.msra.mxu1 %v7224_v30  ;;  %v631_v29 = vld [vmem:[%s10953_s1 + $0x1338] sm:$0xff]  ;;  %v7542_v30 = vcombine.low %v662_v19, %v694_v20  ;;  %v7099_v19 = vcombine.high %v216_v13, %v248_v14 }
  0xab   :  { %5281 = vmatprep.subr.bf16.mxu0 %v7159_v31  ;;  %5322 = vmatprep.subr.bf16.mxu1 %v7161_v32  ;;  %v7544_v31 = vcombine.low %v663_v21, %v695_v22  ;;  %v7479_v32 = vcombine.high %v598_v27, %v630_v44  ;;  %v7481_v33 = vcombine.high %v599_v28, %v631_v29  ;;  %v152_v21 = vld [vmem:[%s10953_s1 + $0x440] sm:$0xff] }
  0xac   :  { %v184_v22 = vld [vmem:[%s10953_s1 + $0x540] sm:$0xff] }
  0xae   :  { %5282 = vmatpush1.bf16.msra.mxu0 %v7158_v37  ;;  %5323 = vmatpush1.bf16.msra.mxu1 %v7160_v38  ;;  %v567_v37 = vld [vmem:[%s10953_s1 + $0x1138] sm:$0xff]  ;;  %v7478_v38 = vcombine.low %v598_v27, %v630_v44  ;;  %v7035_v27 = vcombine.high %v152_v21, %v184_v22 }
  0xaf   :  { %5283 = vmatprep.subr.bf16.mxu0 %v7095_v39  ;;  %5324 = vmatprep.subr.bf16.mxu1 %v7097_v40  ;;  %v7480_v39 = vcombine.low %v599_v28, %v631_v29  ;;  %v7415_v40 = vcombine.high %v534_v34, %v566_v35  ;;  %v7417_v41 = vcombine.high %v535_v36, %v567_v37  ;;  %v88_v28 = vld [vmem:[%s10953_s1 + $0x240] sm:$0xff] }
  0xb0   :  { %v120_v29 = vld [vmem:[%s10953_s1 + $0x340] sm:$0xff] }
  0xb2   :  { %5284 = vmatpush1.bf16.msra.mxu0 %v7094_v46  ;;  %5325 = vmatpush1.bf16.msra.mxu1 %v7096_v48  ;;  %v505_v46 = vld [vmem:[%s10953_s1 + $0xf48] sm:$0xff]  ;;  %v7414_v48 = vcombine.low %v534_v34, %v566_v35  ;;  %v6971_v34 = vcombine.high %v88_v28, %v120_v29 }
  0xb3   :  { %5285 = vmatprep.subr.bf16.mxu0 %v7031_v49  ;;  %5326 = vmatprep.subr.bf16.mxu1 %v7033_v50  ;;  %v7416_v49 = vcombine.low %v535_v36, %v567_v37  ;;  %v7355_v50 = vcombine.high %v472_v42, %v504_v43  ;;  %v7357_v51 = vcombine.high %v473_v45, %v505_v46  ;;  %v24_v36 = vld [vmem:[%s10953_s1 + $0x40] sm:$0xff] }
  0xb4   :  { %v56_v37 = vld [vmem:[%s10953_s1 + $0x140] sm:$0xff] }
  0xb6   :  { %5286 = vmatpush1.bf16.msra.mxu0 %v7030_v55  ;;  %5327 = vmatpush1.bf16.msra.mxu1 %v7032_v56  ;;  %v441_v55 = vld [vmem:[%s10953_s1 + $0xd48] sm:$0xff]  ;;  %v7354_v56 = vcombine.low %v472_v42, %v504_v43  ;;  %v6907_v42 = vcombine.high %v24_v36, %v56_v37 }
  0xb7   :  { %5287 = vmatprep.subr.bf16.mxu0 %v6967_v57  ;;  %5328 = vmatprep.subr.bf16.mxu1 %v6969_v58  ;;  %v7356_v57 = vcombine.low %v473_v45, %v505_v46  ;;  %v7291_v58 = vcombine.high %v408_v52, %v440_v53  ;;  %v7293_v59 = vcombine.high %v409_v54, %v441_v55  ;;  %v792_v45 = vld [vmem:[%s10953_s1 + $0x1840] sm:$0xff]  ;;  %v793_v46 = vld [vmem:[%s10953_s1 + $0x1848] sm:$0xff] }
  0xba   :  { %5288 = vmatpush1.bf16.msra.mxu0 %v6966_v63  ;;  %5329 = vmatpush1.bf16.msra.mxu1 %v6968_v0  ;;  %v345_v63 = vld [vmem:[%s10953_s1 + $0xa48] sm:$0xff] }
  0xbb   :  { %5289 = vmatprep.subr.bf16.mxu0 %v6903_v1  ;;  %5330 = vmatprep.subr.bf16.mxu1 %v6905_v2  ;;  %v377_v0 = vld [vmem:[%s10953_s1 + $0xb48] sm:$0xff]  ;;  %v7290_v1 = vcombine.low %v408_v52, %v440_v53  ;;  %v7292_v2 = vcombine.low %v409_v54, %v441_v55  ;;  %v7677_v52 = vcombine.high %v793_v46, %v793_v46  ;;  %v728_v54 = vld [vmem:[%s10953_s1 + $0x1640] sm:$0xff] }
  0xbc   :  { %v7229_v4 = vcombine.high %v345_v63, %v377_v0  ;;  %v7228_v10 = vcombine.low %v345_v63, %v377_v0  ;;  %v7676_v53 = vcombine.low %v793_v46, %v793_v46  ;;  %v760_v55 = vld [vmem:[%s10953_s1 + $0x1740] sm:$0xff] }
  0xbd   :  { %v664_v63 = vld [vmem:[%s10953_s1 + $0x1440] sm:$0xff] }
  0xbe   :  { %5290 = vmatpush1.bf16.msra.mxu0 %v6902_v5  ;;  %5331 = vmatpush1.bf16.msra.mxu1 %v6904_v6  ;;  %v280_v5 = vld [vmem:[%s10953_s1 + $0x840] sm:$0xff] }
  0xbf   :  { %7734 = vmatprep.subr.msk.bf16.mxu0 %vm4836_vm1, %v7671_v7  ;;  %7736 = vmatprep.subr.msk.bf16.mxu1 %vm4836_vm1, %v7673_v9  ;;  %v312_v6 = vld [vmem:[%s10953_s1 + $0x940] sm:$0xff]  ;;  %v281_v7 = vld [vmem:[%s10953_s1 + $0x848] sm:$0xff]  ;;  %v7226_v9 = vcombine.low %v344_v60, %v376_v61  ;;  %v4892_v60 = vsel %vm4836_vm1, %v7676_v53, 0 }
  0xc0   :  { %v7163_v11 = vcombine.high %v280_v5, %v312_v6  ;;  %v7165_v12 = vcombine.high %v281_v7, %v313_v8  ;;  %v696_v0 = vld [vmem:[%s10953_s1 + $0x1540] sm:$0xff] }
  0xc2   :  { %5298 = vmatpush2.bf16.msra.mxu0 %v4874_v15  ;;  %5339 = vmatpush2.bf16.msra.mxu1 %v4880_v17  ;;  %v217_v15 = vld [vmem:[%s10953_s1 + $0x648] sm:$0xff]  ;;  %v7162_v17 = vcombine.low %v280_v5, %v312_v6  ;;  %v8989_v5 = vpop.permute.xlu0 %819  ;;  %v7547_v6 = vcombine.high %v664_v63, %v696_v0 }
  0xc3   :  { %5299 = vmatprep.subr.bf16.mxu0 %v7607_v16  ;;  %5340 = vmatprep.subr.bf16.mxu1 %v7609_v18  ;;  %v249_v16 = vld [vmem:[%s10953_s1 + $0x748] sm:$0xff]  ;;  %v7164_v18 = vcombine.low %v281_v7, %v313_v8  ;;  %v600_v8 = vld [vmem:[%s10953_s1 + $0x1240] sm:$0xff] }
  0xc4   :  { %v7101_v20 = vcombine.high %v217_v15, %v249_v16 }
  0xc6   :  { %5300 = vmatpush2.bf16.msra.mxu0 %v7606_v23  ;;  %5341 = vmatpush2.bf16.msra.mxu1 %v7608_v24  ;;  %v153_v23 = vld [vmem:[%s10953_s1 + $0x448] sm:$0xff] }
  0xc7   :  { %5301 = vmatprep.subr.bf16.mxu0 %v7543_v25  ;;  %5342 = vmatprep.subr.bf16.mxu1 %v7545_v26  ;;  %v185_v24 = vld [vmem:[%s10953_s1 + $0x548] sm:$0xff]  ;;  %v7098_v25 = vcombine.low %v216_v13, %v248_v14  ;;  %v7100_v26 = vcombine.low %v217_v15, %v249_v16  ;;  %v7546_v15 = vcombine.low %v664_v63, %v696_v0 }
  0xc8   :  { %v7037_v44 = vcombine.high %v153_v23, %v185_v24 }
  0xca   :  { %5302 = vmatpush2.bf16.msra.mxu0 %v7542_v30  ;;  %5343 = vmatpush2.bf16.msra.mxu1 %v7544_v31  ;;  %v89_v30 = vld [vmem:[%s10953_s1 + $0x248] sm:$0xff] }
  0xcb   :  { %5303 = vmatprep.subr.bf16.mxu0 %v7479_v32  ;;  %5344 = vmatprep.subr.bf16.mxu1 %v7481_v33  ;;  %v121_v31 = vld [vmem:[%s10953_s1 + $0x348] sm:$0xff]  ;;  %v7034_v32 = vcombine.low %v152_v21, %v184_v22  ;;  %v7036_v33 = vcombine.low %v153_v23, %v185_v24  ;;  %v536_v24 = vld [vmem:[%s10953_s1 + $0x1040] sm:$0xff] }
  0xcc   :  { %v6973_v35 = vcombine.high %v89_v30, %v121_v31 }
  0xce   :  { %5304 = vmatpush2.bf16.msra.mxu0 %v7478_v38  ;;  %5345 = vmatpush2.bf16.msra.mxu1 %v7480_v39  ;;  %v25_v38 = vld [vmem:[%s10953_s1 + $0x48] sm:$0xff] }
  0xcf   :  { %5305 = vmatprep.subr.bf16.mxu0 %v7415_v40  ;;  %5346 = vmatprep.subr.bf16.mxu1 %v7417_v41  ;;  %v57_v39 = vld [vmem:[%s10953_s1 + $0x148] sm:$0xff]  ;;  %v6970_v40 = vcombine.low %v88_v28, %v120_v29  ;;  %v6972_v41 = vcombine.low %v89_v30, %v121_v31 }
  0xd0   :  { %v6909_v43 = vcombine.high %v25_v38, %v57_v39  ;;  %v537_v28 = vld [vmem:[%s10953_s1 + $0x1048] sm:$0xff] }
  0xd1   :  { %v569_v29 = vld [vmem:[%s10953_s1 + $0x1148] sm:$0xff] }
  0xd2   :  { %5306 = vmatpush2.bf16.msra.mxu0 %v7414_v48  ;;  %5347 = vmatpush2.bf16.msra.mxu1 %v7416_v49  ;;  %v6906_v48 = vcombine.low %v24_v36, %v56_v37  ;;  %v6908_v49 = vcombine.low %v25_v38, %v57_v39  ;;  %v7421_v38 = vcombine.high %v537_v28, %v569_v29  ;;  %v474_v39 = vld [vmem:[%s10953_s1 + $0xe50] sm:$0xff] }
  0xd3   :  { %5357 = vmatprep.subr.bf16.mxu0 %v7355_v50  ;;  %5398 = vmatprep.subr.bf16.mxu1 %v7357_v51  ;;  %v7675_v50 = vcombine.high %v792_v45, %v792_v45  ;;  %v7674_v51 = vcombine.low %v792_v45, %v792_v45  ;;  %v7420_v45 = vcombine.low %v537_v28, %v569_v29  ;;  %v155_v28 = vld [vmem:[%s10953_s1 + $0x458] sm:$0xff] }
  0xd4   :  { %v187_v29 = vld [vmem:[%s10953_s1 + $0x558] sm:$0xff] }
  0xd5   :  { %5308 = vmatmul.mubr.bf16.vlgmr.msra.gmra.mxu0 %v8881_v62  ;;  %5349 = vmatmul.mubr.bf16.vlgmr.msra.gmra.mxu1 %v8881_v62 }
  0xd6   :  { %5358 = vmatpush1.bf16.msra.mxu0 %v7354_v56  ;;  %5399 = vmatpush1.bf16.msra.mxu1 %v7356_v57  ;;  %v729_v56 = vld [vmem:[%s10953_s1 + $0x1648] sm:$0xff] }
  0xd7   :  { %5359 = vmatprep.subr.bf16.mxu0 %v7291_v58  ;;  %5400 = vmatprep.subr.bf16.mxu1 %v7293_v59  ;;  %v761_v57 = vld [vmem:[%s10953_s1 + $0x1748] sm:$0xff]  ;;  %v4886_v58 = vsel %vm4836_vm1, %v7674_v51, 0  ;;  %v7611_v59 = vcombine.high %v728_v54, %v760_v55  ;;  %v411_v51 = vld [vmem:[%s10953_s1 + $0xc58] sm:$0xff] }
  0xd8   :  { %7739 = vmatprep.mubr.msk.bf16.mxu0 %vm4832_vm0, %v8277_v47  ;;  %7741 = vmatprep.mubr.msk.bf16.mxu1 %vm4832_vm0, %v8277_v47  ;;  %v7613_v61 = vcombine.high %v729_v56, %v761_v57 }
  0xda   :  { %5360 = vmatpush1.bf16.msra.mxu0 %v7290_v1  ;;  %5401 = vmatpush1.bf16.msra.mxu1 %v7292_v2  ;;  %v665_v1 = vld [vmem:[%s10953_s1 + $0x1448] sm:$0xff] }
  0xdb   :  { %5361 = vmatprep.subr.bf16.mxu0 %v7227_v3  ;;  %5402 = vmatprep.subr.bf16.mxu1 %v7229_v4  ;;  %v697_v2 = vld [vmem:[%s10953_s1 + $0x1548] sm:$0xff]  ;;  %v7610_v3 = vcombine.low %v728_v54, %v760_v55  ;;  %v7612_v4 = vcombine.low %v729_v56, %v761_v57  ;;  %v346_v57 = vld [vmem:[%s10953_s1 + $0xa50] sm:$0xff] }
  0xdc   :  { %v7549_v7 = vcombine.high %v665_v1, %v697_v2 }
  0xde   :  { %5362 = vmatpush1.bf16.msra.mxu0 %v7226_v9  ;;  %5403 = vmatpush1.bf16.msra.mxu1 %v7228_v10  ;;  %v632_v9 = vld [vmem:[%s10953_s1 + $0x1340] sm:$0xff] }
  0xdf   :  { %5363 = vmatprep.subr.bf16.mxu0 %v7163_v11  ;;  %5404 = vmatprep.subr.bf16.mxu1 %v7165_v12  ;;  %v601_v11 = vld [vmem:[%s10953_s1 + $0x1248] sm:$0xff] }
  0xe0   :  { %v633_v12 = vld [vmem:[%s10953_s1 + $0x1348] sm:$0xff] }
  0xe1   :  { %v7485_v23 = vcombine.high %v601_v11, %v633_v12 }
  0xe2   :  { %5364 = vmatpush1.bf16.msra.mxu0 %v7162_v17  ;;  %5405 = vmatpush1.bf16.msra.mxu1 %v7164_v18  ;;  %v7548_v18 = vcombine.low %v665_v1, %v697_v2 }
  0xe3   :  { %5365 = vmatprep.subr.bf16.mxu0 %v7099_v19  ;;  %5406 = vmatprep.subr.bf16.mxu1 %v7101_v20  ;;  %v7483_v19 = vcombine.high %v600_v8, %v632_v9 }
  0xe6   :  { %5366 = vmatpush1.bf16.msra.mxu0 %v7098_v25  ;;  %5407 = vmatpush1.bf16.msra.mxu1 %v7100_v26  ;;  %v568_v25 = vld [vmem:[%s10953_s1 + $0x1140] sm:$0xff] }
  0xe7   :  { %5367 = vmatprep.subr.bf16.mxu0 %v7035_v27  ;;  %5408 = vmatprep.subr.bf16.mxu1 %v7037_v44  ;;  %v7419_v36 = vcombine.high %v536_v24, %v568_v25 }
  0xea   :  { %5368 = vmatpush1.bf16.msra.mxu0 %v7034_v32  ;;  %5409 = vmatpush1.bf16.msra.mxu1 %v7036_v33  ;;  %v7482_v32 = vcombine.low %v600_v8, %v632_v9 }
  0xeb   :  { %5369 = vmatprep.subr.bf16.mxu0 %v6971_v34  ;;  %5410 = vmatprep.subr.bf16.mxu1 %v6973_v35  ;;  %v7484_v35 = vcombine.low %v601_v11, %v633_v12  ;;  %v315_v11 = vld [vmem:[%s10953_s1 + $0x958] sm:$0xff] }
  0xee   :  { %5370 = vmatpush1.bf16.msra.mxu0 %v6970_v40  ;;  %5411 = vmatpush1.bf16.msra.mxu1 %v6972_v41  ;;  %v506_v40 = vld [vmem:[%s10953_s1 + $0xf50] sm:$0xff]  ;;  %v475_v41 = vld [vmem:[%s10953_s1 + $0xe58] sm:$0xff] }
  0xef   :  { %5371 = vmatprep.subr.bf16.mxu0 %v6907_v42  ;;  %5412 = vmatprep.subr.bf16.mxu1 %v6909_v43  ;;  %v507_v42 = vld [vmem:[%s10953_s1 + $0xf58] sm:$0xff]  ;;  %v7418_v43 = vcombine.low %v536_v24, %v568_v25  ;;  %v7359_v46 = vcombine.high %v474_v39, %v506_v40  ;;  %v7358_v53 = vcombine.low %v474_v39, %v506_v40 }
  0xf0   :  { %v7360_v54 = vcombine.low %v475_v41, %v507_v42  ;;  %v7040_v40 = vcombine.low %v155_v28, %v187_v29 }
  0xf2   :  { %5372 = vmatpush1.bf16.msra.mxu0 %v6906_v48  ;;  %5413 = vmatpush1.bf16.msra.mxu1 %v6908_v49  ;;  %v7361_v48 = vcombine.high %v475_v41, %v507_v42  ;;  %v410_v49 = vld [vmem:[%s10953_s1 + $0xc50] sm:$0xff] }
  0xf3   :  { %7738 = vmatprep.subr.msk.bf16.mxu0 %vm4836_vm1, %v7675_v50  ;;  %7740 = vmatprep.subr.msk.bf16.mxu1 %vm4836_vm1, %v7677_v52  ;;  %v442_v50 = vld [vmem:[%s10953_s1 + $0xd50] sm:$0xff]  ;;  %v443_v52 = vld [vmem:[%s10953_s1 + $0xd58] sm:$0xff] }
  0xf4   :  { %v7295_v55 = vcombine.high %v410_v49, %v442_v50  ;;  %v7297_v56 = vcombine.high %v411_v51, %v443_v52  ;;  %v7296_v0 = vcombine.low %v411_v51, %v443_v52 }
  0xf6   :  { %5380 = vmatpush2.bf16.msra.mxu0 %v4886_v58  ;;  %5421 = vmatpush2.bf16.msra.mxu1 %v4892_v60  ;;  %v378_v58 = vld [vmem:[%s10953_s1 + $0xb50] sm:$0xff]  ;;  %v379_v60 = vld [vmem:[%s10953_s1 + $0xb58] sm:$0xff] }
  0xf7   :  { %5381 = vmatprep.subr.bf16.mxu0 %v7611_v59  ;;  %5422 = vmatprep.subr.bf16.mxu1 %v7613_v61  ;;  %v347_v59 = vld [vmem:[%s10953_s1 + $0xa58] sm:$0xff]  ;;  %v7294_v61 = vcombine.low %v410_v49, %v442_v50  ;;  %v7231_v1 = vcombine.high %v346_v57, %v378_v58 }
  0xf8   :  { %v27_v49 = vld [vmem:[%s10953_s1 + $0x58] sm:$0xff] }
  0xf9   :  { %v5063_v10 = vpop.f32.mrf.mxu0  ;;  %v5104_v13 = vpop.f32.mrf.mxu1  ;;  %v59_v50 = vld [vmem:[%s10953_s1 + $0x158] sm:$0xff] }
  0xfa   :  { %5382 = vmatpush2.bf16.msra.mxu0 %v7610_v3  ;;  %v5064_v14 = vadd.f32 %v5063_v10, %v8989_v5  ;;  %5423 = vmatpush2.bf16.msra.mxu1 %v7612_v4  ;;  %v5105_v17 = vadd.f32 %v5104_v13, %v8989_v5  ;;  %v7233_v4 = vcombine.high %v347_v59, %v379_v60  ;;  %v283_v10 = vld [vmem:[%s10953_s1 + $0x858] sm:$0xff] }
  0xfb   :  { %v5065_v16 = vpop.f32.mrf.mxu0  ;;  %5383 = vmatprep.subr.bf16.mxu0 %v7547_v6  ;;  %v5106_v22 = vpop.f32.mrf.mxu1  ;;  %5424 = vmatprep.subr.bf16.mxu1 %v7549_v7  ;;  %v282_v6 = vld [vmem:[%s10953_s1 + $0x850] sm:$0xff]  ;;  %v7168_v24 = vcombine.low %v283_v10, %v315_v11 }
  0xfc   :  { %v5066_v20 = vadd.f32 %v5065_v16, %v8989_v5  ;;  %v7786_v21 = vmul.f32 -1.442695, %v5064_v14  ;;  %v5107_v26 = vadd.f32 %v5106_v22, %v8989_v5  ;;  %v7788_v27 = vmul.f32 -1.442695, %v5105_v17  ;;  %v314_v7 = vld [vmem:[%s10953_s1 + $0x950] sm:$0xff]  ;;  %v251_v22 = vld [vmem:[%s10953_s1 + $0x758] sm:$0xff] }
  0xfd   :  { %v5067_v44 = vpop.f32.mrf.mxu0  ;;  %v5108_v31 = vpop.f32.mrf.mxu1  ;;  %v7230_v14 = vcombine.low %v346_v57, %v378_v58  ;;  %v7232_v16 = vcombine.low %v347_v59, %v379_v60  ;;  %v7167_v17 = vcombine.high %v282_v6, %v314_v7  ;;  %v6913_v57 = vcombine.high %v27_v49, %v59_v50  ;;  %v794_v58 = vld [vmem:[%s10953_s1 + $0x1850] sm:$0xff]  ;;  %v795_v59 = vld [vmem:[%s10953_s1 + $0x1858] sm:$0xff] }
  0xfe   :  { %7916 = vpow2.f32 %v7786_v21  ;;  %v7787_v30 = vmul.f32 -1.442695, %v5066_v20  ;;  %5384 = vmatpush2.bf16.msra.mxu0 %v7546_v15  ;;  %v7789_v33 = vmul.f32 -1.442695, %v5107_v26  ;;  %5425 = vmatpush2.bf16.msra.mxu1 %v7548_v18  ;;  %v7169_v18 = vcombine.high %v283_v10, %v315_v11  ;;  %v250_v20 = vld [vmem:[%s10953_s1 + $0x750] sm:$0xff]  ;;  %v219_v21 = vld [vmem:[%s10953_s1 + $0x658] sm:$0xff] }
  0xff   :  { %7918 = vpow2.f32 %v7788_v27  ;;  %v5068_v34 = vpop.f32.mrf.mxu0  ;;  %5385 = vmatprep.subr.bf16.mxu0 %v7483_v19  ;;  %v5109_v37 = vpop.f32.mrf.mxu1  ;;  %5426 = vmatprep.subr.bf16.mxu1 %v7485_v23  ;;  %v218_v19 = vld [vmem:[%s10953_s1 + $0x650] sm:$0xff]  ;;  %v7166_v23 = vcombine.low %v282_v6, %v314_v7  ;;  %v7105_v26 = vcombine.high %v219_v21, %v251_v22  ;;  %v7104_v31 = vcombine.low %v219_v21, %v251_v22  ;;  %v731_v6 = vld [vmem:[%s10953_s1 + $0x1658] sm:$0xff] }
 0x100   :  { %7920 = vpow2.f32 %v7787_v30  ;;  %v7103_v25 = vcombine.high %v218_v19, %v250_v20  ;;  %v154_v27 = vld [vmem:[%s10953_s1 + $0x450] sm:$0xff]  ;;  %v7102_v30 = vcombine.low %v218_v19, %v250_v20  ;;  %v123_v37 = vld [vmem:[%s10953_s1 + $0x358] sm:$0xff] }
 0x101   :  { %7922 = vpow2.f32 %v7789_v33  ;;  %v186_v44 = vld [vmem:[%s10953_s1 + $0x550] sm:$0xff]  ;;  %v7041_v33 = vcombine.high %v155_v28, %v187_v29  ;;  %v763_v7 = vld [vmem:[%s10953_s1 + $0x1758] sm:$0xff] }
 0x102   :  { %5386 = vmatpush2.bf16.msra.mxu0 %v7482_v32  ;;  %5427 = vmatpush2.bf16.msra.mxu1 %v7484_v35  ;;  %v7039_v32 = vcombine.high %v154_v27, %v186_v44  ;;  %v90_v34 = vld [vmem:[%s10953_s1 + $0x250] sm:$0xff]  ;;  %v7617_v11 = vcombine.high %v731_v6, %v763_v7 }
 0x103   :  { %5387 = vmatprep.subr.bf16.mxu0 %v7419_v36  ;;  %5428 = vmatprep.subr.bf16.mxu1 %v7421_v38  ;;  %v122_v35 = vld [vmem:[%s10953_s1 + $0x350] sm:$0xff]  ;;  %v91_v36 = vld [vmem:[%s10953_s1 + $0x258] sm:$0xff]  ;;  %v7038_v38 = vcombine.low %v154_v27, %v186_v44 }
 0x104   :  { %v6975_v41 = vcombine.high %v90_v34, %v122_v35  ;;  %v602_v20 = vld [vmem:[%s10953_s1 + $0x1250] sm:$0xff] }
 0x105   :  { %v634_v21 = vld [vmem:[%s10953_s1 + $0x1350] sm:$0xff] }
 0x106   :  { %5388 = vmatpush2.bf16.msra.mxu0 %v7418_v43  ;;  %5429 = vmatpush2.bf16.msra.mxu1 %v7420_v45  ;;  %v6977_v43 = vcombine.high %v91_v36, %v123_v37  ;;  %v26_v45 = vld [vmem:[%s10953_s1 + $0x50] sm:$0xff] }
 0x107   :  { %5439 = vmatprep.subr.bf16.mxu0 %v7359_v46  ;;  %5480 = vmatprep.subr.bf16.mxu1 %v7361_v48  ;;  %v58_v46 = vld [vmem:[%s10953_s1 + $0x150] sm:$0xff] }
 0x108   :  { %v6910_v60 = vcombine.low %v26_v45, %v58_v46 }
 0x109   :  { %5390 = vmatmul.mubr.bf16.vlgmr.msra.gmra.mxu0 %v8881_v62  ;;  %5431 = vmatmul.mubr.bf16.vlgmr.msra.gmra.mxu1 %v8881_v62 }
 0x10a   :  { %5440 = vmatpush1.bf16.msra.mxu0 %v7358_v53  ;;  %5481 = vmatpush1.bf16.msra.mxu1 %v7360_v54  ;;  %v6974_v53 = vcombine.low %v90_v34, %v122_v35  ;;  %v538_v35 = vld [vmem:[%s10953_s1 + $0x1050] sm:$0xff] }
 0x10b   :  { %v7917_v63 = vpop.eup %7916  ;;  %5441 = vmatprep.subr.bf16.mxu0 %v7295_v55  ;;  %5482 = vmatprep.subr.bf16.mxu1 %v7297_v56  ;;  %v6976_v55 = vcombine.low %v91_v36, %v123_v37  ;;  %v6911_v56 = vcombine.high %v26_v45, %v58_v46  ;;  %v570_v36 = vld [vmem:[%s10953_s1 + $0x1150] sm:$0xff]  ;;  %v7486_v45 = vcombine.low %v602_v20, %v634_v21 }
 0x10c   :  { %v7919_v2 = vpop.eup %7918  ;;  %v6533_v3 = vadd.f32 1.0, %v7917_v63  ;;  %7743 = vmatprep.mubr.msk.bf16.mxu0 %vm4832_vm0, %v8277_v47  ;;  %7745 = vmatprep.mubr.msk.bf16.mxu1 %vm4832_vm0, %v8277_v47  ;;  %v7679_v63 = vcombine.high %v794_v58, %v794_v58 }
 0x10d   :  { %v7921_v8 = vpop.eup %7920  ;;  %v6535_v9 = vadd.f32 1.0, %v7919_v2  ;;  %v7680_v2 = vcombine.low %v795_v59, %v795_v59 }
 0x10e   :  { %v7923_v12 = vpop.eup %7922  ;;  %v6534_v13 = vadd.f32 1.0, %v7921_v8  ;;  %7924 = vrcp.f32 %v6533_v3  ;;  %5442 = vmatpush1.bf16.msra.mxu0 %v7294_v61  ;;  %5483 = vmatpush1.bf16.msra.mxu1 %v7296_v0  ;;  %v6912_v61 = vcombine.low %v27_v49, %v59_v50  ;;  %v7678_v0 = vcombine.low %v794_v58, %v794_v58  ;;  %v730_v3 = vld [vmem:[%s10953_s1 + $0x1650] sm:$0xff] }
 0x10f   :  { %v6536_v15 = vadd.f32 1.0, %v7923_v12  ;;  %7926 = vrcp.f32 %v6535_v9  ;;  %5443 = vmatprep.subr.bf16.mxu0 %v7231_v1  ;;  %5484 = vmatprep.subr.bf16.mxu1 %v7233_v4  ;;  %v7681_v1 = vcombine.high %v795_v59, %v795_v59  ;;  %v762_v4 = vld [vmem:[%s10953_s1 + $0x1750] sm:$0xff]  ;;  %v4904_v10 = vsel %vm4836_vm1, %v7680_v2, 0 }
 0x110   :  { %7928 = vrcp.f32 %v6534_v13  ;;  %v4898_v8 = vsel %vm4836_vm1, %v7678_v0, 0  ;;  %v7615_v9 = vcombine.high %v730_v3, %v762_v4  ;;  %v666_v12 = vld [vmem:[%s10953_s1 + $0x1450] sm:$0xff]  ;;  %v7423_v50 = vcombine.high %v538_v35, %v570_v36  ;;  %v413_v0 = vld [vmem:[%s10953_s1 + $0xc68] sm:$0xff] }
 0x111   :  { %7930 = vrcp.f32 %v6536_v15  ;;  %v698_v13 = vld [vmem:[%s10953_s1 + $0x1550] sm:$0xff]  ;;  %v699_v15 = vld [vmem:[%s10953_s1 + $0x1558] sm:$0xff] }
 0x112   :  { %5444 = vmatpush1.bf16.msra.mxu0 %v7230_v14  ;;  %5485 = vmatpush1.bf16.msra.mxu1 %v7232_v16  ;;  %v667_v14 = vld [vmem:[%s10953_s1 + $0x1458] sm:$0xff]  ;;  %v7614_v16 = vcombine.low %v730_v3, %v762_v4  ;;  %v7550_v27 = vcombine.low %v666_v12, %v698_v13 }
 0x113   :  { %5445 = vmatprep.subr.bf16.mxu0 %v7167_v17  ;;  %5486 = vmatprep.subr.bf16.mxu1 %v7169_v18  ;;  %v7616_v17 = vcombine.low %v731_v6, %v763_v7  ;;  %v7551_v18 = vcombine.high %v666_v12, %v698_v13  ;;  %v7553_v19 = vcombine.high %v667_v14, %v699_v15  ;;  %v348_v7 = vld [vmem:[%s10953_s1 + $0xa60] sm:$0xff] }
 0x114   :  { %v7552_v29 = vcombine.low %v667_v14, %v699_v15 }
 0x116   :  { %5446 = vmatpush1.bf16.msra.mxu0 %v7166_v23  ;;  %5487 = vmatpush1.bf16.msra.mxu1 %v7168_v24  ;;  %v603_v23 = vld [vmem:[%s10953_s1 + $0x1258] sm:$0xff] }
 0x117   :  { %5447 = vmatprep.subr.bf16.mxu0 %v7103_v25  ;;  %5488 = vmatprep.subr.bf16.mxu1 %v7105_v26  ;;  %v635_v24 = vld [vmem:[%s10953_s1 + $0x1358] sm:$0xff] }
 0x118   :  { %v7489_v34 = vcombine.high %v603_v23, %v635_v24  ;;  %v7488_v49 = vcombine.low %v603_v23, %v635_v24 }
 0x11a   :  { %5448 = vmatpush1.bf16.msra.mxu0 %v7102_v30  ;;  %5489 = vmatpush1.bf16.msra.mxu1 %v7104_v31  ;;  %v7487_v30 = vcombine.high %v602_v20, %v634_v21  ;;  %v285_v21 = vld [vmem:[%s10953_s1 + $0x868] sm:$0xff] }
 0x11b   :  { %v7925_v39 = vpop.eup %7924  ;;  %5449 = vmatprep.subr.bf16.mxu0 %v7039_v32  ;;  %5490 = vmatprep.subr.bf16.mxu1 %v7041_v33 }
 0x11c   :  { %v7927_v42 = vpop.eup %7926 }
 0x11d   :  { %v7929_v48 = vpop.eup %7928 }
 0x11e   :  { %v7931_v51 = vpop.eup %7930  ;;  %v6789_v52 = vcombine.low %v7925_v39, %v7929_v48  ;;  %5450 = vmatpush1.bf16.msra.mxu0 %v7038_v38  ;;  %5491 = vmatpush1.bf16.msra.mxu1 %v7040_v40  ;;  %v539_v40 = vld [vmem:[%s10953_s1 + $0x1058] sm:$0xff] }
 0x11f   :  { %v6790_v54 = vcombine.low %v7927_v42, %v7931_v51  ;;  %5451 = vmatprep.subr.bf16.mxu0 %v6975_v41  ;;  %5492 = vmatprep.subr.bf16.mxu1 %v6977_v43  ;;  %v571_v41 = vld [vmem:[%s10953_s1 + $0x1158] sm:$0xff] }
 0x120   :  { %6853 = vst [vmem:[%s10956_s3] sm:$0x77] %v6789_v52  ;;  %v7425_v52 = vcombine.high %v539_v40, %v571_v41  ;;  %v7424_v58 = vcombine.low %v539_v40, %v571_v41  ;;  %v189_v40 = vld [vmem:[%s10953_s1 + $0x568] sm:$0xff] }
 0x121   :  { %6854 = vst [vmem:[%s10956_s3 + $0x8] sm:$0x77] %v6790_v54  ;;  %v508_v54 = vld [vmem:[%s10953_s1 + $0xf60] sm:$0xff] }
 0x122   :  { %5452 = vmatpush1.bf16.msra.mxu0 %v6974_v53  ;;  %5493 = vmatpush1.bf16.msra.mxu1 %v6976_v55  ;;  %v476_v53 = vld [vmem:[%s10953_s1 + $0xe60] sm:$0xff]  ;;  %v477_v55 = vld [vmem:[%s10953_s1 + $0xe68] sm:$0xff] }
 0x123   :  { %5453 = vmatprep.subr.bf16.mxu0 %v6911_v56  ;;  %5494 = vmatprep.subr.bf16.mxu1 %v6913_v57  ;;  %v509_v56 = vld [vmem:[%s10953_s1 + $0xf68] sm:$0xff]  ;;  %v7422_v57 = vcombine.low %v538_v35, %v570_v36  ;;  %v7363_v59 = vcombine.high %v476_v53, %v508_v54  ;;  %v7362_v2 = vcombine.low %v476_v53, %v508_v54 }
 0x124   :  { %v7364_v3 = vcombine.low %v477_v55, %v509_v56 }
 0x126   :  { %5454 = vmatpush1.bf16.msra.mxu0 %v6910_v60  ;;  %5495 = vmatpush1.bf16.msra.mxu1 %v6912_v61  ;;  %v7365_v60 = vcombine.high %v477_v55, %v509_v56  ;;  %v412_v61 = vld [vmem:[%s10953_s1 + $0xc60] sm:$0xff] }
 0x127   :  { %7742 = vmatprep.subr.msk.bf16.mxu0 %vm4836_vm1, %v7679_v63  ;;  %7744 = vmatprep.subr.msk.bf16.mxu1 %vm4836_vm1, %v7681_v1  ;;  %v444_v63 = vld [vmem:[%s10953_s1 + $0xd60] sm:$0xff]  ;;  %v445_v1 = vld [vmem:[%s10953_s1 + $0xd68] sm:$0xff] }
 0x128   :  { %v7299_v4 = vcombine.high %v412_v61, %v444_v63  ;;  %v7301_v6 = vcombine.high %v413_v0, %v445_v1  ;;  %v7300_v13 = vcombine.low %v413_v0, %v445_v1 }
 0x12a   :  { %5462 = vmatpush2.bf16.msra.mxu0 %v4898_v8  ;;  %5503 = vmatpush2.bf16.msra.mxu1 %v4904_v10  ;;  %v380_v8 = vld [vmem:[%s10953_s1 + $0xb60] sm:$0xff]  ;;  %v381_v10 = vld [vmem:[%s10953_s1 + $0xb68] sm:$0xff] }
 0x12b   :  { %5463 = vmatprep.subr.bf16.mxu0 %v7615_v9  ;;  %5504 = vmatprep.subr.bf16.mxu1 %v7617_v11  ;;  %v349_v9 = vld [vmem:[%s10953_s1 + $0xa68] sm:$0xff]  ;;  %v7298_v11 = vcombine.low %v412_v61, %v444_v63  ;;  %v7235_v14 = vcombine.high %v348_v7, %v380_v8 }
 0x12c   :  { %v61_v61 = vld [vmem:[%s10953_s1 + $0x168] sm:$0xff] }
 0x12d   :  { %v5145_v22 = vpop.f32.mrf.mxu0  ;;  %v5186_v26 = vpop.f32.mrf.mxu1 }
 0x12e   :  { %v5146_v25 = vadd.f32 %v5145_v22, %v8989_v5  ;;  %5464 = vmatpush2.bf16.msra.mxu0 %v7614_v16  ;;  %v5187_v44 = vadd.f32 %v5186_v26, %v8989_v5  ;;  %5505 = vmatpush2.bf16.msra.mxu1 %v7616_v17  ;;  %v7237_v17 = vcombine.high %v349_v9, %v381_v10  ;;  %v317_v22 = vld [vmem:[%s10953_s1 + $0x968] sm:$0xff] }
 0x12f   :  { %v5147_v28 = vpop.f32.mrf.mxu0  ;;  %5465 = vmatprep.subr.bf16.mxu0 %v7551_v18  ;;  %v5188_v33 = vpop.f32.mrf.mxu1  ;;  %5506 = vmatprep.subr.bf16.mxu1 %v7553_v19  ;;  %v284_v18 = vld [vmem:[%s10953_s1 + $0x860] sm:$0xff] }
 0x130   :  { %v7790_v31 = vmul.f32 -1.442695, %v5146_v25  ;;  %v5148_v32 = vadd.f32 %v5147_v28, %v8989_v5  ;;  %v7792_v37 = vmul.f32 -1.442695, %v5187_v44  ;;  %v5189_v38 = vadd.f32 %v5188_v33, %v8989_v5  ;;  %v316_v19 = vld [vmem:[%s10953_s1 + $0x960] sm:$0xff] }
 0x131   :  { %v5149_v39 = vpop.f32.mrf.mxu0  ;;  %v5190_v43 = vpop.f32.mrf.mxu1  ;;  %v7234_v25 = vcombine.low %v348_v7, %v380_v8  ;;  %v7171_v44 = vcombine.high %v284_v18, %v316_v19  ;;  %v7173_v28 = vcombine.high %v285_v21, %v317_v22  ;;  %v7170_v33 = vcombine.low %v284_v18, %v316_v19  ;;  %v796_v7 = vld [vmem:[%s10953_s1 + $0x1860] sm:$0xff]  ;;  %v797_v8 = vld [vmem:[%s10953_s1 + $0x1868] sm:$0xff] }
 0x132   :  { %7932 = vpow2.f32 %v7790_v31  ;;  %v7791_v42 = vmul.f32 -1.442695, %v5148_v32  ;;  %5466 = vmatpush2.bf16.msra.mxu0 %v7550_v27  ;;  %v7793_v46 = vmul.f32 -1.442695, %v5189_v38  ;;  %5507 = vmatpush2.bf16.msra.mxu1 %v7552_v29  ;;  %v7236_v27 = vcombine.low %v349_v9, %v381_v10  ;;  %v220_v29 = vld [vmem:[%s10953_s1 + $0x660] sm:$0xff]  ;;  %v221_v31 = vld [vmem:[%s10953_s1 + $0x668] sm:$0xff] }
 0x133   :  { %7934 = vpow2.f32 %v7792_v37  ;;  %v5150_v48 = vpop.f32.mrf.mxu0  ;;  %5467 = vmatprep.subr.bf16.mxu0 %v7487_v30  ;;  %v5191_v51 = vpop.f32.mrf.mxu1  ;;  %5508 = vmatprep.subr.bf16.mxu1 %v7489_v34  ;;  %v252_v30 = vld [vmem:[%s10953_s1 + $0x760] sm:$0xff]  ;;  %v253_v32 = vld [vmem:[%s10953_s1 + $0x768] sm:$0xff]  ;;  %v7172_v34 = vcombine.low %v285_v21, %v317_v22 }
 0x134   :  { %7936 = vpow2.f32 %v7791_v42  ;;  %v7107_v35 = vcombine.high %v220_v29, %v252_v30  ;;  %v7109_v36 = vcombine.high %v221_v31, %v253_v32  ;;  %v156_v37 = vld [vmem:[%s10953_s1 + $0x460] sm:$0xff]  ;;  %v157_v39 = vld [vmem:[%s10953_s1 + $0x468] sm:$0xff]  ;;  %v7106_v41 = vcombine.low %v220_v29, %v252_v30 }
 0x135   :  { %7938 = vpow2.f32 %v7793_v46  ;;  %v188_v38 = vld [vmem:[%s10953_s1 + $0x560] sm:$0xff]  ;;  %v7108_v42 = vcombine.low %v221_v31, %v253_v32  ;;  %v7044_v53 = vcombine.low %v157_v39, %v189_v40  ;;  %v765_v18 = vld [vmem:[%s10953_s1 + $0x1768] sm:$0xff] }
 0x136   :  { %5468 = vmatpush2.bf16.msra.mxu0 %v7486_v45  ;;  %5509 = vmatpush2.bf16.msra.mxu1 %v7488_v49  ;;  %v7043_v43 = vcombine.high %v156_v37, %v188_v38  ;;  %v7045_v45 = vcombine.high %v157_v39, %v189_v40  ;;  %v92_v46 = vld [vmem:[%s10953_s1 + $0x260] sm:$0xff]  ;;  %v93_v49 = vld [vmem:[%s10953_s1 + $0x268] sm:$0xff]  ;;  %v7042_v51 = vcombine.low %v156_v37, %v188_v38 }
 0x137   :  { %5469 = vmatprep.subr.bf16.mxu0 %v7423_v50  ;;  %5510 = vmatprep.subr.bf16.mxu1 %v7425_v52  ;;  %v124_v48 = vld [vmem:[%s10953_s1 + $0x360] sm:$0xff]  ;;  %v125_v50 = vld [vmem:[%s10953_s1 + $0x368] sm:$0xff] }
 0x138   :  { %v6979_v54 = vcombine.high %v92_v46, %v124_v48  ;;  %v6981_v56 = vcombine.high %v93_v49, %v125_v50  ;;  %v6978_v1 = vcombine.low %v92_v46, %v124_v48  ;;  %v668_v22 = vld [vmem:[%s10953_s1 + $0x1460] sm:$0xff]  ;;  %v605_v32 = vld [vmem:[%s10953_s1 + $0x1268] sm:$0xff] }
 0x139   :  { %v604_v29 = vld [vmem:[%s10953_s1 + $0x1260] sm:$0xff] }
 0x13a   :  { %5470 = vmatpush2.bf16.msra.mxu0 %v7422_v57  ;;  %5511 = vmatpush2.bf16.msra.mxu1 %v7424_v58  ;;  %v28_v57 = vld [vmem:[%s10953_s1 + $0x60] sm:$0xff] }
 0x13b   :  { %5521 = vmatprep.subr.bf16.mxu0 %v7363_v59  ;;  %5562 = vmatprep.subr.bf16.mxu1 %v7365_v60  ;;  %v60_v58 = vld [vmem:[%s10953_s1 + $0x160] sm:$0xff]  ;;  %v29_v60 = vld [vmem:[%s10953_s1 + $0x68] sm:$0xff] }
 0x13c   :  { %v6914_v9 = vcombine.low %v28_v57, %v60_v58  ;;  %v6916_v10 = vcombine.low %v29_v60, %v61_v61  ;;  %v636_v30 = vld [vmem:[%s10953_s1 + $0x1360] sm:$0xff] }
 0x13d   :  { %5472 = vmatmul.mubr.bf16.vlgmr.msra.gmra.mxu0 %v8881_v62  ;;  %5513 = vmatmul.mubr.bf16.vlgmr.msra.gmra.mxu1 %v8881_v62  ;;  %v7491_v40 = vcombine.high %v604_v29, %v636_v30  ;;  %v540_v46 = vld [vmem:[%s10953_s1 + $0x1060] sm:$0xff] }
 0x13e   :  { %5522 = vmatpush1.bf16.msra.mxu0 %v7362_v2  ;;  %5563 = vmatpush1.bf16.msra.mxu1 %v7364_v3  ;;  %v6980_v3 = vcombine.low %v93_v49, %v125_v50  ;;  %v572_v48 = vld [vmem:[%s10953_s1 + $0x1160] sm:$0xff] }
 0x13f   :  { %v7933_v12 = vpop.eup %7932  ;;  %5523 = vmatprep.subr.bf16.mxu0 %v7299_v4  ;;  %5564 = vmatprep.subr.bf16.mxu1 %v7301_v6  ;;  %v6915_v4 = vcombine.high %v28_v57, %v60_v58  ;;  %v6917_v6 = vcombine.high %v29_v60, %v61_v61  ;;  %v7427_v60 = vcombine.high %v540_v46, %v572_v48 }
 0x140   :  { %v7935_v15 = vpop.eup %7934  ;;  %v6537_v16 = vadd.f32 1.0, %v7933_v12  ;;  %7747 = vmatprep.mubr.msk.bf16.mxu0 %vm4832_vm0, %v8277_v47  ;;  %7749 = vmatprep.mubr.msk.bf16.mxu1 %vm4832_vm0, %v8277_v47  ;;  %v7682_v12 = vcombine.low %v796_v7, %v796_v7 }
 0x141   :  { %v7937_v62 = vpop.eup %7936  ;;  %v6539_v20 = vadd.f32 1.0, %v7935_v15  ;;  %v732_v15 = vld [vmem:[%s10953_s1 + $0x1660] sm:$0xff] }
 0x142   :  { %v7939_v23 = vpop.eup %7938  ;;  %7940 = vrcp.f32 %v6537_v16  ;;  %v6538_v24 = vadd.f32 1.0, %v7937_v62  ;;  %5524 = vmatpush1.bf16.msra.mxu0 %v7298_v11  ;;  %5565 = vmatpush1.bf16.msra.mxu1 %v7300_v13  ;;  %v7683_v11 = vcombine.high %v796_v7, %v796_v7  ;;  %v7685_v13 = vcombine.high %v797_v8, %v797_v8  ;;  %v764_v16 = vld [vmem:[%s10953_s1 + $0x1760] sm:$0xff] }
 0x143   :  { %7942 = vrcp.f32 %v6539_v20  ;;  %v6540_v26 = vadd.f32 1.0, %v7939_v23  ;;  %5525 = vmatprep.subr.bf16.mxu0 %v7235_v14  ;;  %5566 = vmatprep.subr.bf16.mxu1 %v7237_v17  ;;  %v7684_v14 = vcombine.low %v797_v8, %v797_v8  ;;  %v733_v17 = vld [vmem:[%s10953_s1 + $0x1668] sm:$0xff]  ;;  %v4910_v19 = vsel %vm4836_vm1, %v7682_v12, 0  ;;  %v700_v23 = vld [vmem:[%s10953_s1 + $0x1560] sm:$0xff]  ;;  %v447_v12 = vld [vmem:[%s10953_s1 + $0xd78] sm:$0xff] }
 0x144   :  { %7944 = vrcp.f32 %v6538_v24  ;;  %v7619_v62 = vcombine.high %v732_v15, %v764_v16  ;;  %v7621_v21 = vcombine.high %v733_v17, %v765_v18  ;;  %v669_v24 = vld [vmem:[%s10953_s1 + $0x1468] sm:$0xff] }
 0x145   :  { %7946 = vrcp.f32 %v6540_v26  ;;  %v4916_v20 = vsel %vm4836_vm1, %v7684_v14, 0  ;;  %v7618_v26 = vcombine.low %v732_v15, %v764_v16 }
 0x146   :  { %5526 = vmatpush1.bf16.msra.mxu0 %v7234_v25  ;;  %5567 = vmatpush1.bf16.msra.mxu1 %v7236_v27  ;;  %v701_v25 = vld [vmem:[%s10953_s1 + $0x1568] sm:$0xff]  ;;  %v7620_v27 = vcombine.low %v733_v17, %v765_v18  ;;  %v350_v17 = vld [vmem:[%s10953_s1 + $0xa70] sm:$0xff] }
 0x147   :  { %5527 = vmatprep.subr.bf16.mxu0 %v7171_v44  ;;  %5568 = vmatprep.subr.bf16.mxu1 %v7173_v28  ;;  %v7555_v44 = vcombine.high %v668_v22, %v700_v23  ;;  %v7557_v28 = vcombine.high %v669_v24, %v701_v25  ;;  %v7556_v39 = vcombine.low %v669_v24, %v701_v25  ;;  %v382_v18 = vld [vmem:[%s10953_s1 + $0xb70] sm:$0xff] }
 0x148   :  { %v7239_v24 = vcombine.high %v350_v17, %v382_v18 }
 0x14a   :  { %5528 = vmatpush1.bf16.msra.mxu0 %v7170_v33  ;;  %5569 = vmatpush1.bf16.msra.mxu1 %v7172_v34  ;;  %v637_v33 = vld [vmem:[%s10953_s1 + $0x1368] sm:$0xff] }
 0x14b   :  { %5529 = vmatprep.subr.bf16.mxu0 %v7107_v35  ;;  %5570 = vmatprep.subr.bf16.mxu1 %v7109_v36  ;;  %v7554_v36 = vcombine.low %v668_v22, %v700_v23 }
 0x14e   :  { %5530 = vmatpush1.bf16.msra.mxu0 %v7106_v41  ;;  %5571 = vmatpush1.bf16.msra.mxu1 %v7108_v42 }
 0x14f   :  { %v7941_v52 = vpop.eup %7940  ;;  %5531 = vmatprep.subr.bf16.mxu0 %v7043_v43  ;;  %5572 = vmatprep.subr.bf16.mxu1 %v7045_v45  ;;  %v7493_v45 = vcombine.high %v605_v32, %v637_v33 }
 0x150   :  { %v7943_v55 = vpop.eup %7942 }
 0x151   :  { %v7945_v59 = vpop.eup %7944 }
 0x152   :  { %v7947_v63 = vpop.eup %7946  ;;  %v6791_v0 = vcombine.low %v7941_v52, %v7945_v59  ;;  %5532 = vmatpush1.bf16.msra.mxu0 %v7042_v51  ;;  %5573 = vmatpush1.bf16.msra.mxu1 %v7044_v53  ;;  %v541_v52 = vld [vmem:[%s10953_s1 + $0x1068] sm:$0xff]  ;;  %v7492_v59 = vcombine.low %v605_v32, %v637_v33  ;;  %v319_v32 = vld [vmem:[%s10953_s1 + $0x978] sm:$0xff] }
 0x153   :  { %v6792_v2 = vcombine.low %v7943_v55, %v7947_v63  ;;  %5533 = vmatprep.subr.bf16.mxu0 %v6979_v54  ;;  %5574 = vmatprep.subr.bf16.mxu1 %v6981_v56  ;;  %v573_v53 = vld [vmem:[%s10953_s1 + $0x1168] sm:$0xff]  ;;  %v7490_v56 = vcombine.low %v604_v29, %v636_v30 }
 0x154   :  { %6855 = vst [vmem:[%s10956_s3 + $0x10] sm:$0x77] %v6791_v0  ;;  %v7429_v63 = vcombine.high %v541_v52, %v573_v53  ;;  %v478_v0 = vld [vmem:[%s10953_s1 + $0xe70] sm:$0xff] }
 0x155   :  { %6856 = vst [vmem:[%s10956_s3 + $0x18] sm:$0x77] %v6792_v2  ;;  %v479_v2 = vld [vmem:[%s10953_s1 + $0xe78] sm:$0xff] }
 0x156   :  { %5534 = vmatpush1.bf16.msra.mxu0 %v6978_v1  ;;  %5575 = vmatpush1.bf16.msra.mxu1 %v6980_v3  ;;  %v510_v1 = vld [vmem:[%s10953_s1 + $0xf70] sm:$0xff]  ;;  %v511_v3 = vld [vmem:[%s10953_s1 + $0xf78] sm:$0xff] }
 0x157   :  { %5535 = vmatprep.subr.bf16.mxu0 %v6915_v4  ;;  %5576 = vmatprep.subr.bf16.mxu1 %v6917_v6  ;;  %v7426_v4 = vcombine.low %v540_v46, %v572_v48  ;;  %v7428_v6 = vcombine.low %v541_v52, %v573_v53  ;;  %v7367_v7 = vcombine.high %v478_v0, %v510_v1  ;;  %v159_v52 = vld [vmem:[%s10953_s1 + $0x478] sm:$0xff] }
 0x158   :  { %v7369_v8 = vcombine.high %v479_v2, %v511_v3  ;;  %v7368_v14 = vcombine.low %v479_v2, %v511_v3  ;;  %v191_v53 = vld [vmem:[%s10953_s1 + $0x578] sm:$0xff] }
 0x15a   :  { %5536 = vmatpush1.bf16.msra.mxu0 %v6914_v9  ;;  %5577 = vmatpush1.bf16.msra.mxu1 %v6916_v10  ;;  %v414_v9 = vld [vmem:[%s10953_s1 + $0xc70] sm:$0xff] }
 0x15b   :  { %7746 = vmatprep.subr.msk.bf16.mxu0 %vm4836_vm1, %v7683_v11  ;;  %7748 = vmatprep.subr.msk.bf16.mxu1 %vm4836_vm1, %v7685_v13  ;;  %v446_v10 = vld [vmem:[%s10953_s1 + $0xd70] sm:$0xff]  ;;  %v415_v11 = vld [vmem:[%s10953_s1 + $0xc78] sm:$0xff]  ;;  %v7366_v13 = vcombine.low %v478_v0, %v510_v1  ;;  %v7048_v1 = vcombine.low %v159_v52, %v191_v53 }
 0x15c   :  { %v7303_v15 = vcombine.high %v414_v9, %v446_v10  ;;  %v7305_v16 = vcombine.high %v415_v11, %v447_v12  ;;  %v7304_v23 = vcombine.low %v415_v11, %v447_v12 }
 0x15e   :  { %5544 = vmatpush2.bf16.msra.mxu0 %v4910_v19  ;;  %5585 = vmatpush2.bf16.msra.mxu1 %v4916_v20  ;;  %v9392_v19 = vld.sshfl [vmem:[%s10954_s0] sm:$0x33 pattern:$0x76325410]  ;;  %v383_v20 = vld [vmem:[%s10953_s1 + $0xb78] sm:$0xff] }
 0x15f   :  { %5545 = vmatprep.subr.bf16.mxu0 %v7619_v62  ;;  %5586 = vmatprep.subr.bf16.mxu1 %v7621_v21  ;;  %v351_v62 = vld [vmem:[%s10953_s1 + $0xa78] sm:$0xff]  ;;  %v7302_v21 = vcombine.low %v414_v9, %v446_v10 }
 0x160   :  { %v31_v9 = vld [vmem:[%s10953_s1 + $0x78] sm:$0xff] }
 0x161   :  { %v5227_v31 = vpop.f32.mrf.mxu0  ;;  %v5268_v35 = vpop.f32.mrf.mxu1  ;;  %v63_v10 = vld [vmem:[%s10953_s1 + $0x178] sm:$0xff] }
 0x162   :  { %v5228_v34 = vadd.f32 %v5227_v31, %v8989_v5  ;;  %5546 = vmatpush2.bf16.msra.mxu0 %v7618_v26  ;;  %v5269_v37 = vadd.f32 %v5268_v35, %v8989_v5  ;;  %5587 = vmatpush2.bf16.msra.mxu1 %v7620_v27  ;;  %v7241_v27 = vcombine.high %v351_v62, %v383_v20  ;;  %v287_v31 = vld [vmem:[%s10953_s1 + $0x878] sm:$0xff] }
 0x163   :  { %v5229_v38 = vpop.f32.mrf.mxu0  ;;  %5547 = vmatprep.subr.bf16.mxu0 %v7555_v44  ;;  %v5270_v43 = vpop.f32.mrf.mxu1  ;;  %5588 = vmatprep.subr.bf16.mxu1 %v7557_v28  ;;  %v286_v44 = vld [vmem:[%s10953_s1 + $0x870] sm:$0xff]  ;;  %v7238_v35 = vcombine.low %v350_v17, %v382_v18  ;;  %v7176_v46 = vcombine.low %v287_v31, %v319_v32  ;;  %v6921_v17 = vcombine.high %v31_v9, %v63_v10 }
 0x164   :  { %v7794_v41 = vmul.f32 -1.442695, %v5228_v34  ;;  %v5230_v42 = vadd.f32 %v5229_v38, %v8989_v5  ;;  %v7796_v49 = vmul.f32 -1.442695, %v5269_v37  ;;  %v5271_v50 = vadd.f32 %v5270_v43, %v8989_v5  ;;  %v318_v28 = vld [vmem:[%s10953_s1 + $0x970] sm:$0xff]  ;;  %v255_v43 = vld [vmem:[%s10953_s1 + $0x778] sm:$0xff] }
 0x165   :  { %v5231_v51 = vpop.f32.mrf.mxu0  ;;  %v5272_v55 = vpop.f32.mrf.mxu1  ;;  %v7240_v37 = vcombine.low %v351_v62, %v383_v20  ;;  %v7175_v38 = vcombine.high %v286_v44, %v318_v28  ;;  %v798_v18 = vld [vmem:[%s10953_s1 + $0x1870] sm:$0xff]  ;;  %v799_v62 = vld [vmem:[%s10953_s1 + $0x1878] sm:$0xff] }
 0x166   :  { %7948 = vpow2.f32 %v7794_v41  ;;  %v7795_v54 = vmul.f32 -1.442695, %v5230_v42  ;;  %5548 = vmatpush2.bf16.msra.mxu0 %v7554_v36  ;;  %v7797_v57 = vmul.f32 -1.442695, %v5271_v50  ;;  %5589 = vmatpush2.bf16.msra.mxu1 %v7556_v39  ;;  %v7177_v39 = vcombine.high %v287_v31, %v319_v32  ;;  %v254_v41 = vld [vmem:[%s10953_s1 + $0x770] sm:$0xff]  ;;  %v223_v42 = vld [vmem:[%s10953_s1 + $0x678] sm:$0xff] }
 0x167   :  { %7950 = vpow2.f32 %v7796_v49  ;;  %v5232_v58 = vpop.f32.mrf.mxu0  ;;  %5549 = vmatprep.subr.bf16.mxu0 %v7491_v40  ;;  %v5273_v61 = vpop.f32.mrf.mxu1  ;;  %5590 = vmatprep.subr.bf16.mxu1 %v7493_v45  ;;  %v222_v40 = vld [vmem:[%s10953_s1 + $0x670] sm:$0xff]  ;;  %v7174_v45 = vcombine.low %v286_v44, %v318_v28  ;;  %v7113_v49 = vcombine.high %v223_v42, %v255_v43  ;;  %v7112_v55 = vcombine.low %v223_v42, %v255_v43  ;;  %v735_v44 = vld [vmem:[%s10953_s1 + $0x1678] sm:$0xff] }
 0x168   :  { %7952 = vpow2.f32 %v7795_v54  ;;  %v7111_v48 = vcombine.high %v222_v40, %v254_v41  ;;  %v158_v50 = vld [vmem:[%s10953_s1 + $0x470] sm:$0xff]  ;;  %v7110_v54 = vcombine.low %v222_v40, %v254_v41  ;;  %v127_v61 = vld [vmem:[%s10953_s1 + $0x378] sm:$0xff] }
 0x169   :  { %7954 = vpow2.f32 %v7797_v57  ;;  %v190_v51 = vld [vmem:[%s10953_s1 + $0x570] sm:$0xff]  ;;  %v7049_v57 = vcombine.high %v159_v52, %v191_v53  ;;  %v767_v28 = vld [vmem:[%s10953_s1 + $0x1778] sm:$0xff] }
 0x16a   :  { %5550 = vmatpush2.bf16.msra.mxu0 %v7490_v56  ;;  %5591 = vmatpush2.bf16.msra.mxu1 %v7492_v59  ;;  %v7047_v56 = vcombine.high %v158_v50, %v190_v51  ;;  %v94_v58 = vld [vmem:[%s10953_s1 + $0x270] sm:$0xff]  ;;  %v7625_v32 = vcombine.high %v735_v44, %v767_v28 }
 0x16b   :  { %5551 = vmatprep.subr.bf16.mxu0 %v7427_v60  ;;  %5592 = vmatprep.subr.bf16.mxu1 %v7429_v63  ;;  %v126_v59 = vld [vmem:[%s10953_s1 + $0x370] sm:$0xff]  ;;  %v95_v60 = vld [vmem:[%s10953_s1 + $0x278] sm:$0xff]  ;;  %v7046_v63 = vcombine.low %v158_v50, %v190_v51 }
 0x16c   :  { %v6983_v2 = vcombine.high %v94_v58, %v126_v59  ;;  %v606_v41 = vld [vmem:[%s10953_s1 + $0x1270] sm:$0xff] }
 0x16d   :  { %v638_v42 = vld [vmem:[%s10953_s1 + $0x1370] sm:$0xff] }
 0x16e   :  { %5552 = vmatpush2.bf16.msra.mxu0 %v7426_v4  ;;  %5593 = vmatpush2.bf16.msra.mxu1 %v7428_v6  ;;  %v6985_v4 = vcombine.high %v95_v60, %v127_v61  ;;  %v30_v6 = vld [vmem:[%s10953_s1 + $0x70] sm:$0xff] }
 0x16f   :  { %5603 = vmatprep.subr.bf16.mxu0 %v7367_v7  ;;  %5644 = vmatprep.subr.bf16.mxu1 %v7369_v8  ;;  %v62_v7 = vld [vmem:[%s10953_s1 + $0x170] sm:$0xff] }
 0x170   :  { %v6918_v20 = vcombine.low %v30_v6, %v62_v7 }
 0x171   :  { %5554 = vmatmul.mubr.bf16.vlgmr.msra.gmra.mxu0 %v9392_v19  ;;  %5595 = vmatmul.mubr.bf16.vlgmr.msra.gmra.mxu1 %v9392_v19 }
 0x172   :  { %5604 = vmatpush1.bf16.msra.mxu0 %v7366_v13  ;;  %5645 = vmatpush1.bf16.msra.mxu1 %v7368_v14  ;;  %v6982_v13 = vcombine.low %v94_v58, %v126_v59  ;;  %v542_v59 = vld [vmem:[%s10953_s1 + $0x1070] sm:$0xff] }
 0x173   :  { %v7949_v22 = vpop.eup %7948  ;;  %5605 = vmatprep.subr.bf16.mxu0 %v7303_v15  ;;  %5646 = vmatprep.subr.bf16.mxu1 %v7305_v16  ;;  %v6984_v15 = vcombine.low %v95_v60, %v127_v61  ;;  %v6919_v16 = vcombine.high %v30_v6, %v62_v7  ;;  %v574_v60 = vld [vmem:[%s10953_s1 + $0x1170] sm:$0xff]  ;;  %v7494_v6 = vcombine.low %v606_v41, %v638_v42 }
 0x174   :  { %v7951_v25 = vpop.eup %7950  ;;  %v6541_v26 = vadd.f32 1.0, %v7949_v22  ;;  %7751 = vmatprep.mubr.msk.bf16.mxu0 %vm4832_vm0, %v8277_v47  ;;  %7753 = vmatprep.mubr.msk.bf16.mxu1 %vm4832_vm0, %v8277_v47  ;;  %v7687_v22 = vcombine.high %v798_v18, %v798_v18 }
 0x175   :  { %v7953_v29 = vpop.eup %7952  ;;  %v6543_v30 = vadd.f32 1.0, %v7951_v25  ;;  %v7688_v25 = vcombine.low %v799_v62, %v799_v62 }
 0x176   :  { %v7955_v33 = vpop.eup %7954  ;;  %7956 = vrcp.f32 %v6541_v26  ;;  %v6542_v34 = vadd.f32 1.0, %v7953_v29  ;;  %5606 = vmatpush1.bf16.msra.mxu0 %v7302_v21  ;;  %5647 = vmatpush1.bf16.msra.mxu1 %v7304_v23  ;;  %v6920_v21 = vcombine.low %v31_v9, %v63_v10  ;;  %v7686_v23 = vcombine.low %v798_v18, %v798_v18  ;;  %v734_v26 = vld [vmem:[%s10953_s1 + $0x1670] sm:$0xff] }
 0x177   :  { %7958 = vrcp.f32 %v6543_v30  ;;  %v6544_v36 = vadd.f32 1.0, %v7955_v33  ;;  %5607 = vmatprep.subr.bf16.mxu0 %v7239_v24  ;;  %5648 = vmatprep.subr.bf16.mxu1 %v7241_v27  ;;  %v7689_v24 = vcombine.high %v799_v62, %v799_v62  ;;  %v766_v27 = vld [vmem:[%s10953_s1 + $0x1770] sm:$0xff]  ;;  %v4928_v31 = vsel %vm4836_vm1, %v7688_v25, 0 }
 0x178   :  { %7960 = vrcp.f32 %v6542_v34  ;;  %v4922_v29 = vsel %vm4836_vm1, %v7686_v23, 0  ;;  %v7623_v30 = vcombine.high %v734_v26, %v766_v27  ;;  %v670_v33 = vld [vmem:[%s10953_s1 + $0x1470] sm:$0xff]  ;;  %v7431_v10 = vcombine.high %v542_v59, %v574_v60  ;;  %v417_v23 = vld [vmem:[%s10953_s1 + $0xc88] sm:$0xff] }
 0x179   :  { %7962 = vrcp.f32 %v6544_v36  ;;  %v702_v34 = vld [vmem:[%s10953_s1 + $0x1570] sm:$0xff]  ;;  %v703_v36 = vld [vmem:[%s10953_s1 + $0x1578] sm:$0xff] }
 0x17a   :  { %5608 = vmatpush1.bf16.msra.mxu0 %v7238_v35  ;;  %5649 = vmatpush1.bf16.msra.mxu1 %v7240_v37  ;;  %v671_v35 = vld [vmem:[%s10953_s1 + $0x1478] sm:$0xff]  ;;  %v7622_v37 = vcombine.low %v734_v26, %v766_v27  ;;  %v7558_v50 = vcombine.low %v670_v33, %v702_v34 }
 0x17b   :  { %5609 = vmatprep.subr.bf16.mxu0 %v7175_v38  ;;  %5650 = vmatprep.subr.bf16.mxu1 %v7177_v39  ;;  %v7624_v38 = vcombine.low %v735_v44, %v767_v28  ;;  %v7559_v39 = vcombine.high %v670_v33, %v702_v34  ;;  %v7561_v40 = vcombine.high %v671_v35, %v703_v36  ;;  %v352_v28 = vld [vmem:[%s10953_s1 + $0xa80] sm:$0xff] }
 0x17c   :  { %v7560_v53 = vcombine.low %v671_v35, %v703_v36 }
 0x17e   :  { %5610 = vmatpush1.bf16.msra.mxu0 %v7174_v45  ;;  %5651 = vmatpush1.bf16.msra.mxu1 %v7176_v46  ;;  %v607_v45 = vld [vmem:[%s10953_s1 + $0x1278] sm:$0xff] }
 0x17f   :  { %5611 = vmatprep.subr.bf16.mxu0 %v7111_v48  ;;  %5652 = vmatprep.subr.bf16.mxu1 %v7113_v49  ;;  %v639_v46 = vld [vmem:[%s10953_s1 + $0x1378] sm:$0xff] }
 0x180   :  { %v7497_v58 = vcombine.high %v607_v45, %v639_v46  ;;  %v7496_v9 = vcombine.low %v607_v45, %v639_v46  ;;  %v321_v45 = vld [vmem:[%s10953_s1 + $0x988] sm:$0xff] }
 0x182   :  { %5612 = vmatpush1.bf16.msra.mxu0 %v7110_v54  ;;  %5653 = vmatpush1.bf16.msra.mxu1 %v7112_v55  ;;  %v7495_v54 = vcombine.high %v606_v41, %v638_v42 }
 0x183   :  { %v7957_v0 = vpop.eup %7956  ;;  %5613 = vmatprep.subr.bf16.mxu0 %v7047_v56  ;;  %5654 = vmatprep.subr.bf16.mxu1 %v7049_v57 }
 0x184   :  { %v7959_v3 = vpop.eup %7958 }
 0x185   :  { %v7961_v8 = vpop.eup %7960 }
 0x186   :  { %v7963_v11 = vpop.eup %7962  ;;  %v6793_v12 = vcombine.low %v7957_v0, %v7961_v8  ;;  %5614 = vmatpush1.bf16.msra.mxu0 %v7046_v63  ;;  %5655 = vmatpush1.bf16.msra.mxu1 %v7048_v1  ;;  %v543_v1 = vld [vmem:[%s10953_s1 + $0x1078] sm:$0xff] }
 0x187   :  { %v6794_v14 = vcombine.low %v7959_v3, %v7963_v11  ;;  %5615 = vmatprep.subr.bf16.mxu0 %v6983_v2  ;;  %5656 = vmatprep.subr.bf16.mxu1 %v6985_v4  ;;  %v575_v2 = vld [vmem:[%s10953_s1 + $0x1178] sm:$0xff] }
 0x188   :  { %6857 = vst [vmem:[%s10956_s3 + $0x20] sm:$0x77] %v6793_v12  ;;  %v7433_v12 = vcombine.high %v543_v1, %v575_v2  ;;  %v7432_v18 = vcombine.low %v543_v1, %v575_v2  ;;  %v161_v1 = vld [vmem:[%s10953_s1 + $0x488] sm:$0xff] }
 0x189   :  { %6858 = vst [vmem:[%s10956_s3 + $0x28] sm:$0x77] %v6794_v14  ;;  %v512_v14 = vld [vmem:[%s10953_s1 + $0xf80] sm:$0xff]  ;;  %v193_v2 = vld [vmem:[%s10953_s1 + $0x588] sm:$0xff] }
 0x18a   :  { %5616 = vmatpush1.bf16.msra.mxu0 %v6982_v13  ;;  %5657 = vmatpush1.bf16.msra.mxu1 %v6984_v15  ;;  %v480_v13 = vld [vmem:[%s10953_s1 + $0xe80] sm:$0xff]  ;;  %v481_v15 = vld [vmem:[%s10953_s1 + $0xe88] sm:$0xff] }
 0x18b   :  { %5617 = vmatprep.subr.bf16.mxu0 %v6919_v16  ;;  %5658 = vmatprep.subr.bf16.mxu1 %v6921_v17  ;;  %v513_v16 = vld [vmem:[%s10953_s1 + $0xf88] sm:$0xff]  ;;  %v7430_v17 = vcombine.low %v542_v59, %v574_v60  ;;  %v7371_v62 = vcombine.high %v480_v13, %v512_v14  ;;  %v7370_v25 = vcombine.low %v480_v13, %v512_v14 }
 0x18c   :  { %v7372_v26 = vcombine.low %v481_v15, %v513_v16  ;;  %v7052_v14 = vcombine.low %v161_v1, %v193_v2 }
 0x18e   :  { %5618 = vmatpush1.bf16.msra.mxu0 %v6918_v20  ;;  %5659 = vmatpush1.bf16.msra.mxu1 %v6920_v21  ;;  %v7373_v20 = vcombine.high %v481_v15, %v513_v16  ;;  %v416_v21 = vld [vmem:[%s10953_s1 + $0xc80] sm:$0xff] }
 0x18f   :  { %7750 = vmatprep.subr.msk.bf16.mxu0 %vm4836_vm1, %v7687_v22  ;;  %7752 = vmatprep.subr.msk.bf16.mxu1 %vm4836_vm1, %v7689_v24  ;;  %v448_v22 = vld [vmem:[%s10953_s1 + $0xd80] sm:$0xff]  ;;  %v449_v24 = vld [vmem:[%s10953_s1 + $0xd88] sm:$0xff] }
 0x190   :  { %v7307_v27 = vcombine.high %v416_v21, %v448_v22  ;;  %v7309_v44 = vcombine.high %v417_v23, %v449_v24  ;;  %v7308_v34 = vcombine.low %v417_v23, %v449_v24 }
 0x192   :  { %5626 = vmatpush2.bf16.msra.mxu0 %v4922_v29  ;;  %5667 = vmatpush2.bf16.msra.mxu1 %v4928_v31  ;;  %v384_v29 = vld [vmem:[%s10953_s1 + $0xb80] sm:$0xff]  ;;  %v385_v31 = vld [vmem:[%s10953_s1 + $0xb88] sm:$0xff] }
 0x193   :  { %5627 = vmatprep.subr.bf16.mxu0 %v7623_v30  ;;  %5668 = vmatprep.subr.bf16.mxu1 %v7625_v32  ;;  %v353_v30 = vld [vmem:[%s10953_s1 + $0xa88] sm:$0xff]  ;;  %v7306_v32 = vcombine.low %v416_v21, %v448_v22  ;;  %v7243_v35 = vcombine.high %v352_v28, %v384_v29 }
 0x194   :  { %v33_v21 = vld [vmem:[%s10953_s1 + $0x88] sm:$0xff] }
 0x195   :  { %v5309_v43 = vpop.f32.mrf.mxu0  ;;  %v5350_v49 = vpop.f32.mrf.mxu1  ;;  %v65_v22 = vld [vmem:[%s10953_s1 + $0x188] sm:$0xff] }
 0x196   :  { %v5310_v48 = vadd.f32 %v5309_v43, %v8989_v5  ;;  %5628 = vmatpush2.bf16.msra.mxu0 %v7622_v37  ;;  %v5351_v51 = vadd.f32 %v5350_v49, %v8989_v5  ;;  %5669 = vmatpush2.bf16.msra.mxu1 %v7624_v38  ;;  %v7245_v38 = vcombine.high %v353_v30, %v385_v31  ;;  %v289_v43 = vld [vmem:[%s10953_s1 + $0x888] sm:$0xff] }
 0x197   :  { %v5311_v52 = vpop.f32.mrf.mxu0  ;;  %5629 = vmatprep.subr.bf16.mxu0 %v7559_v39  ;;  %v5352_v57 = vpop.f32.mrf.mxu1  ;;  %5670 = vmatprep.subr.bf16.mxu1 %v7561_v40  ;;  %v288_v39 = vld [vmem:[%s10953_s1 + $0x880] sm:$0xff]  ;;  %v7242_v49 = vcombine.low %v352_v28, %v384_v29  ;;  %v7180_v59 = vcombine.low %v289_v43, %v321_v45  ;;  %v6925_v28 = vcombine.high %v33_v21, %v65_v22 }
 0x198   :  { %v7798_v55 = vmul.f32 -1.442695, %v5310_v48  ;;  %v5312_v56 = vadd.f32 %v5311_v52, %v8989_v5  ;;  %v7800_v61 = vmul.f32 -1.442695, %v5351_v51  ;;  %v5353_v63 = vadd.f32 %v5352_v57, %v8989_v5  ;;  %v320_v40 = vld [vmem:[%s10953_s1 + $0x980] sm:$0xff]  ;;  %v257_v57 = vld [vmem:[%s10953_s1 + $0x788] sm:$0xff] }
 0x199   :  { %v5313_v0 = vpop.f32.mrf.mxu0  ;;  %v5354_v4 = vpop.f32.mrf.mxu1  ;;  %v7244_v51 = vcombine.low %v353_v30, %v385_v31  ;;  %v7179_v52 = vcombine.high %v288_v39, %v320_v40  ;;  %v800_v29 = vld [vmem:[%s10953_s1 + $0x1880] sm:$0xff]  ;;  %v801_v30 = vld [vmem:[%s10953_s1 + $0x1888] sm:$0xff] }
 0x19a   :  { %7964 = vpow2.f32 %v7798_v55  ;;  %v7799_v3 = vmul.f32 -1.442695, %v5312_v56  ;;  %5630 = vmatpush2.bf16.msra.mxu0 %v7558_v50  ;;  %v7801_v7 = vmul.f32 -1.442695, %v5353_v63  ;;  %5671 = vmatpush2.bf16.msra.mxu1 %v7560_v53  ;;  %v7181_v53 = vcombine.high %v289_v43, %v321_v45  ;;  %v256_v55 = vld [vmem:[%s10953_s1 + $0x780] sm:$0xff]  ;;  %v225_v56 = vld [vmem:[%s10953_s1 + $0x688] sm:$0xff] }
 0x19b   :  { %7966 = vpow2.f32 %v7800_v61  ;;  %v5314_v8 = vpop.f32.mrf.mxu0  ;;  %5631 = vmatprep.subr.bf16.mxu0 %v7495_v54  ;;  %v5355_v11 = vpop.f32.mrf.mxu1  ;;  %5672 = vmatprep.subr.bf16.mxu1 %v7497_v58  ;;  %v224_v54 = vld [vmem:[%s10953_s1 + $0x680] sm:$0xff]  ;;  %v7178_v58 = vcombine.low %v288_v39, %v320_v40  ;;  %v7117_v61 = vcombine.high %v225_v56, %v257_v57  ;;  %v7116_v4 = vcombine.low %v225_v56, %v257_v57  ;;  %v737_v39 = vld [vmem:[%s10953_s1 + $0x1688] sm:$0xff] }
 0x19c   :  { %7968 = vpow2.f32 %v7799_v3  ;;  %v7115_v60 = vcombine.high %v224_v54, %v256_v55  ;;  %v160_v63 = vld [vmem:[%s10953_s1 + $0x480] sm:$0xff]  ;;  %v7114_v3 = vcombine.low %v224_v54, %v256_v55  ;;  %v129_v11 = vld [vmem:[%s10953_s1 + $0x388] sm:$0xff] }
 0x19d   :  { %7970 = vpow2.f32 %v7801_v7  ;;  %v192_v0 = vld [vmem:[%s10953_s1 + $0x580] sm:$0xff]  ;;  %v7053_v7 = vcombine.high %v161_v1, %v193_v2  ;;  %v769_v40 = vld [vmem:[%s10953_s1 + $0x1788] sm:$0xff] }
 0x19e   :  { %5632 = vmatpush2.bf16.msra.mxu0 %v7494_v6  ;;  %5673 = vmatpush2.bf16.msra.mxu1 %v7496_v9  ;;  %v7051_v6 = vcombine.high %v160_v63, %v192_v0  ;;  %v96_v8 = vld [vmem:[%s10953_s1 + $0x280] sm:$0xff]  ;;  %v7629_v45 = vcombine.high %v737_v39, %v769_v40 }
 0x19f   :  { %5633 = vmatprep.subr.bf16.mxu0 %v7431_v10  ;;  %5674 = vmatprep.subr.bf16.mxu1 %v7433_v12  ;;  %v128_v9 = vld [vmem:[%s10953_s1 + $0x380] sm:$0xff]  ;;  %v97_v10 = vld [vmem:[%s10953_s1 + $0x288] sm:$0xff]  ;;  %v7050_v12 = vcombine.low %v160_v63, %v192_v0 }
 0x1a0   :  { %v6987_v15 = vcombine.high %v96_v8, %v128_v9  ;;  %v608_v55 = vld [vmem:[%s10953_s1 + $0x1280] sm:$0xff] }
 0x1a1   :  { %v640_v56 = vld [vmem:[%s10953_s1 + $0x1380] sm:$0xff] }
 0x1a2   :  { %5634 = vmatpush2.bf16.msra.mxu0 %v7430_v17  ;;  %5675 = vmatpush2.bf16.msra.mxu1 %v7432_v18  ;;  %v6989_v17 = vcombine.high %v97_v10, %v129_v11  ;;  %v32_v18 = vld [vmem:[%s10953_s1 + $0x80] sm:$0xff] }
 0x1a3   :  { %5685 = vmatprep.subr.bf16.mxu0 %v7371_v62  ;;  %5726 = vmatprep.subr.bf16.mxu1 %v7373_v20  ;;  %v64_v62 = vld [vmem:[%s10953_s1 + $0x180] sm:$0xff] }
 0x1a4   :  { %v6922_v31 = vcombine.low %v32_v18, %v64_v62 }
 0x1a5   :  { %5636 = vmatmul.mubr.bf16.vlgmr.msra.gmra.mxu0 %v9392_v19  ;;  %5677 = vmatmul.mubr.bf16.vlgmr.msra.gmra.mxu1 %v9392_v19 }
 0x1a6   :  { %5686 = vmatpush1.bf16.msra.mxu0 %v7370_v25  ;;  %5727 = vmatpush1.bf16.msra.mxu1 %v7372_v26  ;;  %v6986_v25 = vcombine.low %v96_v8, %v128_v9  ;;  %v544_v9 = vld [vmem:[%s10953_s1 + $0x1080] sm:$0xff] }
 0x1a7   :  { %v7965_v33 = vpop.eup %7964  ;;  %5687 = vmatprep.subr.bf16.mxu0 %v7307_v27  ;;  %5728 = vmatprep.subr.bf16.mxu1 %v7309_v44  ;;  %v6988_v27 = vcombine.low %v97_v10, %v129_v11  ;;  %v6923_v44 = vcombine.high %v32_v18, %v64_v62  ;;  %v576_v10 = vld [vmem:[%s10953_s1 + $0x1180] sm:$0xff]  ;;  %v7498_v18 = vcombine.low %v608_v55, %v640_v56 }
 0x1a8   :  { %v7967_v36 = vpop.eup %7966  ;;  %v6545_v37 = vadd.f32 1.0, %v7965_v33  ;;  %7755 = vmatprep.mubr.msk.bf16.mxu0 %vm4832_vm0, %v8277_v47  ;;  %7757 = vmatprep.mubr.msk.bf16.mxu1 %vm4832_vm0, %v8277_v47  ;;  %v7691_v33 = vcombine.high %v800_v29, %v800_v29 }
 0x1a9   :  { %v7969_v41 = vpop.eup %7968  ;;  %v6547_v42 = vadd.f32 1.0, %v7967_v36  ;;  %v7692_v36 = vcombine.low %v801_v30, %v801_v30 }
 0x1aa   :  { %v7971_v46 = vpop.eup %7970  ;;  %7972 = vrcp.f32 %v6545_v37  ;;  %v6546_v48 = vadd.f32 1.0, %v7969_v41  ;;  %5688 = vmatpush1.bf16.msra.mxu0 %v7306_v32  ;;  %5729 = vmatpush1.bf16.msra.mxu1 %v7308_v34  ;;  %v6924_v32 = vcombine.low %v33_v21, %v65_v22  ;;  %v7690_v34 = vcombine.low %v800_v29, %v800_v29  ;;  %v736_v37 = vld [vmem:[%s10953_s1 + $0x1680] sm:$0xff] }
 0x1ab   :  { %7974 = vrcp.f32 %v6547_v42  ;;  %v6548_v50 = vadd.f32 1.0, %v7971_v46  ;;  %5689 = vmatprep.subr.bf16.mxu0 %v7243_v35  ;;  %5730 = vmatprep.subr.bf16.mxu1 %v7245_v38  ;;  %v7693_v35 = vcombine.high %v801_v30, %v801_v30  ;;  %v768_v38 = vld [vmem:[%s10953_s1 + $0x1780] sm:$0xff]  ;;  %v4940_v43 = vsel %vm4836_vm1, %v7692_v36, 0 }
 0x1ac   :  { %7976 = vrcp.f32 %v6546_v48  ;;  %v4934_v41 = vsel %vm4836_vm1, %v7690_v34, 0  ;;  %v7627_v42 = vcombine.high %v736_v37, %v768_v38  ;;  %v672_v46 = vld [vmem:[%s10953_s1 + $0x1480] sm:$0xff]  ;;  %v7435_v22 = vcombine.high %v544_v9, %v576_v10  ;;  %v419_v34 = vld [vmem:[%s10953_s1 + $0xc98] sm:$0xff] }
 0x1ad   :  { %7978 = vrcp.f32 %v6548_v50  ;;  %v704_v48 = vld [vmem:[%s10953_s1 + $0x1580] sm:$0xff]  ;;  %v705_v50 = vld [vmem:[%s10953_s1 + $0x1588] sm:$0xff] }
 0x1ae   :  { %5690 = vmatpush1.bf16.msra.mxu0 %v7242_v49  ;;  %5731 = vmatpush1.bf16.msra.mxu1 %v7244_v51  ;;  %v673_v49 = vld [vmem:[%s10953_s1 + $0x1488] sm:$0xff]  ;;  %v7626_v51 = vcombine.low %v736_v37, %v768_v38  ;;  %v7562_v63 = vcombine.low %v672_v46, %v704_v48 }
 0x1af   :  { %5691 = vmatprep.subr.bf16.mxu0 %v7179_v52  ;;  %5732 = vmatprep.subr.bf16.mxu1 %v7181_v53  ;;  %v7628_v52 = vcombine.low %v737_v39, %v769_v40  ;;  %v7563_v53 = vcombine.high %v672_v46, %v704_v48  ;;  %v7565_v54 = vcombine.high %v673_v49, %v705_v50  ;;  %v354_v40 = vld [vmem:[%s10953_s1 + $0xa90] sm:$0xff] }
 0x1b0   :  { %v7564_v2 = vcombine.low %v673_v49, %v705_v50 }
 0x1b2   :  { %5692 = vmatpush1.bf16.msra.mxu0 %v7178_v58  ;;  %5733 = vmatpush1.bf16.msra.mxu1 %v7180_v59  ;;  %v609_v58 = vld [vmem:[%s10953_s1 + $0x1288] sm:$0xff] }
 0x1b3   :  { %5693 = vmatprep.subr.bf16.mxu0 %v7115_v60  ;;  %5734 = vmatprep.subr.bf16.mxu1 %v7117_v61  ;;  %v641_v59 = vld [vmem:[%s10953_s1 + $0x1388] sm:$0xff] }
 0x1b4   :  { %v7501_v8 = vcombine.high %v609_v58, %v641_v59  ;;  %v7500_v21 = vcombine.low %v609_v58, %v641_v59 }
 0x1b6   :  { %5694 = vmatpush1.bf16.msra.mxu0 %v7114_v3  ;;  %5735 = vmatpush1.bf16.msra.mxu1 %v7116_v4  ;;  %v7499_v3 = vcombine.high %v608_v55, %v640_v56  ;;  %v291_v56 = vld [vmem:[%s10953_s1 + $0x898] sm:$0xff] }
 0x1b7   :  { %v7973_v13 = vpop.eup %7972  ;;  %5695 = vmatprep.subr.bf16.mxu0 %v7051_v6  ;;  %5736 = vmatprep.subr.bf16.mxu1 %v7053_v7 }
 0x1b8   :  { %v7975_v16 = vpop.eup %7974 }
 0x1b9   :  { %v7977_v20 = vpop.eup %7976 }
 0x1ba   :  { %v7979_v23 = vpop.eup %7978  ;;  %v6795_v24 = vcombine.low %v7973_v13, %v7977_v20  ;;  %5696 = vmatpush1.bf16.msra.mxu0 %v7050_v12  ;;  %5737 = vmatpush1.bf16.msra.mxu1 %v7052_v14  ;;  %v545_v14 = vld [vmem:[%s10953_s1 + $0x1088] sm:$0xff] }
 0x1bb   :  { %v6796_v26 = vcombine.low %v7975_v16, %v7979_v23  ;;  %5697 = vmatprep.subr.bf16.mxu0 %v6987_v15  ;;  %5738 = vmatprep.subr.bf16.mxu1 %v6989_v17  ;;  %v577_v15 = vld [vmem:[%s10953_s1 + $0x1188] sm:$0xff] }
 0x1bc   :  { %6859 = vst [vmem:[%s10956_s3 + $0x30] sm:$0x77] %v6795_v24  ;;  %v7437_v24 = vcombine.high %v545_v14, %v577_v15  ;;  %v7436_v29 = vcombine.low %v545_v14, %v577_v15  ;;  %v195_v14 = vld [vmem:[%s10953_s1 + $0x598] sm:$0xff] }
 0x1bd   :  { %6860 = vst [vmem:[%s10956_s3 + $0x38] sm:$0x77] %v6796_v26  ;;  %v514_v26 = vld [vmem:[%s10953_s1 + $0xf90] sm:$0xff] }
 0x1be   :  { %5698 = vmatpush1.bf16.msra.mxu0 %v6986_v25  ;;  %5739 = vmatpush1.bf16.msra.mxu1 %v6988_v27  ;;  %v482_v25 = vld [vmem:[%s10953_s1 + $0xe90] sm:$0xff]  ;;  %v483_v27 = vld [vmem:[%s10953_s1 + $0xe98] sm:$0xff] }
 0x1bf   :  { %5699 = vmatprep.subr.bf16.mxu0 %v6923_v44  ;;  %5740 = vmatprep.subr.bf16.mxu1 %v6925_v28  ;;  %v515_v44 = vld [vmem:[%s10953_s1 + $0xf98] sm:$0xff]  ;;  %v7434_v28 = vcombine.low %v544_v9, %v576_v10  ;;  %v7375_v30 = vcombine.high %v482_v25, %v514_v26  ;;  %v7374_v36 = vcombine.low %v482_v25, %v514_v26 }
 0x1c0   :  { %v7376_v37 = vcombine.low %v483_v27, %v515_v44 }
 0x1c2   :  { %5700 = vmatpush1.bf16.msra.mxu0 %v6922_v31  ;;  %5741 = vmatpush1.bf16.msra.mxu1 %v6924_v32  ;;  %v7377_v31 = vcombine.high %v483_v27, %v515_v44  ;;  %v418_v32 = vld [vmem:[%s10953_s1 + $0xc90] sm:$0xff] }
 0x1c3   :  { %7754 = vmatprep.subr.msk.bf16.mxu0 %vm4836_vm1, %v7691_v33  ;;  %7756 = vmatprep.subr.msk.bf16.mxu1 %vm4836_vm1, %v7693_v35  ;;  %v450_v33 = vld [vmem:[%s10953_s1 + $0xd90] sm:$0xff]  ;;  %v451_v35 = vld [vmem:[%s10953_s1 + $0xd98] sm:$0xff] }
 0x1c4   :  { %v7311_v38 = vcombine.high %v418_v32, %v450_v33  ;;  %v7313_v39 = vcombine.high %v419_v34, %v451_v35  ;;  %v7312_v48 = vcombine.low %v419_v34, %v451_v35 }
 0x1c6   :  { %5708 = vmatpush2.bf16.msra.mxu0 %v4934_v41  ;;  %5749 = vmatpush2.bf16.msra.mxu1 %v4940_v43  ;;  %v386_v41 = vld [vmem:[%s10953_s1 + $0xb90] sm:$0xff]  ;;  %v387_v43 = vld [vmem:[%s10953_s1 + $0xb98] sm:$0xff] }
 0x1c7   :  { %5709 = vmatprep.subr.bf16.mxu0 %v7627_v42  ;;  %5750 = vmatprep.subr.bf16.mxu1 %v7629_v45  ;;  %v355_v42 = vld [vmem:[%s10953_s1 + $0xa98] sm:$0xff]  ;;  %v7310_v45 = vcombine.low %v418_v32, %v450_v33  ;;  %v7247_v49 = vcombine.high %v354_v40, %v386_v41 }
 0x1c8   :  { %v67_v32 = vld [vmem:[%s10953_s1 + $0x198] sm:$0xff] }
 0x1c9   :  { %v5391_v57 = vpop.f32.mrf.mxu0  ;;  %v5432_v61 = vpop.f32.mrf.mxu1 }
 0x1ca   :  { %v5392_v60 = vadd.f32 %v5391_v57, %v8989_v5  ;;  %5710 = vmatpush2.bf16.msra.mxu0 %v7626_v51  ;;  %v5433_v0 = vadd.f32 %v5432_v61, %v8989_v5  ;;  %5751 = vmatpush2.bf16.msra.mxu1 %v7628_v52  ;;  %v7249_v52 = vcombine.high %v355_v42, %v387_v43  ;;  %v323_v57 = vld [vmem:[%s10953_s1 + $0x998] sm:$0xff] }
 0x1cb   :  { %v5393_v1 = vpop.f32.mrf.mxu0  ;;  %5711 = vmatprep.subr.bf16.mxu0 %v7563_v53  ;;  %v5434_v7 = vpop.f32.mrf.mxu1  ;;  %5752 = vmatprep.subr.bf16.mxu1 %v7565_v54  ;;  %v290_v53 = vld [vmem:[%s10953_s1 + $0x890] sm:$0xff] }
 0x1cc   :  { %v7802_v4 = vmul.f32 -1.442695, %v5392_v60  ;;  %v5394_v6 = vadd.f32 %v5393_v1, %v8989_v5  ;;  %v7804_v11 = vmul.f32 -1.442695, %v5433_v0  ;;  %v5435_v12 = vadd.f32 %v5434_v7, %v8989_v5  ;;  %v322_v54 = vld [vmem:[%s10953_s1 + $0x990] sm:$0xff] }
 0x1cd   :  { %v5395_v13 = vpop.f32.mrf.mxu0  ;;  %v5436_v17 = vpop.f32.mrf.mxu1  ;;  %v7246_v60 = vcombine.low %v354_v40, %v386_v41  ;;  %v7183_v0 = vcombine.high %v290_v53, %v322_v54  ;;  %v7185_v1 = vcombine.high %v291_v56, %v323_v57  ;;  %v7182_v7 = vcombine.low %v290_v53, %v322_v54  ;;  %v802_v40 = vld [vmem:[%s10953_s1 + $0x1890] sm:$0xff]  ;;  %v803_v41 = vld [vmem:[%s10953_s1 + $0x1898] sm:$0xff] }
 0x1ce   :  { %7980 = vpow2.f32 %v7802_v4  ;;  %v7803_v16 = vmul.f32 -1.442695, %v5394_v6  ;;  %5712 = vmatpush2.bf16.msra.mxu0 %v7562_v63  ;;  %v7805_v62 = vmul.f32 -1.442695, %v5435_v12  ;;  %5753 = vmatpush2.bf16.msra.mxu1 %v7564_v2  ;;  %v7248_v63 = vcombine.low %v355_v42, %v387_v43  ;;  %v226_v2 = vld [vmem:[%s10953_s1 + $0x690] sm:$0xff]  ;;  %v227_v4 = vld [vmem:[%s10953_s1 + $0x698] sm:$0xff] }
 0x1cf   :  { %7982 = vpow2.f32 %v7804_v11  ;;  %v5396_v20 = vpop.f32.mrf.mxu0  ;;  %5713 = vmatprep.subr.bf16.mxu0 %v7499_v3  ;;  %v5437_v23 = vpop.f32.mrf.mxu1  ;;  %5754 = vmatprep.subr.bf16.mxu1 %v7501_v8  ;;  %v258_v3 = vld [vmem:[%s10953_s1 + $0x790] sm:$0xff]  ;;  %v259_v6 = vld [vmem:[%s10953_s1 + $0x798] sm:$0xff]  ;;  %v7184_v8 = vcombine.low %v291_v56, %v323_v57 }
 0x1d0   :  { %7984 = vpow2.f32 %v7803_v16  ;;  %v7119_v9 = vcombine.high %v226_v2, %v258_v3  ;;  %v7121_v10 = vcombine.high %v227_v4, %v259_v6  ;;  %v162_v11 = vld [vmem:[%s10953_s1 + $0x490] sm:$0xff]  ;;  %v163_v13 = vld [vmem:[%s10953_s1 + $0x498] sm:$0xff]  ;;  %v7118_v15 = vcombine.low %v226_v2, %v258_v3 }
 0x1d1   :  { %7986 = vpow2.f32 %v7805_v62  ;;  %v194_v12 = vld [vmem:[%s10953_s1 + $0x590] sm:$0xff]  ;;  %v7120_v16 = vcombine.low %v227_v4, %v259_v6  ;;  %v7056_v25 = vcombine.low %v163_v13, %v195_v14  ;;  %v771_v53 = vld [vmem:[%s10953_s1 + $0x1798] sm:$0xff] }
 0x1d2   :  { %5714 = vmatpush2.bf16.msra.mxu0 %v7498_v18  ;;  %5755 = vmatpush2.bf16.msra.mxu1 %v7500_v21  ;;  %v7055_v17 = vcombine.high %v162_v11, %v194_v12  ;;  %v7057_v18 = vcombine.high %v163_v13, %v195_v14  ;;  %v98_v62 = vld [vmem:[%s10953_s1 + $0x290] sm:$0xff]  ;;  %v99_v21 = vld [vmem:[%s10953_s1 + $0x298] sm:$0xff]  ;;  %v7054_v23 = vcombine.low %v162_v11, %v194_v12 }
 0x1d3   :  { %5715 = vmatprep.subr.bf16.mxu0 %v7435_v22  ;;  %5756 = vmatprep.subr.bf16.mxu1 %v7437_v24  ;;  %v130_v20 = vld [vmem:[%s10953_s1 + $0x390] sm:$0xff]  ;;  %v131_v22 = vld [vmem:[%s10953_s1 + $0x398] sm:$0xff] }
 0x1d4   :  { %v6991_v26 = vcombine.high %v98_v62, %v130_v20  ;;  %v6993_v44 = vcombine.high %v99_v21, %v131_v22  ;;  %v6990_v35 = vcombine.low %v98_v62, %v130_v20  ;;  %v674_v57 = vld [vmem:[%s10953_s1 + $0x1490] sm:$0xff]  ;;  %v611_v6 = vld [vmem:[%s10953_s1 + $0x1298] sm:$0xff] }
 0x1d5   :  { %v610_v2 = vld [vmem:[%s10953_s1 + $0x1290] sm:$0xff] }
 0x1d6   :  { %5716 = vmatpush2.bf16.msra.mxu0 %v7434_v28  ;;  %5757 = vmatpush2.bf16.msra.mxu1 %v7436_v29  ;;  %v34_v28 = vld [vmem:[%s10953_s1 + $0x90] sm:$0xff] }
 0x1d7   :  { %5767 = vmatprep.subr.bf16.mxu0 %v7375_v30  ;;  %5808 = vmatprep.subr.bf16.mxu1 %v7377_v31  ;;  %v66_v29 = vld [vmem:[%s10953_s1 + $0x190] sm:$0xff]  ;;  %v35_v31 = vld [vmem:[%s10953_s1 + $0x98] sm:$0xff] }
 0x1d8   :  { %v6926_v42 = vcombine.low %v34_v28, %v66_v29  ;;  %v6928_v43 = vcombine.low %v35_v31, %v67_v32  ;;  %v642_v3 = vld [vmem:[%s10953_s1 + $0x1390] sm:$0xff] }
 0x1d9   :  { %5718 = vmatmul.mubr.bf16.vlgmr.msra.gmra.mxu0 %v9392_v19  ;;  %5759 = vmatmul.mubr.bf16.vlgmr.msra.gmra.mxu1 %v9392_v19  ;;  %v7503_v14 = vcombine.high %v610_v2, %v642_v3  ;;  %v546_v62 = vld [vmem:[%s10953_s1 + $0x1090] sm:$0xff] }
 0x1da   :  { %5768 = vmatpush1.bf16.msra.mxu0 %v7374_v36  ;;  %5809 = vmatpush1.bf16.msra.mxu1 %v7376_v37  ;;  %v6992_v37 = vcombine.low %v99_v21, %v131_v22  ;;  %v578_v20 = vld [vmem:[%s10953_s1 + $0x1190] sm:$0xff] }
 0x1db   :  { %v7981_v46 = vpop.eup %7980  ;;  %5769 = vmatprep.subr.bf16.mxu0 %v7311_v38  ;;  %5810 = vmatprep.subr.bf16.mxu1 %v7313_v39  ;;  %v6927_v38 = vcombine.high %v34_v28, %v66_v29  ;;  %v6929_v39 = vcombine.high %v35_v31, %v67_v32  ;;  %v7439_v31 = vcombine.high %v546_v62, %v578_v20 }
 0x1dc   :  { %v7983_v50 = vpop.eup %7982  ;;  %v6549_v51 = vadd.f32 1.0, %v7981_v46  ;;  %7759 = vmatprep.mubr.msk.bf16.mxu0 %vm4832_vm0, %v8277_v47  ;;  %7761 = vmatprep.mubr.msk.bf16.mxu1 %vm4832_vm0, %v8277_v47  ;;  %v7694_v46 = vcombine.low %v802_v40, %v802_v40 }
 0x1dd   :  { %v7985_v19 = vpop.eup %7984  ;;  %v6551_v55 = vadd.f32 1.0, %v7983_v50  ;;  %v738_v50 = vld [vmem:[%s10953_s1 + $0x1690] sm:$0xff] }
 0x1de   :  { %v7987_v58 = vpop.eup %7986  ;;  %7988 = vrcp.f32 %v6549_v51  ;;  %v6550_v59 = vadd.f32 1.0, %v7985_v19  ;;  %5770 = vmatpush1.bf16.msra.mxu0 %v7310_v45  ;;  %5811 = vmatpush1.bf16.msra.mxu1 %v7312_v48  ;;  %v7695_v45 = vcombine.high %v802_v40, %v802_v40  ;;  %v7697_v48 = vcombine.high %v803_v41, %v803_v41  ;;  %v770_v51 = vld [vmem:[%s10953_s1 + $0x1790] sm:$0xff] }
 0x1df   :  { %7990 = vrcp.f32 %v6551_v55  ;;  %v6552_v61 = vadd.f32 1.0, %v7987_v58  ;;  %5771 = vmatprep.subr.bf16.mxu0 %v7247_v49  ;;  %5812 = vmatprep.subr.bf16.mxu1 %v7249_v52  ;;  %v7696_v49 = vcombine.low %v803_v41, %v803_v41  ;;  %v739_v52 = vld [vmem:[%s10953_s1 + $0x1698] sm:$0xff]  ;;  %v4946_v54 = vsel %vm4836_vm1, %v7694_v46, 0  ;;  %v706_v58 = vld [vmem:[%s10953_s1 + $0x1590] sm:$0xff]  ;;  %v453_v46 = vld [vmem:[%s10953_s1 + $0xda8] sm:$0xff] }
 0x1e0   :  { %7992 = vrcp.f32 %v6550_v59  ;;  %v7631_v19 = vcombine.high %v738_v50, %v770_v51  ;;  %v7633_v56 = vcombine.high %v739_v52, %v771_v53  ;;  %v675_v59 = vld [vmem:[%s10953_s1 + $0x1498] sm:$0xff] }
 0x1e1   :  { %7994 = vrcp.f32 %v6552_v61  ;;  %v4952_v55 = vsel %vm4836_vm1, %v7696_v49, 0  ;;  %v7630_v61 = vcombine.low %v738_v50, %v770_v51 }
 0x1e2   :  { %5772 = vmatpush1.bf16.msra.mxu0 %v7246_v60  ;;  %5813 = vmatpush1.bf16.msra.mxu1 %v7248_v63  ;;  %v707_v60 = vld [vmem:[%s10953_s1 + $0x1598] sm:$0xff]  ;;  %v7632_v63 = vcombine.low %v739_v52, %v771_v53  ;;  %v356_v52 = vld [vmem:[%s10953_s1 + $0xaa0] sm:$0xff] }
 0x1e3   :  { %5773 = vmatprep.subr.bf16.mxu0 %v7183_v0  ;;  %5814 = vmatprep.subr.bf16.mxu1 %v7185_v1  ;;  %v7567_v0 = vcombine.high %v674_v57, %v706_v58  ;;  %v7569_v1 = vcombine.high %v675_v59, %v707_v60  ;;  %v7568_v13 = vcombine.low %v675_v59, %v707_v60  ;;  %v388_v53 = vld [vmem:[%s10953_s1 + $0xba0] sm:$0xff] }
 0x1e4   :  { %v7251_v59 = vcombine.high %v356_v52, %v388_v53 }
 0x1e6   :  { %5774 = vmatpush1.bf16.msra.mxu0 %v7182_v7  ;;  %5815 = vmatpush1.bf16.msra.mxu1 %v7184_v8  ;;  %v643_v7 = vld [vmem:[%s10953_s1 + $0x1398] sm:$0xff] }
 0x1e7   :  { %5775 = vmatprep.subr.bf16.mxu0 %v7119_v9  ;;  %5816 = vmatprep.subr.bf16.mxu1 %v7121_v10  ;;  %v7566_v10 = vcombine.low %v674_v57, %v706_v58 }
 0x1ea   :  { %5776 = vmatpush1.bf16.msra.mxu0 %v7118_v15  ;;  %5817 = vmatpush1.bf16.msra.mxu1 %v7120_v16 }
 0x1eb   :  { %v7989_v24 = vpop.eup %7988  ;;  %5777 = vmatprep.subr.bf16.mxu0 %v7055_v17  ;;  %5818 = vmatprep.subr.bf16.mxu1 %v7057_v18  ;;  %v7505_v18 = vcombine.high %v611_v6, %v643_v7 }
 0x1ec   :  { %v7991_v27 = vpop.eup %7990 }
 0x1ed   :  { %v7993_v30 = vpop.eup %7992 }
 0x1ee   :  { %v7995_v33 = vpop.eup %7994  ;;  %v6797_v34 = vcombine.low %v7989_v24, %v7993_v30  ;;  %5778 = vmatpush1.bf16.msra.mxu0 %v7054_v23  ;;  %5819 = vmatpush1.bf16.msra.mxu1 %v7056_v25  ;;  %v547_v24 = vld [vmem:[%s10953_s1 + $0x1098] sm:$0xff]  ;;  %v7504_v30 = vcombine.low %v611_v6, %v643_v7  ;;  %v325_v6 = vld [vmem:[%s10953_s1 + $0x9a8] sm:$0xff] }
 0x1ef   :  { %v6798_v36 = vcombine.low %v7991_v27, %v7995_v33  ;;  %5779 = vmatprep.subr.bf16.mxu0 %v6991_v26  ;;  %5820 = vmatprep.subr.bf16.mxu1 %v6993_v44  ;;  %v579_v25 = vld [vmem:[%s10953_s1 + $0x1198] sm:$0xff]  ;;  %v7502_v44 = vcombine.low %v610_v2, %v642_v3 }
 0x1f0   :  { %6861 = vst [vmem:[%s10956_s3 + $0x40] sm:$0x77] %v6797_v34  ;;  %v7441_v33 = vcombine.high %v547_v24, %v579_v25  ;;  %v484_v34 = vld [vmem:[%s10953_s1 + $0xea0] sm:$0xff] }
 0x1f1   :  { %6862 = vst [vmem:[%s10956_s3 + $0x48] sm:$0x77] %v6798_v36  ;;  %v485_v36 = vld [vmem:[%s10953_s1 + $0xea8] sm:$0xff] }
 0x1f2   :  { %5780 = vmatpush1.bf16.msra.mxu0 %v6990_v35  ;;  %5821 = vmatpush1.bf16.msra.mxu1 %v6992_v37  ;;  %v516_v35 = vld [vmem:[%s10953_s1 + $0xfa0] sm:$0xff]  ;;  %v517_v37 = vld [vmem:[%s10953_s1 + $0xfa8] sm:$0xff] }
 0x1f3   :  { %5781 = vmatprep.subr.bf16.mxu0 %v6927_v38  ;;  %5822 = vmatprep.subr.bf16.mxu1 %v6929_v39  ;;  %v7438_v38 = vcombine.low %v546_v62, %v578_v20  ;;  %v7440_v39 = vcombine.low %v547_v24, %v579_v25  ;;  %v7379_v40 = vcombine.high %v484_v34, %v516_v35  ;;  %v165_v24 = vld [vmem:[%s10953_s1 + $0x4a8] sm:$0xff] }
 0x1f4   :  { %v7381_v41 = vcombine.high %v485_v36, %v517_v37  ;;  %v7380_v49 = vcombine.low %v485_v36, %v517_v37  ;;  %v197_v25 = vld [vmem:[%s10953_s1 + $0x5a8] sm:$0xff] }
 0x1f6   :  { %5782 = vmatpush1.bf16.msra.mxu0 %v6926_v42  ;;  %5823 = vmatpush1.bf16.msra.mxu1 %v6928_v43  ;;  %v420_v42 = vld [vmem:[%s10953_s1 + $0xca0] sm:$0xff] }
 0x1f7   :  { %7758 = vmatprep.subr.msk.bf16.mxu0 %vm4836_vm1, %v7695_v45  ;;  %7760 = vmatprep.subr.msk.bf16.mxu1 %vm4836_vm1, %v7697_v48  ;;  %v452_v43 = vld [vmem:[%s10953_s1 + $0xda0] sm:$0xff]  ;;  %v421_v45 = vld [vmem:[%s10953_s1 + $0xca8] sm:$0xff]  ;;  %v7378_v48 = vcombine.low %v484_v34, %v516_v35  ;;  %v7060_v35 = vcombine.low %v165_v24, %v197_v25 }
 0x1f8   :  { %v7315_v50 = vcombine.high %v420_v42, %v452_v43  ;;  %v7317_v51 = vcombine.high %v421_v45, %v453_v46  ;;  %v7316_v58 = vcombine.low %v421_v45, %v453_v46 }
 0x1fa   :  { %5790 = vmatpush2.bf16.msra.mxu0 %v4946_v54  ;;  %5831 = vmatpush2.bf16.msra.mxu1 %v4952_v55  ;;  %v9907_v54 = vld.sshfl [vmem:[%s10954_s0] sm:$0x33 pattern:$0x76325410]  ;;  %v389_v55 = vld [vmem:[%s10953_s1 + $0xba8] sm:$0xff] }
 0x1fb   :  { %5791 = vmatprep.subr.bf16.mxu0 %v7631_v19  ;;  %5832 = vmatprep.subr.bf16.mxu1 %v7633_v56  ;;  %v357_v19 = vld [vmem:[%s10953_s1 + $0xaa8] sm:$0xff]  ;;  %v7314_v56 = vcombine.low %v420_v42, %v452_v43 }
 0x1fc   :  { %v37_v42 = vld [vmem:[%s10953_s1 + $0xa8] sm:$0xff] }
 0x1fd   :  { %v5473_v4 = vpop.f32.mrf.mxu0  ;;  %v5514_v9 = vpop.f32.mrf.mxu1  ;;  %v69_v43 = vld [vmem:[%s10953_s1 + $0x1a8] sm:$0xff] }
 0x1fe   :  { %v5474_v8 = vadd.f32 %v5473_v4, %v8989_v5  ;;  %5792 = vmatpush2.bf16.msra.mxu0 %v7630_v61  ;;  %v5515_v11 = vadd.f32 %v5514_v9, %v8989_v5  ;;  %5833 = vmatpush2.bf16.msra.mxu1 %v7632_v63  ;;  %v7253_v63 = vcombine.high %v357_v19, %v389_v55  ;;  %v293_v4 = vld [vmem:[%s10953_s1 + $0x8a8] sm:$0xff] }
 0x1ff   :  { %v5475_v12 = vpop.f32.mrf.mxu0  ;;  %5793 = vmatprep.subr.bf16.mxu0 %v7567_v0  ;;  %v5516_v17 = vpop.f32.mrf.mxu1  ;;  %5834 = vmatprep.subr.bf16.mxu1 %v7569_v1  ;;  %v292_v0 = vld [vmem:[%s10953_s1 + $0x8a0] sm:$0xff]  ;;  %v7250_v9 = vcombine.low %v356_v52, %v388_v53  ;;  %v7188_v62 = vcombine.low %v293_v4, %v325_v6  ;;  %v6933_v52 = vcombine.high %v37_v42, %v69_v43 }
 0x200   :  { %v7806_v15 = vmul.f32 -1.442695, %v5474_v8  ;;  %v5476_v16 = vadd.f32 %v5475_v12, %v8989_v5  ;;  %v7808_v21 = vmul.f32 -1.442695, %v5515_v11  ;;  %v5517_v22 = vadd.f32 %v5516_v17, %v8989_v5  ;;  %v324_v1 = vld [vmem:[%s10953_s1 + $0x9a0] sm:$0xff]  ;;  %v261_v17 = vld [vmem:[%s10953_s1 + $0x7a8] sm:$0xff] }
 0x201   :  { %v5477_v23 = vpop.f32.mrf.mxu0  ;;  %v5518_v27 = vpop.f32.mrf.mxu1  ;;  %v7252_v11 = vcombine.low %v357_v19, %v389_v55  ;;  %v7187_v12 = vcombine.high %v292_v0, %v324_v1  ;;  %v804_v53 = vld [vmem:[%s10953_s1 + $0x18a0] sm:$0xff]  ;;  %v805_v19 = vld [vmem:[%s10953_s1 + $0x18a8] sm:$0xff] }
 0x202   :  { %7996 = vpow2.f32 %v7806_v15  ;;  %v7807_v26 = vmul.f32 -1.442695, %v5476_v16  ;;  %5794 = vmatpush2.bf16.msra.mxu0 %v7566_v10  ;;  %v7809_v28 = vmul.f32 -1.442695, %v5517_v22  ;;  %5835 = vmatpush2.bf16.msra.mxu1 %v7568_v13  ;;  %v7189_v13 = vcombine.high %v293_v4, %v325_v6  ;;  %v260_v15 = vld [vmem:[%s10953_s1 + $0x7a0] sm:$0xff]  ;;  %v229_v16 = vld [vmem:[%s10953_s1 + $0x6a8] sm:$0xff] }
 0x203   :  { %7998 = vpow2.f32 %v7808_v21  ;;  %v5478_v29 = vpop.f32.mrf.mxu0  ;;  %5795 = vmatprep.subr.bf16.mxu0 %v7503_v14  ;;  %v5519_v32 = vpop.f32.mrf.mxu1  ;;  %5836 = vmatprep.subr.bf16.mxu1 %v7505_v18  ;;  %v228_v14 = vld [vmem:[%s10953_s1 + $0x6a0] sm:$0xff]  ;;  %v7186_v18 = vcombine.low %v292_v0, %v324_v1  ;;  %v7125_v21 = vcombine.high %v229_v16, %v261_v17  ;;  %v7124_v27 = vcombine.low %v229_v16, %v261_v17  ;;  %v741_v0 = vld [vmem:[%s10953_s1 + $0x16a8] sm:$0xff] }
 0x204   :  { %8000 = vpow2.f32 %v7807_v26  ;;  %v7123_v20 = vcombine.high %v228_v14, %v260_v15  ;;  %v164_v22 = vld [vmem:[%s10953_s1 + $0x4a0] sm:$0xff]  ;;  %v7122_v26 = vcombine.low %v228_v14, %v260_v15  ;;  %v133_v32 = vld [vmem:[%s10953_s1 + $0x3a8] sm:$0xff] }
 0x205   :  { %8002 = vpow2.f32 %v7809_v28  ;;  %v196_v23 = vld [vmem:[%s10953_s1 + $0x5a0] sm:$0xff]  ;;  %v7061_v28 = vcombine.high %v165_v24, %v197_v25  ;;  %v773_v1 = vld [vmem:[%s10953_s1 + $0x17a8] sm:$0xff] }
 0x206   :  { %5796 = vmatpush2.bf16.msra.mxu0 %v7502_v44  ;;  %5837 = vmatpush2.bf16.msra.mxu1 %v7504_v30  ;;  %v7059_v44 = vcombine.high %v164_v22, %v196_v23  ;;  %v100_v29 = vld [vmem:[%s10953_s1 + $0x2a0] sm:$0xff]  ;;  %v7637_v6 = vcombine.high %v741_v0, %v773_v1 }
 0x207   :  { %5797 = vmatprep.subr.bf16.mxu0 %v7439_v31  ;;  %5838 = vmatprep.subr.bf16.mxu1 %v7441_v33  ;;  %v132_v30 = vld [vmem:[%s10953_s1 + $0x3a0] sm:$0xff]  ;;  %v101_v31 = vld [vmem:[%s10953_s1 + $0x2a8] sm:$0xff]  ;;  %v7058_v33 = vcombine.low %v164_v22, %v196_v23 }
 0x208   :  { %v6995_v36 = vcombine.high %v100_v29, %v132_v30  ;;  %v612_v15 = vld [vmem:[%s10953_s1 + $0x12a0] sm:$0xff] }
 0x209   :  { %v644_v16 = vld [vmem:[%s10953_s1 + $0x13a0] sm:$0xff] }
 0x20a   :  { %5798 = vmatpush2.bf16.msra.mxu0 %v7438_v38  ;;  %5839 = vmatpush2.bf16.msra.mxu1 %v7440_v39  ;;  %v6997_v38 = vcombine.high %v101_v31, %v133_v32  ;;  %v36_v39 = vld [vmem:[%s10953_s1 + $0xa0] sm:$0xff] }
 0x20b   :  { %5849 = vmatprep.subr.bf16.mxu0 %v7379_v40  ;;  %5890 = vmatprep.subr.bf16.mxu1 %v7381_v41  ;;  %v68_v40 = vld [vmem:[%s10953_s1 + $0x1a0] sm:$0xff] }
 0x20c   :  { %v6930_v55 = vcombine.low %v36_v39, %v68_v40 }
 0x20d   :  { %5800 = vmatmul.mubr.bf16.vlgmr.msra.gmra.mxu0 %v9907_v54  ;;  %5841 = vmatmul.mubr.bf16.vlgmr.msra.gmra.mxu1 %v9907_v54 }
 0x20e   :  { %5850 = vmatpush1.bf16.msra.mxu0 %v7378_v48  ;;  %5891 = vmatpush1.bf16.msra.mxu1 %v7380_v49  ;;  %v6994_v48 = vcombine.low %v100_v29, %v132_v30  ;;  %v548_v30 = vld [vmem:[%s10953_s1 + $0x10a0] sm:$0xff] }
 0x20f   :  { %v7997_v57 = vpop.eup %7996  ;;  %5851 = vmatprep.subr.bf16.mxu0 %v7315_v50  ;;  %5892 = vmatprep.subr.bf16.mxu1 %v7317_v51  ;;  %v6996_v50 = vcombine.low %v101_v31, %v133_v32  ;;  %v6931_v51 = vcombine.high %v36_v39, %v68_v40  ;;  %v580_v31 = vld [vmem:[%s10953_s1 + $0x11a0] sm:$0xff]  ;;  %v7506_v39 = vcombine.low %v612_v15, %v644_v16 }
 0x210   :  { %v7999_v60 = vpop.eup %7998  ;;  %v6553_v61 = vadd.f32 1.0, %v7997_v57  ;;  %7763 = vmatprep.mubr.msk.bf16.mxu0 %vm4832_vm0, %v8277_v47  ;;  %7765 = vmatprep.mubr.msk.bf16.mxu1 %vm4832_vm0, %v8277_v47  ;;  %v7699_v57 = vcombine.high %v804_v53, %v804_v53 }
 0x211   :  { %v8001_v2 = vpop.eup %8000  ;;  %v6555_v3 = vadd.f32 1.0, %v7999_v60  ;;  %v7700_v60 = vcombine.low %v805_v19, %v805_v19 }
 0x212   :  { %v8003_v7 = vpop.eup %8002  ;;  %8004 = vrcp.f32 %v6553_v61  ;;  %v6554_v8 = vadd.f32 1.0, %v8001_v2  ;;  %5852 = vmatpush1.bf16.msra.mxu0 %v7314_v56  ;;  %5893 = vmatpush1.bf16.msra.mxu1 %v7316_v58  ;;  %v6932_v56 = vcombine.low %v37_v42, %v69_v43  ;;  %v7698_v58 = vcombine.low %v804_v53, %v804_v53  ;;  %v740_v61 = vld [vmem:[%s10953_s1 + $0x16a0] sm:$0xff] }
 0x213   :  { %8006 = vrcp.f32 %v6555_v3  ;;  %v6556_v10 = vadd.f32 1.0, %v8003_v7  ;;  %5853 = vmatprep.subr.bf16.mxu0 %v7251_v59  ;;  %5894 = vmatprep.subr.bf16.mxu1 %v7253_v63  ;;  %v7701_v59 = vcombine.high %v805_v19, %v805_v19  ;;  %v772_v63 = vld [vmem:[%s10953_s1 + $0x17a0] sm:$0xff]  ;;  %v4964_v4 = vsel %vm4836_vm1, %v7700_v60, 0 }
 0x214   :  { %8008 = vrcp.f32 %v6554_v8  ;;  %v4958_v2 = vsel %vm4836_vm1, %v7698_v58, 0  ;;  %v7635_v3 = vcombine.high %v740_v61, %v772_v63  ;;  %v676_v7 = vld [vmem:[%s10953_s1 + $0x14a0] sm:$0xff]  ;;  %v7443_v43 = vcombine.high %v548_v30, %v580_v31  ;;  %v423_v58 = vld [vmem:[%s10953_s1 + $0xcb8] sm:$0xff] }
 0x215   :  { %8010 = vrcp.f32 %v6556_v10  ;;  %v708_v8 = vld [vmem:[%s10953_s1 + $0x15a0] sm:$0xff]  ;;  %v709_v10 = vld [vmem:[%s10953_s1 + $0x15a8] sm:$0xff] }
 0x216   :  { %5854 = vmatpush1.bf16.msra.mxu0 %v7250_v9  ;;  %5895 = vmatpush1.bf16.msra.mxu1 %v7252_v11  ;;  %v677_v9 = vld [vmem:[%s10953_s1 + $0x14a8] sm:$0xff]  ;;  %v7634_v11 = vcombine.low %v740_v61, %v772_v63  ;;  %v7570_v22 = vcombine.low %v676_v7, %v708_v8 }
 0x217   :  { %5855 = vmatprep.subr.bf16.mxu0 %v7187_v12  ;;  %5896 = vmatprep.subr.bf16.mxu1 %v7189_v13  ;;  %v7636_v12 = vcombine.low %v741_v0, %v773_v1  ;;  %v7571_v13 = vcombine.high %v676_v7, %v708_v8  ;;  %v7573_v14 = vcombine.high %v677_v9, %v709_v10  ;;  %v358_v1 = vld [vmem:[%s10953_s1 + $0xab0] sm:$0xff] }
 0x218   :  { %v7572_v25 = vcombine.low %v677_v9, %v709_v10 }
 0x21a   :  { %5856 = vmatpush1.bf16.msra.mxu0 %v7186_v18  ;;  %5897 = vmatpush1.bf16.msra.mxu1 %v7188_v62  ;;  %v613_v18 = vld [vmem:[%s10953_s1 + $0x12a8] sm:$0xff] }
 0x21b   :  { %5857 = vmatprep.subr.bf16.mxu0 %v7123_v20  ;;  %5898 = vmatprep.subr.bf16.mxu1 %v7125_v21  ;;  %v645_v62 = vld [vmem:[%s10953_s1 + $0x13a8] sm:$0xff] }
 0x21c   :  { %v7509_v29 = vcombine.high %v613_v18, %v645_v62  ;;  %v7508_v42 = vcombine.low %v613_v18, %v645_v62  ;;  %v327_v18 = vld [vmem:[%s10953_s1 + $0x9b8] sm:$0xff] }
 0x21e   :  { %5858 = vmatpush1.bf16.msra.mxu0 %v7122_v26  ;;  %5899 = vmatpush1.bf16.msra.mxu1 %v7124_v27  ;;  %v7507_v26 = vcombine.high %v612_v15, %v644_v16 }
 0x21f   :  { %v8005_v34 = vpop.eup %8004  ;;  %5859 = vmatprep.subr.bf16.mxu0 %v7059_v44  ;;  %5900 = vmatprep.subr.bf16.mxu1 %v7061_v28 }
 0x220   :  { %v8007_v37 = vpop.eup %8006 }
 0x221   :  { %v8009_v41 = vpop.eup %8008 }
 0x222   :  { %v8011_v45 = vpop.eup %8010  ;;  %v6799_v46 = vcombine.low %v8005_v34, %v8009_v41  ;;  %5860 = vmatpush1.bf16.msra.mxu0 %v7058_v33  ;;  %5901 = vmatpush1.bf16.msra.mxu1 %v7060_v35  ;;  %v549_v35 = vld [vmem:[%s10953_s1 + $0x10a8] sm:$0xff] }
 0x223   :  { %v6800_v49 = vcombine.low %v8007_v37, %v8011_v45  ;;  %5861 = vmatprep.subr.bf16.mxu0 %v6995_v36  ;;  %5902 = vmatprep.subr.bf16.mxu1 %v6997_v38  ;;  %v581_v36 = vld [vmem:[%s10953_s1 + $0x11a8] sm:$0xff] }
 0x224   :  { %6863 = vst [vmem:[%s10956_s3 + $0x50] sm:$0x77] %v6799_v46  ;;  %v7445_v46 = vcombine.high %v549_v35, %v581_v36  ;;  %v7444_v53 = vcombine.low %v549_v35, %v581_v36  ;;  %v167_v35 = vld [vmem:[%s10953_s1 + $0x4b8] sm:$0xff] }
 0x225   :  { %6864 = vst [vmem:[%s10956_s3 + $0x58] sm:$0x77] %v6800_v49  ;;  %v518_v49 = vld [vmem:[%s10953_s1 + $0xfb0] sm:$0xff]  ;;  %v199_v36 = vld [vmem:[%s10953_s1 + $0x5b8] sm:$0xff] }
 0x226   :  { %5862 = vmatpush1.bf16.msra.mxu0 %v6994_v48  ;;  %5903 = vmatpush1.bf16.msra.mxu1 %v6996_v50  ;;  %v486_v48 = vld [vmem:[%s10953_s1 + $0xeb0] sm:$0xff]  ;;  %v487_v50 = vld [vmem:[%s10953_s1 + $0xeb8] sm:$0xff] }
 0x227   :  { %5863 = vmatprep.subr.bf16.mxu0 %v6931_v51  ;;  %5904 = vmatprep.subr.bf16.mxu1 %v6933_v52  ;;  %v519_v51 = vld [vmem:[%s10953_s1 + $0xfb8] sm:$0xff]  ;;  %v7442_v52 = vcombine.low %v548_v30, %v580_v31  ;;  %v7383_v19 = vcombine.high %v486_v48, %v518_v49  ;;  %v7382_v60 = vcombine.low %v486_v48, %v518_v49 }
 0x228   :  { %v7384_v61 = vcombine.low %v487_v50, %v519_v51  ;;  %v7064_v49 = vcombine.low %v167_v35, %v199_v36 }
 0x22a   :  { %5864 = vmatpush1.bf16.msra.mxu0 %v6930_v55  ;;  %5905 = vmatpush1.bf16.msra.mxu1 %v6932_v56  ;;  %v7385_v55 = vcombine.high %v487_v50, %v519_v51  ;;  %v422_v56 = vld [vmem:[%s10953_s1 + $0xcb0] sm:$0xff] }
 0x22b   :  { %7762 = vmatprep.subr.msk.bf16.mxu0 %vm4836_vm1, %v7699_v57  ;;  %7764 = vmatprep.subr.msk.bf16.mxu1 %vm4836_vm1, %v7701_v59  ;;  %v454_v57 = vld [vmem:[%s10953_s1 + $0xdb0] sm:$0xff]  ;;  %v455_v59 = vld [vmem:[%s10953_s1 + $0xdb8] sm:$0xff] }
 0x22c   :  { %v7319_v63 = vcombine.high %v422_v56, %v454_v57  ;;  %v7321_v0 = vcombine.high %v423_v58, %v455_v59  ;;  %v7320_v8 = vcombine.low %v423_v58, %v455_v59 }
 0x22e   :  { %5872 = vmatpush2.bf16.msra.mxu0 %v4958_v2  ;;  %5913 = vmatpush2.bf16.msra.mxu1 %v4964_v4  ;;  %v390_v2 = vld [vmem:[%s10953_s1 + $0xbb0] sm:$0xff]  ;;  %v391_v4 = vld [vmem:[%s10953_s1 + $0xbb8] sm:$0xff] }
 0x22f   :  { %5873 = vmatprep.subr.bf16.mxu0 %v7635_v3  ;;  %5914 = vmatprep.subr.bf16.mxu1 %v7637_v6  ;;  %v359_v3 = vld [vmem:[%s10953_s1 + $0xab8] sm:$0xff]  ;;  %v7318_v6 = vcombine.low %v422_v56, %v454_v57  ;;  %v7255_v9 = vcombine.high %v358_v1, %v390_v2 }
 0x230   :  { %v39_v56 = vld [vmem:[%s10953_s1 + $0xb8] sm:$0xff] }
 0x231   :  { %v5555_v17 = vpop.f32.mrf.mxu0  ;;  %v5596_v21 = vpop.f32.mrf.mxu1  ;;  %v71_v57 = vld [vmem:[%s10953_s1 + $0x1b8] sm:$0xff] }
 0x232   :  { %v5556_v20 = vadd.f32 %v5555_v17, %v8989_v5  ;;  %5874 = vmatpush2.bf16.msra.mxu0 %v7634_v11  ;;  %v5597_v23 = vadd.f32 %v5596_v21, %v8989_v5  ;;  %5915 = vmatpush2.bf16.msra.mxu1 %v7636_v12  ;;  %v7257_v12 = vcombine.high %v359_v3, %v391_v4  ;;  %v295_v17 = vld [vmem:[%s10953_s1 + $0x8b8] sm:$0xff] }
 0x233   :  { %v5557_v24 = vpop.f32.mrf.mxu0  ;;  %5875 = vmatprep.subr.bf16.mxu0 %v7571_v13  ;;  %v5598_v28 = vpop.f32.mrf.mxu1  ;;  %5916 = vmatprep.subr.bf16.mxu1 %v7573_v14  ;;  %v294_v13 = vld [vmem:[%s10953_s1 + $0x8b0] sm:$0xff]  ;;  %v7254_v21 = vcombine.low %v358_v1, %v390_v2  ;;  %v7192_v30 = vcombine.low %v295_v17, %v327_v18  ;;  %v6937_v1 = vcombine.high %v39_v56, %v71_v57 }
 0x234   :  { %v7810_v27 = vmul.f32 -1.442695, %v5556_v20  ;;  %v5558_v44 = vadd.f32 %v5557_v24, %v8989_v5  ;;  %v7812_v32 = vmul.f32 -1.442695, %v5597_v23  ;;  %v5599_v33 = vadd.f32 %v5598_v28, %v8989_v5  ;;  %v326_v14 = vld [vmem:[%s10953_s1 + $0x9b0] sm:$0xff]  ;;  %v263_v28 = vld [vmem:[%s10953_s1 + $0x7b8] sm:$0xff] }
 0x235   :  { %v5559_v34 = vpop.f32.mrf.mxu0  ;;  %v5600_v38 = vpop.f32.mrf.mxu1  ;;  %v7256_v23 = vcombine.low %v359_v3, %v391_v4  ;;  %v7191_v24 = vcombine.high %v294_v13, %v326_v14  ;;  %v806_v2 = vld [vmem:[%s10953_s1 + $0x18b0] sm:$0xff]  ;;  %v807_v3 = vld [vmem:[%s10953_s1 + $0x18b8] sm:$0xff] }
 0x236   :  { %8012 = vpow2.f32 %v7810_v27  ;;  %v7811_v37 = vmul.f32 -1.442695, %v5558_v44  ;;  %5876 = vmatpush2.bf16.msra.mxu0 %v7570_v22  ;;  %v7813_v40 = vmul.f32 -1.442695, %v5599_v33  ;;  %5917 = vmatpush2.bf16.msra.mxu1 %v7572_v25  ;;  %v7193_v25 = vcombine.high %v295_v17, %v327_v18  ;;  %v262_v27 = vld [vmem:[%s10953_s1 + $0x7b0] sm:$0xff]  ;;  %v231_v44 = vld [vmem:[%s10953_s1 + $0x6b8] sm:$0xff] }
 0x237   :  { %8014 = vpow2.f32 %v7812_v32  ;;  %v5560_v41 = vpop.f32.mrf.mxu0  ;;  %5877 = vmatprep.subr.bf16.mxu0 %v7507_v26  ;;  %v5601_v45 = vpop.f32.mrf.mxu1  ;;  %5918 = vmatprep.subr.bf16.mxu1 %v7509_v29  ;;  %v230_v26 = vld [vmem:[%s10953_s1 + $0x6b0] sm:$0xff]  ;;  %v7190_v29 = vcombine.low %v294_v13, %v326_v14  ;;  %v7129_v32 = vcombine.high %v231_v44, %v263_v28  ;;  %v7128_v38 = vcombine.low %v231_v44, %v263_v28  ;;  %v743_v13 = vld [vmem:[%s10953_s1 + $0x16b8] sm:$0xff] }
 0x238   :  { %8016 = vpow2.f32 %v7811_v37  ;;  %v7127_v31 = vcombine.high %v230_v26, %v262_v27  ;;  %v166_v33 = vld [vmem:[%s10953_s1 + $0x4b0] sm:$0xff]  ;;  %v7126_v37 = vcombine.low %v230_v26, %v262_v27  ;;  %v135_v45 = vld [vmem:[%s10953_s1 + $0x3b8] sm:$0xff] }
 0x239   :  { %8018 = vpow2.f32 %v7813_v40  ;;  %v198_v34 = vld [vmem:[%s10953_s1 + $0x5b0] sm:$0xff]  ;;  %v7065_v40 = vcombine.high %v167_v35, %v199_v36  ;;  %v775_v14 = vld [vmem:[%s10953_s1 + $0x17b8] sm:$0xff] }
 0x23a   :  { %5878 = vmatpush2.bf16.msra.mxu0 %v7506_v39  ;;  %5919 = vmatpush2.bf16.msra.mxu1 %v7508_v42  ;;  %v7063_v39 = vcombine.high %v166_v33, %v198_v34  ;;  %v102_v41 = vld [vmem:[%s10953_s1 + $0x2b0] sm:$0xff]  ;;  %v7641_v18 = vcombine.high %v743_v13, %v775_v14 }
 0x23b   :  { %5879 = vmatprep.subr.bf16.mxu0 %v7443_v43  ;;  %5920 = vmatprep.subr.bf16.mxu1 %v7445_v46  ;;  %v134_v42 = vld [vmem:[%s10953_s1 + $0x3b0] sm:$0xff]  ;;  %v103_v43 = vld [vmem:[%s10953_s1 + $0x2b8] sm:$0xff]  ;;  %v7062_v46 = vcombine.low %v166_v33, %v198_v34 }
 0x23c   :  { %v6999_v50 = vcombine.high %v102_v41, %v134_v42  ;;  %v614_v27 = vld [vmem:[%s10953_s1 + $0x12b0] sm:$0xff] }
 0x23d   :  { %v646_v44 = vld [vmem:[%s10953_s1 + $0x13b0] sm:$0xff] }
 0x23e   :  { %5880 = vmatpush2.bf16.msra.mxu0 %v7442_v52  ;;  %5921 = vmatpush2.bf16.msra.mxu1 %v7444_v53  ;;  %v7001_v52 = vcombine.high %v103_v43, %v135_v45  ;;  %v38_v53 = vld [vmem:[%s10953_s1 + $0xb0] sm:$0xff] }
 0x23f   :  { %5931 = vmatprep.subr.bf16.mxu0 %v7383_v19  ;;  %5972 = vmatprep.subr.bf16.mxu1 %v7385_v55  ;;  %v70_v19 = vld [vmem:[%s10953_s1 + $0x1b0] sm:$0xff] }
 0x240   :  { %v6934_v4 = vcombine.low %v38_v53, %v70_v19 }
 0x241   :  { %5882 = vmatmul.mubr.bf16.vlgmr.msra.gmra.mxu0 %v9907_v54  ;;  %5923 = vmatmul.mubr.bf16.vlgmr.msra.gmra.mxu1 %v9907_v54 }
 0x242   :  { %5932 = vmatpush1.bf16.msra.mxu0 %v7382_v60  ;;  %5973 = vmatpush1.bf16.msra.mxu1 %v7384_v61  ;;  %v6998_v60 = vcombine.low %v102_v41, %v134_v42  ;;  %v550_v42 = vld [vmem:[%s10953_s1 + $0x10b0] sm:$0xff] }
 0x243   :  { %v8013_v7 = vpop.eup %8012  ;;  %5933 = vmatprep.subr.bf16.mxu0 %v7319_v63  ;;  %5974 = vmatprep.subr.bf16.mxu1 %v7321_v0  ;;  %v7000_v63 = vcombine.low %v103_v43, %v135_v45  ;;  %v6935_v0 = vcombine.high %v38_v53, %v70_v19  ;;  %v582_v43 = vld [vmem:[%s10953_s1 + $0x11b0] sm:$0xff]  ;;  %v7510_v53 = vcombine.low %v614_v27, %v646_v44 }
 0x244   :  { %v8015_v10 = vpop.eup %8014  ;;  %v6557_v11 = vadd.f32 1.0, %v8013_v7  ;;  %7767 = vmatprep.mubr.msk.bf16.mxu0 %vm4832_vm0, %v8277_v47  ;;  %7769 = vmatprep.mubr.msk.bf16.mxu1 %vm4832_vm0, %v8277_v47  ;;  %v7703_v7 = vcombine.high %v806_v2, %v806_v2 }
 0x245   :  { %v8017_v15 = vpop.eup %8016  ;;  %v6559_v16 = vadd.f32 1.0, %v8015_v10  ;;  %v7704_v10 = vcombine.low %v807_v3, %v807_v3 }
 0x246   :  { %v8019_v62 = vpop.eup %8018  ;;  %8020 = vrcp.f32 %v6557_v11  ;;  %v6558_v20 = vadd.f32 1.0, %v8017_v15  ;;  %5934 = vmatpush1.bf16.msra.mxu0 %v7318_v6  ;;  %5975 = vmatpush1.bf16.msra.mxu1 %v7320_v8  ;;  %v6936_v6 = vcombine.low %v39_v56, %v71_v57  ;;  %v7702_v8 = vcombine.low %v806_v2, %v806_v2  ;;  %v742_v11 = vld [vmem:[%s10953_s1 + $0x16b0] sm:$0xff] }
 0x247   :  { %8022 = vrcp.f32 %v6559_v16  ;;  %v6560_v22 = vadd.f32 1.0, %v8019_v62  ;;  %5935 = vmatprep.subr.bf16.mxu0 %v7255_v9  ;;  %5976 = vmatprep.subr.bf16.mxu1 %v7257_v12  ;;  %v7705_v9 = vcombine.high %v807_v3, %v807_v3  ;;  %v774_v12 = vld [vmem:[%s10953_s1 + $0x17b0] sm:$0xff]  ;;  %v4976_v17 = vsel %vm4836_vm1, %v7704_v10, 0 }
 0x248   :  { %8024 = vrcp.f32 %v6558_v20  ;;  %v4970_v15 = vsel %vm4836_vm1, %v7702_v8, 0  ;;  %v7639_v16 = vcombine.high %v742_v11, %v774_v12  ;;  %v678_v62 = vld [vmem:[%s10953_s1 + $0x14b0] sm:$0xff]  ;;  %v7447_v57 = vcombine.high %v550_v42, %v582_v43  ;;  %v425_v8 = vld [vmem:[%s10953_s1 + $0xcc8] sm:$0xff] }
 0x249   :  { %8026 = vrcp.f32 %v6560_v22  ;;  %v710_v20 = vld [vmem:[%s10953_s1 + $0x15b0] sm:$0xff]  ;;  %v711_v22 = vld [vmem:[%s10953_s1 + $0x15b8] sm:$0xff] }
 0x24a   :  { %5936 = vmatpush1.bf16.msra.mxu0 %v7254_v21  ;;  %5977 = vmatpush1.bf16.msra.mxu1 %v7256_v23  ;;  %v679_v21 = vld [vmem:[%s10953_s1 + $0x14b8] sm:$0xff]  ;;  %v7638_v23 = vcombine.low %v742_v11, %v774_v12  ;;  %v7574_v33 = vcombine.low %v678_v62, %v710_v20 }
 0x24b   :  { %5937 = vmatprep.subr.bf16.mxu0 %v7191_v24  ;;  %5978 = vmatprep.subr.bf16.mxu1 %v7193_v25  ;;  %v7640_v24 = vcombine.low %v743_v13, %v775_v14  ;;  %v7575_v25 = vcombine.high %v678_v62, %v710_v20  ;;  %v7577_v26 = vcombine.high %v679_v21, %v711_v22  ;;  %v360_v14 = vld [vmem:[%s10953_s1 + $0xac0] sm:$0xff] }
 0x24c   :  { %v7576_v36 = vcombine.low %v679_v21, %v711_v22 }
 0x24e   :  { %5938 = vmatpush1.bf16.msra.mxu0 %v7190_v29  ;;  %5979 = vmatpush1.bf16.msra.mxu1 %v7192_v30  ;;  %v615_v29 = vld [vmem:[%s10953_s1 + $0x12b8] sm:$0xff] }
 0x24f   :  { %5939 = vmatprep.subr.bf16.mxu0 %v7127_v31  ;;  %5980 = vmatprep.subr.bf16.mxu1 %v7129_v32  ;;  %v647_v30 = vld [vmem:[%s10953_s1 + $0x13b8] sm:$0xff] }
 0x250   :  { %v7513_v41 = vcombine.high %v615_v29, %v647_v30  ;;  %v7512_v56 = vcombine.low %v615_v29, %v647_v30 }
 0x252   :  { %5940 = vmatpush1.bf16.msra.mxu0 %v7126_v37  ;;  %5981 = vmatpush1.bf16.msra.mxu1 %v7128_v38  ;;  %v7511_v37 = vcombine.high %v614_v27, %v646_v44  ;;  %v297_v44 = vld [vmem:[%s10953_s1 + $0x8c8] sm:$0xff] }
 0x253   :  { %v8021_v48 = vpop.eup %8020  ;;  %5941 = vmatprep.subr.bf16.mxu0 %v7063_v39  ;;  %5982 = vmatprep.subr.bf16.mxu1 %v7065_v40 }
 0x254   :  { %v8023_v51 = vpop.eup %8022 }
 0x255   :  { %v8025_v55 = vpop.eup %8024 }
 0x256   :  { %v8027_v58 = vpop.eup %8026  ;;  %v6801_v59 = vcombine.low %v8021_v48, %v8025_v55  ;;  %5942 = vmatpush1.bf16.msra.mxu0 %v7062_v46  ;;  %5983 = vmatpush1.bf16.msra.mxu1 %v7064_v49  ;;  %v551_v49 = vld [vmem:[%s10953_s1 + $0x10b8] sm:$0xff] }
 0x257   :  { %v6802_v61 = vcombine.low %v8023_v51, %v8027_v58  ;;  %5943 = vmatprep.subr.bf16.mxu0 %v6999_v50  ;;  %5984 = vmatprep.subr.bf16.mxu1 %v7001_v52  ;;  %v583_v50 = vld [vmem:[%s10953_s1 + $0x11b8] sm:$0xff] }
 0x258   :  { %6865 = vst [vmem:[%s10956_s3 + $0x60] sm:$0x77] %v6801_v59  ;;  %v7449_v59 = vcombine.high %v551_v49, %v583_v50  ;;  %v7448_v2 = vcombine.low %v551_v49, %v583_v50  ;;  %v201_v49 = vld [vmem:[%s10953_s1 + $0x5c8] sm:$0xff] }
 0x259   :  { %6866 = vst [vmem:[%s10956_s3 + $0x68] sm:$0x77] %v6802_v61  ;;  %v520_v61 = vld [vmem:[%s10953_s1 + $0xfc0] sm:$0xff] }
 0x25a   :  { %5944 = vmatpush1.bf16.msra.mxu0 %v6998_v60  ;;  %5985 = vmatpush1.bf16.msra.mxu1 %v7000_v63  ;;  %v488_v60 = vld [vmem:[%s10953_s1 + $0xec0] sm:$0xff]  ;;  %v489_v63 = vld [vmem:[%s10953_s1 + $0xec8] sm:$0xff] }
 0x25b   :  { %5945 = vmatprep.subr.bf16.mxu0 %v6935_v0  ;;  %5986 = vmatprep.subr.bf16.mxu1 %v6937_v1  ;;  %v521_v0 = vld [vmem:[%s10953_s1 + $0xfc8] sm:$0xff]  ;;  %v7446_v1 = vcombine.low %v550_v42, %v582_v43  ;;  %v7387_v3 = vcombine.high %v488_v60, %v520_v61  ;;  %v7386_v10 = vcombine.low %v488_v60, %v520_v61 }
 0x25c   :  { %v7388_v11 = vcombine.low %v489_v63, %v521_v0 }
 0x25e   :  { %5946 = vmatpush1.bf16.msra.mxu0 %v6934_v4  ;;  %5987 = vmatpush1.bf16.msra.mxu1 %v6936_v6  ;;  %v7389_v4 = vcombine.high %v489_v63, %v521_v0  ;;  %v424_v6 = vld [vmem:[%s10953_s1 + $0xcc0] sm:$0xff] }
 0x25f   :  { %7766 = vmatprep.subr.msk.bf16.mxu0 %vm4836_vm1, %v7703_v7  ;;  %7768 = vmatprep.subr.msk.bf16.mxu1 %vm4836_vm1, %v7705_v9  ;;  %v456_v7 = vld [vmem:[%s10953_s1 + $0xdc0] sm:$0xff]  ;;  %v457_v9 = vld [vmem:[%s10953_s1 + $0xdc8] sm:$0xff] }
 0x260   :  { %v7323_v12 = vcombine.high %v424_v6, %v456_v7  ;;  %v7325_v13 = vcombine.high %v425_v8, %v457_v9  ;;  %v7324_v20 = vcombine.low %v425_v8, %v457_v9 }
 0x262   :  { %5954 = vmatpush2.bf16.msra.mxu0 %v4970_v15  ;;  %5995 = vmatpush2.bf16.msra.mxu1 %v4976_v17  ;;  %v392_v15 = vld [vmem:[%s10953_s1 + $0xbc0] sm:$0xff]  ;;  %v393_v17 = vld [vmem:[%s10953_s1 + $0xbc8] sm:$0xff] }
 0x263   :  { %5955 = vmatprep.subr.bf16.mxu0 %v7639_v16  ;;  %5996 = vmatprep.subr.bf16.mxu1 %v7641_v18  ;;  %v361_v16 = vld [vmem:[%s10953_s1 + $0xac8] sm:$0xff]  ;;  %v7322_v18 = vcombine.low %v424_v6, %v456_v7  ;;  %v7259_v21 = vcombine.high %v360_v14, %v392_v15 }
 0x264   :  { %v73_v6 = vld [vmem:[%s10953_s1 + $0x1c8] sm:$0xff] }
 0x265   :  { %v5637_v28 = vpop.f32.mrf.mxu0  ;;  %v5678_v32 = vpop.f32.mrf.mxu1 }
 0x266   :  { %v5638_v31 = vadd.f32 %v5637_v28, %v8989_v5  ;;  %5956 = vmatpush2.bf16.msra.mxu0 %v7638_v23  ;;  %v5679_v34 = vadd.f32 %v5678_v32, %v8989_v5  ;;  %5997 = vmatpush2.bf16.msra.mxu1 %v7640_v24  ;;  %v7261_v24 = vcombine.high %v361_v16, %v393_v17  ;;  %v329_v28 = vld [vmem:[%s10953_s1 + $0x9c8] sm:$0xff] }
 0x267   :  { %v5639_v35 = vpop.f32.mrf.mxu0  ;;  %5957 = vmatprep.subr.bf16.mxu0 %v7575_v25  ;;  %v5680_v40 = vpop.f32.mrf.mxu1  ;;  %5998 = vmatprep.subr.bf16.mxu1 %v7577_v26  ;;  %v296_v25 = vld [vmem:[%s10953_s1 + $0x8c0] sm:$0xff] }
 0x268   :  { %v7814_v38 = vmul.f32 -1.442695, %v5638_v31  ;;  %v5640_v39 = vadd.f32 %v5639_v35, %v8989_v5  ;;  %v7816_v45 = vmul.f32 -1.442695, %v5679_v34  ;;  %v5681_v46 = vadd.f32 %v5680_v40, %v8989_v5  ;;  %v328_v26 = vld [vmem:[%s10953_s1 + $0x9c0] sm:$0xff] }
 0x269   :  { %v5641_v48 = vpop.f32.mrf.mxu0  ;;  %v5682_v52 = vpop.f32.mrf.mxu1  ;;  %v7258_v31 = vcombine.low %v360_v14, %v392_v15  ;;  %v7195_v34 = vcombine.high %v296_v25, %v328_v26  ;;  %v7197_v35 = vcombine.high %v297_v44, %v329_v28  ;;  %v7194_v40 = vcombine.low %v296_v25, %v328_v26  ;;  %v808_v14 = vld [vmem:[%s10953_s1 + $0x18c0] sm:$0xff]  ;;  %v809_v15 = vld [vmem:[%s10953_s1 + $0x18c8] sm:$0xff] }
 0x26a   :  { %8028 = vpow2.f32 %v7814_v38  ;;  %v7815_v51 = vmul.f32 -1.442695, %v5640_v39  ;;  %5958 = vmatpush2.bf16.msra.mxu0 %v7574_v33  ;;  %v7817_v19 = vmul.f32 -1.442695, %v5681_v46  ;;  %5999 = vmatpush2.bf16.msra.mxu1 %v7576_v36  ;;  %v7260_v33 = vcombine.low %v361_v16, %v393_v17  ;;  %v232_v36 = vld [vmem:[%s10953_s1 + $0x6c0] sm:$0xff]  ;;  %v233_v38 = vld [vmem:[%s10953_s1 + $0x6c8] sm:$0xff] }
 0x26b   :  { %8030 = vpow2.f32 %v7816_v45  ;;  %v5642_v55 = vpop.f32.mrf.mxu0  ;;  %5959 = vmatprep.subr.bf16.mxu0 %v7511_v37  ;;  %v5683_v58 = vpop.f32.mrf.mxu1  ;;  %6000 = vmatprep.subr.bf16.mxu1 %v7513_v41  ;;  %v264_v37 = vld [vmem:[%s10953_s1 + $0x7c0] sm:$0xff]  ;;  %v265_v39 = vld [vmem:[%s10953_s1 + $0x7c8] sm:$0xff]  ;;  %v7196_v41 = vcombine.low %v297_v44, %v329_v28 }
 0x26c   :  { %8032 = vpow2.f32 %v7815_v51  ;;  %v7131_v42 = vcombine.high %v232_v36, %v264_v37  ;;  %v7133_v43 = vcombine.high %v233_v38, %v265_v39  ;;  %v168_v45 = vld [vmem:[%s10953_s1 + $0x4c0] sm:$0xff]  ;;  %v169_v48 = vld [vmem:[%s10953_s1 + $0x4c8] sm:$0xff]  ;;  %v7130_v50 = vcombine.low %v232_v36, %v264_v37 }
 0x26d   :  { %8034 = vpow2.f32 %v7817_v19  ;;  %v200_v46 = vld [vmem:[%s10953_s1 + $0x5c0] sm:$0xff]  ;;  %v7132_v51 = vcombine.low %v233_v38, %v265_v39  ;;  %v7068_v60 = vcombine.low %v169_v48, %v201_v49  ;;  %v777_v25 = vld [vmem:[%s10953_s1 + $0x17c8] sm:$0xff] }
 0x26e   :  { %5960 = vmatpush2.bf16.msra.mxu0 %v7510_v53  ;;  %6001 = vmatpush2.bf16.msra.mxu1 %v7512_v56  ;;  %v7067_v52 = vcombine.high %v168_v45, %v200_v46  ;;  %v7069_v53 = vcombine.high %v169_v48, %v201_v49  ;;  %v104_v19 = vld [vmem:[%s10953_s1 + $0x2c0] sm:$0xff]  ;;  %v105_v56 = vld [vmem:[%s10953_s1 + $0x2c8] sm:$0xff]  ;;  %v7066_v58 = vcombine.low %v168_v45, %v200_v46 }
 0x26f   :  { %5961 = vmatprep.subr.bf16.mxu0 %v7447_v57  ;;  %6002 = vmatprep.subr.bf16.mxu1 %v7449_v59  ;;  %v136_v55 = vld [vmem:[%s10953_s1 + $0x3c0] sm:$0xff]  ;;  %v137_v57 = vld [vmem:[%s10953_s1 + $0x3c8] sm:$0xff] }
 0x270   :  { %v7003_v61 = vcombine.high %v104_v19, %v136_v55  ;;  %v7005_v0 = vcombine.high %v105_v56, %v137_v57  ;;  %v7002_v9 = vcombine.low %v104_v19, %v136_v55  ;;  %v680_v28 = vld [vmem:[%s10953_s1 + $0x14c0] sm:$0xff]  ;;  %v617_v39 = vld [vmem:[%s10953_s1 + $0x12c8] sm:$0xff] }
 0x271   :  { %v616_v36 = vld [vmem:[%s10953_s1 + $0x12c0] sm:$0xff] }
 0x272   :  { %5962 = vmatpush2.bf16.msra.mxu0 %v7446_v1  ;;  %6003 = vmatpush2.bf16.msra.mxu1 %v7448_v2  ;;  %v40_v1 = vld [vmem:[%s10953_s1 + $0xc0] sm:$0xff] }
 0x273   :  { %6013 = vmatprep.subr.bf16.mxu0 %v7387_v3  ;;  %6054 = vmatprep.subr.bf16.mxu1 %v7389_v4  ;;  %v72_v2 = vld [vmem:[%s10953_s1 + $0x1c0] sm:$0xff]  ;;  %v41_v4 = vld [vmem:[%s10953_s1 + $0xc8] sm:$0xff] }
 0x274   :  { %v6938_v16 = vcombine.low %v40_v1, %v72_v2  ;;  %v6940_v17 = vcombine.low %v41_v4, %v73_v6  ;;  %v648_v37 = vld [vmem:[%s10953_s1 + $0x13c0] sm:$0xff] }
 0x275   :  { %5964 = vmatmul.mubr.bf16.vlgmr.msra.gmra.mxu0 %v9907_v54  ;;  %6005 = vmatmul.mubr.bf16.vlgmr.msra.gmra.mxu1 %v9907_v54  ;;  %v7515_v49 = vcombine.high %v616_v36, %v648_v37  ;;  %v552_v19 = vld [vmem:[%s10953_s1 + $0x10c0] sm:$0xff] }
 0x276   :  { %6014 = vmatpush1.bf16.msra.mxu0 %v7386_v10  ;;  %6055 = vmatpush1.bf16.msra.mxu1 %v7388_v11  ;;  %v7004_v11 = vcombine.low %v105_v56, %v137_v57  ;;  %v584_v55 = vld [vmem:[%s10953_s1 + $0x11c0] sm:$0xff] }
 0x277   :  { %v8029_v62 = vpop.eup %8028  ;;  %6015 = vmatprep.subr.bf16.mxu0 %v7323_v12  ;;  %6056 = vmatprep.subr.bf16.mxu1 %v7325_v13  ;;  %v6939_v12 = vcombine.high %v40_v1, %v72_v2  ;;  %v6941_v13 = vcombine.high %v41_v4, %v73_v6  ;;  %v7451_v4 = vcombine.high %v552_v19, %v584_v55 }
 0x278   :  { %v8031_v22 = vpop.eup %8030  ;;  %v6561_v23 = vadd.f32 1.0, %v8029_v62  ;;  %7771 = vmatprep.mubr.msk.bf16.mxu0 %vm4832_vm0, %v8277_v47  ;;  %7773 = vmatprep.mubr.msk.bf16.mxu1 %vm4832_vm0, %v8277_v47  ;;  %v7706_v62 = vcombine.low %v808_v14, %v808_v14 }
 0x279   :  { %v8033_v54 = vpop.eup %8032  ;;  %v6563_v27 = vadd.f32 1.0, %v8031_v22  ;;  %v744_v22 = vld [vmem:[%s10953_s1 + $0x16c0] sm:$0xff] }
 0x27a   :  { %v8035_v29 = vpop.eup %8034  ;;  %8036 = vrcp.f32 %v6561_v23  ;;  %v6562_v30 = vadd.f32 1.0, %v8033_v54  ;;  %6016 = vmatpush1.bf16.msra.mxu0 %v7322_v18  ;;  %6057 = vmatpush1.bf16.msra.mxu1 %v7324_v20  ;;  %v7707_v18 = vcombine.high %v808_v14, %v808_v14  ;;  %v7709_v20 = vcombine.high %v809_v15, %v809_v15  ;;  %v776_v23 = vld [vmem:[%s10953_s1 + $0x17c0] sm:$0xff] }
 0x27b   :  { %8038 = vrcp.f32 %v6563_v27  ;;  %v6564_v32 = vadd.f32 1.0, %v8035_v29  ;;  %6017 = vmatprep.subr.bf16.mxu0 %v7259_v21  ;;  %6058 = vmatprep.subr.bf16.mxu1 %v7261_v24  ;;  %v7708_v21 = vcombine.low %v809_v15, %v809_v15  ;;  %v745_v24 = vld [vmem:[%s10953_s1 + $0x16c8] sm:$0xff]  ;;  %v4982_v26 = vsel %vm4836_vm1, %v7706_v62, 0  ;;  %v712_v29 = vld [vmem:[%s10953_s1 + $0x15c0] sm:$0xff]  ;;  %v459_v62 = vld [vmem:[%s10953_s1 + $0xdd8] sm:$0xff] }
 0x27c   :  { %8040 = vrcp.f32 %v6562_v30  ;;  %v7643_v54 = vcombine.high %v744_v22, %v776_v23  ;;  %v7645_v44 = vcombine.high %v745_v24, %v777_v25  ;;  %v681_v30 = vld [vmem:[%s10953_s1 + $0x14c8] sm:$0xff] }
 0x27d   :  { %8042 = vrcp.f32 %v6564_v32  ;;  %v4988_v27 = vsel %vm4836_vm1, %v7708_v21, 0  ;;  %v7642_v32 = vcombine.low %v744_v22, %v776_v23 }
 0x27e   :  { %6018 = vmatpush1.bf16.msra.mxu0 %v7258_v31  ;;  %6059 = vmatpush1.bf16.msra.mxu1 %v7260_v33  ;;  %v713_v31 = vld [vmem:[%s10953_s1 + $0x15c8] sm:$0xff]  ;;  %v7644_v33 = vcombine.low %v745_v24, %v777_v25  ;;  %v362_v24 = vld [vmem:[%s10953_s1 + $0xad0] sm:$0xff] }
 0x27f   :  { %6019 = vmatprep.subr.bf16.mxu0 %v7195_v34  ;;  %6060 = vmatprep.subr.bf16.mxu1 %v7197_v35  ;;  %v7579_v34 = vcombine.high %v680_v28, %v712_v29  ;;  %v7581_v35 = vcombine.high %v681_v30, %v713_v31  ;;  %v7580_v48 = vcombine.low %v681_v30, %v713_v31  ;;  %v394_v25 = vld [vmem:[%s10953_s1 + $0xbd0] sm:$0xff] }
 0x280   :  { %v7263_v30 = vcombine.high %v362_v24, %v394_v25 }
 0x282   :  { %6020 = vmatpush1.bf16.msra.mxu0 %v7194_v40  ;;  %6061 = vmatpush1.bf16.msra.mxu1 %v7196_v41  ;;  %v649_v40 = vld [vmem:[%s10953_s1 + $0x13c8] sm:$0xff] }
 0x283   :  { %6021 = vmatprep.subr.bf16.mxu0 %v7131_v42  ;;  %6062 = vmatprep.subr.bf16.mxu1 %v7133_v43  ;;  %v7578_v43 = vcombine.low %v680_v28, %v712_v29 }
 0x286   :  { %6022 = vmatpush1.bf16.msra.mxu0 %v7130_v50  ;;  %6063 = vmatpush1.bf16.msra.mxu1 %v7132_v51 }
 0x287   :  { %v8037_v59 = vpop.eup %8036  ;;  %6023 = vmatprep.subr.bf16.mxu0 %v7067_v52  ;;  %6064 = vmatprep.subr.bf16.mxu1 %v7069_v53  ;;  %v7517_v53 = vcombine.high %v617_v39, %v649_v40 }
 0x288   :  { %v8039_v63 = vpop.eup %8038 }
 0x289   :  { %v8041_v3 = vpop.eup %8040 }
 0x28a   :  { %v8043_v7 = vpop.eup %8042  ;;  %v6803_v8 = vcombine.low %v8037_v59, %v8041_v3  ;;  %6024 = vmatpush1.bf16.msra.mxu0 %v7066_v58  ;;  %6065 = vmatpush1.bf16.msra.mxu1 %v7068_v60  ;;  %v553_v59 = vld [vmem:[%s10953_s1 + $0x10c8] sm:$0xff]  ;;  %v7516_v3 = vcombine.low %v617_v39, %v649_v40  ;;  %v331_v39 = vld [vmem:[%s10953_s1 + $0x9d8] sm:$0xff] }
 0x28b   :  { %v6804_v10 = vcombine.low %v8039_v63, %v8043_v7  ;;  %6025 = vmatprep.subr.bf16.mxu0 %v7003_v61  ;;  %6066 = vmatprep.subr.bf16.mxu1 %v7005_v0  ;;  %v585_v60 = vld [vmem:[%s10953_s1 + $0x11c8] sm:$0xff]  ;;  %v7514_v0 = vcombine.low %v616_v36, %v648_v37 }
 0x28c   :  { %6867 = vst [vmem:[%s10956_s3 + $0x70] sm:$0x77] %v6803_v8  ;;  %v7453_v7 = vcombine.high %v553_v59, %v585_v60  ;;  %v490_v8 = vld [vmem:[%s10953_s1 + $0xed0] sm:$0xff] }
 0x28d   :  { %6868 = vst [vmem:[%s10956_s3 + $0x78] sm:$0x77] %v6804_v10  ;;  %v491_v10 = vld [vmem:[%s10953_s1 + $0xed8] sm:$0xff] }
 0x28e   :  { %6026 = vmatpush1.bf16.msra.mxu0 %v7002_v9  ;;  %6067 = vmatpush1.bf16.msra.mxu1 %v7004_v11  ;;  %v522_v9 = vld [vmem:[%s10953_s1 + $0xfd0] sm:$0xff]  ;;  %v523_v11 = vld [vmem:[%s10953_s1 + $0xfd8] sm:$0xff] }
 0x28f   :  { %6027 = vmatprep.subr.bf16.mxu0 %v6939_v12  ;;  %6068 = vmatprep.subr.bf16.mxu1 %v6941_v13  ;;  %v7450_v12 = vcombine.low %v552_v19, %v584_v55  ;;  %v7452_v13 = vcombine.low %v553_v59, %v585_v60  ;;  %v7391_v14 = vcombine.high %v490_v8, %v522_v9  ;;  %v171_v59 = vld [vmem:[%s10953_s1 + $0x4d8] sm:$0xff] }
 0x290   :  { %v7393_v15 = vcombine.high %v491_v10, %v523_v11  ;;  %v7392_v21 = vcombine.low %v491_v10, %v523_v11  ;;  %v203_v60 = vld [vmem:[%s10953_s1 + $0x5d8] sm:$0xff] }
 0x292   :  { %6028 = vmatpush1.bf16.msra.mxu0 %v6938_v16  ;;  %6069 = vmatpush1.bf16.msra.mxu1 %v6940_v17  ;;  %v426_v16 = vld [vmem:[%s10953_s1 + $0xcd0] sm:$0xff] }
 0x293   :  { %7770 = vmatprep.subr.msk.bf16.mxu0 %vm4836_vm1, %v7707_v18  ;;  %7772 = vmatprep.subr.msk.bf16.mxu1 %vm4836_vm1, %v7709_v20  ;;  %v458_v17 = vld [vmem:[%s10953_s1 + $0xdd0] sm:$0xff]  ;;  %v427_v18 = vld [vmem:[%s10953_s1 + $0xcd8] sm:$0xff]  ;;  %v7390_v20 = vcombine.low %v490_v8, %v522_v9  ;;  %v7072_v9 = vcombine.low %v171_v59, %v203_v60 }
 0x294   :  { %v7327_v22 = vcombine.high %v426_v16, %v458_v17  ;;  %v7329_v23 = vcombine.high %v427_v18, %v459_v62  ;;  %v7328_v29 = vcombine.low %v427_v18, %v459_v62 }
 0x296   :  { %6036 = vmatpush2.bf16.msra.mxu0 %v4982_v26  ;;  %6077 = vmatpush2.bf16.msra.mxu1 %v4988_v27  ;;  %v10422_v26 = vld.sshfl [vmem:[%s10954_s0] sm:$0x33 pattern:$0x76325410]  ;;  %v395_v27 = vld [vmem:[%s10953_s1 + $0xbd8] sm:$0xff] }
 0x297   :  { %6037 = vmatprep.subr.bf16.mxu0 %v7643_v54  ;;  %6078 = vmatprep.subr.bf16.mxu1 %v7645_v44  ;;  %v363_v54 = vld [vmem:[%s10953_s1 + $0xad8] sm:$0xff]  ;;  %v7326_v44 = vcombine.low %v426_v16, %v458_v17 }
 0x298   :  { %v43_v16 = vld [vmem:[%s10953_s1 + $0xd8] sm:$0xff] }
 0x299   :  { %v5719_v38 = vpop.f32.mrf.mxu0  ;;  %v5760_v42 = vpop.f32.mrf.mxu1  ;;  %v75_v17 = vld [vmem:[%s10953_s1 + $0x1d8] sm:$0xff] }
 0x29a   :  { %v5720_v41 = vadd.f32 %v5719_v38, %v8989_v5  ;;  %6038 = vmatpush2.bf16.msra.mxu0 %v7642_v32  ;;  %v5761_v45 = vadd.f32 %v5760_v42, %v8989_v5  ;;  %6079 = vmatpush2.bf16.msra.mxu1 %v7644_v33  ;;  %v7265_v33 = vcombine.high %v363_v54, %v395_v27  ;;  %v299_v38 = vld [vmem:[%s10953_s1 + $0x8d8] sm:$0xff] }
 0x29b   :  { %v5721_v46 = vpop.f32.mrf.mxu0  ;;  %6039 = vmatprep.subr.bf16.mxu0 %v7579_v34  ;;  %v5762_v52 = vpop.f32.mrf.mxu1  ;;  %6080 = vmatprep.subr.bf16.mxu1 %v7581_v35  ;;  %v298_v34 = vld [vmem:[%s10953_s1 + $0x8d0] sm:$0xff]  ;;  %v7262_v42 = vcombine.low %v362_v24, %v394_v25  ;;  %v7200_v19 = vcombine.low %v299_v38, %v331_v39  ;;  %v6945_v24 = vcombine.high %v43_v16, %v75_v17 }
 0x29c   :  { %v7818_v50 = vmul.f32 -1.442695, %v5720_v41  ;;  %v5722_v51 = vadd.f32 %v5721_v46, %v8989_v5  ;;  %v7820_v56 = vmul.f32 -1.442695, %v5761_v45  ;;  %v5763_v57 = vadd.f32 %v5762_v52, %v8989_v5  ;;  %v330_v35 = vld [vmem:[%s10953_s1 + $0x9d0] sm:$0xff]  ;;  %v267_v52 = vld [vmem:[%s10953_s1 + $0x7d8] sm:$0xff] }
 0x29d   :  { %v5723_v58 = vpop.f32.mrf.mxu0  ;;  %v5764_v63 = vpop.f32.mrf.mxu1  ;;  %v7264_v45 = vcombine.low %v363_v54, %v395_v27  ;;  %v7199_v46 = vcombine.high %v298_v34, %v330_v35  ;;  %v810_v25 = vld [vmem:[%s10953_s1 + $0x18d0] sm:$0xff]  ;;  %v811_v54 = vld [vmem:[%s10953_s1 + $0x18d8] sm:$0xff] }
 0x29e   :  { %8044 = vpow2.f32 %v7818_v50  ;;  %v7819_v61 = vmul.f32 -1.442695, %v5722_v51  ;;  %6040 = vmatpush2.bf16.msra.mxu0 %v7578_v43  ;;  %v7821_v1 = vmul.f32 -1.442695, %v5763_v57  ;;  %6081 = vmatpush2.bf16.msra.mxu1 %v7580_v48  ;;  %v7201_v48 = vcombine.high %v299_v38, %v331_v39  ;;  %v266_v50 = vld [vmem:[%s10953_s1 + $0x7d0] sm:$0xff]  ;;  %v235_v51 = vld [vmem:[%s10953_s1 + $0x6d8] sm:$0xff] }
 0x29f   :  { %8046 = vpow2.f32 %v7820_v56  ;;  %v5724_v2 = vpop.f32.mrf.mxu0  ;;  %6041 = vmatprep.subr.bf16.mxu0 %v7515_v49  ;;  %v5765_v6 = vpop.f32.mrf.mxu1  ;;  %6082 = vmatprep.subr.bf16.mxu1 %v7517_v53  ;;  %v234_v49 = vld [vmem:[%s10953_s1 + $0x6d0] sm:$0xff]  ;;  %v7198_v53 = vcombine.low %v298_v34, %v330_v35  ;;  %v7137_v56 = vcombine.high %v235_v51, %v267_v52  ;;  %v7136_v63 = vcombine.low %v235_v51, %v267_v52  ;;  %v747_v34 = vld [vmem:[%s10953_s1 + $0x16d8] sm:$0xff] }
 0x2a0   :  { %8048 = vpow2.f32 %v7819_v61  ;;  %v7135_v55 = vcombine.high %v234_v49, %v266_v50  ;;  %v170_v57 = vld [vmem:[%s10953_s1 + $0x4d0] sm:$0xff]  ;;  %v7134_v61 = vcombine.low %v234_v49, %v266_v50  ;;  %v139_v6 = vld [vmem:[%s10953_s1 + $0x3d8] sm:$0xff] }
 0x2a1   :  { %8050 = vpow2.f32 %v7821_v1  ;;  %v202_v58 = vld [vmem:[%s10953_s1 + $0x5d0] sm:$0xff]  ;;  %v7073_v1 = vcombine.high %v171_v59, %v203_v60  ;;  %v779_v35 = vld [vmem:[%s10953_s1 + $0x17d8] sm:$0xff] }
 0x2a2   :  { %6042 = vmatpush2.bf16.msra.mxu0 %v7514_v0  ;;  %6083 = vmatpush2.bf16.msra.mxu1 %v7516_v3  ;;  %v7071_v0 = vcombine.high %v170_v57, %v202_v58  ;;  %v106_v2 = vld [vmem:[%s10953_s1 + $0x2d0] sm:$0xff]  ;;  %v7649_v39 = vcombine.high %v747_v34, %v779_v35 }
 0x2a3   :  { %6043 = vmatprep.subr.bf16.mxu0 %v7451_v4  ;;  %6084 = vmatprep.subr.bf16.mxu1 %v7453_v7  ;;  %v138_v3 = vld [vmem:[%s10953_s1 + $0x3d0] sm:$0xff]  ;;  %v107_v4 = vld [vmem:[%s10953_s1 + $0x2d8] sm:$0xff]  ;;  %v7070_v7 = vcombine.low %v170_v57, %v202_v58 }
 0x2a4   :  { %v7007_v10 = vcombine.high %v106_v2, %v138_v3  ;;  %v618_v50 = vld [vmem:[%s10953_s1 + $0x12d0] sm:$0xff] }
 0x2a5   :  { %v650_v51 = vld [vmem:[%s10953_s1 + $0x13d0] sm:$0xff] }
 0x2a6   :  { %6044 = vmatpush2.bf16.msra.mxu0 %v7450_v12  ;;  %6085 = vmatpush2.bf16.msra.mxu1 %v7452_v13  ;;  %v7009_v12 = vcombine.high %v107_v4, %v139_v6  ;;  %v42_v13 = vld [vmem:[%s10953_s1 + $0xd0] sm:$0xff] }
 0x2a7   :  { %6095 = vmatprep.subr.bf16.mxu0 %v7391_v14  ;;  %6136 = vmatprep.subr.bf16.mxu1 %v7393_v15  ;;  %v74_v14 = vld [vmem:[%s10953_s1 + $0x1d0] sm:$0xff] }
 0x2a8   :  { %v6942_v27 = vcombine.low %v42_v13, %v74_v14 }
 0x2a9   :  { %6046 = vmatmul.mubr.bf16.vlgmr.msra.gmra.mxu0 %v10422_v26  ;;  %6087 = vmatmul.mubr.bf16.vlgmr.msra.gmra.mxu1 %v10422_v26 }
 0x2aa   :  { %6096 = vmatpush1.bf16.msra.mxu0 %v7390_v20  ;;  %6137 = vmatpush1.bf16.msra.mxu1 %v7392_v21  ;;  %v7006_v20 = vcombine.low %v106_v2, %v138_v3  ;;  %v554_v3 = vld [vmem:[%s10953_s1 + $0x10d0] sm:$0xff] }
 0x2ab   :  { %v8045_v28 = vpop.eup %8044  ;;  %6097 = vmatprep.subr.bf16.mxu0 %v7327_v22  ;;  %6138 = vmatprep.subr.bf16.mxu1 %v7329_v23  ;;  %v7008_v22 = vcombine.low %v107_v4, %v139_v6  ;;  %v6943_v23 = vcombine.high %v42_v13, %v74_v14  ;;  %v586_v4 = vld [vmem:[%s10953_s1 + $0x11d0] sm:$0xff]  ;;  %v7518_v13 = vcombine.low %v618_v50, %v650_v51 }
 0x2ac   :  { %v8047_v31 = vpop.eup %8046  ;;  %v6565_v32 = vadd.f32 1.0, %v8045_v28  ;;  %7775 = vmatprep.mubr.msk.bf16.mxu0 %vm4832_vm0, %v8277_v47  ;;  %7777 = vmatprep.mubr.msk.bf16.mxu1 %vm4832_vm0, %v8277_v47  ;;  %v7711_v28 = vcombine.high %v810_v25, %v810_v25 }
 0x2ad   :  { %v8049_v36 = vpop.eup %8048  ;;  %v6567_v37 = vadd.f32 1.0, %v8047_v31  ;;  %v7712_v31 = vcombine.low %v811_v54, %v811_v54 }
 0x2ae   :  { %v8051_v40 = vpop.eup %8050  ;;  %8052 = vrcp.f32 %v6565_v32  ;;  %v6566_v41 = vadd.f32 1.0, %v8049_v36  ;;  %6098 = vmatpush1.bf16.msra.mxu0 %v7326_v44  ;;  %6139 = vmatpush1.bf16.msra.mxu1 %v7328_v29  ;;  %v6944_v44 = vcombine.low %v43_v16, %v75_v17  ;;  %v7710_v29 = vcombine.low %v810_v25, %v810_v25  ;;  %v746_v32 = vld [vmem:[%s10953_s1 + $0x16d0] sm:$0xff] }
 0x2af   :  { %8054 = vrcp.f32 %v6567_v37  ;;  %v6568_v43 = vadd.f32 1.0, %v8051_v40  ;;  %6099 = vmatprep.subr.bf16.mxu0 %v7263_v30  ;;  %6140 = vmatprep.subr.bf16.mxu1 %v7265_v33  ;;  %v7713_v30 = vcombine.high %v811_v54, %v811_v54  ;;  %v778_v33 = vld [vmem:[%s10953_s1 + $0x17d0] sm:$0xff]  ;;  %v5000_v38 = vsel %vm4836_vm1, %v7712_v31, 0 }
 0x2b0   :  { %8056 = vrcp.f32 %v6566_v41  ;;  %v4994_v36 = vsel %vm4836_vm1, %v7710_v29, 0  ;;  %v7647_v37 = vcombine.high %v746_v32, %v778_v33  ;;  %v682_v40 = vld [vmem:[%s10953_s1 + $0x14d0] sm:$0xff]  ;;  %v7455_v17 = vcombine.high %v554_v3, %v586_v4  ;;  %v429_v29 = vld [vmem:[%s10953_s1 + $0xce8] sm:$0xff] }
 0x2b1   :  { %8058 = vrcp.f32 %v6568_v43  ;;  %v714_v41 = vld [vmem:[%s10953_s1 + $0x15d0] sm:$0xff]  ;;  %v715_v43 = vld [vmem:[%s10953_s1 + $0x15d8] sm:$0xff] }
 0x2b2   :  { %6100 = vmatpush1.bf16.msra.mxu0 %v7262_v42  ;;  %6141 = vmatpush1.bf16.msra.mxu1 %v7264_v45  ;;  %v683_v42 = vld [vmem:[%s10953_s1 + $0x14d8] sm:$0xff]  ;;  %v7646_v45 = vcombine.low %v746_v32, %v778_v33  ;;  %v7582_v57 = vcombine.low %v682_v40, %v714_v41 }
 0x2b3   :  { %6101 = vmatprep.subr.bf16.mxu0 %v7199_v46  ;;  %6142 = vmatprep.subr.bf16.mxu1 %v7201_v48  ;;  %v7648_v46 = vcombine.low %v747_v34, %v779_v35  ;;  %v7583_v48 = vcombine.high %v682_v40, %v714_v41  ;;  %v7585_v49 = vcombine.high %v683_v42, %v715_v43  ;;  %v364_v35 = vld [vmem:[%s10953_s1 + $0xae0] sm:$0xff] }
 0x2b4   :  { %v7584_v60 = vcombine.low %v683_v42, %v715_v43 }
 0x2b6   :  { %6102 = vmatpush1.bf16.msra.mxu0 %v7198_v53  ;;  %6143 = vmatpush1.bf16.msra.mxu1 %v7200_v19  ;;  %v619_v53 = vld [vmem:[%s10953_s1 + $0x12d8] sm:$0xff] }
 0x2b7   :  { %6103 = vmatprep.subr.bf16.mxu0 %v7135_v55  ;;  %6144 = vmatprep.subr.bf16.mxu1 %v7137_v56  ;;  %v651_v19 = vld [vmem:[%s10953_s1 + $0x13d8] sm:$0xff] }
 0x2b8   :  { %v7521_v2 = vcombine.high %v619_v53, %v651_v19  ;;  %v7520_v16 = vcombine.low %v619_v53, %v651_v19  ;;  %v333_v53 = vld [vmem:[%s10953_s1 + $0x9e8] sm:$0xff] }
 0x2ba   :  { %6104 = vmatpush1.bf16.msra.mxu0 %v7134_v61  ;;  %6145 = vmatpush1.bf16.msra.mxu1 %v7136_v63  ;;  %v7519_v61 = vcombine.high %v618_v50, %v650_v51 }
 0x2bb   :  { %v8053_v8 = vpop.eup %8052  ;;  %6105 = vmatprep.subr.bf16.mxu0 %v7071_v0  ;;  %6146 = vmatprep.subr.bf16.mxu1 %v7073_v1 }
 0x2bc   :  { %v8055_v11 = vpop.eup %8054 }
 0x2bd   :  { %v8057_v15 = vpop.eup %8056 }
 0x2be   :  { %v8059_v18 = vpop.eup %8058  ;;  %v6805_v62 = vcombine.low %v8053_v8, %v8057_v15  ;;  %6106 = vmatpush1.bf16.msra.mxu0 %v7070_v7  ;;  %6147 = vmatpush1.bf16.msra.mxu1 %v7072_v9  ;;  %v555_v9 = vld [vmem:[%s10953_s1 + $0x10d8] sm:$0xff] }
 0x2bf   :  { %v6806_v21 = vcombine.low %v8055_v11, %v8059_v18  ;;  %6107 = vmatprep.subr.bf16.mxu0 %v7007_v10  ;;  %6148 = vmatprep.subr.bf16.mxu1 %v7009_v12  ;;  %v587_v10 = vld [vmem:[%s10953_s1 + $0x11d8] sm:$0xff] }
 0x2c0   :  { %6869 = vst [vmem:[%s10956_s3 + $0x80] sm:$0x77] %v6805_v62  ;;  %v7457_v62 = vcombine.high %v555_v9, %v587_v10  ;;  %v7456_v25 = vcombine.low %v555_v9, %v587_v10  ;;  %v173_v9 = vld [vmem:[%s10953_s1 + $0x4e8] sm:$0xff] }
 0x2c1   :  { %6870 = vst [vmem:[%s10956_s3 + $0x88] sm:$0x77] %v6806_v21  ;;  %v524_v21 = vld [vmem:[%s10953_s1 + $0xfe0] sm:$0xff]  ;;  %v205_v10 = vld [vmem:[%s10953_s1 + $0x5e8] sm:$0xff] }
 0x2c2   :  { %6108 = vmatpush1.bf16.msra.mxu0 %v7006_v20  ;;  %6149 = vmatpush1.bf16.msra.mxu1 %v7008_v22  ;;  %v492_v20 = vld [vmem:[%s10953_s1 + $0xee0] sm:$0xff]  ;;  %v493_v22 = vld [vmem:[%s10953_s1 + $0xee8] sm:$0xff] }
 0x2c3   :  { %6109 = vmatprep.subr.bf16.mxu0 %v6943_v23  ;;  %6150 = vmatprep.subr.bf16.mxu1 %v6945_v24  ;;  %v525_v23 = vld [vmem:[%s10953_s1 + $0xfe8] sm:$0xff]  ;;  %v7454_v24 = vcombine.low %v554_v3, %v586_v4  ;;  %v7395_v54 = vcombine.high %v492_v20, %v524_v21  ;;  %v7394_v31 = vcombine.low %v492_v20, %v524_v21 }
 0x2c4   :  { %v7396_v32 = vcombine.low %v493_v22, %v525_v23  ;;  %v7076_v21 = vcombine.low %v173_v9, %v205_v10 }
 0x2c6   :  { %6110 = vmatpush1.bf16.msra.mxu0 %v6942_v27  ;;  %6151 = vmatpush1.bf16.msra.mxu1 %v6944_v44  ;;  %v7397_v27 = vcombine.high %v493_v22, %v525_v23  ;;  %v428_v44 = vld [vmem:[%s10953_s1 + $0xce0] sm:$0xff] }
 0x2c7   :  { %7774 = vmatprep.subr.msk.bf16.mxu0 %vm4836_vm1, %v7711_v28  ;;  %7776 = vmatprep.subr.msk.bf16.mxu1 %vm4836_vm1, %v7713_v30  ;;  %v460_v28 = vld [vmem:[%s10953_s1 + $0xde0] sm:$0xff]  ;;  %v461_v30 = vld [vmem:[%s10953_s1 + $0xde8] sm:$0xff] }
 0x2c8   :  { %v7331_v33 = vcombine.high %v428_v44, %v460_v28  ;;  %v7333_v34 = vcombine.high %v429_v29, %v461_v30  ;;  %v7332_v41 = vcombine.low %v429_v29, %v461_v30 }
 0x2ca   :  { %6118 = vmatpush2.bf16.msra.mxu0 %v4994_v36  ;;  %6159 = vmatpush2.bf16.msra.mxu1 %v5000_v38  ;;  %v396_v36 = vld [vmem:[%s10953_s1 + $0xbe0] sm:$0xff]  ;;  %v397_v38 = vld [vmem:[%s10953_s1 + $0xbe8] sm:$0xff] }
 0x2cb   :  { %6119 = vmatprep.subr.bf16.mxu0 %v7647_v37  ;;  %6160 = vmatprep.subr.bf16.mxu1 %v7649_v39  ;;  %v365_v37 = vld [vmem:[%s10953_s1 + $0xae8] sm:$0xff]  ;;  %v7330_v39 = vcombine.low %v428_v44, %v460_v28  ;;  %v7267_v42 = vcombine.high %v364_v35, %v396_v36 }
 0x2cc   :  { %v45_v44 = vld [vmem:[%s10953_s1 + $0xe8] sm:$0xff] }
 0x2cd   :  { %v5801_v52 = vpop.f32.mrf.mxu0  ;;  %v5842_v56 = vpop.f32.mrf.mxu1  ;;  %v77_v28 = vld [vmem:[%s10953_s1 + $0x1e8] sm:$0xff] }
 0x2ce   :  { %v5802_v55 = vadd.f32 %v5801_v52, %v8989_v5  ;;  %6120 = vmatpush2.bf16.msra.mxu0 %v7646_v45  ;;  %v5843_v58 = vadd.f32 %v5842_v56, %v8989_v5  ;;  %6161 = vmatpush2.bf16.msra.mxu1 %v7648_v46  ;;  %v7269_v46 = vcombine.high %v365_v37, %v397_v38  ;;  %v301_v52 = vld [vmem:[%s10953_s1 + $0x8e8] sm:$0xff] }
 0x2cf   :  { %v5803_v59 = vpop.f32.mrf.mxu0  ;;  %6121 = vmatprep.subr.bf16.mxu0 %v7583_v48  ;;  %v5844_v1 = vpop.f32.mrf.mxu1  ;;  %6162 = vmatprep.subr.bf16.mxu1 %v7585_v49  ;;  %v300_v48 = vld [vmem:[%s10953_s1 + $0x8e0] sm:$0xff]  ;;  %v7266_v56 = vcombine.low %v364_v35, %v396_v36  ;;  %v7204_v3 = vcombine.low %v301_v52, %v333_v53  ;;  %v6949_v35 = vcombine.high %v45_v44, %v77_v28 }
 0x2d0   :  { %v7822_v63 = vmul.f32 -1.442695, %v5802_v55  ;;  %v5804_v0 = vadd.f32 %v5803_v59, %v8989_v5  ;;  %v7824_v6 = vmul.f32 -1.442695, %v5843_v58  ;;  %v5845_v7 = vadd.f32 %v5844_v1, %v8989_v5  ;;  %v332_v49 = vld [vmem:[%s10953_s1 + $0x9e0] sm:$0xff]  ;;  %v269_v1 = vld [vmem:[%s10953_s1 + $0x7e8] sm:$0xff] }
 0x2d1   :  { %v5805_v8 = vpop.f32.mrf.mxu0  ;;  %v5846_v12 = vpop.f32.mrf.mxu1  ;;  %v7268_v58 = vcombine.low %v365_v37, %v397_v38  ;;  %v7203_v59 = vcombine.high %v300_v48, %v332_v49  ;;  %v812_v36 = vld [vmem:[%s10953_s1 + $0x18e0] sm:$0xff]  ;;  %v813_v37 = vld [vmem:[%s10953_s1 + $0x18e8] sm:$0xff] }
 0x2d2   :  { %8060 = vpow2.f32 %v7822_v63  ;;  %v7823_v11 = vmul.f32 -1.442695, %v5804_v0  ;;  %6122 = vmatpush2.bf16.msra.mxu0 %v7582_v57  ;;  %v7825_v14 = vmul.f32 -1.442695, %v5845_v7  ;;  %6163 = vmatpush2.bf16.msra.mxu1 %v7584_v60  ;;  %v7205_v60 = vcombine.high %v301_v52, %v333_v53  ;;  %v268_v63 = vld [vmem:[%s10953_s1 + $0x7e0] sm:$0xff]  ;;  %v237_v0 = vld [vmem:[%s10953_s1 + $0x6e8] sm:$0xff] }
 0x2d3   :  { %8062 = vpow2.f32 %v7824_v6  ;;  %v5806_v15 = vpop.f32.mrf.mxu0  ;;  %6123 = vmatprep.subr.bf16.mxu0 %v7519_v61  ;;  %v5847_v18 = vpop.f32.mrf.mxu1  ;;  %6164 = vmatprep.subr.bf16.mxu1 %v7521_v2  ;;  %v236_v61 = vld [vmem:[%s10953_s1 + $0x6e0] sm:$0xff]  ;;  %v7202_v2 = vcombine.low %v300_v48, %v332_v49  ;;  %v7141_v6 = vcombine.high %v237_v0, %v269_v1  ;;  %v7140_v12 = vcombine.low %v237_v0, %v269_v1  ;;  %v749_v48 = vld [vmem:[%s10953_s1 + $0x16e8] sm:$0xff] }
 0x2d4   :  { %8064 = vpow2.f32 %v7823_v11  ;;  %v7139_v4 = vcombine.high %v236_v61, %v268_v63  ;;  %v172_v7 = vld [vmem:[%s10953_s1 + $0x4e0] sm:$0xff]  ;;  %v7138_v11 = vcombine.low %v236_v61, %v268_v63  ;;  %v141_v18 = vld [vmem:[%s10953_s1 + $0x3e8] sm:$0xff] }
 0x2d5   :  { %8066 = vpow2.f32 %v7825_v14  ;;  %v204_v8 = vld [vmem:[%s10953_s1 + $0x5e0] sm:$0xff]  ;;  %v7077_v14 = vcombine.high %v173_v9, %v205_v10  ;;  %v781_v49 = vld [vmem:[%s10953_s1 + $0x17e8] sm:$0xff] }
 0x2d6   :  { %6124 = vmatpush2.bf16.msra.mxu0 %v7518_v13  ;;  %6165 = vmatpush2.bf16.msra.mxu1 %v7520_v16  ;;  %v7075_v13 = vcombine.high %v172_v7, %v204_v8  ;;  %v108_v15 = vld [vmem:[%s10953_s1 + $0x2e0] sm:$0xff]  ;;  %v7653_v53 = vcombine.high %v749_v48, %v781_v49 }
 0x2d7   :  { %6125 = vmatprep.subr.bf16.mxu0 %v7455_v17  ;;  %6166 = vmatprep.subr.bf16.mxu1 %v7457_v62  ;;  %v140_v16 = vld [vmem:[%s10953_s1 + $0x3e0] sm:$0xff]  ;;  %v109_v17 = vld [vmem:[%s10953_s1 + $0x2e8] sm:$0xff]  ;;  %v7074_v62 = vcombine.low %v172_v7, %v204_v8 }
 0x2d8   :  { %v7011_v22 = vcombine.high %v108_v15, %v140_v16  ;;  %v620_v63 = vld [vmem:[%s10953_s1 + $0x12e0] sm:$0xff] }
 0x2d9   :  { %v652_v0 = vld [vmem:[%s10953_s1 + $0x13e0] sm:$0xff] }
 0x2da   :  { %6126 = vmatpush2.bf16.msra.mxu0 %v7454_v24  ;;  %6167 = vmatpush2.bf16.msra.mxu1 %v7456_v25  ;;  %v7013_v24 = vcombine.high %v109_v17, %v141_v18  ;;  %v44_v25 = vld [vmem:[%s10953_s1 + $0xe0] sm:$0xff] }
 0x2db   :  { %6177 = vmatprep.subr.bf16.mxu0 %v7395_v54  ;;  %6218 = vmatprep.subr.bf16.mxu1 %v7397_v27  ;;  %v76_v54 = vld [vmem:[%s10953_s1 + $0x1e0] sm:$0xff] }
 0x2dc   :  { %v6946_v38 = vcombine.low %v44_v25, %v76_v54 }
 0x2dd   :  { %6128 = vmatmul.mubr.bf16.vlgmr.msra.gmra.mxu0 %v10422_v26  ;;  %6169 = vmatmul.mubr.bf16.vlgmr.msra.gmra.mxu1 %v10422_v26 }
 0x2de   :  { %6178 = vmatpush1.bf16.msra.mxu0 %v7394_v31  ;;  %6219 = vmatpush1.bf16.msra.mxu1 %v7396_v32  ;;  %v7010_v31 = vcombine.low %v108_v15, %v140_v16  ;;  %v556_v16 = vld [vmem:[%s10953_s1 + $0x10e0] sm:$0xff] }
 0x2df   :  { %v8061_v40 = vpop.eup %8060  ;;  %6179 = vmatprep.subr.bf16.mxu0 %v7331_v33  ;;  %6220 = vmatprep.subr.bf16.mxu1 %v7333_v34  ;;  %v7012_v33 = vcombine.low %v109_v17, %v141_v18  ;;  %v6947_v34 = vcombine.high %v44_v25, %v76_v54  ;;  %v588_v17 = vld [vmem:[%s10953_s1 + $0x11e0] sm:$0xff]  ;;  %v7522_v25 = vcombine.low %v620_v63, %v652_v0 }
 0x2e0   :  { %v8063_v43 = vpop.eup %8062  ;;  %v6569_v45 = vadd.f32 1.0, %v8061_v40  ;;  %7779 = vmatprep.mubr.msk.bf16.mxu0 %vm4832_vm0, %v8277_v47  ;;  %7781 = vmatprep.mubr.msk.bf16.mxu1 %vm4832_vm0, %v8277_v47  ;;  %v7715_v40 = vcombine.high %v812_v36, %v812_v36 }
 0x2e1   :  { %v8065_v50 = vpop.eup %8064  ;;  %v6571_v51 = vadd.f32 1.0, %v8063_v43  ;;  %v7716_v43 = vcombine.low %v813_v37, %v813_v37 }
 0x2e2   :  { %v8067_v19 = vpop.eup %8066  ;;  %8068 = vrcp.f32 %v6569_v45  ;;  %v6570_v55 = vadd.f32 1.0, %v8065_v50  ;;  %6180 = vmatpush1.bf16.msra.mxu0 %v7330_v39  ;;  %6221 = vmatpush1.bf16.msra.mxu1 %v7332_v41  ;;  %v6948_v39 = vcombine.low %v45_v44, %v77_v28  ;;  %v7714_v41 = vcombine.low %v812_v36, %v812_v36  ;;  %v748_v45 = vld [vmem:[%s10953_s1 + $0x16e0] sm:$0xff] }
 0x2e3   :  { %8070 = vrcp.f32 %v6571_v51  ;;  %v6572_v57 = vadd.f32 1.0, %v8067_v19  ;;  %6181 = vmatprep.subr.bf16.mxu0 %v7267_v42  ;;  %6222 = vmatprep.subr.bf16.mxu1 %v7269_v46  ;;  %v7717_v42 = vcombine.high %v813_v37, %v813_v37  ;;  %v780_v46 = vld [vmem:[%s10953_s1 + $0x17e0] sm:$0xff]  ;;  %v5012_v52 = vsel %vm4836_vm1, %v7716_v43, 0 }
 0x2e4   :  { %8072 = vrcp.f32 %v6570_v55  ;;  %v5006_v50 = vsel %vm4836_vm1, %v7714_v41, 0  ;;  %v7651_v51 = vcombine.high %v748_v45, %v780_v46  ;;  %v684_v19 = vld [vmem:[%s10953_s1 + $0x14e0] sm:$0xff]  ;;  %v7459_v28 = vcombine.high %v556_v16, %v588_v17  ;;  %v431_v41 = vld [vmem:[%s10953_s1 + $0xcf8] sm:$0xff] }
 0x2e5   :  { %8074 = vrcp.f32 %v6572_v57  ;;  %v716_v55 = vld [vmem:[%s10953_s1 + $0x15e0] sm:$0xff]  ;;  %v717_v57 = vld [vmem:[%s10953_s1 + $0x15e8] sm:$0xff] }
 0x2e6   :  { %6182 = vmatpush1.bf16.msra.mxu0 %v7266_v56  ;;  %6223 = vmatpush1.bf16.msra.mxu1 %v7268_v58  ;;  %v685_v56 = vld [vmem:[%s10953_s1 + $0x14e8] sm:$0xff]  ;;  %v7650_v58 = vcombine.low %v748_v45, %v780_v46  ;;  %v7586_v7 = vcombine.low %v684_v19, %v716_v55 }
 0x2e7   :  { %6183 = vmatprep.subr.bf16.mxu0 %v7203_v59  ;;  %6224 = vmatprep.subr.bf16.mxu1 %v7205_v60  ;;  %v7652_v59 = vcombine.low %v749_v48, %v781_v49  ;;  %v7587_v60 = vcombine.high %v684_v19, %v716_v55  ;;  %v7589_v61 = vcombine.high %v685_v56, %v717_v57  ;;  %v366_v49 = vld [vmem:[%s10953_s1 + $0xaf0] sm:$0xff] }
 0x2e8   :  { %v7588_v10 = vcombine.low %v685_v56, %v717_v57 }
 0x2ea   :  { %6184 = vmatpush1.bf16.msra.mxu0 %v7202_v2  ;;  %6225 = vmatpush1.bf16.msra.mxu1 %v7204_v3  ;;  %v621_v2 = vld [vmem:[%s10953_s1 + $0x12e8] sm:$0xff] }
 0x2eb   :  { %6185 = vmatprep.subr.bf16.mxu0 %v7139_v4  ;;  %6226 = vmatprep.subr.bf16.mxu1 %v7141_v6  ;;  %v653_v3 = vld [vmem:[%s10953_s1 + $0x13e8] sm:$0xff] }
 0x2ec   :  { %v7525_v15 = vcombine.high %v621_v2, %v653_v3  ;;  %v7524_v44 = vcombine.low %v621_v2, %v653_v3 }
 0x2ee   :  { %6186 = vmatpush1.bf16.msra.mxu0 %v7138_v11  ;;  %6227 = vmatpush1.bf16.msra.mxu1 %v7140_v12  ;;  %v7523_v11 = vcombine.high %v620_v63, %v652_v0  ;;  %v303_v0 = vld [vmem:[%s10953_s1 + $0x8f8] sm:$0xff] }
 0x2ef   :  { %v8069_v20 = vpop.eup %8068  ;;  %6187 = vmatprep.subr.bf16.mxu0 %v7075_v13  ;;  %6228 = vmatprep.subr.bf16.mxu1 %v7077_v14 }
 0x2f0   :  { %v8071_v23 = vpop.eup %8070 }
 0x2f1   :  { %v8073_v27 = vpop.eup %8072 }
 0x2f2   :  { %v8075_v29 = vpop.eup %8074  ;;  %v6807_v30 = vcombine.low %v8069_v20, %v8073_v27  ;;  %6188 = vmatpush1.bf16.msra.mxu0 %v7074_v62  ;;  %6229 = vmatpush1.bf16.msra.mxu1 %v7076_v21  ;;  %v557_v21 = vld [vmem:[%s10953_s1 + $0x10e8] sm:$0xff] }
 0x2f3   :  { %v6808_v32 = vcombine.low %v8071_v23, %v8075_v29  ;;  %6189 = vmatprep.subr.bf16.mxu0 %v7011_v22  ;;  %6230 = vmatprep.subr.bf16.mxu1 %v7013_v24  ;;  %v589_v22 = vld [vmem:[%s10953_s1 + $0x11e8] sm:$0xff] }
 0x2f4   :  { %6871 = vst [vmem:[%s10956_s3 + $0x90] sm:$0x77] %v6807_v30  ;;  %v7461_v30 = vcombine.high %v557_v21, %v589_v22  ;;  %v7460_v36 = vcombine.low %v557_v21, %v589_v22 }
 0x2f5   :  { %6872 = vst [vmem:[%s10956_s3 + $0x98] sm:$0x77] %v6808_v32  ;;  %v526_v32 = vld [vmem:[%s10953_s1 + $0xff0] sm:$0xff] }
 0x2f6   :  { %6190 = vmatpush1.bf16.msra.mxu0 %v7010_v31  ;;  %6231 = vmatpush1.bf16.msra.mxu1 %v7012_v33  ;;  %v494_v31 = vld [vmem:[%s10953_s1 + $0xef0] sm:$0xff]  ;;  %v495_v33 = vld [vmem:[%s10953_s1 + $0xef8] sm:$0xff] }
 0x2f7   :  { %6191 = vmatprep.subr.bf16.mxu0 %v6947_v34  ;;  %6232 = vmatprep.subr.bf16.mxu1 %v6949_v35  ;;  %v527_v34 = vld [vmem:[%s10953_s1 + $0xff8] sm:$0xff]  ;;  %v7458_v35 = vcombine.low %v556_v16, %v588_v17  ;;  %v7399_v37 = vcombine.high %v494_v31, %v526_v32  ;;  %v7398_v43 = vcombine.low %v494_v31, %v526_v32  ;;  %v174_v17 = vld [vmem:[%s10953_s1 + $0x4f0] sm:$0xff] }
 0x2f8   :  { %v7400_v45 = vcombine.low %v495_v33, %v527_v34 }
 0x2fa   :  { %6192 = vmatpush1.bf16.msra.mxu0 %v6946_v38  ;;  %6233 = vmatpush1.bf16.msra.mxu1 %v6948_v39  ;;  %v7401_v38 = vcombine.high %v495_v33, %v527_v34  ;;  %v430_v39 = vld [vmem:[%s10953_s1 + $0xcf0] sm:$0xff] }
 0x2fb   :  { %7778 = vmatprep.subr.msk.bf16.mxu0 %vm4836_vm1, %v7715_v40  ;;  %7780 = vmatprep.subr.msk.bf16.mxu1 %vm4836_vm1, %v7717_v42  ;;  %v462_v40 = vld [vmem:[%s10953_s1 + $0xdf0] sm:$0xff]  ;;  %v463_v42 = vld [vmem:[%s10953_s1 + $0xdf8] sm:$0xff] }
 0x2fc   :  { %v7335_v46 = vcombine.high %v430_v39, %v462_v40  ;;  %v7337_v48 = vcombine.high %v431_v41, %v463_v42  ;;  %v7336_v55 = vcombine.low %v431_v41, %v463_v42  ;;  %v46_v34 = vld [vmem:[%s10953_s1 + $0xf0] sm:$0xff] }
 0x2fe   :  { %6200 = vmatpush2.bf16.msra.mxu0 %v5006_v50  ;;  %6241 = vmatpush2.bf16.msra.mxu1 %v5012_v52  ;;  %v398_v50 = vld [vmem:[%s10953_s1 + $0xbf0] sm:$0xff]  ;;  %v399_v52 = vld [vmem:[%s10953_s1 + $0xbf8] sm:$0xff] }
 0x2ff   :  { %6201 = vmatprep.subr.bf16.mxu0 %v7651_v51  ;;  %6242 = vmatprep.subr.bf16.mxu1 %v7653_v53  ;;  %v367_v51 = vld [vmem:[%s10953_s1 + $0xaf8] sm:$0xff]  ;;  %v7334_v53 = vcombine.low %v430_v39, %v462_v40  ;;  %v7271_v56 = vcombine.high %v366_v49, %v398_v50 }
 0x301   :  { %v5883_v1 = vpop.f32.mrf.mxu0  ;;  %v5924_v6 = vpop.f32.mrf.mxu1 }
 0x302   :  { %v5884_v4 = vadd.f32 %v5883_v1, %v8989_v5  ;;  %6202 = vmatpush2.bf16.msra.mxu0 %v7650_v58  ;;  %v5925_v8 = vadd.f32 %v5924_v6, %v8989_v5  ;;  %6243 = vmatpush2.bf16.msra.mxu1 %v7652_v59  ;;  %v7273_v59 = vcombine.high %v367_v51, %v399_v52  ;;  %v335_v1 = vld [vmem:[%s10953_s1 + $0x9f8] sm:$0xff] }
 0x303   :  { %v5885_v9 = vpop.f32.mrf.mxu0  ;;  %6203 = vmatprep.subr.bf16.mxu0 %v7587_v60  ;;  %v5926_v14 = vpop.f32.mrf.mxu1  ;;  %6244 = vmatprep.subr.bf16.mxu1 %v7589_v61  ;;  %v302_v60 = vld [vmem:[%s10953_s1 + $0x8f0] sm:$0xff] }
 0x304   :  { %v7826_v12 = vmul.f32 -1.442695, %v5884_v4  ;;  %v5886_v13 = vadd.f32 %v5885_v9, %v8989_v5  ;;  %v7828_v18 = vmul.f32 -1.442695, %v5925_v8  ;;  %v5927_v62 = vadd.f32 %v5926_v14, %v8989_v5  ;;  %v334_v61 = vld [vmem:[%s10953_s1 + $0x9f0] sm:$0xff] }
 0x305   :  { %v5887_v20 = vpop.f32.mrf.mxu0  ;;  %v5928_v24 = vpop.f32.mrf.mxu1  ;;  %v7270_v4 = vcombine.low %v366_v49, %v398_v50  ;;  %v7207_v8 = vcombine.high %v302_v60, %v334_v61  ;;  %v7209_v9 = vcombine.high %v303_v0, %v335_v1  ;;  %v7208_v14 = vcombine.low %v303_v0, %v335_v1  ;;  %v815_v49 = vld [vmem:[%s10953_s1 + $0x18f8] sm:$0xff]  ;;  %v686_v0 = vld [vmem:[%s10953_s1 + $0x14f0] sm:$0xff] }
 0x306   :  { %8076 = vpow2.f32 %v7826_v12  ;;  %v7827_v23 = vmul.f32 -1.442695, %v5886_v13  ;;  %6204 = vmatpush2.bf16.msra.mxu0 %v7586_v7  ;;  %v7829_v54 = vmul.f32 -1.442695, %v5927_v62  ;;  %6245 = vmatpush2.bf16.msra.mxu1 %v7588_v10  ;;  %v7272_v7 = vcombine.low %v367_v51, %v399_v52  ;;  %v238_v10 = vld [vmem:[%s10953_s1 + $0x6f0] sm:$0xff]  ;;  %v271_v12 = vld [vmem:[%s10953_s1 + $0x7f8] sm:$0xff] }
 0x307   :  { %8078 = vpow2.f32 %v7828_v18  ;;  %v5888_v27 = vpop.f32.mrf.mxu0  ;;  %6205 = vmatprep.subr.bf16.mxu0 %v7523_v11  ;;  %v5929_v29 = vpop.f32.mrf.mxu1  ;;  %6246 = vmatprep.subr.bf16.mxu1 %v7525_v15  ;;  %v239_v11 = vld [vmem:[%s10953_s1 + $0x6f8] sm:$0xff]  ;;  %v7206_v13 = vcombine.low %v302_v60, %v334_v61  ;;  %v206_v18 = vld [vmem:[%s10953_s1 + $0x5f0] sm:$0xff] }
 0x308   :  { %8080 = vpow2.f32 %v7827_v23  ;;  %v7145_v16 = vcombine.high %v239_v11, %v271_v12  ;;  %v175_v62 = vld [vmem:[%s10953_s1 + $0x4f8] sm:$0xff]  ;;  %v7144_v22 = vcombine.low %v239_v11, %v271_v12  ;;  %v7079_v23 = vcombine.high %v174_v17, %v206_v18  ;;  %v718_v1 = vld [vmem:[%s10953_s1 + $0x15f0] sm:$0xff] }
 0x309   :  { %8082 = vpow2.f32 %v7829_v54  ;;  %v207_v20 = vld [vmem:[%s10953_s1 + $0x5f8] sm:$0xff]  ;;  %v142_v54 = vld [vmem:[%s10953_s1 + $0x3f0] sm:$0xff] }
 0x30a   :  { %6206 = vmatpush2.bf16.msra.mxu0 %v7522_v25  ;;  %6247 = vmatpush2.bf16.msra.mxu1 %v7524_v44  ;;  %v7081_v24 = vcombine.high %v175_v62, %v207_v20  ;;  %v110_v25 = vld [vmem:[%s10953_s1 + $0x2f0] sm:$0xff]  ;;  %v111_v27 = vld [vmem:[%s10953_s1 + $0x2f8] sm:$0xff] }
 0x30b   :  { %6207 = vmatprep.subr.bf16.mxu0 %v7459_v28  ;;  %6248 = vmatprep.subr.bf16.mxu1 %v7461_v30  ;;  %v143_v44 = vld [vmem:[%s10953_s1 + $0x3f8] sm:$0xff]  ;;  %v7078_v28 = vcombine.low %v174_v17, %v206_v18  ;;  %v7080_v30 = vcombine.low %v175_v62, %v207_v20  ;;  %v7015_v31 = vcombine.high %v110_v25, %v142_v54 }
 0x30c   :  { %v7017_v33 = vcombine.high %v111_v27, %v143_v44  ;;  %v7014_v41 = vcombine.low %v110_v25, %v142_v54  ;;  %v623_v11 = vld [vmem:[%s10953_s1 + $0x12f8] sm:$0xff]  ;;  %v590_v25 = vld [vmem:[%s10953_s1 + $0x11f0] sm:$0xff] }
 0x30d   :  { %v655_v12 = vld [vmem:[%s10953_s1 + $0x13f8] sm:$0xff] }
 0x30e   :  { %6208 = vmatpush2.bf16.msra.mxu0 %v7458_v35  ;;  %6249 = vmatpush2.bf16.msra.mxu1 %v7460_v36  ;;  %v78_v35 = vld [vmem:[%s10953_s1 + $0x1f0] sm:$0xff] }
 0x30f   :  { %6259 = vmatprep.subr.bf16.mxu0 %v7399_v37  ;;  %6300 = vmatprep.subr.bf16.mxu1 %v7401_v38  ;;  %v47_v37 = vld [vmem:[%s10953_s1 + $0xf8] sm:$0xff]  ;;  %v6950_v50 = vcombine.low %v46_v34, %v78_v35 }
 0x310   :  { %v79_v38 = vld [vmem:[%s10953_s1 + $0x1f8] sm:$0xff] }
 0x311   :  { %6210 = vmatmul.mubr.bf16.vlgmr.msra.gmra.mxu0 %v10422_v26  ;;  %6251 = vmatmul.mubr.bf16.vlgmr.msra.gmra.mxu1 %v10422_v26  ;;  %v6952_v51 = vcombine.low %v47_v37, %v79_v38 }
 0x312   :  { %6260 = vmatpush1.bf16.msra.mxu0 %v7398_v43  ;;  %6301 = vmatpush1.bf16.msra.mxu1 %v7400_v45  ;;  %v7016_v43 = vcombine.low %v111_v27, %v143_v44  ;;  %v6951_v45 = vcombine.high %v46_v34, %v78_v35  ;;  %v7528_v35 = vcombine.low %v623_v11, %v655_v12 }
 0x313   :  { %v8077_v19 = vpop.eup %8076  ;;  %6261 = vmatprep.subr.bf16.mxu0 %v7335_v46  ;;  %6302 = vmatprep.subr.bf16.mxu1 %v7337_v48  ;;  %v6953_v46 = vcombine.high %v47_v37, %v79_v38  ;;  %v814_v48 = vld [vmem:[%s10953_s1 + $0x18f0] sm:$0xff] }
 0x314   :  { %v8079_v57 = vpop.eup %8078  ;;  %v6573_v58 = vadd.f32 1.0, %v8077_v19  ;;  %7783 = vmatprep.mubr.msk.bf16.mxu0 %vm4832_vm0, %v8277_v47  ;;  %7785 = vmatprep.mubr.msk.bf16.mxu1 %vm4832_vm0, %v8277_v47  ;;  %v270_v47 = vld [vmem:[%s10953_s1 + $0x7f0] sm:$0xff]  ;;  %v7719_v52 = vcombine.high %v814_v48, %v814_v48  ;;  %v7721_v19 = vcombine.high %v815_v49, %v815_v49 }
 0x315   :  { %v8081_v26 = vpop.eup %8080  ;;  %v6575_v63 = vadd.f32 1.0, %v8079_v57  ;;  %v7143_v15 = vcombine.high %v238_v10, %v270_v47  ;;  %v7142_v21 = vcombine.low %v238_v10, %v270_v47  ;;  %v782_v57 = vld [vmem:[%s10953_s1 + $0x17f0] sm:$0xff] }
 0x316   :  { %v8083_v2 = vpop.eup %8082  ;;  %8084 = vrcp.f32 %v6573_v58  ;;  %v6574_v3 = vadd.f32 1.0, %v8081_v26  ;;  %6262 = vmatpush1.bf16.msra.mxu0 %v7334_v53  ;;  %6303 = vmatpush1.bf16.msra.mxu1 %v7336_v55  ;;  %v7718_v53 = vcombine.low %v814_v48, %v814_v48  ;;  %v7720_v55 = vcombine.low %v815_v49, %v815_v49  ;;  %v751_v58 = vld [vmem:[%s10953_s1 + $0x16f8] sm:$0xff]  ;;  %v654_v10 = vld [vmem:[%s10953_s1 + $0x13f0] sm:$0xff] }
 0x317   :  { %8086 = vrcp.f32 %v6575_v63  ;;  %v6576_v6 = vadd.f32 1.0, %v8083_v2  ;;  %6263 = vmatprep.subr.bf16.mxu0 %v7271_v56  ;;  %6304 = vmatprep.subr.bf16.mxu1 %v7273_v59  ;;  %v750_v56 = vld [vmem:[%s10953_s1 + $0x16f0] sm:$0xff]  ;;  %v783_v59 = vld [vmem:[%s10953_s1 + $0x17f8] sm:$0xff] }
 0x318   :  { %8088 = vrcp.f32 %v6574_v3  ;;  %v5018_v60 = vsel %vm4836_vm1, %v7718_v53, 0  ;;  %v7655_v61 = vcombine.high %v750_v56, %v782_v57  ;;  %v5024_v26 = vsel %vm4836_vm1, %v7720_v55, 0  ;;  %v687_v2 = vld [vmem:[%s10953_s1 + $0x14f8] sm:$0xff] }
 0x319   :  { %8090 = vrcp.f32 %v6576_v6  ;;  %v7657_v63 = vcombine.high %v751_v58, %v783_v59  ;;  %v719_v3 = vld [vmem:[%s10953_s1 + $0x15f8] sm:$0xff]  ;;  %v7656_v6 = vcombine.low %v751_v58, %v783_v59 }
 0x31a   :  { %6264 = vmatpush1.bf16.msra.mxu0 %v7270_v4  ;;  %6305 = vmatpush1.bf16.msra.mxu1 %v7272_v7  ;;  %v7654_v4 = vcombine.low %v750_v56, %v782_v57  ;;  %v7591_v7 = vcombine.high %v686_v0, %v718_v1  ;;  %v7592_v18 = vcombine.low %v687_v2, %v719_v3 }
 0x31b   :  { %6265 = vmatprep.subr.bf16.mxu0 %v7207_v8  ;;  %6306 = vmatprep.subr.bf16.mxu1 %v7209_v9  ;;  %v7593_v8 = vcombine.high %v687_v2, %v719_v3  ;;  %v622_v9 = vld [vmem:[%s10953_s1 + $0x12f0] sm:$0xff] }
 0x31c   :  { %v7527_v62 = vcombine.high %v622_v9, %v654_v10 }
 0x31e   :  { %6266 = vmatpush1.bf16.msra.mxu0 %v7206_v13  ;;  %6307 = vmatpush1.bf16.msra.mxu1 %v7208_v14 }
 0x31f   :  { %6267 = vmatprep.subr.bf16.mxu0 %v7143_v15  ;;  %6308 = vmatprep.subr.bf16.mxu1 %v7145_v16  ;;  %v7590_v15 = vcombine.low %v686_v0, %v718_v1 }
 0x322   :  { %6268 = vmatpush1.bf16.msra.mxu0 %v7142_v21  ;;  %6309 = vmatpush1.bf16.msra.mxu1 %v7144_v22 }
 0x323   :  { %v8085_v29 = vpop.eup %8084  ;;  %6269 = vmatprep.subr.bf16.mxu0 %v7079_v23  ;;  %6310 = vmatprep.subr.bf16.mxu1 %v7081_v24  ;;  %v7529_v23 = vcombine.high %v623_v11, %v655_v12  ;;  %v558_v24 = vld [vmem:[%s10953_s1 + $0x10f0] sm:$0xff] }
 0x324   :  { %v8087_v32 = vpop.eup %8086 }
 0x325   :  { %v8089_v36 = vpop.eup %8088 }
 0x326   :  { %v8091_v39 = vpop.eup %8090  ;;  %v6809_v40 = vcombine.low %v8085_v29, %v8089_v36  ;;  %6270 = vmatpush1.bf16.msra.mxu0 %v7078_v28  ;;  %6311 = vmatpush1.bf16.msra.mxu1 %v7080_v30  ;;  %v559_v28 = vld [vmem:[%s10953_s1 + $0x10f8] sm:$0xff]  ;;  %v7463_v36 = vcombine.high %v558_v24, %v590_v25 }
 0x327   :  { %v6810_v42 = vcombine.low %v8087_v32, %v8091_v39  ;;  %6271 = vmatprep.subr.bf16.mxu0 %v7015_v31  ;;  %6312 = vmatprep.subr.bf16.mxu1 %v7017_v33  ;;  %v591_v29 = vld [vmem:[%s10953_s1 + $0x11f8] sm:$0xff]  ;;  %v7526_v32 = vcombine.low %v622_v9, %v654_v10  ;;  %v7462_v39 = vcombine.low %v558_v24, %v590_v25 }
 0x328   :  { %6873 = vst [vmem:[%s10956_s3 + $0xa0] sm:$0x77] %v6809_v40  ;;  %v7465_v38 = vcombine.high %v559_v28, %v591_v29  ;;  %v7464_v40 = vcombine.low %v559_v28, %v591_v29 }
 0x329   :  { %6874 = vst [vmem:[%s10956_s3 + $0xa8] sm:$0x77] %v6810_v42 }
 0x32a   :  { %6272 = vmatpush1.bf16.msra.mxu0 %v7014_v41  ;;  %6313 = vmatpush1.bf16.msra.mxu1 %v7016_v43  ;;  %v8176_v41 = vld.sshfl [vmem:[%s10954_s0] sm:$0x33 pattern:$0x76325410] }
 0x32b   :  { %6273 = vmatprep.subr.bf16.mxu0 %v6951_v45  ;;  %6314 = vmatprep.subr.bf16.mxu1 %v6953_v46 }
 0x32e   :  { %6274 = vmatpush1.bf16.msra.mxu0 %v6950_v50  ;;  %6315 = vmatpush1.bf16.msra.mxu1 %v6952_v51 }
 0x32f   :  { %7782 = vmatprep.subr.msk.bf16.mxu0 %vm4836_vm1, %v7719_v52  ;;  %7784 = vmatprep.subr.msk.bf16.mxu1 %vm4836_vm1, %v7721_v19 }
 0x332   :  { %6282 = vmatpush2.bf16.msra.mxu0 %v5018_v60  ;;  %6323 = vmatpush2.bf16.msra.mxu1 %v5024_v26 }
 0x333   :  { %6283 = vmatprep.subr.bf16.mxu0 %v7655_v61  ;;  %6324 = vmatprep.subr.bf16.mxu1 %v7657_v63 }
 0x335   :  { %v5965_v47 = vpop.f32.mrf.mxu0  ;;  %v6006_v14 = vpop.f32.mrf.mxu1 }
 0x336   :  { %v5966_v13 = vadd.f32 %v5965_v47, %v8989_v5  ;;  %6284 = vmatpush2.bf16.msra.mxu0 %v7654_v4  ;;  %v6007_v16 = vadd.f32 %v6006_v14, %v8989_v5  ;;  %6325 = vmatpush2.bf16.msra.mxu1 %v7656_v6 }
 0x337   :  { %v5967_v17 = vpop.f32.mrf.mxu0  ;;  %6285 = vmatprep.subr.bf16.mxu0 %v7591_v7  ;;  %v6008_v22 = vpop.f32.mrf.mxu1  ;;  %6326 = vmatprep.subr.bf16.mxu1 %v7593_v8 }
 0x338   :  { %v7830_v20 = vmul.f32 -1.442695, %v5966_v13  ;;  %v5968_v21 = vadd.f32 %v5967_v17, %v8989_v5  ;;  %v7832_v54 = vmul.f32 -1.442695, %v6007_v16  ;;  %v6009_v27 = vadd.f32 %v6008_v22, %v8989_v5 }
 0x339   :  { %v5969_v44 = vpop.f32.mrf.mxu0  ;;  %v6010_v31 = vpop.f32.mrf.mxu1 }
 0x33a   :  { %8092 = vpow2.f32 %v7830_v20  ;;  %v7831_v30 = vmul.f32 -1.442695, %v5968_v21  ;;  %6286 = vmatpush2.bf16.msra.mxu0 %v7590_v15  ;;  %v7833_v33 = vmul.f32 -1.442695, %v6009_v27  ;;  %6327 = vmatpush2.bf16.msra.mxu1 %v7592_v18 }
 0x33b   :  { %8094 = vpow2.f32 %v7832_v54  ;;  %v5970_v34 = vpop.f32.mrf.mxu0  ;;  %6287 = vmatprep.subr.bf16.mxu0 %v7527_v62  ;;  %v6011_v37 = vpop.f32.mrf.mxu1  ;;  %6328 = vmatprep.subr.bf16.mxu1 %v7529_v23 }
 0x33c   :  { %8096 = vpow2.f32 %v7831_v30 }
 0x33d   :  { %8098 = vpow2.f32 %v7833_v33 }
 0x33e   :  { %6288 = vmatpush2.bf16.msra.mxu0 %v7526_v32  ;;  %6329 = vmatpush2.bf16.msra.mxu1 %v7528_v35 }
 0x33f   :  { %6289 = vmatprep.subr.bf16.mxu0 %v7463_v36  ;;  %6330 = vmatprep.subr.bf16.mxu1 %v7465_v38 }
 0x342   :  { %6290 = vmatpush2.bf16.msra.mxu0 %v7462_v39  ;;  %6331 = vmatpush2.bf16.msra.mxu1 %v7464_v40 }
 0x345   :  { %6292 = vmatmul.mubr.bf16.vlgmr.msra.gmra.mxu0 %v8176_v41  ;;  %6333 = vmatmul.mubr.bf16.vlgmr.msra.gmra.mxu1 %v8176_v41 }
 0x347   :  { %v8093_v42 = vpop.eup %8092 }
 0x348   :  { %v8095_v43 = vpop.eup %8094  ;;  %v6577_v45 = vadd.f32 1.0, %v8093_v42 }
 0x349   :  { %v8097_v46 = vpop.eup %8096  ;;  %v6579_v48 = vadd.f32 1.0, %v8095_v43 }
 0x34a   :  { %v8099_v49 = vpop.eup %8098  ;;  %8100 = vrcp.f32 %v6577_v45  ;;  %v6578_v50 = vadd.f32 1.0, %v8097_v46 }
 0x34b   :  { %8102 = vrcp.f32 %v6579_v48  ;;  %v6580_v51 = vadd.f32 1.0, %v8099_v49 }
 0x34c   :  { %8104 = vrcp.f32 %v6578_v50 }
 0x34d   :  { %8106 = vrcp.f32 %v6580_v51 }
 0x357   :  { %v8101_v52 = vpop.eup %8100 }
 0x358   :  { %v8103_v53 = vpop.eup %8102 }
 0x359   :  { %v8105_v19 = vpop.eup %8104 }
 0x35a   :  { %v8107_v55 = vpop.eup %8106  ;;  %v6811_v56 = vcombine.low %v8101_v52, %v8105_v19 }
 0x35b   :  { %v6812_v57 = vcombine.low %v8103_v53, %v8107_v55 }
 0x35c   :  { %6875 = vst [vmem:[%s10956_s3 + $0xb0] sm:$0x77] %v6811_v56 }
 0x35d   :  { %6876 = vst [vmem:[%s10956_s3 + $0xb8] sm:$0x77] %v6812_v57 }
 0x369   :  { %v6047_v58 = vpop.f32.mrf.mxu0  ;;  %v6088_v60 = vpop.f32.mrf.mxu1 }
 0x36a   :  { %v6048_v59 = vadd.f32 %v6047_v58, %v8989_v5  ;;  %v6089_v61 = vadd.f32 %v6088_v60, %v8989_v5 }
 0x36b   :  { %v6049_v26 = vpop.f32.mrf.mxu0  ;;  %v6090_v1 = vpop.f32.mrf.mxu1 }
 0x36c   :  { %v7834_v63 = vmul.f32 -1.442695, %v6048_v59  ;;  %v6050_v0 = vadd.f32 %v6049_v26, %v8989_v5  ;;  %v7836_v2 = vmul.f32 -1.442695, %v6089_v61  ;;  %v6091_v3 = vadd.f32 %v6090_v1, %v8989_v5 }
 0x36d   :  { %v6051_v4 = vpop.f32.mrf.mxu0  ;;  %v6092_v7 = vpop.f32.mrf.mxu1 }
 0x36e   :  { %8108 = vpow2.f32 %v7834_v63  ;;  %v7835_v6 = vmul.f32 -1.442695, %v6050_v0  ;;  %v7837_v8 = vmul.f32 -1.442695, %v6091_v3 }
 0x36f   :  { %8110 = vpow2.f32 %v7836_v2  ;;  %v6052_v9 = vpop.f32.mrf.mxu0  ;;  %v6093_v10 = vpop.f32.mrf.mxu1 }
 0x370   :  { %8112 = vpow2.f32 %v7835_v6 }
 0x371   :  { %8114 = vpow2.f32 %v7837_v8 }
 0x37b   :  { %v8109_v47 = vpop.eup %8108 }
 0x37c   :  { %v8111_v11 = vpop.eup %8110  ;;  %v6581_v12 = vadd.f32 1.0, %v8109_v47 }
 0x37d   :  { %v8113_v13 = vpop.eup %8112  ;;  %v6583_v14 = vadd.f32 1.0, %v8111_v11 }
 0x37e   :  { %v8115_v15 = vpop.eup %8114  ;;  %8116 = vrcp.f32 %v6581_v12  ;;  %v6582_v16 = vadd.f32 1.0, %v8113_v13 }
 0x37f   :  { %8118 = vrcp.f32 %v6583_v14  ;;  %v6584_v17 = vadd.f32 1.0, %v8115_v15 }
 0x380   :  { %8120 = vrcp.f32 %v6582_v16 }
 0x381   :  { %8122 = vrcp.f32 %v6584_v17 }
 0x38b   :  { %v8117_v18 = vpop.eup %8116 }
 0x38c   :  { %v8119_v62 = vpop.eup %8118 }
 0x38d   :  { %v8121_v20 = vpop.eup %8120 }
 0x38e   :  { %v8123_v21 = vpop.eup %8122  ;;  %v6813_v22 = vcombine.low %v8117_v18, %v8121_v20 }
 0x38f   :  { %v6814_v23 = vcombine.low %v8119_v62, %v8123_v21 }
 0x390   :  { %6877 = vst [vmem:[%s10956_s3 + $0xc0] sm:$0x77] %v6813_v22 }
 0x391   :  { %6878 = vst [vmem:[%s10956_s3 + $0xc8] sm:$0x77] %v6814_v23 }
 0x39d   :  { %v6129_v24 = vpop.f32.mrf.mxu0  ;;  %v6170_v54 = vpop.f32.mrf.mxu1 }
 0x39e   :  { %v6130_v25 = vadd.f32 %v6129_v24, %v8989_v5  ;;  %v6171_v27 = vadd.f32 %v6170_v54, %v8989_v5 }
 0x39f   :  { %v6131_v44 = vpop.f32.mrf.mxu0  ;;  %v6172_v30 = vpop.f32.mrf.mxu1 }
 0x3a0   :  { %v7838_v28 = vmul.f32 -1.442695, %v6130_v25  ;;  %v6132_v29 = vadd.f32 %v6131_v44, %v8989_v5  ;;  %v7840_v31 = vmul.f32 -1.442695, %v6171_v27  ;;  %v6173_v32 = vadd.f32 %v6172_v30, %v8989_v5 }
 0x3a1   :  { %v6133_v33 = vpop.f32.mrf.mxu0  ;;  %v6174_v35 = vpop.f32.mrf.mxu1 }
 0x3a2   :  { %8124 = vpow2.f32 %v7838_v28  ;;  %v7839_v34 = vmul.f32 -1.442695, %v6132_v29  ;;  %v7841_v36 = vmul.f32 -1.442695, %v6173_v32 }
 0x3a3   :  { %8126 = vpow2.f32 %v7840_v31  ;;  %v6134_v37 = vpop.f32.mrf.mxu0  ;;  %v6175_v38 = vpop.f32.mrf.mxu1 }
 0x3a4   :  { %8128 = vpow2.f32 %v7839_v34 }
 0x3a5   :  { %8130 = vpow2.f32 %v7841_v36 }
 0x3af   :  { %v8125_v39 = vpop.eup %8124 }
 0x3b0   :  { %v8127_v40 = vpop.eup %8126  ;;  %v6585_v41 = vadd.f32 1.0, %v8125_v39 }
 0x3b1   :  { %v8129_v42 = vpop.eup %8128  ;;  %v6587_v43 = vadd.f32 1.0, %v8127_v40 }
 0x3b2   :  { %v8131_v45 = vpop.eup %8130  ;;  %8132 = vrcp.f32 %v6585_v41  ;;  %v6586_v46 = vadd.f32 1.0, %v8129_v42 }
 0x3b3   :  { %8134 = vrcp.f32 %v6587_v43  ;;  %v6588_v48 = vadd.f32 1.0, %v8131_v45 }
 0x3b4   :  { %8136 = vrcp.f32 %v6586_v46 }
 0x3b5   :  { %8138 = vrcp.f32 %v6588_v48 }
 0x3bf   :  { %v8133_v49 = vpop.eup %8132 }
 0x3c0   :  { %v8135_v50 = vpop.eup %8134 }
 0x3c1   :  { %v8137_v51 = vpop.eup %8136 }
 0x3c2   :  { %v8139_v52 = vpop.eup %8138  ;;  %v6815_v53 = vcombine.low %v8133_v49, %v8137_v51 }
 0x3c3   :  { %v6816_v19 = vcombine.low %v8135_v50, %v8139_v52 }
 0x3c4   :  { %6879 = vst [vmem:[%s10956_s3 + $0xd0] sm:$0x77] %v6815_v53 }
 0x3c5   :  { %6880 = vst [vmem:[%s10956_s3 + $0xd8] sm:$0x77] %v6816_v19 }
 0x3d1   :  { %v6211_v55 = vpop.f32.mrf.mxu0  ;;  %v6252_v57 = vpop.f32.mrf.mxu1 }
 0x3d2   :  { %v6212_v56 = vadd.f32 %v6211_v55, %v8989_v5  ;;  %v6253_v58 = vadd.f32 %v6252_v57, %v8989_v5 }
 0x3d3   :  { %v6213_v59 = vpop.f32.mrf.mxu0  ;;  %v6254_v26 = vpop.f32.mrf.mxu1 }
 0x3d4   :  { %v7842_v60 = vmul.f32 -1.442695, %v6212_v56  ;;  %v6214_v61 = vadd.f32 %v6213_v59, %v8989_v5  ;;  %v7844_v63 = vmul.f32 -1.442695, %v6253_v58  ;;  %v6255_v0 = vadd.f32 %v6254_v26, %v8989_v5 }
 0x3d5   :  { %v6215_v1 = vpop.f32.mrf.mxu0  ;;  %v6256_v3 = vpop.f32.mrf.mxu1 }
 0x3d6   :  { %8140 = vpow2.f32 %v7842_v60  ;;  %v7843_v2 = vmul.f32 -1.442695, %v6214_v61  ;;  %v7845_v4 = vmul.f32 -1.442695, %v6255_v0 }
 0x3d7   :  { %8142 = vpow2.f32 %v7844_v63  ;;  %v6216_v6 = vpop.f32.mrf.mxu0  ;;  %v6257_v7 = vpop.f32.mrf.mxu1 }
 0x3d8   :  { %8144 = vpow2.f32 %v7843_v2 }
 0x3d9   :  { %8146 = vpow2.f32 %v7845_v4 }
 0x3e3   :  { %v8141_v8 = vpop.eup %8140 }
 0x3e4   :  { %v8143_v9 = vpop.eup %8142  ;;  %v6589_v10 = vadd.f32 1.0, %v8141_v8 }
 0x3e5   :  { %v8145_v47 = vpop.eup %8144  ;;  %v6591_v11 = vadd.f32 1.0, %v8143_v9 }
 0x3e6   :  { %v8147_v12 = vpop.eup %8146  ;;  %8148 = vrcp.f32 %v6589_v10  ;;  %v6590_v13 = vadd.f32 1.0, %v8145_v47 }
 0x3e7   :  { %8150 = vrcp.f32 %v6591_v11  ;;  %v6592_v14 = vadd.f32 1.0, %v8147_v12 }
 0x3e8   :  { %8152 = vrcp.f32 %v6590_v13 }
 0x3e9   :  { %8154 = vrcp.f32 %v6592_v14 }
 0x3f3   :  { %v8149_v15 = vpop.eup %8148 }
 0x3f4   :  { %v8151_v16 = vpop.eup %8150 }
 0x3f5   :  { %v8153_v17 = vpop.eup %8152 }
 0x3f6   :  { %v8155_v18 = vpop.eup %8154  ;;  %v6817_v62 = vcombine.low %v8149_v15, %v8153_v17 }
 0x3f7   :  { %v6818_v20 = vcombine.low %v8151_v16, %v8155_v18 }
 0x3f8   :  { %6881 = vst [vmem:[%s10956_s3 + $0xe0] sm:$0x77] %v6817_v62 }
 0x3f9   :  { %6882 = vst [vmem:[%s10956_s3 + $0xe8] sm:$0x77] %v6818_v20 }
 0x405   :  { %v6293_v21 = vpop.f32.mrf.mxu0  ;;  %v6334_v23 = vpop.f32.mrf.mxu1 }
 0x406   :  { %v6294_v22 = vadd.f32 %v6293_v21, %v8989_v5  ;;  %v6335_v24 = vadd.f32 %v6334_v23, %v8989_v5 }
 0x407   :  { %v6295_v25 = vpop.f32.mrf.mxu0  ;;  %v6336_v44 = vpop.f32.mrf.mxu1 }
 0x408   :  { %v7846_v54 = vmul.f32 -1.442695, %v6294_v22  ;;  %v6296_v27 = vadd.f32 %v6295_v25, %v8989_v5  ;;  %v7848_v28 = vmul.f32 -1.442695, %v6335_v24  ;;  %v6337_v29 = vadd.f32 %v6336_v44, %v8989_v5 }
 0x409   :  { %v6297_v30 = vpop.f32.mrf.mxu0  ;;  %v6338_v32 = vpop.f32.mrf.mxu1 }
 0x40a   :  { %8156 = vpow2.f32 %v7846_v54  ;;  %v7847_v31 = vmul.f32 -1.442695, %v6296_v27  ;;  %v7849_v33 = vmul.f32 -1.442695, %v6337_v29 }
 0x40b   :  { %8158 = vpow2.f32 %v7848_v28  ;;  %v6298_v34 = vpop.f32.mrf.mxu0  ;;  %v6339_v35 = vpop.f32.mrf.mxu1 }
 0x40c   :  { %8160 = vpow2.f32 %v7847_v31 }
 0x40d   :  { %8162 = vpow2.f32 %v7849_v33 }
 0x417   :  { %v8157_v36 = vpop.eup %8156 }
 0x418   :  { %v8159_v37 = vpop.eup %8158  ;;  %v6593_v38 = vadd.f32 1.0, %v8157_v36 }
 0x419   :  { %v8161_v39 = vpop.eup %8160  ;;  %v6595_v40 = vadd.f32 1.0, %v8159_v37 }
 0x41a   :  { %v8163_v41 = vpop.eup %8162  ;;  %8164 = vrcp.f32 %v6593_v38  ;;  %v6594_v42 = vadd.f32 1.0, %v8161_v39 }
 0x41b   :  { %8166 = vrcp.f32 %v6595_v40  ;;  %v6596_v5 = vadd.f32 1.0, %v8163_v41 }
 0x41c   :  { %8168 = vrcp.f32 %v6594_v42 }
 0x41d   :  { %8170 = vrcp.f32 %v6596_v5 }
 0x427   :  { %v8165_v43 = vpop.eup %8164 }
 0x428   :  { %v8167_v45 = vpop.eup %8166 }
 0x429   :  { %v8169_v46 = vpop.eup %8168 }
 0x42a   :  { %v8171_v48 = vpop.eup %8170  ;;  %v6819_v49 = vcombine.low %v8165_v43, %v8169_v46 }
 0x42b   :  { %v6820_v50 = vcombine.low %v8167_v45, %v8171_v48 }
 0x42c   :  { %6883 = vst [vmem:[%s10956_s3 + $0xf0] sm:$0x77] %v6819_v49 }
 0x42d   :  { %6884 = vst [vmem:[%s10956_s3 + $0xf8] sm:$0x77] %v6820_v50 }

</bundles_post_ra>
